<compile_context>
chip_gen: v7x
topology: tpu7x:2x2x1
jax: 0.10.0
libtpu: 0.0.40
codegen_flags: <defaults>
</compile_context>

<pallas_src>
import numpy as np

import jax
import jax.numpy as jnp
from jax import lax
from jax.experimental import pallas as pl
from jax.experimental.pallas import tpu as pltpu

# ------------------------- configuration -------------------------
B, C, H, W = 2, 32, 8, 8            # GroupNorm32 requires C % 32 == 0
HEADS, D_HEAD = 4, 8
D_MODEL = HEADS * D_HEAD            # inner_dim; must equal C for this module
N_TOK = H * W
FF_INNER = D_MODEL * 4              # FeedForward mult=4
GN_GROUPS = 32
EPS = 1e-5
RES_GAIN = 1.0
assert D_MODEL == C and C % GN_GROUPS == 0

# ---- (32, 512) matrix-slab column offsets ----
W_PI = 0                            # proj_in                       (32,  32)
W_A1QV = W_PI + D_MODEL             # attn1 [Wq | Wv]               (32,  64)
W_A1O = W_A1QV + 2 * D_MODEL        # attn1 Wo                      (32,  32)
W_A2QV = W_A1O + D_MODEL            # attn2 [Wq | Wv]               (32,  64)
W_A2O = W_A2QV + 2 * D_MODEL        # attn2 Wo                      (32,  32)
W_PO = W_A2O + D_MODEL              # proj_out                      (32,  32)
W_FFG = W_PO + D_MODEL              # GEGLU Wg                      (32, 256)
W_COLS = W_FFG + 2 * FF_INNER       # 512

# ---- (16, 256) vector-slab row indices ----
(R_GN_G, R_GN_B, R_B_PI,
 R_A1_LNG, R_A1_LNB, R_A1_BQV, R_A1_BO,
 R_A2_LNG, R_A2_LNB, R_A2_BQV, R_A2_BO,
 R_FF_LNG, R_FF_LNB, R_FF_BG, R_FF_B2,
 R_B_PO) = range(16)
VEC_ROWS = 16
VEC_W = 2 * FF_INNER                # 256 lanes


# ------------------------- in-kernel helpers -------------------------
def _erf_poly(x):
    # Abramowitz & Stegun 7.1.26 (max abs err ~1.5e-7); avoids relying on a
    # lax.erf lowering inside Mosaic.
    a1, a2, a3, a4, a5 = (0.254829592, -0.284496736, 1.421413741,
                          -1.453152027, 1.061405429)
    p = 0.3275911
    ax = jnp.abs(x)
    t = 1.0 / (1.0 + p * ax)
    poly = ((((a5 * t + a4) * t + a3) * t + a2) * t + a1) * t
    y = 1.0 - poly * jnp.exp(-ax * ax)
    return jnp.where(x >= 0.0, y, -y)


def _gelu_exact(x):
    # matches torch F.gelu (erf form) used inside GEGLU
    return 0.5 * x * (1.0 + _erf_poly(x * 0.7071067811865476))


def _layernorm(x, g, b):
    mu = jnp.mean(x, axis=-1, keepdims=True)
    var = jnp.mean((x - mu) ** 2, axis=-1, keepdims=True)
    return (x - mu) * lax.rsqrt(var + EPS) * g + b


def _cat(xs, axis):
    return xs[0] if len(xs) == 1 else jnp.concatenate(xs, axis=axis)


# ------------------------- fused Pallas kernel -------------------------
def _spatial_transformer_kernel(x_ref, w_ref, vec_ref, w2_ref, o_ref):
    bs, c, hw = x_ref.shape
    f32 = jnp.float32

    def vrow(r, width):                       # (1, width) bias / affine row
        return vec_ref[r:r + 1, :width]

    def wcol(c0, width):                      # (32, width) weight slice
        return w_ref[:, c0:c0 + width]

    # Identity mask, hoisted once: used to read diag(Q Q^T) in every head.
    rid = lax.broadcasted_iota(jnp.int32, (hw, hw), 0)
    cid = lax.broadcasted_iota(jnp.int32, (hw, hw), 1)
    eye = (rid == cid).astype(f32)

    # ---- GroupNorm32 (1 channel/group -> per-channel stats over H*W) and
    #      'b c (h w) -> (h w) c' transpose; batch elements sublane-stacked ----
    x_res = []
    toks = []
    for b in range(bs):
        xb = x_ref[b]                                            # (C, HW)
        mu = jnp.mean(xb, axis=1, keepdims=True)
        var = jnp.mean((xb - mu) ** 2, axis=1, keepdims=True)
        toks.append(jnp.transpose((xb - mu) * lax.rsqrt(var + EPS)))   # (HW, C)
        x_res.append(xb)
    tok = _cat(toks, axis=0)                                     # (bs*HW, C)
    # per-channel GN affine == lane-wise after the transpose
    tok = tok * vrow(R_GN_G, c) + vrow(R_GN_B, c)

    # ---- proj_in ----
    tok = jnp.dot(tok, wcol(W_PI, D_MODEL),
                  preferred_element_type=f32) + vrow(R_B_PI, D_MODEL)

    # ---- L2 cross-attention block (self, k == q), residual included ----
    def attn_block(x, qv_c0, o_c0, r_lng, r_lnb, r_bqv, r_bo):
        xn = _layernorm(x, vrow(r_lng, D_MODEL), vrow(r_lnb, D_MODEL))
        # fused Q|V projection: one (bs*N,32)@(32,64) matmul
        qv = jnp.dot(xn, wcol(qv_c0, 2 * D_MODEL),
                     preferred_element_type=f32) + vrow(r_bqv, 2 * D_MODEL)
        scale = D_HEAD ** -0.5
        dn = (((1,), (1,)), ((), ()))        # contract last dims: A @ B^T
        per_batch = []
        for b in range(bs):
            r0 = b * hw
            heads = []
            for h in range(HEADS):
                lo = h * D_HEAD
                qh = qv[r0:r0 + hw, lo:lo + D_HEAD]                        # (N,dh)
                vh = qv[r0:r0 + hw, D_MODEL + lo:D_MODEL + lo + D_HEAD]    # (N,dh)
                ab = lax.dot_general(qh, qh, dn,
                                     preferred_element_type=f32)           # (N,N)
                d = ab * eye                         # diag(AB) = squared norms
                aa_col = jnp.sum(d, axis=1, keepdims=True)                 # (N,1)
                bb_row = jnp.sum(d, axis=0, keepdims=True)                 # (1,N)
                # sim[i,j] = -(||q_i||^2 - 2 q_i.q_j + ||q_j||^2)*scale <= 0,
                # diagonal exactly 0 -> exp() never overflows, denom >= 1,
                # so no row-max subtraction and no matrix transpose needed.
                sim = (2.0 * ab - aa_col - bb_row) * scale
                p = jnp.exp(sim)
                p = p * pl.reciprocal(jnp.sum(p, axis=-1, keepdims=True),
                                      approx=False)
                heads.append(jnp.dot(p, vh, preferred_element_type=f32))   # (N,dh)
            per_batch.append(_cat(heads, axis=-1))                         # (N,D)
        o_all = _cat(per_batch, axis=0)                                    # (bs*N,D)
        # ONE consolidated output projection for all heads (and all batches).
        return x + jnp.dot(o_all, wcol(o_c0, D_MODEL),
                           preferred_element_type=f32) + vrow(r_bo, D_MODEL)

    tok = attn_block(tok, W_A1QV, W_A1O, R_A1_LNG, R_A1_LNB, R_A1_BQV, R_A1_BO)
    tok = attn_block(tok, W_A2QV, W_A2O, R_A2_LNG, R_A2_LNB, R_A2_BQV, R_A2_BO)

    # ---- GEGLU feed-forward, residual included ----
    xn = _layernorm(tok, vrow(R_FF_LNG, D_MODEL), vrow(R_FF_LNB, D_MODEL))
    pr = jnp.dot(xn, wcol(W_FFG, 2 * FF_INNER),
                 preferred_element_type=f32) + vrow(R_FF_BG, 2 * FF_INNER)
    hg = pr[:, :FF_INNER] * _gelu_exact(pr[:, FF_INNER:])
    tok = tok + jnp.dot(hg, w2_ref[...],
                        preferred_element_type=f32) + vrow(R_FF_B2, D_MODEL)

    # ---- proj_out ----
    tok = jnp.dot(tok, wcol(W_PO, c),
                  preferred_element_type=f32) + vrow(R_B_PO, c)

    # ---- '(h w) c -> c (h w)' + fused residual with the original input ----
    for b in range(bs):
        o_ref[b] = jnp.transpose(tok[b * hw:(b + 1) * hw, :]) + x_res[b] * RES_GAIN


# ------------------------- weight packing (3 lane-dense slabs) -------------------------
def _pack_params(params):
    a1, a2, ff = params["attn1"], params["attn2"], params["ff"]

    def wqv(p):
        return jnp.concatenate([p["wq"], p["wv"]], axis=1)        # (32, 64)

    w_slab = jnp.concatenate(
        [params["wpi"], wqv(a1), a1["wo"], wqv(a2), a2["wo"],
         params["wpo"], ff["wg"]], axis=1).astype(jnp.float32)    # (32, 512)
    assert w_slab.shape == (D_MODEL, W_COLS)

    def row(v):
        v = jnp.reshape(v, (1, -1)).astype(jnp.float32)
        return jnp.pad(v, ((0, 0), (0, VEC_W - v.shape[1])))

    vec_slab = jnp.concatenate([
        row(params["gn_g"]), row(params["gn_b"]), row(params["bpi"]),
        row(a1["ln_g"]), row(a1["ln_b"]),
        row(jnp.concatenate([a1["bq"], a1["bv"]], axis=1)), row(a1["bo"]),
        row(a2["ln_g"]), row(a2["ln_b"]),
        row(jnp.concatenate([a2["bq"], a2["bv"]], axis=1)), row(a2["bo"]),
        row(ff["ln_g"]), row(ff["ln_b"]), row(ff["bg"]), row(ff["b2"]),
        row(params["bpo"]),
    ], axis=0)                                                    # (16, 256)
    assert vec_slab.shape == (VEC_ROWS, VEC_W)

    return w_slab, vec_slab, ff["w2"].astype(jnp.float32)         # w2: (128, 32)


# ------------------------- pallas_call wrapper -------------------------
def _default_batch_per_step(total_batch):
    # Dual-TensorCore chips (v4/v5p/v7x): 1 element/step so grid "parallel"
    # spreads the batch over the cores.  Single-TC chips (v5e/v6e): stack the
    # whole batch into one step (perf heuristic only; both paths are correct).
    try:
        kind = jax.devices()[0].device_kind.lower()
    except Exception:
        kind = ""
    dual_tc = any(t in kind for t in ("v4", "v5p", "v7", "7x"))
    return 1 if dual_tc else total_batch


def spatial_transformer_pallas(x, params, batch_per_step=None):
    Bn, Cc, Hh, Ww = x.shape
    hw = Hh * Ww
    bs = batch_per_step if batch_per_step is not None else _default_batch_per_step(Bn)
    bs = max(1, min(int(bs), Bn))
    while Bn % bs:
        bs -= 1

    x_flat = x.reshape(Bn, Cc, hw).astype(jnp.float32)            # contiguous view
    w_slab, vec_slab, w2 = _pack_params(params)

    out = pl.pallas_call(
        _spatial_transformer_kernel,
        out_shape=jax.ShapeDtypeStruct((Bn, Cc, hw), jnp.float32),
        grid=(Bn // bs,),
        in_specs=[
            pl.BlockSpec((bs, Cc, hw), lambda i: (i, 0, 0)),
            pl.BlockSpec(w_slab.shape, lambda i: (0, 0)),
            pl.BlockSpec(vec_slab.shape, lambda i: (0, 0)),
            pl.BlockSpec(w2.shape, lambda i: (0, 0)),
        ],
        out_specs=pl.BlockSpec((bs, Cc, hw), lambda i: (i, 0, 0)),
        compiler_params=pltpu.CompilerParams(
            dimension_semantics=("parallel",)),
    )(x_flat, w_slab, vec_slab, w2)

    return out.reshape(Bn, Cc, Hh, Ww)


# ------------------------- pure-JAX reference -------------------------
def _ref_ln(x, p):
    mu = jnp.mean(x, -1, keepdims=True)
    var = jnp.mean((x - mu) ** 2, -1, keepdims=True)
    return (x - mu) / jnp.sqrt(var + EPS) * p["ln_g"] + p["ln_b"]


def _ref_attn(xn, p):
    q = xn @ p["wq"] + p["bq"]
    v = xn @ p["wv"] + p["bv"]
    Bn, N, D = q.shape
    qh = q.reshape(Bn, N, HEADS, D_HEAD).transpose(0, 2, 1, 3)
    vh = v.reshape(Bn, N, HEADS, D_HEAD).transpose(0, 2, 1, 3)
    ab = jnp.einsum("bhnd,bhmd->bhnm", qh, qh)
    aa = jnp.sum(qh * qh, -1, keepdims=True)
    sim = -(aa - 2.0 * ab + jnp.swapaxes(aa, -1, -2)) * (D_HEAD ** -0.5)
    w = jax.nn.softmax(sim, axis=-1)
    out = jnp.einsum("bhnm,bhmd->bhnd", w, vh)
    out = out.transpose(0, 2, 1, 3).reshape(Bn, N, D)
    return out @ p["wo"] + p["bo"]


def _ref_ff(xn, p):
    y = xn @ p["wg"] + p["bg"]
    a, g = y[..., :FF_INNER], y[..., FF_INNER:]
    h = a * jax.nn.gelu(g, approximate=False)
    return h @ p["w2"] + p["b2"]


def _ref_forward(x, params):
    x_in = x
    xg = x.reshape(B, GN_GROUPS, -1)
    mu = jnp.mean(xg, -1, keepdims=True)
    var = jnp.mean((xg - mu) ** 2, -1, keepdims=True)
    xg = ((xg - mu) / jnp.sqrt(var + EPS)).reshape(B, C, H, W)
    xg = xg * params["gn_g"].reshape(1, C, 1, 1) + params["gn_b"].reshape(1, C, 1, 1)
    tok = xg.reshape(B, C, H * W).transpose(0, 2, 1)
    tok = tok @ params["wpi"] + params["bpi"]
    tok = _ref_attn(_ref_ln(tok, params["attn1"]), params["attn1"]) + tok
    tok = _ref_attn(_ref_ln(tok, params["attn2"]), params["attn2"]) + tok
    tok = _ref_ff(_ref_ln(tok, params["ff"]), params["ff"]) + tok
    tok = tok @ params["wpo"] + params["bpo"]
    out = tok.reshape(B, H, W, C).transpose(0, 3, 1, 2)
    return out + x_in * RES_GAIN


# ------------------------- deterministic parameter init -------------------------
def _init_params(key):
    ks = iter(jax.random.split(key, 48))

    def wmat(shape, fan_in):
        return jax.random.normal(next(ks), shape, jnp.float32) / jnp.sqrt(float(fan_in))

    def bvec(shape):
        return 0.02 * jax.random.normal(next(ks), shape, jnp.float32)

    def ln():
        return {"ln_g": 1.0 + 0.1 * jax.random.normal(next(ks), (1, D_MODEL), jnp.float32),
                "ln_b": 0.1 * jax.random.normal(next(ks), (1, D_MODEL), jnp.float32)}

    def attn():
        p = ln()
        p.update({"wq": wmat((D_MODEL, D_MODEL), D_MODEL), "bq": bvec((1, D_MODEL)),
                  "wv": wmat((D_MODEL, D_MODEL), D_MODEL), "bv": bvec((1, D_MODEL)),
                  "wo": wmat((D_MODEL, D_MODEL), D_MODEL), "bo": bvec((1, D_MODEL))})
        return p

    return {
        "gn_g": 1.0 + 0.1 * jax.random.normal(next(ks), (C,), jnp.float32),
        "gn_b": 0.1 * jax.random.normal(next(ks), (C,), jnp.float32),
        "wpi": wmat((C, D_MODEL), C), "bpi": bvec((1, D_MODEL)),
        "attn1": attn(),
        "attn2": attn(),
        "ff": {**ln(),
               "wg": wmat((D_MODEL, 2 * FF_INNER), D_MODEL), "bg": bvec((1, 2 * FF_INNER)),
               "w2": wmat((FF_INNER, D_MODEL), FF_INNER), "b2": bvec((1, D_MODEL))},
        # NOTE: the PyTorch __init__ zero-inits proj_out (zero_module), which would
        # make the block an identity; deterministic non-zero weights are used so the
        # kernel compute path is exercised.  Forward semantics are unchanged.
        "wpo": wmat((D_MODEL, C), D_MODEL), "bpo": bvec((1, C)),
    }


# ------------------------- main -------------------------
if __name__ == "__main__":
    key = jax.random.PRNGKey(0)
    pkey, xkey = jax.random.split(key)
    params = _init_params(pkey)
    x = jax.random.normal(xkey, (B, C, H, W), jnp.float32)

    out = jax.jit(spatial_transformer_pallas)(x, params)
    out = jax.block_until_ready(out)

    ref = _ref_forward(x, params)
    assert out.shape == (B, C, H, W) and out.dtype == jnp.float32
    np.testing.assert_allclose(np.asarray(out), np.asarray(ref), rtol=2e-3, atol=2e-3)
    print("KERNEL_OK")
</pallas_src>

<mosaic_0001>
module attributes {stable_mosaic.version = 11 : i64} {
  func.func @_spatial_transformer_kernel(%arg0: i32, %arg1: memref<2x32x64xf32, #tpu.memory_space<vmem>>, %arg2: memref<32x512xf32, #tpu.memory_space<vmem>>, %arg3: memref<16x256xf32, #tpu.memory_space<vmem>>, %arg4: memref<128x32xf32, #tpu.memory_space<vmem>>, %arg5: memref<2x32x64xf32, #tpu.memory_space<vmem>>) attributes {dimension_semantics = [#tpu.dimension_semantics<parallel>], iteration_bounds = array<i64: 1>, scalar_prefetch = 0 : i64, scratch_operands = 0 : i64, tpu.core_type = #tpu.core_type<tc>, window_params = [{transform_indices = @transform_0, window_bounds = array<i64: 2, 32, 64>}, {pipeline_mode = #tpu.pipeline_mode<synchronous>, transform_indices = @transform_1, window_bounds = array<i64: 32, 512>}, {pipeline_mode = #tpu.pipeline_mode<synchronous>, transform_indices = @transform_2, window_bounds = array<i64: 16, 256>}, {pipeline_mode = #tpu.pipeline_mode<synchronous>, transform_indices = @transform_3, window_bounds = array<i64: 128, 32>}, {transform_indices = @transform_4, window_bounds = array<i64: 2, 32, 64>}]} {
    %0 = tpu.iota {dimensions = array<i32: 0>} : vector<64x64xi32>
    %1 = tpu.iota {dimensions = array<i32: 1>} : vector<64x64xi32>
    %2 = arith.cmpi eq, %0, %1 : vector<64x64xi32>
    %3 = arith.extui %2 : vector<64x64xi1> to vector<64x64xi32>
    %4 = arith.sitofp %3 : vector<64x64xi32> to vector<64x64xf32>
    %c0 = arith.constant 0 : index
    %c0_0 = arith.constant 0 : index
    %c0_1 = arith.constant 0 : index
    %5 = vector.load %arg1[%c0, %c0_0, %c0_1] : memref<2x32x64xf32, #tpu.memory_space<vmem>>, vector<1x32x64xf32>
    %6 = vector.shape_cast %5 : vector<1x32x64xf32> to vector<32x64xf32>
    %cst = arith.constant dense<0.000000e+00> : vector<32xf32>
    %7 = vector.multi_reduction <add>, %6, %cst [1] : vector<32x64xf32> to vector<32xf32>
    %8 = vector.shape_cast %7 : vector<32xf32> to vector<32x1xf32>
    %cst_2 = arith.constant 6.400000e+01 : f32
    %9 = vector.broadcast %cst_2 : f32 to vector<32x1xf32>
    %10 = arith.divf %8, %9 : vector<32x1xf32>
    %11 = vector.broadcast %10 : vector<32x1xf32> to vector<32x64xf32>
    %12 = arith.subf %6, %11 : vector<32x64xf32>
    %13 = arith.mulf %12, %12 : vector<32x64xf32>
    %cst_3 = arith.constant dense<0.000000e+00> : vector<32xf32>
    %14 = vector.multi_reduction <add>, %13, %cst_3 [1] : vector<32x64xf32> to vector<32xf32>
    %15 = vector.shape_cast %14 : vector<32xf32> to vector<32x1xf32>
    %cst_4 = arith.constant 6.400000e+01 : f32
    %16 = vector.broadcast %cst_4 : f32 to vector<32x1xf32>
    %17 = arith.divf %15, %16 : vector<32x1xf32>
    %18 = vector.broadcast %10 : vector<32x1xf32> to vector<32x64xf32>
    %19 = arith.subf %6, %18 : vector<32x64xf32>
    %cst_5 = arith.constant 9.99999974E-6 : f32
    %20 = vector.broadcast %cst_5 : f32 to vector<32x1xf32>
    %21 = arith.addf %17, %20 : vector<32x1xf32>
    %22 = math.rsqrt %21 : vector<32x1xf32>
    %23 = vector.broadcast %22 : vector<32x1xf32> to vector<32x64xf32>
    %24 = arith.mulf %19, %23 : vector<32x64xf32>
    %25 = tpu.transpose %24, [1, 0] : vector<32x64xf32> -> vector<64x32xf32>
    %c1 = arith.constant 1 : index
    %c0_6 = arith.constant 0 : index
    %c0_7 = arith.constant 0 : index
    %26 = vector.load %arg1[%c1, %c0_6, %c0_7] : memref<2x32x64xf32, #tpu.memory_space<vmem>>, vector<1x32x64xf32>
    %27 = vector.shape_cast %26 : vector<1x32x64xf32> to vector<32x64xf32>
    %cst_8 = arith.constant dense<0.000000e+00> : vector<32xf32>
    %28 = vector.multi_reduction <add>, %27, %cst_8 [1] : vector<32x64xf32> to vector<32xf32>
    %29 = vector.shape_cast %28 : vector<32xf32> to vector<32x1xf32>
    %cst_9 = arith.constant 6.400000e+01 : f32
    %30 = vector.broadcast %cst_9 : f32 to vector<32x1xf32>
    %31 = arith.divf %29, %30 : vector<32x1xf32>
    %32 = vector.broadcast %31 : vector<32x1xf32> to vector<32x64xf32>
    %33 = arith.subf %27, %32 : vector<32x64xf32>
    %34 = arith.mulf %33, %33 : vector<32x64xf32>
    %cst_10 = arith.constant dense<0.000000e+00> : vector<32xf32>
    %35 = vector.multi_reduction <add>, %34, %cst_10 [1] : vector<32x64xf32> to vector<32xf32>
    %36 = vector.shape_cast %35 : vector<32xf32> to vector<32x1xf32>
    %cst_11 = arith.constant 6.400000e+01 : f32
    %37 = vector.broadcast %cst_11 : f32 to vector<32x1xf32>
    %38 = arith.divf %36, %37 : vector<32x1xf32>
    %39 = vector.broadcast %31 : vector<32x1xf32> to vector<32x64xf32>
    %40 = arith.subf %27, %39 : vector<32x64xf32>
    %cst_12 = arith.constant 9.99999974E-6 : f32
    %41 = vector.broadcast %cst_12 : f32 to vector<32x1xf32>
    %42 = arith.addf %38, %41 : vector<32x1xf32>
    %43 = math.rsqrt %42 : vector<32x1xf32>
    %44 = vector.broadcast %43 : vector<32x1xf32> to vector<32x64xf32>
    %45 = arith.mulf %40, %44 : vector<32x64xf32>
    %46 = tpu.transpose %45, [1, 0] : vector<32x64xf32> -> vector<64x32xf32>
    %47 = tpu.concatenate %25, %46 in 0 : vector<64x32xf32>, vector<64x32xf32> -> vector<128x32xf32>
    %c0_13 = arith.constant 0 : index
    %c0_14 = arith.constant 0 : index
    %48 = vector.load %arg3[%c0_13, %c0_14] : memref<16x256xf32, #tpu.memory_space<vmem>>, vector<1x32xf32>
    %49 = vector.broadcast %48 : vector<1x32xf32> to vector<128x32xf32>
    %50 = arith.mulf %47, %49 : vector<128x32xf32>
    %c1_15 = arith.constant 1 : index
    %c0_16 = arith.constant 0 : index
    %51 = vector.load %arg3[%c1_15, %c0_16] : memref<16x256xf32, #tpu.memory_space<vmem>>, vector<1x32xf32>
    %52 = vector.broadcast %51 : vector<1x32xf32> to vector<128x32xf32>
    %53 = arith.addf %50, %52 : vector<128x32xf32>
    %c0_17 = arith.constant 0 : index
    %c0_18 = arith.constant 0 : index
    %54 = vector.load %arg2[%c0_17, %c0_18] : memref<32x512xf32, #tpu.memory_space<vmem>>, vector<32x32xf32>
    %cst_19 = arith.constant dense<0.000000e+00> : vector<128x32xf32>
    %55 = tpu.matmul %53, %54, %cst_19 {dimension_numbers = #tpu.dot_dimension_numbers<[1], [0], [0], [1], [0, 0, 1, 1], [], []>} : vector<128x32xf32>, vector<32x32xf32>, vector<128x32xf32> -> vector<128x32xf32>
    %c2 = arith.constant 2 : index
    %c0_20 = arith.constant 0 : index
    %56 = vector.load %arg3[%c2, %c0_20] : memref<16x256xf32, #tpu.memory_space<vmem>>, vector<1x32xf32>
    %57 = vector.broadcast %56 : vector<1x32xf32> to vector<128x32xf32>
    %58 = arith.addf %55, %57 : vector<128x32xf32>
    %c3 = arith.constant 3 : index
    %c0_21 = arith.constant 0 : index
    %59 = vector.load %arg3[%c3, %c0_21] : memref<16x256xf32, #tpu.memory_space<vmem>>, vector<1x32xf32>
    %c4 = arith.constant 4 : index
    %c0_22 = arith.constant 0 : index
    %60 = vector.load %arg3[%c4, %c0_22] : memref<16x256xf32, #tpu.memory_space<vmem>>, vector<1x32xf32>
    %cst_23 = arith.constant dense<0.000000e+00> : vector<128xf32>
    %61 = vector.multi_reduction <add>, %58, %cst_23 [1] : vector<128x32xf32> to vector<128xf32>
    %62 = vector.shape_cast %61 : vector<128xf32> to vector<128x1xf32>
    %cst_24 = arith.constant 3.200000e+01 : f32
    %63 = vector.broadcast %cst_24 : f32 to vector<128x1xf32>
    %64 = arith.divf %62, %63 : vector<128x1xf32>
    %65 = vector.broadcast %64 : vector<128x1xf32> to vector<128x32xf32>
    %66 = arith.subf %58, %65 : vector<128x32xf32>
    %67 = arith.mulf %66, %66 : vector<128x32xf32>
    %cst_25 = arith.constant dense<0.000000e+00> : vector<128xf32>
    %68 = vector.multi_reduction <add>, %67, %cst_25 [1] : vector<128x32xf32> to vector<128xf32>
    %69 = vector.shape_cast %68 : vector<128xf32> to vector<128x1xf32>
    %cst_26 = arith.constant 3.200000e+01 : f32
    %70 = vector.broadcast %cst_26 : f32 to vector<128x1xf32>
    %71 = arith.divf %69, %70 : vector<128x1xf32>
    %72 = vector.broadcast %64 : vector<128x1xf32> to vector<128x32xf32>
    %73 = arith.subf %58, %72 : vector<128x32xf32>
    %cst_27 = arith.constant 9.99999974E-6 : f32
    %74 = vector.broadcast %cst_27 : f32 to vector<128x1xf32>
    %75 = arith.addf %71, %74 : vector<128x1xf32>
    %76 = math.rsqrt %75 : vector<128x1xf32>
    %77 = vector.broadcast %76 : vector<128x1xf32> to vector<128x32xf32>
    %78 = arith.mulf %73, %77 : vector<128x32xf32>
    %79 = vector.broadcast %59 : vector<1x32xf32> to vector<128x32xf32>
    %80 = arith.mulf %78, %79 : vector<128x32xf32>
    %81 = vector.broadcast %60 : vector<1x32xf32> to vector<128x32xf32>
    %82 = arith.addf %80, %81 : vector<128x32xf32>
    %c0_28 = arith.constant 0 : index
    %c32 = arith.constant 32 : index
    %83 = vector.load %arg2[%c0_28, %c32] : memref<32x512xf32, #tpu.memory_space<vmem>>, vector<32x64xf32>
    %cst_29 = arith.constant dense<0.000000e+00> : vector<128x64xf32>
    %84 = tpu.matmul %82, %83, %cst_29 {dimension_numbers = #tpu.dot_dimension_numbers<[1], [0], [0], [1], [0, 0, 1, 1], [], []>} : vector<128x32xf32>, vector<32x64xf32>, vector<128x64xf32> -> vector<128x64xf32>
    %c5 = arith.constant 5 : index
    %c0_30 = arith.constant 0 : index
    %85 = vector.load %arg3[%c5, %c0_30] : memref<16x256xf32, #tpu.memory_space<vmem>>, vector<1x64xf32>
    %86 = vector.broadcast %85 : vector<1x64xf32> to vector<128x64xf32>
    %87 = arith.addf %84, %86 : vector<128x64xf32>
    %88 = vector.extract_strided_slice %87 {offsets = [0, 0], sizes = [64, 8], strides = [1, 1]} : vector<128x64xf32> to vector<64x8xf32>
    %89 = vector.extract_strided_slice %87 {offsets = [0, 32], sizes = [64, 8], strides = [1, 1]} : vector<128x64xf32> to vector<64x8xf32>
    %cst_31 = arith.constant dense<0.000000e+00> : vector<64x64xf32>
    %90 = tpu.matmul %88, %88, %cst_31 {dimension_numbers = #tpu.dot_dimension_numbers<[1], [1], [0], [0], [0, 0, 1, 0], [], []>} : vector<64x8xf32>, vector<64x8xf32>, vector<64x64xf32> -> vector<64x64xf32>
    %91 = arith.mulf %90, %4 : vector<64x64xf32>
    %cst_32 = arith.constant dense<0.000000e+00> : vector<64xf32>
    %92 = vector.multi_reduction <add>, %91, %cst_32 [1] : vector<64x64xf32> to vector<64xf32>
    %93 = vector.shape_cast %92 : vector<64xf32> to vector<64x1xf32>
    %cst_33 = arith.constant dense<0.000000e+00> : vector<64xf32>
    %94 = vector.multi_reduction <add>, %91, %cst_33 [0] : vector<64x64xf32> to vector<64xf32>
    %95 = vector.shape_cast %94 : vector<64xf32> to vector<1x64xf32>
    %cst_34 = arith.constant 2.000000e+00 : f32
    %96 = vector.broadcast %cst_34 : f32 to vector<64x64xf32>
    %97 = arith.mulf %96, %90 : vector<64x64xf32>
    %98 = vector.broadcast %93 : vector<64x1xf32> to vector<64x64xf32>
    %99 = arith.subf %97, %98 : vector<64x64xf32>
    %100 = vector.broadcast %95 : vector<1x64xf32> to vector<64x64xf32>
    %101 = arith.subf %99, %100 : vector<64x64xf32>
    %cst_35 = arith.constant 0.353553385 : f32
    %102 = vector.broadcast %cst_35 : f32 to vector<64x64xf32>
    %103 = arith.mulf %101, %102 : vector<64x64xf32>
    %104 = math.exp %103 : vector<64x64xf32>
    %cst_36 = arith.constant dense<0.000000e+00> : vector<64xf32>
    %105 = vector.multi_reduction <add>, %104, %cst_36 [1] : vector<64x64xf32> to vector<64xf32>
    %106 = vector.shape_cast %105 : vector<64xf32> to vector<64x1xf32>
    %107 = tpu.reciprocal %106 : vector<64x1xf32> -> vector<64x1xf32>
    %108 = vector.broadcast %107 : vector<64x1xf32> to vector<64x64xf32>
    %109 = arith.mulf %104, %108 : vector<64x64xf32>
    %cst_37 = arith.constant dense<0.000000e+00> : vector<64x8xf32>
    %110 = tpu.matmul %109, %89, %cst_37 {dimension_numbers = #tpu.dot_dimension_numbers<[1], [0], [0], [1], [0, 0, 1, 1], [], []>} : vector<64x64xf32>, vector<64x8xf32>, vector<64x8xf32> -> vector<64x8xf32>
    %111 = vector.extract_strided_slice %87 {offsets = [0, 8], sizes = [64, 8], strides = [1, 1]} : vector<128x64xf32> to vector<64x8xf32>
    %112 = vector.extract_strided_slice %87 {offsets = [0, 40], sizes = [64, 8], strides = [1, 1]} : vector<128x64xf32> to vector<64x8xf32>
    %cst_38 = arith.constant dense<0.000000e+00> : vector<64x64xf32>
    %113 = tpu.matmul %111, %111, %cst_38 {dimension_numbers = #tpu.dot_dimension_numbers<[1], [1], [0], [0], [0, 0, 1, 0], [], []>} : vector<64x8xf32>, vector<64x8xf32>, vector<64x64xf32> -> vector<64x64xf32>
    %114 = arith.mulf %113, %4 : vector<64x64xf32>
    %cst_39 = arith.constant dense<0.000000e+00> : vector<64xf32>
    %115 = vector.multi_reduction <add>, %114, %cst_39 [1] : vector<64x64xf32> to vector<64xf32>
    %116 = vector.shape_cast %115 : vector<64xf32> to vector<64x1xf32>
    %cst_40 = arith.constant dense<0.000000e+00> : vector<64xf32>
    %117 = vector.multi_reduction <add>, %114, %cst_40 [0] : vector<64x64xf32> to vector<64xf32>
    %118 = vector.shape_cast %117 : vector<64xf32> to vector<1x64xf32>
    %cst_41 = arith.constant 2.000000e+00 : f32
    %119 = vector.broadcast %cst_41 : f32 to vector<64x64xf32>
    %120 = arith.mulf %119, %113 : vector<64x64xf32>
    %121 = vector.broadcast %116 : vector<64x1xf32> to vector<64x64xf32>
    %122 = arith.subf %120, %121 : vector<64x64xf32>
    %123 = vector.broadcast %118 : vector<1x64xf32> to vector<64x64xf32>
    %124 = arith.subf %122, %123 : vector<64x64xf32>
    %cst_42 = arith.constant 0.353553385 : f32
    %125 = vector.broadcast %cst_42 : f32 to vector<64x64xf32>
    %126 = arith.mulf %124, %125 : vector<64x64xf32>
    %127 = math.exp %126 : vector<64x64xf32>
    %cst_43 = arith.constant dense<0.000000e+00> : vector<64xf32>
    %128 = vector.multi_reduction <add>, %127, %cst_43 [1] : vector<64x64xf32> to vector<64xf32>
    %129 = vector.shape_cast %128 : vector<64xf32> to vector<64x1xf32>
    %130 = tpu.reciprocal %129 : vector<64x1xf32> -> vector<64x1xf32>
    %131 = vector.broadcast %130 : vector<64x1xf32> to vector<64x64xf32>
    %132 = arith.mulf %127, %131 : vector<64x64xf32>
    %cst_44 = arith.constant dense<0.000000e+00> : vector<64x8xf32>
    %133 = tpu.matmul %132, %112, %cst_44 {dimension_numbers = #tpu.dot_dimension_numbers<[1], [0], [0], [1], [0, 0, 1, 1], [], []>} : vector<64x64xf32>, vector<64x8xf32>, vector<64x8xf32> -> vector<64x8xf32>
    %134 = vector.extract_strided_slice %87 {offsets = [0, 16], sizes = [64, 8], strides = [1, 1]} : vector<128x64xf32> to vector<64x8xf32>
    %135 = vector.extract_strided_slice %87 {offsets = [0, 48], sizes = [64, 8], strides = [1, 1]} : vector<128x64xf32> to vector<64x8xf32>
    %cst_45 = arith.constant dense<0.000000e+00> : vector<64x64xf32>
    %136 = tpu.matmul %134, %134, %cst_45 {dimension_numbers = #tpu.dot_dimension_numbers<[1], [1], [0], [0], [0, 0, 1, 0], [], []>} : vector<64x8xf32>, vector<64x8xf32>, vector<64x64xf32> -> vector<64x64xf32>
    %137 = arith.mulf %136, %4 : vector<64x64xf32>
    %cst_46 = arith.constant dense<0.000000e+00> : vector<64xf32>
    %138 = vector.multi_reduction <add>, %137, %cst_46 [1] : vector<64x64xf32> to vector<64xf32>
    %139 = vector.shape_cast %138 : vector<64xf32> to vector<64x1xf32>
    %cst_47 = arith.constant dense<0.000000e+00> : vector<64xf32>
    %140 = vector.multi_reduction <add>, %137, %cst_47 [0] : vector<64x64xf32> to vector<64xf32>
    %141 = vector.shape_cast %140 : vector<64xf32> to vector<1x64xf32>
    %cst_48 = arith.constant 2.000000e+00 : f32
    %142 = vector.broadcast %cst_48 : f32 to vector<64x64xf32>
    %143 = arith.mulf %142, %136 : vector<64x64xf32>
    %144 = vector.broadcast %139 : vector<64x1xf32> to vector<64x64xf32>
    %145 = arith.subf %143, %144 : vector<64x64xf32>
    %146 = vector.broadcast %141 : vector<1x64xf32> to vector<64x64xf32>
    %147 = arith.subf %145, %146 : vector<64x64xf32>
    %cst_49 = arith.constant 0.353553385 : f32
    %148 = vector.broadcast %cst_49 : f32 to vector<64x64xf32>
    %149 = arith.mulf %147, %148 : vector<64x64xf32>
    %150 = math.exp %149 : vector<64x64xf32>
    %cst_50 = arith.constant dense<0.000000e+00> : vector<64xf32>
    %151 = vector.multi_reduction <add>, %150, %cst_50 [1] : vector<64x64xf32> to vector<64xf32>
    %152 = vector.shape_cast %151 : vector<64xf32> to vector<64x1xf32>
    %153 = tpu.reciprocal %152 : vector<64x1xf32> -> vector<64x1xf32>
    %154 = vector.broadcast %153 : vector<64x1xf32> to vector<64x64xf32>
    %155 = arith.mulf %150, %154 : vector<64x64xf32>
    %cst_51 = arith.constant dense<0.000000e+00> : vector<64x8xf32>
    %156 = tpu.matmul %155, %135, %cst_51 {dimension_numbers = #tpu.dot_dimension_numbers<[1], [0], [0], [1], [0, 0, 1, 1], [], []>} : vector<64x64xf32>, vector<64x8xf32>, vector<64x8xf32> -> vector<64x8xf32>
    %157 = vector.extract_strided_slice %87 {offsets = [0, 24], sizes = [64, 8], strides = [1, 1]} : vector<128x64xf32> to vector<64x8xf32>
    %158 = vector.extract_strided_slice %87 {offsets = [0, 56], sizes = [64, 8], strides = [1, 1]} : vector<128x64xf32> to vector<64x8xf32>
    %cst_52 = arith.constant dense<0.000000e+00> : vector<64x64xf32>
    %159 = tpu.matmul %157, %157, %cst_52 {dimension_numbers = #tpu.dot_dimension_numbers<[1], [1], [0], [0], [0, 0, 1, 0], [], []>} : vector<64x8xf32>, vector<64x8xf32>, vector<64x64xf32> -> vector<64x64xf32>
    %160 = arith.mulf %159, %4 : vector<64x64xf32>
    %cst_53 = arith.constant dense<0.000000e+00> : vector<64xf32>
    %161 = vector.multi_reduction <add>, %160, %cst_53 [1] : vector<64x64xf32> to vector<64xf32>
    %162 = vector.shape_cast %161 : vector<64xf32> to vector<64x1xf32>
    %cst_54 = arith.constant dense<0.000000e+00> : vector<64xf32>
    %163 = vector.multi_reduction <add>, %160, %cst_54 [0] : vector<64x64xf32> to vector<64xf32>
    %164 = vector.shape_cast %163 : vector<64xf32> to vector<1x64xf32>
    %cst_55 = arith.constant 2.000000e+00 : f32
    %165 = vector.broadcast %cst_55 : f32 to vector<64x64xf32>
    %166 = arith.mulf %165, %159 : vector<64x64xf32>
    %167 = vector.broadcast %162 : vector<64x1xf32> to vector<64x64xf32>
    %168 = arith.subf %166, %167 : vector<64x64xf32>
    %169 = vector.broadcast %164 : vector<1x64xf32> to vector<64x64xf32>
    %170 = arith.subf %168, %169 : vector<64x64xf32>
    %cst_56 = arith.constant 0.353553385 : f32
    %171 = vector.broadcast %cst_56 : f32 to vector<64x64xf32>
    %172 = arith.mulf %170, %171 : vector<64x64xf32>
    %173 = math.exp %172 : vector<64x64xf32>
    %cst_57 = arith.constant dense<0.000000e+00> : vector<64xf32>
    %174 = vector.multi_reduction <add>, %173, %cst_57 [1] : vector<64x64xf32> to vector<64xf32>
    %175 = vector.shape_cast %174 : vector<64xf32> to vector<64x1xf32>
    %176 = tpu.reciprocal %175 : vector<64x1xf32> -> vector<64x1xf32>
    %177 = vector.broadcast %176 : vector<64x1xf32> to vector<64x64xf32>
    %178 = arith.mulf %173, %177 : vector<64x64xf32>
    %cst_58 = arith.constant dense<0.000000e+00> : vector<64x8xf32>
    %179 = tpu.matmul %178, %158, %cst_58 {dimension_numbers = #tpu.dot_dimension_numbers<[1], [0], [0], [1], [0, 0, 1, 1], [], []>} : vector<64x64xf32>, vector<64x8xf32>, vector<64x8xf32> -> vector<64x8xf32>
    %180 = tpu.concatenate %110, %133, %156, %179 in 1 : vector<64x8xf32>, vector<64x8xf32>, vector<64x8xf32>, vector<64x8xf32> -> vector<64x32xf32>
    %181 = vector.extract_strided_slice %87 {offsets = [64, 0], sizes = [64, 8], strides = [1, 1]} : vector<128x64xf32> to vector<64x8xf32>
    %182 = vector.extract_strided_slice %87 {offsets = [64, 32], sizes = [64, 8], strides = [1, 1]} : vector<128x64xf32> to vector<64x8xf32>
    %cst_59 = arith.constant dense<0.000000e+00> : vector<64x64xf32>
    %183 = tpu.matmul %181, %181, %cst_59 {dimension_numbers = #tpu.dot_dimension_numbers<[1], [1], [0], [0], [0, 0, 1, 0], [], []>} : vector<64x8xf32>, vector<64x8xf32>, vector<64x64xf32> -> vector<64x64xf32>
    %184 = arith.mulf %183, %4 : vector<64x64xf32>
    %cst_60 = arith.constant dense<0.000000e+00> : vector<64xf32>
    %185 = vector.multi_reduction <add>, %184, %cst_60 [1] : vector<64x64xf32> to vector<64xf32>
    %186 = vector.shape_cast %185 : vector<64xf32> to vector<64x1xf32>
    %cst_61 = arith.constant dense<0.000000e+00> : vector<64xf32>
    %187 = vector.multi_reduction <add>, %184, %cst_61 [0] : vector<64x64xf32> to vector<64xf32>
    %188 = vector.shape_cast %187 : vector<64xf32> to vector<1x64xf32>
    %cst_62 = arith.constant 2.000000e+00 : f32
    %189 = vector.broadcast %cst_62 : f32 to vector<64x64xf32>
    %190 = arith.mulf %189, %183 : vector<64x64xf32>
    %191 = vector.broadcast %186 : vector<64x1xf32> to vector<64x64xf32>
    %192 = arith.subf %190, %191 : vector<64x64xf32>
    %193 = vector.broadcast %188 : vector<1x64xf32> to vector<64x64xf32>
    %194 = arith.subf %192, %193 : vector<64x64xf32>
    %cst_63 = arith.constant 0.353553385 : f32
    %195 = vector.broadcast %cst_63 : f32 to vector<64x64xf32>
    %196 = arith.mulf %194, %195 : vector<64x64xf32>
    %197 = math.exp %196 : vector<64x64xf32>
    %cst_64 = arith.constant dense<0.000000e+00> : vector<64xf32>
    %198 = vector.multi_reduction <add>, %197, %cst_64 [1] : vector<64x64xf32> to vector<64xf32>
    %199 = vector.shape_cast %198 : vector<64xf32> to vector<64x1xf32>
    %200 = tpu.reciprocal %199 : vector<64x1xf32> -> vector<64x1xf32>
    %201 = vector.broadcast %200 : vector<64x1xf32> to vector<64x64xf32>
    %202 = arith.mulf %197, %201 : vector<64x64xf32>
    %cst_65 = arith.constant dense<0.000000e+00> : vector<64x8xf32>
    %203 = tpu.matmul %202, %182, %cst_65 {dimension_numbers = #tpu.dot_dimension_numbers<[1], [0], [0], [1], [0, 0, 1, 1], [], []>} : vector<64x64xf32>, vector<64x8xf32>, vector<64x8xf32> -> vector<64x8xf32>
    %204 = vector.extract_strided_slice %87 {offsets = [64, 8], sizes = [64, 8], strides = [1, 1]} : vector<128x64xf32> to vector<64x8xf32>
    %205 = vector.extract_strided_slice %87 {offsets = [64, 40], sizes = [64, 8], strides = [1, 1]} : vector<128x64xf32> to vector<64x8xf32>
    %cst_66 = arith.constant dense<0.000000e+00> : vector<64x64xf32>
    %206 = tpu.matmul %204, %204, %cst_66 {dimension_numbers = #tpu.dot_dimension_numbers<[1], [1], [0], [0], [0, 0, 1, 0], [], []>} : vector<64x8xf32>, vector<64x8xf32>, vector<64x64xf32> -> vector<64x64xf32>
    %207 = arith.mulf %206, %4 : vector<64x64xf32>
    %cst_67 = arith.constant dense<0.000000e+00> : vector<64xf32>
    %208 = vector.multi_reduction <add>, %207, %cst_67 [1] : vector<64x64xf32> to vector<64xf32>
    %209 = vector.shape_cast %208 : vector<64xf32> to vector<64x1xf32>
    %cst_68 = arith.constant dense<0.000000e+00> : vector<64xf32>
    %210 = vector.multi_reduction <add>, %207, %cst_68 [0] : vector<64x64xf32> to vector<64xf32>
    %211 = vector.shape_cast %210 : vector<64xf32> to vector<1x64xf32>
    %cst_69 = arith.constant 2.000000e+00 : f32
    %212 = vector.broadcast %cst_69 : f32 to vector<64x64xf32>
    %213 = arith.mulf %212, %206 : vector<64x64xf32>
    %214 = vector.broadcast %209 : vector<64x1xf32> to vector<64x64xf32>
    %215 = arith.subf %213, %214 : vector<64x64xf32>
    %216 = vector.broadcast %211 : vector<1x64xf32> to vector<64x64xf32>
    %217 = arith.subf %215, %216 : vector<64x64xf32>
    %cst_70 = arith.constant 0.353553385 : f32
    %218 = vector.broadcast %cst_70 : f32 to vector<64x64xf32>
    %219 = arith.mulf %217, %218 : vector<64x64xf32>
    %220 = math.exp %219 : vector<64x64xf32>
    %cst_71 = arith.constant dense<0.000000e+00> : vector<64xf32>
    %221 = vector.multi_reduction <add>, %220, %cst_71 [1] : vector<64x64xf32> to vector<64xf32>
    %222 = vector.shape_cast %221 : vector<64xf32> to vector<64x1xf32>
    %223 = tpu.reciprocal %222 : vector<64x1xf32> -> vector<64x1xf32>
    %224 = vector.broadcast %223 : vector<64x1xf32> to vector<64x64xf32>
    %225 = arith.mulf %220, %224 : vector<64x64xf32>
    %cst_72 = arith.constant dense<0.000000e+00> : vector<64x8xf32>
    %226 = tpu.matmul %225, %205, %cst_72 {dimension_numbers = #tpu.dot_dimension_numbers<[1], [0], [0], [1], [0, 0, 1, 1], [], []>} : vector<64x64xf32>, vector<64x8xf32>, vector<64x8xf32> -> vector<64x8xf32>
    %227 = vector.extract_strided_slice %87 {offsets = [64, 16], sizes = [64, 8], strides = [1, 1]} : vector<128x64xf32> to vector<64x8xf32>
    %228 = vector.extract_strided_slice %87 {offsets = [64, 48], sizes = [64, 8], strides = [1, 1]} : vector<128x64xf32> to vector<64x8xf32>
    %cst_73 = arith.constant dense<0.000000e+00> : vector<64x64xf32>
    %229 = tpu.matmul %227, %227, %cst_73 {dimension_numbers = #tpu.dot_dimension_numbers<[1], [1], [0], [0], [0, 0, 1, 0], [], []>} : vector<64x8xf32>, vector<64x8xf32>, vector<64x64xf32> -> vector<64x64xf32>
    %230 = arith.mulf %229, %4 : vector<64x64xf32>
    %cst_74 = arith.constant dense<0.000000e+00> : vector<64xf32>
    %231 = vector.multi_reduction <add>, %230, %cst_74 [1] : vector<64x64xf32> to vector<64xf32>
    %232 = vector.shape_cast %231 : vector<64xf32> to vector<64x1xf32>
    %cst_75 = arith.constant dense<0.000000e+00> : vector<64xf32>
    %233 = vector.multi_reduction <add>, %230, %cst_75 [0] : vector<64x64xf32> to vector<64xf32>
    %234 = vector.shape_cast %233 : vector<64xf32> to vector<1x64xf32>
    %cst_76 = arith.constant 2.000000e+00 : f32
    %235 = vector.broadcast %cst_76 : f32 to vector<64x64xf32>
    %236 = arith.mulf %235, %229 : vector<64x64xf32>
    %237 = vector.broadcast %232 : vector<64x1xf32> to vector<64x64xf32>
    %238 = arith.subf %236, %237 : vector<64x64xf32>
    %239 = vector.broadcast %234 : vector<1x64xf32> to vector<64x64xf32>
    %240 = arith.subf %238, %239 : vector<64x64xf32>
    %cst_77 = arith.constant 0.353553385 : f32
    %241 = vector.broadcast %cst_77 : f32 to vector<64x64xf32>
    %242 = arith.mulf %240, %241 : vector<64x64xf32>
    %243 = math.exp %242 : vector<64x64xf32>
    %cst_78 = arith.constant dense<0.000000e+00> : vector<64xf32>
    %244 = vector.multi_reduction <add>, %243, %cst_78 [1] : vector<64x64xf32> to vector<64xf32>
    %245 = vector.shape_cast %244 : vector<64xf32> to vector<64x1xf32>
    %246 = tpu.reciprocal %245 : vector<64x1xf32> -> vector<64x1xf32>
    %247 = vector.broadcast %246 : vector<64x1xf32> to vector<64x64xf32>
    %248 = arith.mulf %243, %247 : vector<64x64xf32>
    %cst_79 = arith.constant dense<0.000000e+00> : vector<64x8xf32>
    %249 = tpu.matmul %248, %228, %cst_79 {dimension_numbers = #tpu.dot_dimension_numbers<[1], [0], [0], [1], [0, 0, 1, 1], [], []>} : vector<64x64xf32>, vector<64x8xf32>, vector<64x8xf32> -> vector<64x8xf32>
    %250 = vector.extract_strided_slice %87 {offsets = [64, 24], sizes = [64, 8], strides = [1, 1]} : vector<128x64xf32> to vector<64x8xf32>
    %251 = vector.extract_strided_slice %87 {offsets = [64, 56], sizes = [64, 8], strides = [1, 1]} : vector<128x64xf32> to vector<64x8xf32>
    %cst_80 = arith.constant dense<0.000000e+00> : vector<64x64xf32>
    %252 = tpu.matmul %250, %250, %cst_80 {dimension_numbers = #tpu.dot_dimension_numbers<[1], [1], [0], [0], [0, 0, 1, 0], [], []>} : vector<64x8xf32>, vector<64x8xf32>, vector<64x64xf32> -> vector<64x64xf32>
    %253 = arith.mulf %252, %4 : vector<64x64xf32>
    %cst_81 = arith.constant dense<0.000000e+00> : vector<64xf32>
    %254 = vector.multi_reduction <add>, %253, %cst_81 [1] : vector<64x64xf32> to vector<64xf32>
    %255 = vector.shape_cast %254 : vector<64xf32> to vector<64x1xf32>
    %cst_82 = arith.constant dense<0.000000e+00> : vector<64xf32>
    %256 = vector.multi_reduction <add>, %253, %cst_82 [0] : vector<64x64xf32> to vector<64xf32>
    %257 = vector.shape_cast %256 : vector<64xf32> to vector<1x64xf32>
    %cst_83 = arith.constant 2.000000e+00 : f32
    %258 = vector.broadcast %cst_83 : f32 to vector<64x64xf32>
    %259 = arith.mulf %258, %252 : vector<64x64xf32>
    %260 = vector.broadcast %255 : vector<64x1xf32> to vector<64x64xf32>
    %261 = arith.subf %259, %260 : vector<64x64xf32>
    %262 = vector.broadcast %257 : vector<1x64xf32> to vector<64x64xf32>
    %263 = arith.subf %261, %262 : vector<64x64xf32>
    %cst_84 = arith.constant 0.353553385 : f32
    %264 = vector.broadcast %cst_84 : f32 to vector<64x64xf32>
    %265 = arith.mulf %263, %264 : vector<64x64xf32>
    %266 = math.exp %265 : vector<64x64xf32>
    %cst_85 = arith.constant dense<0.000000e+00> : vector<64xf32>
    %267 = vector.multi_reduction <add>, %266, %cst_85 [1] : vector<64x64xf32> to vector<64xf32>
    %268 = vector.shape_cast %267 : vector<64xf32> to vector<64x1xf32>
    %269 = tpu.reciprocal %268 : vector<64x1xf32> -> vector<64x1xf32>
    %270 = vector.broadcast %269 : vector<64x1xf32> to vector<64x64xf32>
    %271 = arith.mulf %266, %270 : vector<64x64xf32>
    %cst_86 = arith.constant dense<0.000000e+00> : vector<64x8xf32>
    %272 = tpu.matmul %271, %251, %cst_86 {dimension_numbers = #tpu.dot_dimension_numbers<[1], [0], [0], [1], [0, 0, 1, 1], [], []>} : vector<64x64xf32>, vector<64x8xf32>, vector<64x8xf32> -> vector<64x8xf32>
    %273 = tpu.concatenate %203, %226, %249, %272 in 1 : vector<64x8xf32>, vector<64x8xf32>, vector<64x8xf32>, vector<64x8xf32> -> vector<64x32xf32>
    %274 = tpu.concatenate %180, %273 in 0 : vector<64x32xf32>, vector<64x32xf32> -> vector<128x32xf32>
    %c0_87 = arith.constant 0 : index
    %c96 = arith.constant 96 : index
    %275 = vector.load %arg2[%c0_87, %c96] : memref<32x512xf32, #tpu.memory_space<vmem>>, vector<32x32xf32>
    %cst_88 = arith.constant dense<0.000000e+00> : vector<128x32xf32>
    %276 = tpu.matmul %274, %275, %cst_88 {dimension_numbers = #tpu.dot_dimension_numbers<[1], [0], [0], [1], [0, 0, 1, 1], [], []>} : vector<128x32xf32>, vector<32x32xf32>, vector<128x32xf32> -> vector<128x32xf32>
    %277 = arith.addf %58, %276 : vector<128x32xf32>
    %c6 = arith.constant 6 : index
    %c0_89 = arith.constant 0 : index
    %278 = vector.load %arg3[%c6, %c0_89] : memref<16x256xf32, #tpu.memory_space<vmem>>, vector<1x32xf32>
    %279 = vector.broadcast %278 : vector<1x32xf32> to vector<128x32xf32>
    %280 = arith.addf %277, %279 : vector<128x32xf32>
    %c7 = arith.constant 7 : index
    %c0_90 = arith.constant 0 : index
    %281 = vector.load %arg3[%c7, %c0_90] : memref<16x256xf32, #tpu.memory_space<vmem>>, vector<1x32xf32>
    %c8 = arith.constant 8 : index
    %c0_91 = arith.constant 0 : index
    %282 = vector.load %arg3[%c8, %c0_91] : memref<16x256xf32, #tpu.memory_space<vmem>>, vector<1x32xf32>
    %cst_92 = arith.constant dense<0.000000e+00> : vector<128xf32>
    %283 = vector.multi_reduction <add>, %280, %cst_92 [1] : vector<128x32xf32> to vector<128xf32>
    %284 = vector.shape_cast %283 : vector<128xf32> to vector<128x1xf32>
    %cst_93 = arith.constant 3.200000e+01 : f32
    %285 = vector.broadcast %cst_93 : f32 to vector<128x1xf32>
    %286 = arith.divf %284, %285 : vector<128x1xf32>
    %287 = vector.broadcast %286 : vector<128x1xf32> to vector<128x32xf32>
    %288 = arith.subf %280, %287 : vector<128x32xf32>
    %289 = arith.mulf %288, %288 : vector<128x32xf32>
    %cst_94 = arith.constant dense<0.000000e+00> : vector<128xf32>
    %290 = vector.multi_reduction <add>, %289, %cst_94 [1] : vector<128x32xf32> to vector<128xf32>
    %291 = vector.shape_cast %290 : vector<128xf32> to vector<128x1xf32>
    %cst_95 = arith.constant 3.200000e+01 : f32
    %292 = vector.broadcast %cst_95 : f32 to vector<128x1xf32>
    %293 = arith.divf %291, %292 : vector<128x1xf32>
    %294 = vector.broadcast %286 : vector<128x1xf32> to vector<128x32xf32>
    %295 = arith.subf %280, %294 : vector<128x32xf32>
    %cst_96 = arith.constant 9.99999974E-6 : f32
    %296 = vector.broadcast %cst_96 : f32 to vector<128x1xf32>
    %297 = arith.addf %293, %296 : vector<128x1xf32>
    %298 = math.rsqrt %297 : vector<128x1xf32>
    %299 = vector.broadcast %298 : vector<128x1xf32> to vector<128x32xf32>
    %300 = arith.mulf %295, %299 : vector<128x32xf32>
    %301 = vector.broadcast %281 : vector<1x32xf32> to vector<128x32xf32>
    %302 = arith.mulf %300, %301 : vector<128x32xf32>
    %303 = vector.broadcast %282 : vector<1x32xf32> to vector<128x32xf32>
    %304 = arith.addf %302, %303 : vector<128x32xf32>
    %c0_97 = arith.constant 0 : index
    %c128 = arith.constant 128 : index
    %305 = vector.load %arg2[%c0_97, %c128] : memref<32x512xf32, #tpu.memory_space<vmem>>, vector<32x64xf32>
    %cst_98 = arith.constant dense<0.000000e+00> : vector<128x64xf32>
    %306 = tpu.matmul %304, %305, %cst_98 {dimension_numbers = #tpu.dot_dimension_numbers<[1], [0], [0], [1], [0, 0, 1, 1], [], []>} : vector<128x32xf32>, vector<32x64xf32>, vector<128x64xf32> -> vector<128x64xf32>
    %c9 = arith.constant 9 : index
    %c0_99 = arith.constant 0 : index
    %307 = vector.load %arg3[%c9, %c0_99] : memref<16x256xf32, #tpu.memory_space<vmem>>, vector<1x64xf32>
    %308 = vector.broadcast %307 : vector<1x64xf32> to vector<128x64xf32>
    %309 = arith.addf %306, %308 : vector<128x64xf32>
    %310 = vector.extract_strided_slice %309 {offsets = [0, 0], sizes = [64, 8], strides = [1, 1]} : vector<128x64xf32> to vector<64x8xf32>
    %311 = vector.extract_strided_slice %309 {offsets = [0, 32], sizes = [64, 8], strides = [1, 1]} : vector<128x64xf32> to vector<64x8xf32>
    %cst_100 = arith.constant dense<0.000000e+00> : vector<64x64xf32>
    %312 = tpu.matmul %310, %310, %cst_100 {dimension_numbers = #tpu.dot_dimension_numbers<[1], [1], [0], [0], [0, 0, 1, 0], [], []>} : vector<64x8xf32>, vector<64x8xf32>, vector<64x64xf32> -> vector<64x64xf32>
    %313 = arith.mulf %312, %4 : vector<64x64xf32>
    %cst_101 = arith.constant dense<0.000000e+00> : vector<64xf32>
    %314 = vector.multi_reduction <add>, %313, %cst_101 [1] : vector<64x64xf32> to vector<64xf32>
    %315 = vector.shape_cast %314 : vector<64xf32> to vector<64x1xf32>
    %cst_102 = arith.constant dense<0.000000e+00> : vector<64xf32>
    %316 = vector.multi_reduction <add>, %313, %cst_102 [0] : vector<64x64xf32> to vector<64xf32>
    %317 = vector.shape_cast %316 : vector<64xf32> to vector<1x64xf32>
    %cst_103 = arith.constant 2.000000e+00 : f32
    %318 = vector.broadcast %cst_103 : f32 to vector<64x64xf32>
    %319 = arith.mulf %318, %312 : vector<64x64xf32>
    %320 = vector.broadcast %315 : vector<64x1xf32> to vector<64x64xf32>
    %321 = arith.subf %319, %320 : vector<64x64xf32>
    %322 = vector.broadcast %317 : vector<1x64xf32> to vector<64x64xf32>
    %323 = arith.subf %321, %322 : vector<64x64xf32>
    %cst_104 = arith.constant 0.353553385 : f32
    %324 = vector.broadcast %cst_104 : f32 to vector<64x64xf32>
    %325 = arith.mulf %323, %324 : vector<64x64xf32>
    %326 = math.exp %325 : vector<64x64xf32>
    %cst_105 = arith.constant dense<0.000000e+00> : vector<64xf32>
    %327 = vector.multi_reduction <add>, %326, %cst_105 [1] : vector<64x64xf32> to vector<64xf32>
    %328 = vector.shape_cast %327 : vector<64xf32> to vector<64x1xf32>
    %329 = tpu.reciprocal %328 : vector<64x1xf32> -> vector<64x1xf32>
    %330 = vector.broadcast %329 : vector<64x1xf32> to vector<64x64xf32>
    %331 = arith.mulf %326, %330 : vector<64x64xf32>
    %cst_106 = arith.constant dense<0.000000e+00> : vector<64x8xf32>
    %332 = tpu.matmul %331, %311, %cst_106 {dimension_numbers = #tpu.dot_dimension_numbers<[1], [0], [0], [1], [0, 0, 1, 1], [], []>} : vector<64x64xf32>, vector<64x8xf32>, vector<64x8xf32> -> vector<64x8xf32>
    %333 = vector.extract_strided_slice %309 {offsets = [0, 8], sizes = [64, 8], strides = [1, 1]} : vector<128x64xf32> to vector<64x8xf32>
    %334 = vector.extract_strided_slice %309 {offsets = [0, 40], sizes = [64, 8], strides = [1, 1]} : vector<128x64xf32> to vector<64x8xf32>
    %cst_107 = arith.constant dense<0.000000e+00> : vector<64x64xf32>
    %335 = tpu.matmul %333, %333, %cst_107 {dimension_numbers = #tpu.dot_dimension_numbers<[1], [1], [0], [0], [0, 0, 1, 0], [], []>} : vector<64x8xf32>, vector<64x8xf32>, vector<64x64xf32> -> vector<64x64xf32>
    %336 = arith.mulf %335, %4 : vector<64x64xf32>
    %cst_108 = arith.constant dense<0.000000e+00> : vector<64xf32>
    %337 = vector.multi_reduction <add>, %336, %cst_108 [1] : vector<64x64xf32> to vector<64xf32>
    %338 = vector.shape_cast %337 : vector<64xf32> to vector<64x1xf32>
    %cst_109 = arith.constant dense<0.000000e+00> : vector<64xf32>
    %339 = vector.multi_reduction <add>, %336, %cst_109 [0] : vector<64x64xf32> to vector<64xf32>
    %340 = vector.shape_cast %339 : vector<64xf32> to vector<1x64xf32>
    %cst_110 = arith.constant 2.000000e+00 : f32
    %341 = vector.broadcast %cst_110 : f32 to vector<64x64xf32>
    %342 = arith.mulf %341, %335 : vector<64x64xf32>
    %343 = vector.broadcast %338 : vector<64x1xf32> to vector<64x64xf32>
    %344 = arith.subf %342, %343 : vector<64x64xf32>
    %345 = vector.broadcast %340 : vector<1x64xf32> to vector<64x64xf32>
    %346 = arith.subf %344, %345 : vector<64x64xf32>
    %cst_111 = arith.constant 0.353553385 : f32
    %347 = vector.broadcast %cst_111 : f32 to vector<64x64xf32>
    %348 = arith.mulf %346, %347 : vector<64x64xf32>
    %349 = math.exp %348 : vector<64x64xf32>
    %cst_112 = arith.constant dense<0.000000e+00> : vector<64xf32>
    %350 = vector.multi_reduction <add>, %349, %cst_112 [1] : vector<64x64xf32> to vector<64xf32>
    %351 = vector.shape_cast %350 : vector<64xf32> to vector<64x1xf32>
    %352 = tpu.reciprocal %351 : vector<64x1xf32> -> vector<64x1xf32>
    %353 = vector.broadcast %352 : vector<64x1xf32> to vector<64x64xf32>
    %354 = arith.mulf %349, %353 : vector<64x64xf32>
    %cst_113 = arith.constant dense<0.000000e+00> : vector<64x8xf32>
    %355 = tpu.matmul %354, %334, %cst_113 {dimension_numbers = #tpu.dot_dimension_numbers<[1], [0], [0], [1], [0, 0, 1, 1], [], []>} : vector<64x64xf32>, vector<64x8xf32>, vector<64x8xf32> -> vector<64x8xf32>
    %356 = vector.extract_strided_slice %309 {offsets = [0, 16], sizes = [64, 8], strides = [1, 1]} : vector<128x64xf32> to vector<64x8xf32>
    %357 = vector.extract_strided_slice %309 {offsets = [0, 48], sizes = [64, 8], strides = [1, 1]} : vector<128x64xf32> to vector<64x8xf32>
    %cst_114 = arith.constant dense<0.000000e+00> : vector<64x64xf32>
    %358 = tpu.matmul %356, %356, %cst_114 {dimension_numbers = #tpu.dot_dimension_numbers<[1], [1], [0], [0], [0, 0, 1, 0], [], []>} : vector<64x8xf32>, vector<64x8xf32>, vector<64x64xf32> -> vector<64x64xf32>
    %359 = arith.mulf %358, %4 : vector<64x64xf32>
    %cst_115 = arith.constant dense<0.000000e+00> : vector<64xf32>
    %360 = vector.multi_reduction <add>, %359, %cst_115 [1] : vector<64x64xf32> to vector<64xf32>
    %361 = vector.shape_cast %360 : vector<64xf32> to vector<64x1xf32>
    %cst_116 = arith.constant dense<0.000000e+00> : vector<64xf32>
    %362 = vector.multi_reduction <add>, %359, %cst_116 [0] : vector<64x64xf32> to vector<64xf32>
    %363 = vector.shape_cast %362 : vector<64xf32> to vector<1x64xf32>
    %cst_117 = arith.constant 2.000000e+00 : f32
    %364 = vector.broadcast %cst_117 : f32 to vector<64x64xf32>
    %365 = arith.mulf %364, %358 : vector<64x64xf32>
    %366 = vector.broadcast %361 : vector<64x1xf32> to vector<64x64xf32>
    %367 = arith.subf %365, %366 : vector<64x64xf32>
    %368 = vector.broadcast %363 : vector<1x64xf32> to vector<64x64xf32>
    %369 = arith.subf %367, %368 : vector<64x64xf32>
    %cst_118 = arith.constant 0.353553385 : f32
    %370 = vector.broadcast %cst_118 : f32 to vector<64x64xf32>
    %371 = arith.mulf %369, %370 : vector<64x64xf32>
    %372 = math.exp %371 : vector<64x64xf32>
    %cst_119 = arith.constant dense<0.000000e+00> : vector<64xf32>
    %373 = vector.multi_reduction <add>, %372, %cst_119 [1] : vector<64x64xf32> to vector<64xf32>
    %374 = vector.shape_cast %373 : vector<64xf32> to vector<64x1xf32>
    %375 = tpu.reciprocal %374 : vector<64x1xf32> -> vector<64x1xf32>
    %376 = vector.broadcast %375 : vector<64x1xf32> to vector<64x64xf32>
    %377 = arith.mulf %372, %376 : vector<64x64xf32>
    %cst_120 = arith.constant dense<0.000000e+00> : vector<64x8xf32>
    %378 = tpu.matmul %377, %357, %cst_120 {dimension_numbers = #tpu.dot_dimension_numbers<[1], [0], [0], [1], [0, 0, 1, 1], [], []>} : vector<64x64xf32>, vector<64x8xf32>, vector<64x8xf32> -> vector<64x8xf32>
    %379 = vector.extract_strided_slice %309 {offsets = [0, 24], sizes = [64, 8], strides = [1, 1]} : vector<128x64xf32> to vector<64x8xf32>
    %380 = vector.extract_strided_slice %309 {offsets = [0, 56], sizes = [64, 8], strides = [1, 1]} : vector<128x64xf32> to vector<64x8xf32>
    %cst_121 = arith.constant dense<0.000000e+00> : vector<64x64xf32>
    %381 = tpu.matmul %379, %379, %cst_121 {dimension_numbers = #tpu.dot_dimension_numbers<[1], [1], [0], [0], [0, 0, 1, 0], [], []>} : vector<64x8xf32>, vector<64x8xf32>, vector<64x64xf32> -> vector<64x64xf32>
    %382 = arith.mulf %381, %4 : vector<64x64xf32>
    %cst_122 = arith.constant dense<0.000000e+00> : vector<64xf32>
    %383 = vector.multi_reduction <add>, %382, %cst_122 [1] : vector<64x64xf32> to vector<64xf32>
    %384 = vector.shape_cast %383 : vector<64xf32> to vector<64x1xf32>
    %cst_123 = arith.constant dense<0.000000e+00> : vector<64xf32>
    %385 = vector.multi_reduction <add>, %382, %cst_123 [0] : vector<64x64xf32> to vector<64xf32>
    %386 = vector.shape_cast %385 : vector<64xf32> to vector<1x64xf32>
    %cst_124 = arith.constant 2.000000e+00 : f32
    %387 = vector.broadcast %cst_124 : f32 to vector<64x64xf32>
    %388 = arith.mulf %387, %381 : vector<64x64xf32>
    %389 = vector.broadcast %384 : vector<64x1xf32> to vector<64x64xf32>
    %390 = arith.subf %388, %389 : vector<64x64xf32>
    %391 = vector.broadcast %386 : vector<1x64xf32> to vector<64x64xf32>
    %392 = arith.subf %390, %391 : vector<64x64xf32>
    %cst_125 = arith.constant 0.353553385 : f32
    %393 = vector.broadcast %cst_125 : f32 to vector<64x64xf32>
    %394 = arith.mulf %392, %393 : vector<64x64xf32>
    %395 = math.exp %394 : vector<64x64xf32>
    %cst_126 = arith.constant dense<0.000000e+00> : vector<64xf32>
    %396 = vector.multi_reduction <add>, %395, %cst_126 [1] : vector<64x64xf32> to vector<64xf32>
    %397 = vector.shape_cast %396 : vector<64xf32> to vector<64x1xf32>
    %398 = tpu.reciprocal %397 : vector<64x1xf32> -> vector<64x1xf32>
    %399 = vector.broadcast %398 : vector<64x1xf32> to vector<64x64xf32>
    %400 = arith.mulf %395, %399 : vector<64x64xf32>
    %cst_127 = arith.constant dense<0.000000e+00> : vector<64x8xf32>
    %401 = tpu.matmul %400, %380, %cst_127 {dimension_numbers = #tpu.dot_dimension_numbers<[1], [0], [0], [1], [0, 0, 1, 1], [], []>} : vector<64x64xf32>, vector<64x8xf32>, vector<64x8xf32> -> vector<64x8xf32>
    %402 = tpu.concatenate %332, %355, %378, %401 in 1 : vector<64x8xf32>, vector<64x8xf32>, vector<64x8xf32>, vector<64x8xf32> -> vector<64x32xf32>
    %403 = vector.extract_strided_slice %309 {offsets = [64, 0], sizes = [64, 8], strides = [1, 1]} : vector<128x64xf32> to vector<64x8xf32>
    %404 = vector.extract_strided_slice %309 {offsets = [64, 32], sizes = [64, 8], strides = [1, 1]} : vector<128x64xf32> to vector<64x8xf32>
    %cst_128 = arith.constant dense<0.000000e+00> : vector<64x64xf32>
    %405 = tpu.matmul %403, %403, %cst_128 {dimension_numbers = #tpu.dot_dimension_numbers<[1], [1], [0], [0], [0, 0, 1, 0], [], []>} : vector<64x8xf32>, vector<64x8xf32>, vector<64x64xf32> -> vector<64x64xf32>
    %406 = arith.mulf %405, %4 : vector<64x64xf32>
    %cst_129 = arith.constant dense<0.000000e+00> : vector<64xf32>
    %407 = vector.multi_reduction <add>, %406, %cst_129 [1] : vector<64x64xf32> to vector<64xf32>
    %408 = vector.shape_cast %407 : vector<64xf32> to vector<64x1xf32>
    %cst_130 = arith.constant dense<0.000000e+00> : vector<64xf32>
    %409 = vector.multi_reduction <add>, %406, %cst_130 [0] : vector<64x64xf32> to vector<64xf32>
    %410 = vector.shape_cast %409 : vector<64xf32> to vector<1x64xf32>
    %cst_131 = arith.constant 2.000000e+00 : f32
    %411 = vector.broadcast %cst_131 : f32 to vector<64x64xf32>
    %412 = arith.mulf %411, %405 : vector<64x64xf32>
    %413 = vector.broadcast %408 : vector<64x1xf32> to vector<64x64xf32>
    %414 = arith.subf %412, %413 : vector<64x64xf32>
    %415 = vector.broadcast %410 : vector<1x64xf32> to vector<64x64xf32>
    %416 = arith.subf %414, %415 : vector<64x64xf32>
    %cst_132 = arith.constant 0.353553385 : f32
    %417 = vector.broadcast %cst_132 : f32 to vector<64x64xf32>
    %418 = arith.mulf %416, %417 : vector<64x64xf32>
    %419 = math.exp %418 : vector<64x64xf32>
    %cst_133 = arith.constant dense<0.000000e+00> : vector<64xf32>
    %420 = vector.multi_reduction <add>, %419, %cst_133 [1] : vector<64x64xf32> to vector<64xf32>
    %421 = vector.shape_cast %420 : vector<64xf32> to vector<64x1xf32>
    %422 = tpu.reciprocal %421 : vector<64x1xf32> -> vector<64x1xf32>
    %423 = vector.broadcast %422 : vector<64x1xf32> to vector<64x64xf32>
    %424 = arith.mulf %419, %423 : vector<64x64xf32>
    %cst_134 = arith.constant dense<0.000000e+00> : vector<64x8xf32>
    %425 = tpu.matmul %424, %404, %cst_134 {dimension_numbers = #tpu.dot_dimension_numbers<[1], [0], [0], [1], [0, 0, 1, 1], [], []>} : vector<64x64xf32>, vector<64x8xf32>, vector<64x8xf32> -> vector<64x8xf32>
    %426 = vector.extract_strided_slice %309 {offsets = [64, 8], sizes = [64, 8], strides = [1, 1]} : vector<128x64xf32> to vector<64x8xf32>
    %427 = vector.extract_strided_slice %309 {offsets = [64, 40], sizes = [64, 8], strides = [1, 1]} : vector<128x64xf32> to vector<64x8xf32>
    %cst_135 = arith.constant dense<0.000000e+00> : vector<64x64xf32>
    %428 = tpu.matmul %426, %426, %cst_135 {dimension_numbers = #tpu.dot_dimension_numbers<[1], [1], [0], [0], [0, 0, 1, 0], [], []>} : vector<64x8xf32>, vector<64x8xf32>, vector<64x64xf32> -> vector<64x64xf32>
    %429 = arith.mulf %428, %4 : vector<64x64xf32>
    %cst_136 = arith.constant dense<0.000000e+00> : vector<64xf32>
    %430 = vector.multi_reduction <add>, %429, %cst_136 [1] : vector<64x64xf32> to vector<64xf32>
    %431 = vector.shape_cast %430 : vector<64xf32> to vector<64x1xf32>
    %cst_137 = arith.constant dense<0.000000e+00> : vector<64xf32>
    %432 = vector.multi_reduction <add>, %429, %cst_137 [0] : vector<64x64xf32> to vector<64xf32>
    %433 = vector.shape_cast %432 : vector<64xf32> to vector<1x64xf32>
    %cst_138 = arith.constant 2.000000e+00 : f32
    %434 = vector.broadcast %cst_138 : f32 to vector<64x64xf32>
    %435 = arith.mulf %434, %428 : vector<64x64xf32>
    %436 = vector.broadcast %431 : vector<64x1xf32> to vector<64x64xf32>
    %437 = arith.subf %435, %436 : vector<64x64xf32>
    %438 = vector.broadcast %433 : vector<1x64xf32> to vector<64x64xf32>
    %439 = arith.subf %437, %438 : vector<64x64xf32>
    %cst_139 = arith.constant 0.353553385 : f32
    %440 = vector.broadcast %cst_139 : f32 to vector<64x64xf32>
    %441 = arith.mulf %439, %440 : vector<64x64xf32>
    %442 = math.exp %441 : vector<64x64xf32>
    %cst_140 = arith.constant dense<0.000000e+00> : vector<64xf32>
    %443 = vector.multi_reduction <add>, %442, %cst_140 [1] : vector<64x64xf32> to vector<64xf32>
    %444 = vector.shape_cast %443 : vector<64xf32> to vector<64x1xf32>
    %445 = tpu.reciprocal %444 : vector<64x1xf32> -> vector<64x1xf32>
    %446 = vector.broadcast %445 : vector<64x1xf32> to vector<64x64xf32>
    %447 = arith.mulf %442, %446 : vector<64x64xf32>
    %cst_141 = arith.constant dense<0.000000e+00> : vector<64x8xf32>
    %448 = tpu.matmul %447, %427, %cst_141 {dimension_numbers = #tpu.dot_dimension_numbers<[1], [0], [0], [1], [0, 0, 1, 1], [], []>} : vector<64x64xf32>, vector<64x8xf32>, vector<64x8xf32> -> vector<64x8xf32>
    %449 = vector.extract_strided_slice %309 {offsets = [64, 16], sizes = [64, 8], strides = [1, 1]} : vector<128x64xf32> to vector<64x8xf32>
    %450 = vector.extract_strided_slice %309 {offsets = [64, 48], sizes = [64, 8], strides = [1, 1]} : vector<128x64xf32> to vector<64x8xf32>
    %cst_142 = arith.constant dense<0.000000e+00> : vector<64x64xf32>
    %451 = tpu.matmul %449, %449, %cst_142 {dimension_numbers = #tpu.dot_dimension_numbers<[1], [1], [0], [0], [0, 0, 1, 0], [], []>} : vector<64x8xf32>, vector<64x8xf32>, vector<64x64xf32> -> vector<64x64xf32>
    %452 = arith.mulf %451, %4 : vector<64x64xf32>
    %cst_143 = arith.constant dense<0.000000e+00> : vector<64xf32>
    %453 = vector.multi_reduction <add>, %452, %cst_143 [1] : vector<64x64xf32> to vector<64xf32>
    %454 = vector.shape_cast %453 : vector<64xf32> to vector<64x1xf32>
    %cst_144 = arith.constant dense<0.000000e+00> : vector<64xf32>
    %455 = vector.multi_reduction <add>, %452, %cst_144 [0] : vector<64x64xf32> to vector<64xf32>
    %456 = vector.shape_cast %455 : vector<64xf32> to vector<1x64xf32>
    %cst_145 = arith.constant 2.000000e+00 : f32
    %457 = vector.broadcast %cst_145 : f32 to vector<64x64xf32>
    %458 = arith.mulf %457, %451 : vector<64x64xf32>
    %459 = vector.broadcast %454 : vector<64x1xf32> to vector<64x64xf32>
    %460 = arith.subf %458, %459 : vector<64x64xf32>
    %461 = vector.broadcast %456 : vector<1x64xf32> to vector<64x64xf32>
    %462 = arith.subf %460, %461 : vector<64x64xf32>
    %cst_146 = arith.constant 0.353553385 : f32
    %463 = vector.broadcast %cst_146 : f32 to vector<64x64xf32>
    %464 = arith.mulf %462, %463 : vector<64x64xf32>
    %465 = math.exp %464 : vector<64x64xf32>
    %cst_147 = arith.constant dense<0.000000e+00> : vector<64xf32>
    %466 = vector.multi_reduction <add>, %465, %cst_147 [1] : vector<64x64xf32> to vector<64xf32>
    %467 = vector.shape_cast %466 : vector<64xf32> to vector<64x1xf32>
    %468 = tpu.reciprocal %467 : vector<64x1xf32> -> vector<64x1xf32>
    %469 = vector.broadcast %468 : vector<64x1xf32> to vector<64x64xf32>
    %470 = arith.mulf %465, %469 : vector<64x64xf32>
    %cst_148 = arith.constant dense<0.000000e+00> : vector<64x8xf32>
    %471 = tpu.matmul %470, %450, %cst_148 {dimension_numbers = #tpu.dot_dimension_numbers<[1], [0], [0], [1], [0, 0, 1, 1], [], []>} : vector<64x64xf32>, vector<64x8xf32>, vector<64x8xf32> -> vector<64x8xf32>
    %472 = vector.extract_strided_slice %309 {offsets = [64, 24], sizes = [64, 8], strides = [1, 1]} : vector<128x64xf32> to vector<64x8xf32>
    %473 = vector.extract_strided_slice %309 {offsets = [64, 56], sizes = [64, 8], strides = [1, 1]} : vector<128x64xf32> to vector<64x8xf32>
    %cst_149 = arith.constant dense<0.000000e+00> : vector<64x64xf32>
    %474 = tpu.matmul %472, %472, %cst_149 {dimension_numbers = #tpu.dot_dimension_numbers<[1], [1], [0], [0], [0, 0, 1, 0], [], []>} : vector<64x8xf32>, vector<64x8xf32>, vector<64x64xf32> -> vector<64x64xf32>
    %475 = arith.mulf %474, %4 : vector<64x64xf32>
    %cst_150 = arith.constant dense<0.000000e+00> : vector<64xf32>
    %476 = vector.multi_reduction <add>, %475, %cst_150 [1] : vector<64x64xf32> to vector<64xf32>
    %477 = vector.shape_cast %476 : vector<64xf32> to vector<64x1xf32>
    %cst_151 = arith.constant dense<0.000000e+00> : vector<64xf32>
    %478 = vector.multi_reduction <add>, %475, %cst_151 [0] : vector<64x64xf32> to vector<64xf32>
    %479 = vector.shape_cast %478 : vector<64xf32> to vector<1x64xf32>
    %cst_152 = arith.constant 2.000000e+00 : f32
    %480 = vector.broadcast %cst_152 : f32 to vector<64x64xf32>
    %481 = arith.mulf %480, %474 : vector<64x64xf32>
    %482 = vector.broadcast %477 : vector<64x1xf32> to vector<64x64xf32>
    %483 = arith.subf %481, %482 : vector<64x64xf32>
    %484 = vector.broadcast %479 : vector<1x64xf32> to vector<64x64xf32>
    %485 = arith.subf %483, %484 : vector<64x64xf32>
    %cst_153 = arith.constant 0.353553385 : f32
    %486 = vector.broadcast %cst_153 : f32 to vector<64x64xf32>
    %487 = arith.mulf %485, %486 : vector<64x64xf32>
    %488 = math.exp %487 : vector<64x64xf32>
    %cst_154 = arith.constant dense<0.000000e+00> : vector<64xf32>
    %489 = vector.multi_reduction <add>, %488, %cst_154 [1] : vector<64x64xf32> to vector<64xf32>
    %490 = vector.shape_cast %489 : vector<64xf32> to vector<64x1xf32>
    %491 = tpu.reciprocal %490 : vector<64x1xf32> -> vector<64x1xf32>
    %492 = vector.broadcast %491 : vector<64x1xf32> to vector<64x64xf32>
    %493 = arith.mulf %488, %492 : vector<64x64xf32>
    %cst_155 = arith.constant dense<0.000000e+00> : vector<64x8xf32>
    %494 = tpu.matmul %493, %473, %cst_155 {dimension_numbers = #tpu.dot_dimension_numbers<[1], [0], [0], [1], [0, 0, 1, 1], [], []>} : vector<64x64xf32>, vector<64x8xf32>, vector<64x8xf32> -> vector<64x8xf32>
    %495 = tpu.concatenate %425, %448, %471, %494 in 1 : vector<64x8xf32>, vector<64x8xf32>, vector<64x8xf32>, vector<64x8xf32> -> vector<64x32xf32>
    %496 = tpu.concatenate %402, %495 in 0 : vector<64x32xf32>, vector<64x32xf32> -> vector<128x32xf32>
    %c0_156 = arith.constant 0 : index
    %c192 = arith.constant 192 : index
    %497 = vector.load %arg2[%c0_156, %c192] : memref<32x512xf32, #tpu.memory_space<vmem>>, vector<32x32xf32>
    %cst_157 = arith.constant dense<0.000000e+00> : vector<128x32xf32>
    %498 = tpu.matmul %496, %497, %cst_157 {dimension_numbers = #tpu.dot_dimension_numbers<[1], [0], [0], [1], [0, 0, 1, 1], [], []>} : vector<128x32xf32>, vector<32x32xf32>, vector<128x32xf32> -> vector<128x32xf32>
    %499 = arith.addf %280, %498 : vector<128x32xf32>
    %c10 = arith.constant 10 : index
    %c0_158 = arith.constant 0 : index
    %500 = vector.load %arg3[%c10, %c0_158] : memref<16x256xf32, #tpu.memory_space<vmem>>, vector<1x32xf32>
    %501 = vector.broadcast %500 : vector<1x32xf32> to vector<128x32xf32>
    %502 = arith.addf %499, %501 : vector<128x32xf32>
    %c11 = arith.constant 11 : index
    %c0_159 = arith.constant 0 : index
    %503 = vector.load %arg3[%c11, %c0_159] : memref<16x256xf32, #tpu.memory_space<vmem>>, vector<1x32xf32>
    %c12 = arith.constant 12 : index
    %c0_160 = arith.constant 0 : index
    %504 = vector.load %arg3[%c12, %c0_160] : memref<16x256xf32, #tpu.memory_space<vmem>>, vector<1x32xf32>
    %cst_161 = arith.constant dense<0.000000e+00> : vector<128xf32>
    %505 = vector.multi_reduction <add>, %502, %cst_161 [1] : vector<128x32xf32> to vector<128xf32>
    %506 = vector.shape_cast %505 : vector<128xf32> to vector<128x1xf32>
    %cst_162 = arith.constant 3.200000e+01 : f32
    %507 = vector.broadcast %cst_162 : f32 to vector<128x1xf32>
    %508 = arith.divf %506, %507 : vector<128x1xf32>
    %509 = vector.broadcast %508 : vector<128x1xf32> to vector<128x32xf32>
    %510 = arith.subf %502, %509 : vector<128x32xf32>
    %511 = arith.mulf %510, %510 : vector<128x32xf32>
    %cst_163 = arith.constant dense<0.000000e+00> : vector<128xf32>
    %512 = vector.multi_reduction <add>, %511, %cst_163 [1] : vector<128x32xf32> to vector<128xf32>
    %513 = vector.shape_cast %512 : vector<128xf32> to vector<128x1xf32>
    %cst_164 = arith.constant 3.200000e+01 : f32
    %514 = vector.broadcast %cst_164 : f32 to vector<128x1xf32>
    %515 = arith.divf %513, %514 : vector<128x1xf32>
    %516 = vector.broadcast %508 : vector<128x1xf32> to vector<128x32xf32>
    %517 = arith.subf %502, %516 : vector<128x32xf32>
    %cst_165 = arith.constant 9.99999974E-6 : f32
    %518 = vector.broadcast %cst_165 : f32 to vector<128x1xf32>
    %519 = arith.addf %515, %518 : vector<128x1xf32>
    %520 = math.rsqrt %519 : vector<128x1xf32>
    %521 = vector.broadcast %520 : vector<128x1xf32> to vector<128x32xf32>
    %522 = arith.mulf %517, %521 : vector<128x32xf32>
    %523 = vector.broadcast %503 : vector<1x32xf32> to vector<128x32xf32>
    %524 = arith.mulf %522, %523 : vector<128x32xf32>
    %525 = vector.broadcast %504 : vector<1x32xf32> to vector<128x32xf32>
    %526 = arith.addf %524, %525 : vector<128x32xf32>
    %c0_166 = arith.constant 0 : index
    %c256 = arith.constant 256 : index
    %527 = vector.load %arg2[%c0_166, %c256] : memref<32x512xf32, #tpu.memory_space<vmem>>, vector<32x256xf32>
    %cst_167 = arith.constant dense<0.000000e+00> : vector<128x256xf32>
    %528 = tpu.matmul %526, %527, %cst_167 {dimension_numbers = #tpu.dot_dimension_numbers<[1], [0], [0], [1], [0, 0, 1, 1], [], []>} : vector<128x32xf32>, vector<32x256xf32>, vector<128x256xf32> -> vector<128x256xf32>
    %c13 = arith.constant 13 : index
    %c0_168 = arith.constant 0 : index
    %529 = vector.load %arg3[%c13, %c0_168] : memref<16x256xf32, #tpu.memory_space<vmem>>, vector<1x256xf32>
    %530 = vector.broadcast %529 : vector<1x256xf32> to vector<128x256xf32>
    %531 = arith.addf %528, %530 : vector<128x256xf32>
    %532 = vector.extract_strided_slice %531 {offsets = [0, 0], sizes = [128, 128], strides = [1, 1]} : vector<128x256xf32> to vector<128x128xf32>
    %533 = vector.extract_strided_slice %531 {offsets = [0, 128], sizes = [128, 128], strides = [1, 1]} : vector<128x256xf32> to vector<128x128xf32>
    %cst_169 = arith.constant 5.000000e-01 : f32
    %534 = vector.broadcast %cst_169 : f32 to vector<128x128xf32>
    %535 = arith.mulf %534, %533 : vector<128x128xf32>
    %cst_170 = arith.constant 0.707106769 : f32
    %536 = vector.broadcast %cst_170 : f32 to vector<128x128xf32>
    %537 = arith.mulf %533, %536 : vector<128x128xf32>
    %538 = math.absf %537 : vector<128x128xf32>
    %cst_171 = arith.constant 0.327591091 : f32
    %539 = vector.broadcast %cst_171 : f32 to vector<128x128xf32>
    %540 = arith.mulf %539, %538 : vector<128x128xf32>
    %cst_172 = arith.constant 1.000000e+00 : f32
    %541 = vector.broadcast %cst_172 : f32 to vector<128x128xf32>
    %542 = arith.addf %541, %540 : vector<128x128xf32>
    %cst_173 = arith.constant 1.000000e+00 : f32
    %543 = vector.broadcast %cst_173 : f32 to vector<128x128xf32>
    %544 = arith.divf %543, %542 : vector<128x128xf32>
    %cst_174 = arith.constant 1.06140542 : f32
    %545 = vector.broadcast %cst_174 : f32 to vector<128x128xf32>
    %546 = arith.mulf %545, %544 : vector<128x128xf32>
    %cst_175 = arith.constant -1.45315206 : f32
    %547 = vector.broadcast %cst_175 : f32 to vector<128x128xf32>
    %548 = arith.addf %546, %547 : vector<128x128xf32>
    %549 = arith.mulf %548, %544 : vector<128x128xf32>
    %cst_176 = arith.constant 1.42141378 : f32
    %550 = vector.broadcast %cst_176 : f32 to vector<128x128xf32>
    %551 = arith.addf %549, %550 : vector<128x128xf32>
    %552 = arith.mulf %551, %544 : vector<128x128xf32>
    %cst_177 = arith.constant -0.284496725 : f32
    %553 = vector.broadcast %cst_177 : f32 to vector<128x128xf32>
    %554 = arith.addf %552, %553 : vector<128x128xf32>
    %555 = arith.mulf %554, %544 : vector<128x128xf32>
    %cst_178 = arith.constant 0.254829586 : f32
    %556 = vector.broadcast %cst_178 : f32 to vector<128x128xf32>
    %557 = arith.addf %555, %556 : vector<128x128xf32>
    %558 = arith.mulf %557, %544 : vector<128x128xf32>
    %cst_179 = arith.constant 0.000000e+00 : f32
    %559 = vector.broadcast %cst_179 : f32 to vector<128x128xf32>
    %560 = arith.subf %559, %538 : vector<128x128xf32>
    %561 = arith.mulf %560, %538 : vector<128x128xf32>
    %562 = math.exp %561 : vector<128x128xf32>
    %563 = arith.mulf %558, %562 : vector<128x128xf32>
    %cst_180 = arith.constant 1.000000e+00 : f32
    %564 = vector.broadcast %cst_180 : f32 to vector<128x128xf32>
    %565 = arith.subf %564, %563 : vector<128x128xf32>
    %cst_181 = arith.constant 0.000000e+00 : f32
    %566 = vector.broadcast %cst_181 : f32 to vector<128x128xf32>
    %567 = arith.cmpf oge, %537, %566 : vector<128x128xf32>
    %cst_182 = arith.constant 0.000000e+00 : f32
    %568 = vector.broadcast %cst_182 : f32 to vector<128x128xf32>
    %569 = arith.subf %568, %565 : vector<128x128xf32>
    %570 = arith.select %567, %565, %569 : vector<128x128xi1>, vector<128x128xf32>
    %cst_183 = arith.constant 1.000000e+00 : f32
    %571 = vector.broadcast %cst_183 : f32 to vector<128x128xf32>
    %572 = arith.addf %571, %570 : vector<128x128xf32>
    %573 = arith.mulf %535, %572 : vector<128x128xf32>
    %574 = arith.mulf %532, %573 : vector<128x128xf32>
    %c0_184 = arith.constant 0 : index
    %c0_185 = arith.constant 0 : index
    %575 = vector.load %arg4[%c0_184, %c0_185] : memref<128x32xf32, #tpu.memory_space<vmem>>, vector<128x32xf32>
    %cst_186 = arith.constant dense<0.000000e+00> : vector<128x32xf32>
    %576 = tpu.matmul %574, %575, %cst_186 {dimension_numbers = #tpu.dot_dimension_numbers<[1], [0], [0], [1], [0, 0, 1, 1], [], []>} : vector<128x128xf32>, vector<128x32xf32>, vector<128x32xf32> -> vector<128x32xf32>
    %577 = arith.addf %502, %576 : vector<128x32xf32>
    %c14 = arith.constant 14 : index
    %c0_187 = arith.constant 0 : index
    %578 = vector.load %arg3[%c14, %c0_187] : memref<16x256xf32, #tpu.memory_space<vmem>>, vector<1x32xf32>
    %579 = vector.broadcast %578 : vector<1x32xf32> to vector<128x32xf32>
    %580 = arith.addf %577, %579 : vector<128x32xf32>
    %c0_188 = arith.constant 0 : index
    %c224 = arith.constant 224 : index
    %581 = vector.load %arg2[%c0_188, %c224] : memref<32x512xf32, #tpu.memory_space<vmem>>, vector<32x32xf32>
    %cst_189 = arith.constant dense<0.000000e+00> : vector<128x32xf32>
    %582 = tpu.matmul %580, %581, %cst_189 {dimension_numbers = #tpu.dot_dimension_numbers<[1], [0], [0], [1], [0, 0, 1, 1], [], []>} : vector<128x32xf32>, vector<32x32xf32>, vector<128x32xf32> -> vector<128x32xf32>
    %c15 = arith.constant 15 : index
    %c0_190 = arith.constant 0 : index
    %583 = vector.load %arg3[%c15, %c0_190] : memref<16x256xf32, #tpu.memory_space<vmem>>, vector<1x32xf32>
    %584 = vector.broadcast %583 : vector<1x32xf32> to vector<128x32xf32>
    %585 = arith.addf %582, %584 : vector<128x32xf32>
    %586 = vector.extract_strided_slice %585 {offsets = [0, 0], sizes = [64, 32], strides = [1, 1]} : vector<128x32xf32> to vector<64x32xf32>
    %587 = tpu.transpose %586, [1, 0] : vector<64x32xf32> -> vector<32x64xf32>
    %cst_191 = arith.constant 1.000000e+00 : f32
    %588 = vector.broadcast %cst_191 : f32 to vector<32x64xf32>
    %589 = arith.mulf %6, %588 : vector<32x64xf32>
    %590 = arith.addf %587, %589 : vector<32x64xf32>
    %c0_192 = arith.constant 0 : index
    %c0_193 = arith.constant 0 : index
    %c0_194 = arith.constant 0 : index
    %591 = vector.load %arg5[%c0_192, %c0_193, %c0_194] : memref<2x32x64xf32, #tpu.memory_space<vmem>>, vector<1x32x64xf32>
    %592 = vector.shape_cast %591 : vector<1x32x64xf32> to vector<32x64xf32>
    %593 = vector.shape_cast %590 : vector<32x64xf32> to vector<1x32x64xf32>
    tpu.vector_store %arg5[%c0_192, %c0_193, %c0_194], %593 {strides = array<i32>} : memref<2x32x64xf32, #tpu.memory_space<vmem>>, vector<1x32x64xf32>,
    %594 = vector.extract_strided_slice %585 {offsets = [64, 0], sizes = [64, 32], strides = [1, 1]} : vector<128x32xf32> to vector<64x32xf32>
    %595 = tpu.transpose %594, [1, 0] : vector<64x32xf32> -> vector<32x64xf32>
    %cst_195 = arith.constant 1.000000e+00 : f32
    %596 = vector.broadcast %cst_195 : f32 to vector<32x64xf32>
    %597 = arith.mulf %27, %596 : vector<32x64xf32>
    %598 = arith.addf %595, %597 : vector<32x64xf32>
    %c1_196 = arith.constant 1 : index
    %c0_197 = arith.constant 0 : index
    %c0_198 = arith.constant 0 : index
    %599 = vector.load %arg5[%c1_196, %c0_197, %c0_198] : memref<2x32x64xf32, #tpu.memory_space<vmem>>, vector<1x32x64xf32>
    %600 = vector.shape_cast %599 : vector<1x32x64xf32> to vector<32x64xf32>
    %601 = vector.shape_cast %598 : vector<32x64xf32> to vector<1x32x64xf32>
    tpu.vector_store %arg5[%c1_196, %c0_197, %c0_198], %601 {strides = array<i32>} : memref<2x32x64xf32, #tpu.memory_space<vmem>>, vector<1x32x64xf32>,
    return
  }
  func.func @transform_0(%arg0: i32) -> (i32, i32, i32) {
    %c0_i32 = arith.constant 0 : i32
    %c0_i32_0 = arith.constant 0 : i32
    %c0_i32_1 = arith.constant 0 : i32
    return %arg0, %c0_i32, %c0_i32_0 : i32, i32, i32
  }
  func.func @transform_1(%arg0: i32) -> (i32, i32) {
    %c0_i32 = arith.constant 0 : i32
    %c0_i32_0 = arith.constant 0 : i32
    %c0_i32_1 = arith.constant 0 : i32
    return %c0_i32, %c0_i32_0 : i32, i32
  }
  func.func @transform_2(%arg0: i32) -> (i32, i32) {
    %c0_i32 = arith.constant 0 : i32
    %c0_i32_0 = arith.constant 0 : i32
    %c0_i32_1 = arith.constant 0 : i32
    return %c0_i32, %c0_i32_0 : i32, i32
  }
  func.func @transform_3(%arg0: i32) -> (i32, i32) {
    %c0_i32 = arith.constant 0 : i32
    %c0_i32_0 = arith.constant 0 : i32
    %c0_i32_1 = arith.constant 0 : i32
    return %c0_i32, %c0_i32_0 : i32, i32
  }
  func.func @transform_4(%arg0: i32) -> (i32, i32, i32) {
    %c0_i32 = arith.constant 0 : i32
    %c0_i32_0 = arith.constant 0 : i32
    %c0_i32_1 = arith.constant 0 : i32
    return %arg0, %c0_i32, %c0_i32_0 : i32, i32, i32
  }
}

</mosaic_0001>

<bundles_post_ra>
// kernel: spatial_transformer_pallas.1
= control target key start
LH: loop header
LB: loop body
LE: loop exit
PB: predicated region body
PF: predicated region fallthrough
CT: control target
= control target key end

     0   :  { %vm56_vm0 = vcmask 523264   ;;  %vm270_vm1 = vcmask 261120   ;;  %s14601_s19 = smov 96   ;;  %vm917_vm2 = vcmask 64512   ;;  %s14602_s26 = smov 120   ;;  %vm2706_vm12 = vcmask 130048   ;;  %s19093_s0 = inlined_call_operand.vmem [shape: f32[2,32,64], index: 0, kind: input, shape index: {}]   ;;  %s19094_s1 = inlined_call_operand.vmem [shape: f32[32,512], index: 1, kind: input, shape index: {}]   ;;  %s19095_s2 = inlined_call_operand.vmem [shape: f32[16,256], index: 2, kind: input, shape index: {}]   ;;  %s19096_s3 = inlined_call_operand.vmem [shape: f32[128,32], index: 3, kind: input, shape index: {}]   ;;  %s19097_s4 = inlined_call_operand.vmem [shape: f32[2,32,64], index: 4, kind: output, shape index: {}]  }
   0x1   :  { %v52_v0 = vld [vmem:[%s19093_s0] sm:$0xff]  ;;  %v54_v1 = vld [vmem:[%s19093_s0 + $0x10] sm:$0xff]  ;;  %v53_v2 = vld [vmem:[%s19093_s0 + $0x8] sm:$0xff]  ;;  %s14603_s27 = smov 88   ;;  %s14605_s28 = smov 112   ;;  %vm2715_vm13 = vcmask 195584  }
   0x2   :  { %v57_v3 = vsel %vm56_vm0, %v52_v0, 0.0  ;;  %v63_v4 = vsel %vm56_vm0, %v54_v1, 0.0  ;;  %v55_v5 = vld [vmem:[%s19093_s0 + $0x18] sm:$0xff]  ;;  %v60_v6 = vsel %vm56_vm0, %v53_v2, 0.0  ;;  %v10469_v28 = vld [vmem:[%s19093_s0 + $0x20] sm:$0xff]  ;;  %v10470_v30 = vld [vmem:[%s19093_s0 + $0x28] sm:$0xff] }
   0x3   :  { %58 = vadd.xlane.f32.xlu0 %v57_v3  ;;  %64 = vadd.xlane.f32.xlu1 %v63_v4  ;;  %v66_v7 = vsel %vm56_vm0, %v55_v5, 0.0  ;;  %v147_v29 = vsel %vm56_vm0, %v10469_v28, 0.0  ;;  %v150_v31 = vsel %vm56_vm0, %v10470_v30, 0.0  ;;  %v10471_v32 = vld [vmem:[%s19093_s0 + $0x30] sm:$0xff]  ;;  %v10472_v34 = vld [vmem:[%s19093_s0 + $0x38] sm:$0xff]  ;;  %v14690_v56 = vld [vmem:[%s19094_s1] sm:$0xff] }
   0x4   :  { %v153_v33 = vsel %vm56_vm0, %v10471_v32, 0.0  ;;  %v156_v35 = vsel %vm56_vm0, %v10472_v34, 0.0  ;;  %v14695_v57 = vld [vmem:[%s19094_s1 + $0x20] sm:$0xff]  ;;  %vm15031_vm3 = vmpackc.low %vm917_vm2, %vm917_vm2  ;;  %s14606_s29 = smov 80   ;;  %s14607_s30 = smov 104  }
   0x5   :  { %v12782_v58 = vpack.c.bf16 %v14695_v57, %v14690_v56  ;;  %v14707_v3 = vld [vmem:[%s19094_s1 + $0x40] sm:$0xff]  ;;  %s14608_s5 = smov 72   ;;  %s14609_s12 = smov 32  }
   0x6   :  { %v14712_v4 = vld [vmem:[%s19094_s1 + $0x60] sm:$0xff]  ;;  %s14610_s17 = smov 8   ;;  %s14611_s18 = smov 16  }
   0x7   :  { %61 = vadd.xlane.f32.xlu0 %v60_v6  ;;  %67 = vadd.xlane.f32.xlu1 %v66_v7  ;;  %s14612_s20 = smov 24  }
   0x8   :  { %12783 = vmatprep.subr.bf16.mxu0 %v12782_v58 }
   0x9   :  { %12785 = vmatpush3.bf16.msra.mxu0 %v12782_v58 }
  0x90   :  { %v59_v8 = vpop.xlane.xlu0 %58  ;;  %v65_v9 = vpop.xlane.xlu1 %64 }
  0x91   :  { %v70_v10 = vmul.f32 0.015625, %v59_v8  ;;  %v72_v11 = vmul.f32 0.015625, %v65_v9 }
  0x93   :  { %v74_v12 = vsub.f32 %v52_v0, %v70_v10  ;;  %v14655_v13 = vsub.f32 %v54_v1, %v72_v11 }
  0x94   :  { %v62_v14 = vpop.xlane.xlu0 %61  ;;  %v68_v15 = vpop.xlane.xlu1 %67 }
  0x95   :  { %v71_v16 = vmul.f32 0.015625, %v62_v14  ;;  %v73_v17 = vmul.f32 0.015625, %v68_v15  ;;  %v78_v18 = vmul.f32 %v74_v12, %v74_v12  ;;  %v80_v19 = vmul.f32 %v14655_v13, %v14655_v13 }
  0x97   :  { %v75_v20 = vsub.f32 %v53_v2, %v71_v16  ;;  %v14659_v21 = vsub.f32 %v55_v5, %v73_v17  ;;  %v82_v22 = vsel %vm56_vm0, %v78_v18, 0.0  ;;  %v88_v23 = vsel %vm56_vm0, %v80_v19, 0.0  ;;  %v14732_v18 = vld [vmem:[%s19095_s2] ss:$0 sm:$0xff] }
  0x98   :  { %83 = vadd.xlane.f32.xlu0 %v82_v22  ;;  %v12786_v5 = vpack.c.bf16 %v14712_v4, %v14707_v3 }
  0x99   :  { %v79_v24 = vmul.f32 %v75_v20, %v75_v20  ;;  %v81_v25 = vmul.f32 %v14659_v21, %v14659_v21 }
  0x9a   :  { %12787 = vmatprep.subr.bf16.mxu0 %v12786_v5 }
  0x9b   :  { %v85_v26 = vsel %vm56_vm0, %v79_v24, 0.0  ;;  %v91_v27 = vsel %vm56_vm0, %v81_v25, 0.0  ;;  %12789 = vmatpush3.bf16.msra.mxu0 %v12786_v5 }
  0x9c   :  { %89 = vadd.xlane.f32.xlu0 %v88_v23  ;;  %86 = vadd.xlane.f32.xlu1 %v85_v26 }
  0xa0   :  { %92 = vadd.xlane.f32.xlu1 %v91_v27 }
  0xa4   :  { %148 = vadd.xlane.f32.xlu1 %v147_v29 }
  0xa8   :  { %151 = vadd.xlane.f32.xlu1 %v150_v31 }
  0xac   :  { %154 = vadd.xlane.f32.xlu1 %v153_v33 }
  0xb0   :  { %157 = vadd.xlane.f32.xlu1 %v156_v35 }
 0x125   :  { %v84_v36 = vpop.xlane.xlu0 %83 }
 0x126   :  { %v94_v37 = vmul.f32 0.015625, %v84_v36 }
 0x128   :  { %v98_v38 = vadd.f32 1e-05, %v94_v37 }
 0x129   :  { %v87_v39 = vpop.xlane.xlu1 %86  ;;  %v90_v40 = vpop.xlane.xlu0 %89 }
 0x12a   :  { %13891 = vrsqrt.f32 %v98_v38  ;;  %v95_v41 = vmul.f32 0.015625, %v87_v39  ;;  %v96_v42 = vmul.f32 0.015625, %v90_v40 }
 0x12c   :  { %v99_v43 = vadd.f32 1e-05, %v95_v41  ;;  %v100_v44 = vadd.f32 1e-05, %v96_v42 }
 0x12d   :  { %v93_v45 = vpop.xlane.xlu1 %92 }
 0x12e   :  { %13893 = vrsqrt.f32 %v99_v43  ;;  %v97_v46 = vmul.f32 0.015625, %v93_v45 }
 0x12f   :  { %13895 = vrsqrt.f32 %v100_v44  ;;  %v14766_v44 = vld [vmem:[%s19095_s2 + $0x2] ss:$0 sm:$0xff] }
 0x130   :  { %v101_v47 = vadd.f32 1e-05, %v97_v46 }
 0x131   :  { %v149_v48 = vpop.xlane.xlu1 %148 }
 0x132   :  { %v159_v49 = vmul.f32 0.015625, %v149_v48  ;;  %13897 = vrsqrt.f32 %v101_v47 }
 0x134   :  { %v13892_v50 = vpop.eup %13891  ;;  %v14683_v51 = vsub.f32 %v10469_v28, %v159_v49 }
 0x135   :  { %v106_v52 = vmul.f32 %v13892_v50, %v74_v12  ;;  %v152_v53 = vpop.xlane.xlu1 %151 }
 0x136   :  { %v160_v54 = vmul.f32 0.015625, %v152_v53  ;;  %v167_v55 = vmul.f32 %v14683_v51, %v14683_v51 }
 0x137   :  { %110 = vxpose.xlu0.b32.start [1/4] (short) (narrow) %v106_v52, 64 }
 0x138   :  { %v13894_v59 = vpop.eup %13893  ;;  %v14699_v60 = vsub.f32 %v10470_v30, %v160_v54  ;;  %v171_v61 = vsel %vm56_vm0, %v167_v55, 0.0 }
 0x139   :  { %v107_v62 = vmul.f32 %v13894_v59, %v75_v20  ;;  %172 = vadd.xlane.f32.xlu1 %v171_v61  ;;  %v155_v63 = vpop.xlane.xlu1 %154  ;;  %v13896_v0 = vpop.eup %13895  ;;  %v14737_v20 = vld [vmem:[%s19095_s2 + $0x1] ss:$0 sm:$0xff] }
 0x13a   :  { %v161_v1 = vmul.f32 0.015625, %v155_v63  ;;  %v168_v2 = vmul.f32 %v14699_v60, %v14699_v60  ;;  %v108_v8 = vmul.f32 %v13896_v0, %v14655_v13 }
 0x13b   :  { %111 = vxpose.xlu0.b32.cont [2/4] (short) (narrow) %v107_v62, 64 }
 0x13c   :  { %v14716_v6 = vsub.f32 %v10471_v32, %v161_v1  ;;  %v174_v7 = vsel %vm56_vm0, %v168_v2, 0.0  ;;  %v13898_v10 = vpop.eup %13897 }
 0x13d   :  { %175 = vadd.xlane.f32.xlu1 %v174_v7  ;;  %v158_v9 = vpop.xlane.xlu1 %157  ;;  %v109_v16 = vmul.f32 %v13898_v10, %v14659_v21 }
 0x13e   :  { %v162_v11 = vmul.f32 0.015625, %v158_v9  ;;  %v169_v12 = vmul.f32 %v14716_v6, %v14716_v6 }
 0x13f   :  { %112 = vxpose.xlu0.b32.cont [3/4] (short) (narrow) %v108_v8, 64 }
 0x140   :  { %v14722_v14 = vsub.f32 %v10472_v34, %v162_v11  ;;  %v177_v15 = vsel %vm56_vm0, %v169_v12, 0.0 }
 0x141   :  { %178 = vadd.xlane.f32.xlu1 %v177_v15 }
 0x142   :  { %v170_v13 = vmul.f32 %v14722_v14, %v14722_v14 }
 0x143   :  { %113 = vxpose.xlu0.b32.end [4/4] (short) (narrow) %v109_v16, 64 }
 0x144   :  { %v180_v17 = vsel %vm56_vm0, %v170_v13, 0.0 }
 0x145   :  { %181 = vadd.xlane.f32.xlu1 %v180_v17 }
 0x1b7   :  { %v126_v19 = vpop.trf.xlu0 }
 0x1b8   :  { %v232_v21 = vmul.f32 %v14732_v18, %v126_v19 }
 0x1ba   :  { %v249_v22 = vadd.f32 %v14737_v20, %v232_v21 }
 0x1bb   :  { %v127_v23 = vpop.trf.xlu0 }
 0x1bc   :  { %v233_v24 = vmul.f32 %v14732_v18, %v127_v23  ;;  %11646 = vmatprep.mubr.msk.f32.mxu0 %vm270_vm1, %v249_v22 }
 0x1be   :  { %v250_v25 = vadd.f32 %v14737_v20, %v233_v24 }
 0x1bf   :  { %v128_v26 = vpop.trf.xlu0 }
 0x1c0   :  { %v234_v27 = vmul.f32 %v14732_v18, %v128_v26  ;;  %11647 = vmatmul.mubr.msk.f32.vlgmr.msra.gmra.mrb[0].mxu0 %vm270_vm1, %v250_v25 }
 0x1c2   :  { %v251_v28 = vadd.f32 %v14737_v20, %v234_v27 }
 0x1c3   :  { %v129_v29 = vpop.trf.xlu0 }
 0x1c4   :  { %v235_v30 = vmul.f32 %v14732_v18, %v129_v29  ;;  %11649 = vmatprep.mubr.msk.f32.mxu0 %vm270_vm1, %v251_v28 }
 0x1c6   :  { %v252_v31 = vadd.f32 %v14737_v20, %v235_v30  ;;  %v173_v10 = vpop.xlane.xlu1 %172 }
 0x1c7   :  { %v130_v32 = vpop.trf.xlu0  ;;  %v183_v12 = vmul.f32 0.015625, %v173_v10 }
 0x1c8   :  { %v236_v33 = vmul.f32 %v14732_v18, %v130_v32  ;;  %11650 = vmatmul.mubr.msk.f32.gmra.mrb[2].mxu0 %vm270_vm1, %v252_v31 }
 0x1c9   :  { %v187_v16 = vadd.f32 1e-05, %v183_v12 }
 0x1ca   :  { %v253_v34 = vadd.f32 %v14737_v20, %v236_v33  ;;  %v176_v11 = vpop.xlane.xlu1 %175 }
 0x1cb   :  { %v131_v35 = vpop.trf.xlu0  ;;  %v184_v13 = vmul.f32 0.015625, %v176_v11  ;;  %13899 = vrsqrt.f32 %v187_v16 }
 0x1cc   :  { %v237_v36 = vmul.f32 %v14732_v18, %v131_v35  ;;  %11652 = vmatprep.mubr.msk.f32.mxu0 %vm270_vm1, %v253_v34 }
 0x1cd   :  { %v188_v17 = vadd.f32 1e-05, %v184_v13 }
 0x1ce   :  { %v254_v37 = vadd.f32 %v14737_v20, %v237_v36  ;;  %v179_v15 = vpop.xlane.xlu1 %178 }
 0x1cf   :  { %v132_v38 = vpop.trf.xlu0  ;;  %v185_v19 = vmul.f32 0.015625, %v179_v15  ;;  %13901 = vrsqrt.f32 %v188_v17 }
 0x1d0   :  { %v238_v39 = vmul.f32 %v14732_v18, %v132_v38  ;;  %11653 = vmatmul.mubr.msk.f32.gmra.mrb[4].mxu0 %vm270_vm1, %v254_v37 }
 0x1d1   :  { %v189_v22 = vadd.f32 1e-05, %v185_v19 }
 0x1d2   :  { %v255_v40 = vadd.f32 %v14737_v20, %v238_v39  ;;  %v182_v21 = vpop.xlane.xlu1 %181 }
 0x1d3   :  { %v133_v41 = vpop.trf.xlu0  ;;  %v186_v23 = vmul.f32 0.015625, %v182_v21  ;;  %13903 = vrsqrt.f32 %v189_v22 }
 0x1d4   :  { %v239_v42 = vmul.f32 %v14732_v18, %v133_v41  ;;  %11655 = vmatprep.mubr.msk.f32.mxu0 %vm270_vm1, %v255_v40 }
 0x1d5   :  { %v190_v24 = vadd.f32 1e-05, %v186_v23  ;;  %v13900_v25 = vpop.eup %13899 }
 0x1d6   :  { %v256_v43 = vadd.f32 %v14737_v20, %v239_v42  ;;  %v195_v26 = vmul.f32 %v13900_v25, %v14683_v51 }
 0x1d7   :  { %13905 = vrsqrt.f32 %v190_v24 }
 0x1d8   :  { %11656 = vmatmul.mubr.msk.f32.gmra.mrb[6].mxu0 %vm270_vm1, %v256_v43 }
 0x1d9   :  { %v13902_v27 = vpop.eup %13901 }
 0x1da   :  { %v196_v28 = vmul.f32 %v13902_v27, %v14699_v60 }
 0x1dd   :  { %v13904_v29 = vpop.eup %13903 }
 0x1de   :  { %v197_v30 = vmul.f32 %v13904_v29, %v14716_v6 }
 0x1e1   :  { %v13906_v31 = vpop.eup %13905 }
 0x1e2   :  { %v198_v32 = vmul.f32 %v13906_v31, %v14722_v14 }
 0x293   :  { %v11648_v45 = vpop.f32.mrb[0].mxu0 }
 0x294   :  { %v14769_v46 = vadd.f32 %v11648_v45, %v14766_v44  ;;  %v385_v47 = vpop.f32.mrb[1].mxu0 }
 0x295   :  { %v14772_v48 = vadd.f32 %v385_v47, %v14766_v44 }
 0x296   :  { %19161 = vst [vmem:[#allocation2_spill] sm:$0xff] %v14769_v46  ;;  %v469_v49 = vsel %vm270_vm1, %v14769_v46, 0.0 }
 0x297   :  { %19162 = vst [vmem:[#allocation3_spill] sm:$0xff] %v14772_v48  ;;  %470 = vadd.xlane.f32.xlu1 %v469_v49  ;;  %v466_v50 = vsel %vm270_vm1, %v14772_v48, 0.0 }
 0x29b   :  { %467 = vadd.xlane.f32.xlu1 %v466_v50  ;;  %v11651_v52 = vpop.f32.mrb[2].mxu0 }
 0x29c   :  { %v14779_v53 = vadd.f32 %v11651_v52, %v14766_v44  ;;  %v395_v54 = vpop.f32.mrb[3].mxu0 }
 0x29d   :  { %v14782_v55 = vadd.f32 %v395_v54, %v14766_v44 }
 0x29e   :  { %19163 = vst [vmem:[#allocation4_spill] sm:$0xff] %v14779_v53  ;;  %v475_v58 = vsel %vm270_vm1, %v14779_v53, 0.0 }
 0x29f   :  { %19164 = vst [vmem:[#allocation5_spill] sm:$0xff] %v14782_v55  ;;  %476 = vadd.xlane.f32.xlu1 %v475_v58  ;;  %v472_v59 = vsel %vm270_vm1, %v14782_v55, 0.0 }
 0x2a3   :  { %473 = vadd.xlane.f32.xlu1 %v472_v59  ;;  %v11654_v61 = vpop.f32.mrb[4].mxu0  ;;  %v13536_v59 = vpack.i.bf16 %v14712_v4, %v14707_v3 }
 0x2a4   :  { %v405_v62 = vpop.f32.mrb[5].mxu0  ;;  %v14808_v33 = vadd.f32 %v11654_v61, %v14766_v44 }
 0x2a5   :  { %v14789_v63 = vadd.f32 %v405_v62, %v14766_v44 }
 0x2a6   :  { %19168 = vst [vmem:[#allocation9_spill] sm:$0xff] %v14808_v33  ;;  %v481_v34 = vsel %vm270_vm1, %v14808_v33, 0.0 }
 0x2a7   :  { %19165 = vst [vmem:[#allocation6_spill] sm:$0xff] %v14789_v63  ;;  %v478_v0 = vsel %vm270_vm1, %v14789_v63, 0.0 }
 0x2a8   :  { %479 = vadd.xlane.f32.xlu0 %v478_v0 }
 0x2ab   :  { %v11657_v1 = vpop.f32.mrb[6].mxu0 }
 0x2ac   :  { %v415_v2 = vpop.f32.mrb[7].mxu0  ;;  %v14794_v5 = vadd.f32 %v11657_v1, %v14766_v44 }
 0x2ad   :  { %v14797_v7 = vadd.f32 %v415_v2, %v14766_v44 }
 0x2ae   :  { %19166 = vst [vmem:[#allocation7_spill] sm:$0xff] %v14794_v5  ;;  %v487_v9 = vsel %vm270_vm1, %v14794_v5, 0.0 }
 0x2af   :  { %19167 = vst [vmem:[#allocation8_spill] sm:$0xff] %v14797_v7  ;;  %v484_v8 = vsel %vm270_vm1, %v14797_v7, 0.0 }
 0x2b0   :  { %485 = vadd.xlane.f32.xlu0 %v484_v8 }
 0x2b4   :  { %488 = vadd.xlane.f32.xlu0 %v487_v9 }
 0x2d6   :  { %199 = vxpose.xlu1.b32.start [1/4] (short) (narrow) %v195_v26, 64 }
 0x2da   :  { %200 = vxpose.xlu1.b32.cont [2/4] (short) (narrow) %v196_v28, 64 }
 0x2de   :  { %201 = vxpose.xlu1.b32.cont [3/4] (short) (narrow) %v197_v30, 64 }
 0x2e2   :  { %202 = vxpose.xlu1.b32.end [4/4] (short) (narrow) %v198_v32, 64 }
 0x319   :  { %482 = vadd.xlane.f32.xlu1 %v481_v34 }
 0x324   :  { %v471_v51 = vpop.xlane.xlu1 %470 }
 0x325   :  { %v516_v35 = vmul.f32 0.03125, %v471_v51 }
 0x327   :  { %v14813_v60 = vsub.f32 %v14769_v46, %v516_v35 }
 0x328   :  { %v468_v36 = vpop.xlane.xlu1 %467 }
 0x329   :  { %v515_v37 = vmul.f32 0.03125, %v468_v36  ;;  %v548_v6 = vmul.f32 %v14813_v60, %v14813_v60 }
 0x32a   :  { %13537 = vrot.lane.b32.xlu1 %v13536_v59, %s14601_s19 }
 0x32b   :  { %v14818_v14 = vsub.f32 %v14772_v48, %v515_v37  ;;  %v566_v38 = vsel %vm270_vm1, %v548_v6, 0.0 }
 0x32c   :  { %v477_v39 = vpop.xlane.xlu1 %476  ;;  %567 = vadd.xlane.f32.xlu0 %v566_v38 }
 0x32d   :  { %v518_v40 = vmul.f32 0.03125, %v477_v39  ;;  %v547_v41 = vmul.f32 %v14818_v14, %v14818_v14 }
 0x32f   :  { %v14824_v42 = vsub.f32 %v14779_v53, %v518_v40  ;;  %v563_v43 = vsel %vm270_vm1, %v547_v41, 0.0 }
 0x330   :  { %v474_v45 = vpop.xlane.xlu1 %473  ;;  %564 = vadd.xlane.f32.xlu0 %v563_v43 }
 0x331   :  { %v517_v47 = vmul.f32 0.03125, %v474_v45  ;;  %v550_v49 = vmul.f32 %v14824_v42, %v14824_v42 }
 0x333   :  { %v14830_v50 = vsub.f32 %v14782_v55, %v517_v47  ;;  %v572_v52 = vsel %vm270_vm1, %v550_v49, 0.0 }
 0x334   :  { %573 = vadd.xlane.f32.xlu0 %v572_v52 }
 0x335   :  { %v549_v54 = vmul.f32 %v14830_v50, %v14830_v50  ;;  %v480_v28 = vpop.xlane.xlu0 %479 }
 0x336   :  { %v519_v30 = vmul.f32 0.03125, %v480_v28 }
 0x337   :  { %v569_v58 = vsel %vm270_vm1, %v549_v54, 0.0 }
 0x338   :  { %570 = vadd.xlane.f32.xlu0 %v569_v58  ;;  %v14864_v51 = vsub.f32 %v14789_v63, %v519_v30 }
 0x33a   :  { %v551_v38 = vmul.f32 %v14864_v51, %v14864_v51 }
 0x33c   :  { %v575_v40 = vsel %vm270_vm1, %v551_v38, 0.0 }
 0x33d   :  { %v486_v29 = vpop.xlane.xlu0 %485 }
 0x33e   :  { %v521_v37 = vmul.f32 0.03125, %v486_v29 }
 0x340   :  { %v14878_v39 = vsub.f32 %v14797_v7, %v521_v37 }
 0x341   :  { %v489_v31 = vpop.xlane.xlu0 %488 }
 0x342   :  { %v522_v35 = vmul.f32 0.03125, %v489_v31  ;;  %v553_v45 = vmul.f32 %v14878_v39, %v14878_v39 }
 0x344   :  { %v581_v49 = vsel %vm270_vm1, %v553_v45, 0.0 }
 0x356   :  { %v215_v61 = vpop.trf.xlu1 }
 0x357   :  { %v240_v62 = vmul.f32 %v14732_v18, %v215_v61  ;;  %v13531_v61 = vpack.i.bf16 %v14695_v57, %v14690_v56 }
 0x359   :  { %v257_v0 = vadd.f32 %v14737_v20, %v240_v62 }
 0x35a   :  { %v216_v1 = vpop.trf.xlu1 }
 0x35b   :  { %v241_v2 = vmul.f32 %v14732_v18, %v216_v1  ;;  %11658 = vmatprep.mubr.msk.f32.mxu0 %vm270_vm1, %v257_v0  ;;  %v14893_v0 = vld [vmem:[%s19095_s2 + $0x3] ss:$0 sm:$0xff] }
 0x35d   :  { %v258_v8 = vadd.f32 %v14737_v20, %v241_v2  ;;  %v14899_v2 = vld [vmem:[%s19095_s2 + $0x4] ss:$0 sm:$0xff] }
 0x35e   :  { %v217_v9 = vpop.trf.xlu1 }
 0x35f   :  { %v242_v10 = vmul.f32 %v14732_v18, %v217_v9  ;;  %11659 = vmatmul.mubr.msk.f32.gmra.mrb[8].mxu0 %vm270_vm1, %v258_v8 }
 0x361   :  { %v259_v3 = vadd.f32 %v14737_v20, %v242_v10 }
 0x362   :  { %v218_v4 = vpop.trf.xlu1 }
 0x363   :  { %v243_v11 = vmul.f32 %v14732_v18, %v218_v4  ;;  %11661 = vmatprep.mubr.msk.f32.mxu0 %vm270_vm1, %v259_v3 }
 0x365   :  { %v260_v12 = vadd.f32 %v14737_v20, %v243_v11 }
 0x366   :  { %v219_v15 = vpop.trf.xlu1 }
 0x367   :  { %v244_v16 = vmul.f32 %v14732_v18, %v219_v15  ;;  %11662 = vmatmul.mubr.msk.f32.gmra.mrb[10].mxu0 %vm270_vm1, %v260_v12 }
 0x369   :  { %v261_v13 = vadd.f32 %v14737_v20, %v244_v16 }
 0x36a   :  { %v220_v17 = vpop.trf.xlu1 }
 0x36b   :  { %v245_v19 = vmul.f32 %v14732_v18, %v220_v17  ;;  %11664 = vmatprep.mubr.msk.f32.mxu0 %vm270_vm1, %v261_v13 }
 0x36d   :  { %v262_v21 = vadd.f32 %v14737_v20, %v245_v19 }
 0x36e   :  { %v221_v22 = vpop.trf.xlu1 }
 0x36f   :  { %v246_v23 = vmul.f32 %v14732_v18, %v221_v22  ;;  %11665 = vmatmul.mubr.msk.f32.gmra.mrb[12].mxu0 %vm270_vm1, %v262_v21 }
 0x371   :  { %v263_v24 = vadd.f32 %v14737_v20, %v246_v23 }
 0x372   :  { %v222_v25 = vpop.trf.xlu1 }
 0x373   :  { %v247_v26 = vmul.f32 %v14732_v18, %v222_v25  ;;  %11667 = vmatprep.mubr.msk.f32.mxu0 %vm270_vm1, %v263_v24 }
 0x375   :  { %v264_v27 = vadd.f32 %v14737_v20, %v247_v26  ;;  %v14872_v20 = vsub.f32 %v14794_v5, %v522_v35 }
 0x377   :  { %11668 = vmatmul.mubr.msk.f32.gmra.mrb[14].mxu0 %vm270_vm1, %v264_v27  ;;  %v554_v41 = vmul.f32 %v14872_v20, %v14872_v20 }
 0x379   :  { %v584_v43 = vsel %vm270_vm1, %v554_v41, 0.0 }
 0x3a6   :  { %v483_v32 = vpop.xlane.xlu1 %482 }
 0x3a7   :  { %v520_v34 = vmul.f32 0.03125, %v483_v32 }
 0x3a9   :  { %v14867_v36 = vsub.f32 %v14808_v33, %v520_v34 }
 0x3aa   :  { %v13538_v45 = vpop.permute.xlu1 %13537 }
 0x3ab   :  { %v552_v18 = vmul.f32 %v14867_v36, %v14867_v36 }
 0x3ad   :  { %v578_v6 = vsel %vm270_vm1, %v552_v18, 0.0 }
 0x3ae   :  { %579 = vadd.xlane.f32.xlu0 %v578_v6 }
 0x3b2   :  { %576 = vadd.xlane.f32.xlu0 %v575_v40 }
 0x3b6   :  { %585 = vadd.xlane.f32.xlu0 %v584_v43 }
 0x3b9   :  { %v568_v47 = vpop.xlane.xlu0 %567 }
 0x3ba   :  { %582 = vadd.xlane.f32.xlu0 %v581_v49  ;;  %v612_v12 = vmul.f32 0.03125, %v568_v47 }
 0x3bc   :  { %v628_v22 = vadd.f32 1e-05, %v612_v12 }
 0x3bd   :  { %v565_v52 = vpop.xlane.xlu0 %564 }
 0x3be   :  { %v611_v54 = vmul.f32 0.03125, %v565_v52 }
 0x3c0   :  { %v627_v58 = vadd.f32 1e-05, %v611_v54 }
 0x3c1   :  { %v574_v56 = vpop.xlane.xlu0 %573 }
 0x3c2   :  { %13907 = vrsqrt.f32 %v627_v58  ;;  %v614_v23 = vmul.f32 0.03125, %v574_v56  ;;  %v13540_v58 = vunpack.i.h.bf16 %v13538_v45 }
 0x3c3   :  { %13909 = vrsqrt.f32 %v628_v22 }
 0x3c4   :  { %v630_v29 = vadd.f32 1e-05, %v614_v23 }
 0x3c5   :  { %v571_v11 = vpop.xlane.xlu0 %570 }
 0x3c6   :  { %v613_v15 = vmul.f32 0.03125, %v571_v11 }
 0x3c8   :  { %v629_v24 = vadd.f32 1e-05, %v613_v15 }
 0x3ca   :  { %13911 = vrsqrt.f32 %v629_v24 }
 0x3cb   :  { %13913 = vrsqrt.f32 %v630_v29 }
 0x3cc   :  { %v13908_v59 = vpop.eup %13907 }
 0x3cd   :  { %v659_v62 = vmul.f32 %v13908_v59, %v14818_v14  ;;  %v13539_v59 = vunpack.i.l.bf16 %v13538_v45 }
 0x3cf   :  { %v675_v1 = vmul.f32 %v659_v62, %v14893_v0  ;;  %v12794_v15 = vpack.c.bf16 %v13540_v58, %v13539_v59 }
 0x3d0   :  { %13532 = vrot.lane.b32.xlu0 %v13531_v61, %s14601_s19  ;;  %v13910_v61 = vpop.eup %13909 }
 0x3d1   :  { %v691_v8 = vadd.f32 %v675_v1, %v14899_v2 }
 0x3d3   :  { %11678 = vmatprep.mubr.msk.f32.mxu1 %vm270_vm1, %v691_v8 }
 0x3d4   :  { %v13912_v56 = vpop.eup %13911 }
 0x432   :  { %v11660_v57 = vpop.f32.mrb[8].mxu0 }
 0x433   :  { %v14905_v14 = vadd.f32 %v11660_v57, %v14766_v44  ;;  %v425_v9 = vpop.f32.mrb[9].mxu0 }
 0x434   :  { %v14908_v10 = vadd.f32 %v425_v9, %v14766_v44 }
 0x435   :  { %19169 = vst [vmem:[#allocation10_spill] sm:$0xff] %v14905_v14  ;;  %v493_v3 = vsel %vm270_vm1, %v14905_v14, 0.0 }
 0x436   :  { %19170 = vst [vmem:[#allocation11_spill] sm:$0xff] %v14908_v10  ;;  %494 = vadd.xlane.f32.xlu1 %v493_v3  ;;  %v490_v4 = vsel %vm270_vm1, %v14908_v10, 0.0 }
 0x437   :  { %491 = vadd.xlane.f32.xlu0 %v490_v4 }
 0x43a   :  { %v11663_v16 = vpop.f32.mrb[10].mxu0 }
 0x43b   :  { %v435_v13 = vpop.f32.mrb[11].mxu0  ;;  %v580_v17 = vpop.xlane.xlu0 %579  ;;  %v14915_v19 = vadd.f32 %v11663_v16, %v14766_v44  ;;  %v660_v16 = vmul.f32 %v13910_v61, %v14813_v60 }
 0x43c   :  { %v14918_v21 = vadd.f32 %v435_v13, %v14766_v44  ;;  %v616_v30 = vmul.f32 0.03125, %v580_v17  ;;  %v13914_v13 = vpop.eup %13913  ;;  %v661_v17 = vmul.f32 %v13912_v56, %v14830_v50 }
 0x43d   :  { %19171 = vst [vmem:[#allocation12_spill] sm:$0xff] %v14915_v19  ;;  %v499_v28 = vsel %vm270_vm1, %v14915_v19, 0.0  ;;  %v676_v22 = vmul.f32 %v660_v16, %v14893_v0  ;;  %v662_v23 = vmul.f32 %v13914_v13, %v14824_v42 }
 0x43e   :  { %19172 = vst [vmem:[#allocation13_spill] sm:$0xff] %v14918_v21  ;;  %v496_v25 = vsel %vm270_vm1, %v14918_v21, 0.0  ;;  %v632_v6 = vadd.f32 1e-05, %v616_v30 }
 0x43f   :  { %497 = vadd.xlane.f32.xlu0 %v496_v25  ;;  %v577_v26 = vpop.xlane.xlu0 %576  ;;  %v677_v25 = vmul.f32 %v661_v17, %v14893_v0  ;;  %v692_v60 = vadd.f32 %v676_v22, %v14899_v2 }
 0x440   :  { %v615_v27 = vmul.f32 0.03125, %v577_v26 }
 0x441   :  { %v693_v30 = vadd.f32 %v677_v25, %v14899_v2 }
 0x442   :  { %v631_v31 = vadd.f32 1e-05, %v615_v27  ;;  %v11666_v32 = vpop.f32.mrb[12].mxu0 }
 0x443   :  { %v14925_v34 = vadd.f32 %v11666_v32, %v14766_v44  ;;  %v445_v35 = vpop.f32.mrb[13].mxu0  ;;  %500 = vadd.xlane.f32.xlu0 %v499_v28  ;;  %v586_v18 = vpop.xlane.xlu0 %585  ;;  %v678_v28 = vmul.f32 %v662_v23, %v14893_v0 }
 0x444   :  { %v14928_v37 = vadd.f32 %v445_v35, %v14766_v44  ;;  %v618_v38 = vmul.f32 0.03125, %v586_v18  ;;  %13915 = vrsqrt.f32 %v631_v31 }
 0x445   :  { %19173 = vst [vmem:[#allocation14_spill] sm:$0xff] %v14925_v34  ;;  %v505_v40 = vsel %vm270_vm1, %v14925_v34, 0.0  ;;  %13917 = vrsqrt.f32 %v632_v6 }
 0x446   :  { %19174 = vst [vmem:[#allocation15_spill] sm:$0xff] %v14928_v37  ;;  %506 = vadd.xlane.f32.xlu1 %v505_v40  ;;  %v502_v41 = vsel %vm270_vm1, %v14928_v37, 0.0  ;;  %v634_v49 = vadd.f32 1e-05, %v618_v38 }
 0x447   :  { %503 = vadd.xlane.f32.xlu0 %v502_v41  ;;  %v583_v43 = vpop.xlane.xlu0 %582 }
 0x448   :  { %v617_v47 = vmul.f32 0.03125, %v583_v43 }
 0x44a   :  { %v633_v52 = vadd.f32 1e-05, %v617_v47  ;;  %v11669_v54 = vpop.f32.mrb[14].mxu0 }
 0x44b   :  { %v14935_v62 = vadd.f32 %v11669_v54, %v14766_v44  ;;  %v455_v1 = vpop.f32.mrb[15].mxu0  ;;  %v13533_v8 = vpop.permute.xlu0 %13532 }
 0x44c   :  { %13919 = vrsqrt.f32 %v633_v52  ;;  %v14938_v57 = vadd.f32 %v455_v1, %v14766_v44  ;;  %v13535_v9 = vunpack.i.h.bf16 %v13533_v8  ;;  %v13534_v3 = vunpack.i.l.bf16 %v13533_v8 }
 0x44d   :  { %19175 = vst [vmem:[#allocation16_spill] sm:$0xff] %v14935_v62  ;;  %13921 = vrsqrt.f32 %v634_v49  ;;  %v511_v4 = vsel %vm270_vm1, %v14935_v62, 0.0 }
 0x44e   :  { %19176 = vst [vmem:[#allocation17_spill] sm:$0xff] %v14938_v57  ;;  %512 = vadd.xlane.f32.xlu1 %v511_v4  ;;  %v508_v11 = vsel %vm270_vm1, %v14938_v57, 0.0  ;;  %v12790_v12 = vpack.c.bf16 %v13535_v9, %v13534_v3  ;;  %v13916_v44 = vpop.eup %13915 }
 0x44f   :  { %509 = vadd.xlane.f32.xlu0 %v508_v11  ;;  %v13918_v24 = vpop.eup %13917  ;;  %v663_v26 = vmul.f32 %v13916_v44, %v14864_v51  ;;  %v694_v51 = vadd.f32 %v678_v28, %v14899_v2 }
 0x450   :  { %12791 = vmatprep.subr.bf16.mxu1 %v12790_v12  ;;  %v664_v50 = vmul.f32 %v13918_v24, %v14867_v36 }
 0x451   :  { %12793 = vmatpush3.bf16.msra.mxu1 %v12790_v12  ;;  %v679_v31 = vmul.f32 %v663_v26, %v14893_v0 }
 0x452   :  { %12795 = vmatprep.subr.bf16.mxu1 %v12794_v15  ;;  %v680_v32 = vmul.f32 %v664_v50, %v14893_v0 }
 0x453   :  { %v695_v18 = vadd.f32 %v679_v31, %v14899_v2 }
 0x455   :  { %12797 = vmatpush3.bf16.msra.mxu1 %v12794_v15 }
 0x456   :  { %v13920_v27 = vpop.eup %13919 }
 0x457   :  { %v13922_v29 = vpop.eup %13921  ;;  %v665_v42 = vmul.f32 %v13920_v27, %v14878_v39  ;;  %v696_v39 = vadd.f32 %v680_v32, %v14899_v2 }
 0x458   :  { %11679 = vmatmul.mubr.msk.f32.vlgmr.msra.gmra.mrb[0].mxu1 %vm270_vm1, %v692_v60  ;;  %v666_v35 = vmul.f32 %v13922_v29, %v14872_v20 }
 0x459   :  { %11681 = vmatprep.mubr.msk.f32.mxu1 %vm270_vm1, %v693_v30  ;;  %v681_v36 = vmul.f32 %v665_v42, %v14893_v0 }
 0x45a   :  { %v682_v6 = vmul.f32 %v666_v35, %v14893_v0 }
 0x45b   :  { %v697_v38 = vadd.f32 %v681_v36, %v14899_v2 }
 0x45c   :  { %11682 = vmatmul.mubr.msk.f32.gmra.mrb[2].mxu1 %vm270_vm1, %v694_v51  ;;  %v698_v20 = vadd.f32 %v682_v6, %v14899_v2 }
 0x45d   :  { %11684 = vmatprep.mubr.msk.f32.mxu1 %vm270_vm1, %v695_v18  ;;  %v707_v18 = vld [vmem:[%s19095_s2 + $0x5] ss:$0 sm:$0xff] }
 0x460   :  { %11685 = vmatmul.mubr.msk.f32.gmra.mrb[4].mxu1 %vm270_vm1, %v696_v39 }
 0x461   :  { %11687 = vmatprep.mubr.msk.f32.mxu1 %vm270_vm1, %v697_v38 }
 0x464   :  { %11688 = vmatmul.mubr.msk.f32.gmra.mrb[6].mxu1 %vm270_vm1, %v698_v20  ;;  %v19177_v20 = vmov 0 }
 0x465   :  { %v19178_v20 = vsel %vm15031_vm3, 4294967295, %v19177_v20 }
 0x466   :  { %19179 = vst [vmem:[#allocation18_spill] sm:$0xff] %v19178_v20 }
 0x4c3   :  { %v495_v40 = vpop.xlane.xlu1 %494 }
 0x4c4   :  { %v524_v41 = vmul.f32 0.03125, %v495_v40  ;;  %v492_v43 = vpop.xlane.xlu0 %491 }
 0x4c5   :  { %v523_v45 = vmul.f32 0.03125, %v492_v43 }
 0x4c6   :  { %v14973_v47 = vsub.f32 %v14905_v14, %v524_v41 }
 0x4c7   :  { %v14976_v49 = vsub.f32 %v14908_v10, %v523_v45 }
 0x4c8   :  { %v556_v52 = vmul.f32 %v14973_v47, %v14973_v47 }
 0x4c9   :  { %v555_v54 = vmul.f32 %v14976_v49, %v14976_v49 }
 0x4ca   :  { %v590_v58 = vsel %vm270_vm1, %v556_v52, 0.0 }
 0x4cb   :  { %591 = vadd.xlane.f32.xlu1 %v590_v58  ;;  %v587_v59 = vsel %vm270_vm1, %v555_v54, 0.0 }
 0x4cc   :  { %588 = vadd.xlane.f32.xlu0 %v587_v59  ;;  %v498_v61 = vpop.xlane.xlu0 %497 }
 0x4cd   :  { %v525_v1 = vmul.f32 0.03125, %v498_v61 }
 0x4cf   :  { %v14985_v8 = vsub.f32 %v14918_v21, %v525_v1 }
 0x4d0   :  { %v501_v56 = vpop.xlane.xlu0 %500 }
 0x4d1   :  { %v526_v9 = vmul.f32 0.03125, %v501_v56  ;;  %v557_v3 = vmul.f32 %v14985_v8, %v14985_v8 }
 0x4d3   :  { %v14990_v4 = vsub.f32 %v14915_v19, %v526_v9  ;;  %v507_v11 = vpop.xlane.xlu1 %506  ;;  %v593_v12 = vsel %vm270_vm1, %v557_v3, 0.0 }
 0x4d4   :  { %v528_v15 = vmul.f32 0.03125, %v507_v11  ;;  %594 = vadd.xlane.f32.xlu0 %v593_v12  ;;  %v504_v16 = vpop.xlane.xlu0 %503 }
 0x4d5   :  { %v527_v13 = vmul.f32 0.03125, %v504_v16  ;;  %v558_v17 = vmul.f32 %v14990_v4, %v14990_v4 }
 0x4d6   :  { %v14996_v44 = vsub.f32 %v14925_v34, %v528_v15 }
 0x4d7   :  { %v14999_v22 = vsub.f32 %v14928_v37, %v527_v13  ;;  %v596_v23 = vsel %vm270_vm1, %v558_v17, 0.0 }
 0x4d8   :  { %597 = vadd.xlane.f32.xlu1 %v596_v23  ;;  %v560_v24 = vmul.f32 %v14996_v44, %v14996_v44 }
 0x4d9   :  { %v559_v25 = vmul.f32 %v14999_v22, %v14999_v22 }
 0x4da   :  { %v602_v26 = vsel %vm270_vm1, %v560_v24, 0.0 }
 0x4db   :  { %v513_v27 = vpop.xlane.xlu1 %512  ;;  %v599_v60 = vsel %vm270_vm1, %v559_v25, 0.0 }
 0x4dc   :  { %v530_v28 = vmul.f32 0.03125, %v513_v27  ;;  %603 = vadd.xlane.f32.xlu1 %v602_v26  ;;  %600 = vadd.xlane.f32.xlu0 %v599_v60  ;;  %v510_v50 = vpop.xlane.xlu0 %509 }
 0x4dd   :  { %v529_v29 = vmul.f32 0.03125, %v510_v50 }
 0x4de   :  { %v15009_v30 = vsub.f32 %v14935_v62, %v530_v28 }
 0x4df   :  { %v15012_v31 = vsub.f32 %v14938_v57, %v529_v29 }
 0x4e0   :  { %v562_v42 = vmul.f32 %v15009_v30, %v15009_v30 }
 0x4e1   :  { %v561_v51 = vmul.f32 %v15012_v31, %v15012_v31 }
 0x4e2   :  { %v608_v32 = vsel %vm270_vm1, %v562_v42, 0.0 }
 0x4e3   :  { %609 = vadd.xlane.f32.xlu1 %v608_v32  ;;  %v605_v35 = vsel %vm270_vm1, %v561_v51, 0.0 }
 0x4e4   :  { %606 = vadd.xlane.f32.xlu0 %v605_v35 }
 0x52b   :  { %v11680_v36 = vpop.f32.mrb[0].mxu1 }
 0x52c   :  { %v15023_v39 = vadd.f32 %v11680_v36, %v707_v18  ;;  %v838_v6 = vpop.f32.mrb[1].mxu1 }
 0x52d   :  { %v15025_v38 = vadd.f32 %v838_v6, %v707_v18 }
 0x52e   :  { %1335 = vrot.lane.b32.xlu1 %v15023_v39, %s14602_s26 }
 0x52f   :  { %v11683_v40 = vpop.f32.mrb[2].mxu1  ;;  %1333 = vrot.lane.b32.xlu0 %v15025_v38, %s14602_s26  ;;  %v12798_v41 = vpack.c.bf16 %v15023_v39, %v15025_v38  ;;  %v15085_v16 = vpack.i.bf16 %v15023_v39, %v15025_v38 }
 0x530   :  { %v15039_v43 = vadd.f32 %v11683_v40, %v707_v18  ;;  %v848_v45 = vpop.f32.mrb[3].mxu1 }
 0x531   :  { %v15041_v52 = vadd.f32 %v848_v45, %v707_v18  ;;  %12800 = vmatprep.subr.msk.bf16.mxu1 %vm15031_vm3, %v12798_v41 }
 0x532   :  { %12803 = vmatpush3.bf16.xpose.msk.msra.mxu1 %vm15031_vm3, %v12798_v41 }
 0x533   :  { %v11686_v54 = vpop.f32.mrb[4].mxu1  ;;  %1337 = vrot.lane.b32.xlu1 %v15041_v52, %s14602_s26  ;;  %v12804_v58 = vpack.c.bf16 %v15039_v43, %v15041_v52  ;;  %v15077_v15 = vpack.i.bf16 %v15039_v43, %v15041_v52 }
 0x534   :  { %v858_v59 = vpop.f32.mrb[5].mxu1  ;;  %v15055_v1 = vadd.f32 %v11686_v54, %v707_v18 }
 0x535   :  { %v15051_v61 = vadd.f32 %v858_v59, %v707_v18  ;;  %12806 = vmatprep.subr.msk.bf16.mxu1 %vm15031_vm3, %v12804_v58 }
 0x537   :  { %v11689_v56 = vpop.f32.mrb[6].mxu1  ;;  %1339 = vrot.lane.b32.xlu1 %v15039_v43, %s14602_s26  ;;  %1341 = vrot.lane.b32.xlu0 %v15051_v61, %s14602_s26  ;;  %v12810_v11 = vpack.c.bf16 %v15055_v1, %v15051_v61  ;;  %v15099_v17 = vpack.i.bf16 %v15055_v1, %v15051_v61 }
 0x538   :  { %v868_v9 = vpop.f32.mrb[7].mxu1  ;;  %v15073_v12 = vadd.f32 %v11689_v56, %v707_v18 }
 0x539   :  { %v15061_v3 = vadd.f32 %v868_v9, %v707_v18 }
 0x53a   :  { %12809 = vmatpush3.bf16.xpose.msk.msra.mxu1 %vm15031_vm3, %v12804_v58 }
 0x53b   :  { %1343 = vrot.lane.b32.xlu1 %v15055_v1, %s14602_s26  ;;  %1345 = vrot.lane.b32.xlu0 %v15061_v3, %s14602_s26  ;;  %v12816_v13 = vpack.c.bf16 %v15073_v12, %v15061_v3  ;;  %v15103_v23 = vpack.i.bf16 %v15073_v12, %v15061_v3 }
 0x53c   :  { %12812 = vmatprep.subr.msk.bf16.mxu1 %vm15031_vm3, %v12810_v11 }
 0x53f   :  { %1347 = vrot.lane.b32.xlu1 %v15073_v12, %s14602_s26  ;;  %13547 = vrot.lane.b32.xlu0 %v15077_v15, %s14601_s19 }
 0x542   :  { %12815 = vmatpush3.bf16.xpose.msk.msra.mxu1 %vm15031_vm3, %v12810_v11 }
 0x543   :  { %13542 = vrot.lane.b32.xlu1 %v15085_v16, %s14601_s19  ;;  %13562 = vrot.lane.b32.xlu0 %v15077_v15, %s14603_s27 }
 0x544   :  { %12818 = vmatprep.subr.msk.bf16.mxu1 %vm15031_vm3, %v12816_v13 }
 0x547   :  { %13552 = vrot.lane.b32.xlu1 %v15099_v17, %s14601_s19  ;;  %13572 = vrot.lane.b32.xlu0 %v15103_v23, %s14601_s19 }
 0x54a   :  { %12821 = vmatpush3.bf16.xpose.msk.msra.mxu1 %vm15031_vm3, %v12816_v13 }
 0x54b   :  { %13557 = vrot.lane.b32.xlu1 %v15085_v16, %s14603_s27 }
 0x54f   :  { %13567 = vrot.lane.b32.xlu1 %v15099_v17, %s14603_s27 }
 0x553   :  { %13577 = vrot.lane.b32.xlu1 %v15103_v23, %s14603_s27 }
 0x558   :  { %v592_v24 = vpop.xlane.xlu1 %591 }
 0x559   :  { %v620_v25 = vmul.f32 0.03125, %v592_v24  ;;  %v589_v26 = vpop.xlane.xlu0 %588 }
 0x55a   :  { %v619_v27 = vmul.f32 0.03125, %v589_v26 }
 0x55b   :  { %v636_v60 = vadd.f32 1e-05, %v620_v25 }
 0x55c   :  { %v635_v28 = vadd.f32 1e-05, %v619_v27 }
 0x55d   :  { %13923 = vrsqrt.f32 %v636_v60 }
 0x55e   :  { %13925 = vrsqrt.f32 %v635_v28 }
 0x561   :  { %v595_v50 = vpop.xlane.xlu0 %594 }
 0x562   :  { %v621_v29 = vmul.f32 0.03125, %v595_v50 }
 0x564   :  { %v637_v42 = vadd.f32 1e-05, %v621_v29 }
 0x565   :  { %v598_v51 = vpop.xlane.xlu1 %597 }
 0x566   :  { %13927 = vrsqrt.f32 %v637_v42  ;;  %v622_v32 = vmul.f32 0.03125, %v598_v51 }
 0x567   :  { %v13924_v35 = vpop.eup %13923 }
 0x568   :  { %v13926_v18 = vpop.eup %13925  ;;  %v638_v36 = vadd.f32 1e-05, %v622_v32  ;;  %v668_v6 = vmul.f32 %v13924_v35, %v14973_v47 }
 0x569   :  { %v604_v40 = vpop.xlane.xlu1 %603  ;;  %v601_v41 = vpop.xlane.xlu0 %600  ;;  %v667_v45 = vmul.f32 %v13926_v18, %v14976_v49 }
 0x56a   :  { %13929 = vrsqrt.f32 %v638_v36  ;;  %v624_v54 = vmul.f32 0.03125, %v604_v40  ;;  %v623_v58 = vmul.f32 0.03125, %v601_v41  ;;  %v684_v59 = vmul.f32 %v668_v6, %v14893_v0 }
 0x56b   :  { %v683_v56 = vmul.f32 %v667_v45, %v14893_v0 }
 0x56c   :  { %v640_v9 = vadd.f32 1e-05, %v624_v54  ;;  %v639_v11 = vadd.f32 1e-05, %v623_v58  ;;  %v700_v24 = vadd.f32 %v684_v59, %v14899_v2 }
 0x56d   :  { %v699_v13 = vadd.f32 %v683_v56, %v14899_v2 }
 0x56e   :  { %13931 = vrsqrt.f32 %v640_v9 }
 0x56f   :  { %13933 = vrsqrt.f32 %v639_v11  ;;  %11690 = vmatprep.mubr.msk.f32.mxu1 %vm270_vm1, %v699_v13 }
 0x570   :  { %v13928_v47 = vpop.eup %13927  ;;  %v610_v25 = vpop.xlane.xlu1 %609  ;;  %11691 = vmatmul.mubr.msk.f32.gmra.mrb[8].mxu1 %vm270_vm1, %v700_v24 }
 0x571   :  { %v626_v49 = vmul.f32 0.03125, %v610_v25  ;;  %v607_v26 = vpop.xlane.xlu0 %606  ;;  %v669_v27 = vmul.f32 %v13928_v47, %v14985_v8 }
 0x572   :  { %v625_v60 = vmul.f32 0.03125, %v607_v26 }
 0x573   :  { %v642_v28 = vadd.f32 1e-05, %v626_v49  ;;  %v685_v50 = vmul.f32 %v669_v27, %v14893_v0 }
 0x574   :  { %v13930_v29 = vpop.eup %13929  ;;  %v641_v42 = vadd.f32 1e-05, %v625_v60 }
 0x575   :  { %13935 = vrsqrt.f32 %v642_v28  ;;  %v701_v51 = vadd.f32 %v685_v50, %v14899_v2  ;;  %v670_v32 = vmul.f32 %v13930_v29, %v14990_v4 }
 0x576   :  { %13937 = vrsqrt.f32 %v641_v42 }
 0x577   :  { %11693 = vmatprep.mubr.msk.f32.mxu1 %vm270_vm1, %v701_v51  ;;  %v686_v35 = vmul.f32 %v670_v32, %v14893_v0 }
 0x578   :  { %v13932_v18 = vpop.eup %13931 }
 0x579   :  { %v13934_v36 = vpop.eup %13933  ;;  %v702_v8 = vadd.f32 %v686_v35, %v14899_v2  ;;  %v672_v6 = vmul.f32 %v13932_v18, %v14996_v44 }
 0x57a   :  { %v671_v40 = vmul.f32 %v13934_v36, %v14999_v22 }
 0x57b   :  { %11694 = vmatmul.mubr.msk.f32.gmra.mrb[10].mxu1 %vm270_vm1, %v702_v8  ;;  %v688_v41 = vmul.f32 %v672_v6, %v14893_v0 }
 0x57c   :  { %v687_v45 = vmul.f32 %v671_v40, %v14893_v0 }
 0x57d   :  { %v704_v4 = vadd.f32 %v688_v41, %v14899_v2 }
 0x57e   :  { %v703_v54 = vadd.f32 %v687_v45, %v14899_v2 }
 0x57f   :  { %v13936_v58 = vpop.eup %13935 }
 0x580   :  { %v13938_v59 = vpop.eup %13937  ;;  %11696 = vmatprep.mubr.msk.f32.mxu1 %vm270_vm1, %v703_v54  ;;  %v674_v56 = vmul.f32 %v13936_v58, %v15009_v30 }
 0x581   :  { %11697 = vmatmul.mubr.msk.f32.gmra.mrb[12].mxu1 %vm270_vm1, %v704_v4  ;;  %v673_v44 = vmul.f32 %v13938_v59, %v15012_v31 }
 0x582   :  { %v690_v22 = vmul.f32 %v674_v56, %v14893_v0 }
 0x583   :  { %v689_v9 = vmul.f32 %v673_v44, %v14893_v0 }
 0x584   :  { %v706_v13 = vadd.f32 %v690_v22, %v14899_v2 }
 0x585   :  { %v705_v11 = vadd.f32 %v689_v9, %v14899_v2 }
 0x587   :  { %11699 = vmatprep.mubr.msk.f32.mxu1 %vm270_vm1, %v705_v11 }
 0x588   :  { %11700 = vmatmul.mubr.msk.f32.gmra.mrb[14].mxu1 %vm270_vm1, %v706_v13 }
 0x589   :  { %11718 = vmatprep.mubr.msk.f32.mxu1 %vm917_vm2, %v15025_v38 }
 0x58c   :  { %11719 = vmatmul.mubr.msk.f32.vlgmr.msra.gmra.mrb[16].mxu1 %vm917_vm2, %v15023_v39 }
 0x58d   :  { %11721 = vmatprep.mubr.msk.f32.mxu1 %vm917_vm2, %v15041_v52 }
 0x590   :  { %11722 = vmatmul.mubr.msk.f32.gmra.mrb[18].mxu1 %vm917_vm2, %v15039_v43 }
 0x591   :  { %11724 = vmatprep.mubr.msk.f32.mxu1 %vm917_vm2, %v15051_v61 }
 0x594   :  { %11725 = vmatmul.mubr.msk.f32.gmra.mrb[20].mxu1 %vm917_vm2, %v15055_v1 }
 0x595   :  { %11727 = vmatprep.mubr.msk.f32.mxu1 %vm917_vm2, %v15061_v3 }
 0x598   :  { %11728 = vmatmul.mubr.msk.f32.gmra.mrb[22].mxu1 %vm917_vm2, %v15073_v12 }
 0x5a0   :  { %v1336_v0 = vpop.permute.xlu1 %1335 }
 0x5a1   :  { %v1334_v2 = vpop.permute.xlu0 %1333 }
 0x5a2   :  { %v12838_v30 = vpack.c.bf16 %v1336_v0, %v1334_v2  ;;  %11774 = vmatprep.mubr.msk.f32.mxu0 %vm917_vm2, %v1334_v2  ;;  %v17_v2 = vlaneseq }
 0x5a4   :  { %12840 = vmatprep.subr.msk.bf16.mxu0 %vm15031_vm3, %v12838_v30 }
 0x5a5   :  { %v1338_v31 = vpop.permute.xlu1 %1337  ;;  %12843 = vmatpush3.bf16.xpose.msk.msra.mxu0 %vm15031_vm3, %v12838_v30 }
 0x5a9   :  { %v1340_v24 = vpop.permute.xlu1 %1339  ;;  %v1342_v47 = vpop.permute.xlu0 %1341 }
 0x5aa   :  { %v12844_v25 = vpack.c.bf16 %v1340_v24, %v1338_v31 }
 0x5ac   :  { %12846 = vmatprep.subr.msk.bf16.mxu0 %vm15031_vm3, %v12844_v25 }
 0x5ad   :  { %v1344_v49 = vpop.permute.xlu1 %1343  ;;  %12849 = vmatpush3.bf16.xpose.msk.msra.mxu0 %vm15031_vm3, %v12844_v25  ;;  %v1346_v26 = vpop.permute.xlu0 %1345 }
 0x5ae   :  { %v12850_v27 = vpack.c.bf16 %v1344_v49, %v1342_v47 }
 0x5b0   :  { %12852 = vmatprep.subr.msk.bf16.mxu0 %vm15031_vm3, %v12850_v27 }
 0x5b1   :  { %v1348_v60 = vpop.permute.xlu1 %1347  ;;  %v13548_v28 = vpop.permute.xlu0 %13547 }
 0x5b2   :  { %v12856_v50 = vpack.c.bf16 %v1348_v60, %v1346_v26  ;;  %v13550_v51 = vunpack.i.h.bf16 %v13548_v28  ;;  %v13549_v32 = vunpack.i.l.bf16 %v13548_v28 }
 0x5b4   :  { %v12826_v41 = vpack.c.bf16 %v13550_v51, %v13549_v32 }
 0x5b5   :  { %v13543_v29 = vpop.permute.xlu1 %13542  ;;  %12855 = vmatpush3.bf16.xpose.msk.msra.mxu0 %vm15031_vm3, %v12850_v27  ;;  %v15178_v42 = vpop.permute.xlu0 %13562 }
 0x5b6   :  { %v13545_v35 = vunpack.i.h.bf16 %v13543_v29  ;;  %v13544_v18 = vunpack.i.l.bf16 %v13543_v29  ;;  %12858 = vmatprep.subr.msk.bf16.mxu0 %vm15031_vm3, %v12856_v50 }
 0x5b8   :  { %v12822_v36 = vpack.c.bf16 %v13545_v35, %v13544_v18 }
 0x5b9   :  { %v13553_v8 = vpop.permute.xlu1 %13552  ;;  %v13573_v45 = vpop.permute.xlu0 %13572 }
 0x5ba   :  { %v13555_v6 = vunpack.i.h.bf16 %v13553_v8  ;;  %v13554_v40 = vunpack.i.l.bf16 %v13553_v8  ;;  %12823 = vmatprep.subr.bf16.mxu1 %v12822_v36  ;;  %v13575_v4 = vunpack.i.h.bf16 %v13573_v45  ;;  %v13574_v54 = vunpack.i.l.bf16 %v13573_v45 }
 0x5bb   :  { %12825 = vmatpush3.bf16.msra.mxu1 %v12822_v36 }
 0x5bc   :  { %12827 = vmatprep.subr.bf16.mxu1 %v12826_v41  ;;  %v12830_v58 = vpack.c.bf16 %v13555_v6, %v13554_v40  ;;  %v12834_v22 = vpack.c.bf16 %v13575_v4, %v13574_v54 }
 0x5bd   :  { %12861 = vmatpush3.bf16.xpose.msk.msra.mxu0 %vm15031_vm3, %v12856_v50  ;;  %v13558_v59 = vpop.permute.xlu1 %13557  ;;  %v19103_v50 = vmov 0.0  }
 0x5be   :  { %v13560_v56 = vunpack.i.h.bf16 %v13558_v59  ;;  %v13559_v44 = vunpack.i.l.bf16 %v13558_v59 }
 0x5bf   :  { %12829 = vmatpush3.bf16.msra.mxu1 %v12826_v41 }
 0x5c0   :  { %12831 = vmatprep.subr.bf16.mxu1 %v12830_v58  ;;  %v15186_v9 = vpack.c.bf16 %v13560_v56, %v13559_v44 }
 0x5c3   :  { %12833 = vmatpush3.bf16.msra.mxu1 %v12830_v58 }
 0x5c4   :  { %12835 = vmatprep.subr.bf16.mxu1 %v12834_v22  ;;  %11775 = vmatmul.mubr.msk.f32.vlgmr.msra.gmra.mrb[16].mxu0 %vm917_vm2, %v1336_v0 }
 0x5c5   :  { %11777 = vmatprep.mubr.msk.f32.mxu0 %vm917_vm2, %v1338_v31  ;;  %v15202_v31 = vshrl.u32 %v17_v2, 7 }
 0x5c7   :  { %12837 = vmatpush3.bf16.msra.mxu1 %v12834_v22  ;;  %19182 = vst [vmem:[#allocation21_spill] sm:$0xff] %v15202_v31  ;;  %v19_v25 = vadd.s32 8, %v15202_v31  ;;  %v23_v32 = vadd.s32 40, %v15202_v31  ;;  %v22_v18 = vadd.s32 32, %v15202_v31  ;;  %v25_v4 = vadd.s32 56, %v15202_v31 }
 0x5c8   :  { %11778 = vmatmul.mubr.msk.f32.gmra.mrb[18].mxu0 %vm917_vm2, %v1340_v24  ;;  %12863 = vmatprep.subr.bf16.mxu1 %v15186_v9  ;;  %v24_v59 = vadd.s32 48, %v15202_v31 }
 0x5c9   :  { %11780 = vmatprep.mubr.msk.f32.mxu0 %vm917_vm2, %v1342_v47 }
 0x5cc   :  { %11781 = vmatmul.mubr.msk.f32.gmra.mrb[20].mxu0 %vm917_vm2, %v1344_v49  ;;  %v27_v49 = vand.u32 127, %v17_v2 }
 0x5cd   :  { %11783 = vmatprep.mubr.msk.f32.mxu0 %vm917_vm2, %v1346_v26  ;;  %v21_v26 = vadd.s32 24, %v15202_v31 }
 0x5ce   :  { %vm29_vm4 = vcmp.eq.s32.totalorder %v19_v25, %v27_v49  ;;  %vm28_vm5 = vcmp.eq.s32.totalorder %v15202_v31, %v27_v49  ;;  %vm33_vm8 = vcmp.eq.s32.totalorder %v23_v32, %v27_v49  ;;  %vm32_vm9 = vcmp.eq.s32.totalorder %v22_v18, %v27_v49 }
 0x5cf   :  { %v15217_v29 = vsel %vm29_vm4, 1.0, %v19103_v50  ;;  %v15220_v51 = vsel %vm28_vm5, 1.0, %v19103_v50  ;;  %vm31_vm6 = vcmp.eq.s32.totalorder %v21_v26, %v27_v49  ;;  %v15251_v25 = vsel %vm33_vm8, 1.0, %v19103_v50 }
 0x5d0   :  { %11784 = vmatmul.mubr.msk.f32.gmra.mrb[22].mxu0 %vm917_vm2, %v1348_v60  ;;  %v20_v60 = vadd.s32 16, %v15202_v31  ;;  %19187 = vst [vmem:[#allocation26_spill] sm:$0xff] %v15217_v29  ;;  %19188 = vst [vmem:[#allocation27_spill] sm:$0xff] %v15220_v51  ;;  %v15233_v40 = vsel %vm31_vm6, 1.0, %v19103_v50  ;;  %vm35_vm10 = vcmp.eq.s32.totalorder %v25_v4, %v27_v49  ;;  %vm34_vm11 = vcmp.eq.s32.totalorder %v24_v59, %v27_v49 }
 0x5d1   :  { %v15271_v31 = vsel %vm34_vm11, 1.0, %v19103_v50 }
 0x5d2   :  { %vm30_vm7 = vcmp.eq.s32.totalorder %v20_v60, %v27_v49  ;;  %v15255_v60 = vsel %vm32_vm9, 1.0, %v19103_v50  ;;  %19191 = vst [vmem:[#allocation30_spill] sm:$0xff] %v15271_v31 }
 0x5d3   :  { %v15237_v45 = vsel %vm30_vm7, 1.0, %v19103_v50  ;;  %19189 = vst [vmem:[#allocation28_spill] sm:$0xff] %v15255_v60 }
 0x643   :  { %v15194_v11 = vpop.f32.mrb[8].mxu1 }
 0x644   :  { %19180 = vst [vmem:[#allocation19_spill] sm:$0xff] %v15194_v11  ;;  %v15196_v13 = vpop.f32.mrb[9].mxu1 }
 0x645   :  { %19181 = vst [vmem:[#allocation20_spill] sm:$0xff] %v15196_v13 }
 0x64e   :  { %v15198_v0 = vpop.f32.mrb[10].mxu1 }
 0x64f   :  { %v15200_v30 = vpop.f32.mrb[11].mxu1 }
 0x654   :  { %v15204_v24 = vpop.f32.mrb[12].mxu1 }
 0x655   :  { %19183 = vst [vmem:[#allocation22_spill] sm:$0xff] %v15204_v24  ;;  %v15206_v47 = vpop.f32.mrb[13].mxu1 }
 0x656   :  { %19184 = vst [vmem:[#allocation23_spill] sm:$0xff] %v15206_v47 }
 0x65b   :  { %v15210_v27 = vpop.f32.mrb[14].mxu1 }
 0x65c   :  { %19185 = vst [vmem:[#allocation24_spill] sm:$0xff] %v15210_v27  ;;  %v15214_v28 = vpop.f32.mrb[15].mxu1 }
 0x65d   :  { %19186 = vst [vmem:[#allocation25_spill] sm:$0xff] %v15214_v28 }
 0x65f   :  { %v15223_v35 = vpop.f32.mrb[16].mxu1 }
 0x660   :  { %v1048_v36 = vmul.f32 %v15223_v35, %v15217_v29  ;;  %v15228_v8 = vpop.f32.mrb[17].mxu1 }
 0x661   :  { %v1047_v6 = vmul.f32 %v15220_v51, %v15228_v8  ;;  %v1092_v46 = vmul.f32 2.0, %v15228_v8 }
 0x662   :  { %v1058_v41 = vsel %vm56_vm0, %v1048_v36, 0.0 }
 0x663   :  { %1059 = vadd.xlane.f32.xlu1 %v1058_v41  ;;  %v15240_v54 = vpop.f32.mrb[18].mxu1  ;;  %v1055_v58 = vsel %vm56_vm0, %v1047_v6, 0.0 }
 0x664   :  { %v1050_v56 = vmul.f32 %v15240_v54, %v15233_v40  ;;  %1056 = vadd.xlane.f32.xlu0 %v1055_v58  ;;  %v1079_v44 = vadd.f32 %v1058_v41, %v1055_v58  ;;  %v15246_v22 = vpop.f32.mrb[19].mxu1 }
 0x665   :  { %v1049_v2 = vmul.f32 %v15237_v45, %v15246_v22 }
 0x666   :  { %v1064_v26 = vsel %vm56_vm0, %v1050_v56, 0.0  ;;  %v15267_v56 = vsel %vm35_vm10, 1.0, %v19103_v50 }
 0x667   :  { %v15257_v32 = vpop.f32.mrb[20].mxu1  ;;  %v1061_v18 = vsel %vm56_vm0, %v1049_v2, 0.0  ;;  %19190 = vst [vmem:[#allocation29_spill] sm:$0xff] %v15267_v56 }
 0x668   :  { %v1052_v36 = vmul.f32 %v15257_v32, %v15251_v25  ;;  %1065 = vadd.xlane.f32.xlu0 %v1064_v26  ;;  %v15262_v6 = vpop.f32.mrb[21].mxu1  ;;  %v1080_v41 = vadd.f32 %v1079_v44, %v1061_v18 }
 0x669   :  { %v1051_v58 = vmul.f32 %v15255_v60, %v15262_v6 }
 0x66a   :  { %v1070_v4 = vsel %vm56_vm0, %v1052_v36, 0.0  ;;  %v1081_v2 = vadd.f32 %v1080_v41, %v1064_v26 }
 0x66b   :  { %1071 = vadd.xlane.f32.xlu1 %v1070_v4  ;;  %v15273_v49 = vpop.f32.mrb[22].mxu1  ;;  %v1067_v59 = vsel %vm56_vm0, %v1051_v58, 0.0 }
 0x66c   :  { %v1054_v44 = vmul.f32 %v15273_v49, %v15267_v56  ;;  %1062 = vadd.xlane.f32.xlu0 %v1061_v18  ;;  %v15278_v57 = vpop.f32.mrb[23].mxu1  ;;  %v1082_v62 = vadd.f32 %v1081_v2, %v1067_v59 }
 0x66d   :  { %v1053_v37 = vmul.f32 %v15271_v31, %v15278_v57 }
 0x66e   :  { %v1076_v36 = vsel %vm56_vm0, %v1054_v44, 0.0  ;;  %v1083_v50 = vadd.f32 %v1082_v62, %v1070_v4 }
 0x66f   :  { %1077 = vadd.xlane.f32.xlu1 %v1076_v36  ;;  %v1073_v26 = vsel %vm56_vm0, %v1053_v37, 0.0 }
 0x670   :  { %1068 = vadd.xlane.f32.xlu0 %v1067_v59  ;;  %v1084_v41 = vadd.f32 %v1083_v50, %v1073_v26 }
 0x672   :  { %v1085_v34 = vadd.f32 %v1084_v41, %v1076_v36 }
 0x674   :  { %1074 = vadd.xlane.f32.xlu0 %v1073_v26 }
 0x697   :  { %v15284_v58 = vpop.f32.mrb[16].mxu0 }
 0x698   :  { %v1471_v18 = vmul.f32 %v15284_v58, %v15217_v29  ;;  %v15288_v21 = vpop.f32.mrb[17].mxu0 }
 0x699   :  { %v1470_v2 = vmul.f32 %v15220_v51, %v15288_v21 }
 0x69a   :  { %v1481_v44 = vsel %vm56_vm0, %v1471_v18, 0.0 }
 0x69b   :  { %v15293_v62 = vpop.f32.mrb[18].mxu0  ;;  %1482 = vadd.xlane.f32.xlu1 %v1481_v44  ;;  %v1478_v37 = vsel %vm56_vm0, %v1470_v2, 0.0 }
 0x69c   :  { %v15296_v50 = vpop.f32.mrb[19].mxu0  ;;  %v1502_v4 = vadd.f32 %v1481_v44, %v1478_v37  ;;  %1479 = vadd.xlane.f32.xlu0 %v1478_v37  ;;  %v1473_v59 = vmul.f32 %v15293_v62, %v15233_v40 }
 0x69d   :  { %v1472_v36 = vmul.f32 %v15237_v45, %v15296_v50 }
 0x69e   :  { %v1487_v37 = vsel %vm56_vm0, %v1473_v59, 0.0 }
 0x69f   :  { %v15302_v26 = vpop.f32.mrb[20].mxu0  ;;  %v1484_v41 = vsel %vm56_vm0, %v1472_v36, 0.0 }
 0x6a0   :  { %v15305_v18 = vpop.f32.mrb[21].mxu0  ;;  %v1503_v19 = vadd.f32 %v1502_v4, %v1484_v41  ;;  %v1475_v2 = vmul.f32 %v15302_v26, %v15251_v25 }
 0x6a1   :  { %v1474_v44 = vmul.f32 %v15255_v60, %v15305_v18 }
 0x6a2   :  { %v1504_v10 = vadd.f32 %v1503_v19, %v1487_v37  ;;  %v1493_v33 = vsel %vm56_vm0, %v1475_v2, 0.0  ;;  %v15330_v2 = vpop.permute.xlu1 %13567 }
 0x6a3   :  { %v15312_v14 = vpop.f32.mrb[22].mxu0  ;;  %v1490_v7 = vsel %vm56_vm0, %v1474_v44, 0.0 }
 0x6a4   :  { %v15315_v5 = vpop.f32.mrb[23].mxu0  ;;  %v1505_v63 = vadd.f32 %v1504_v10, %v1490_v7  ;;  %v1477_v36 = vmul.f32 %v15312_v14, %v15267_v56 }
 0x6a5   :  { %v1476_v4 = vmul.f32 %v15271_v31, %v15315_v5 }
 0x6a6   :  { %v1506_v55 = vadd.f32 %v1505_v63, %v1493_v33  ;;  %v1499_v19 = vsel %vm56_vm0, %v1477_v36, 0.0  ;;  %v1086_v63 = vrot.slane %v1085_v34, 4  ;;  %v15332_v36 = vpop.permute.xlu1 %13577 }
 0x6a7   :  { %v1496_v53 = vsel %vm56_vm0, %v1476_v4, 0.0 }
 0x6a8   :  { %v1507_v59 = vadd.f32 %v1506_v55, %v1496_v53  ;;  %v1087_v10 = vadd.f32 %v1086_v63, %v1085_v34 }
 0x6aa   :  { %v15324_v48 = vadd.f32 %v1507_v59, %v1499_v19  ;;  %v1088_v55 = vrot.slane %v1087_v10, 2  ;;  %v1093_v59 = vmul.f32 2.0, %v15223_v35  ;;  %v1094_v35 = vmul.f32 2.0, %v15246_v22 }
 0x6ac   :  { %1758 = vrot.lane.b32.xlu1 %v15023_v39, %s14605_s28  ;;  %v1089_v44 = vadd.f32 %v1088_v55, %v1087_v10  ;;  %v1097_v55 = vmul.f32 2.0, %v15257_v32 }
 0x6ae   :  { %v1090_v4 = vrot.slane %v1089_v44, 1 }
 0x6b2   :  { %1756 = vrot.lane.b32.xlu0 %v15025_v38, %s14605_s28 }
 0x6d0   :  { %1488 = vadd.xlane.f32.xlu1 %v1487_v37  ;;  %v1091_v37 = vadd.f32 %v1090_v4, %v1089_v44 }
 0x6d1   :  { %1485 = vadd.xlane.f32.xlu0 %v1484_v41 }
 0x6d4   :  { %1494 = vadd.xlane.f32.xlu1 %v1493_v33 }
 0x6d5   :  { %1491 = vadd.xlane.f32.xlu0 %v1490_v7 }
 0x6d8   :  { %1500 = vadd.xlane.f32.xlu1 %v1499_v19 }
 0x6d9   :  { %1497 = vadd.xlane.f32.xlu0 %v1496_v53  ;;  %v1095_v53 = vmul.f32 2.0, %v15240_v54  ;;  %v1099_v54 = vmul.f32 2.0, %v15273_v49 }
 0x6f0   :  { %v1060_v28 = vpop.xlane.xlu1 %1059 }
 0x6f1   :  { %v1101_v41 = vsub.f32 %v1093_v59, %v1060_v28  ;;  %v1057_v33 = vpop.xlane.xlu0 %1056 }
 0x6f2   :  { %v1100_v7 = vsub.f32 %v1092_v46, %v1057_v33 }
 0x6f3   :  { %v1109_v19 = vsub.f32 %v1101_v41, %v1091_v37  ;;  %v1096_v41 = vmul.f32 2.0, %v15262_v6 }
 0x6f4   :  { %v1108_v34 = vsub.f32 %v1100_v7, %v1091_v37 }
 0x6f5   :  { %v1117_v63 = vmul.f32 0.35355338, %v1109_v19  ;;  %v1066_v27 = vpop.xlane.xlu0 %1065 }
 0x6f6   :  { %v1116_v13 = vmul.f32 0.35355338, %v1108_v34  ;;  %v1103_v10 = vsub.f32 %v1095_v53, %v1066_v27 }
 0x6f7   :  { %v1126_v11 = vmul.f32 1.442695, %v1117_v63 }
 0x6f8   :  { %v1124_v47 = vmul.f32 1.442695, %v1116_v13  ;;  %v1111_v8 = vsub.f32 %v1103_v10, %v1091_v37  ;;  %v1072_v24 = vpop.xlane.xlu1 %1071 }
 0x6f9   :  { %13939 = vpow2.f32 %v1126_v11  ;;  %v1105_v28 = vsub.f32 %v1097_v55, %v1072_v24  ;;  %v1063_v44 = vpop.xlane.xlu0 %1062 }
 0x6fa   :  { %13941 = vpow2.f32 %v1124_v47  ;;  %v1119_v46 = vmul.f32 0.35355338, %v1111_v8  ;;  %v1102_v4 = vsub.f32 %v1094_v35, %v1063_v44  ;;  %v1098_v47 = vmul.f32 2.0, %v15278_v57 }
 0x6fb   :  { %v1113_v59 = vsub.f32 %v1105_v28, %v1091_v37 }
 0x6fc   :  { %v1130_v27 = vmul.f32 1.442695, %v1119_v46  ;;  %v1110_v33 = vsub.f32 %v1102_v4, %v1091_v37  ;;  %v1078_v32 = vpop.xlane.xlu1 %1077 }
 0x6fd   :  { %v1121_v7 = vmul.f32 0.35355338, %v1113_v59  ;;  %v1107_v19 = vsub.f32 %v1099_v54, %v1078_v32  ;;  %v1069_v22 = vpop.xlane.xlu0 %1068 }
 0x6fe   :  { %13943 = vpow2.f32 %v1130_v27  ;;  %v1118_v13 = vmul.f32 0.35355338, %v1110_v33  ;;  %v1104_v53 = vsub.f32 %v1096_v41, %v1069_v22 }
 0x6ff   :  { %v1134_v11 = vmul.f32 1.442695, %v1121_v7  ;;  %v1115_v24 = vsub.f32 %v1107_v19, %v1091_v37 }
 0x700   :  { %v1128_v34 = vmul.f32 1.442695, %v1118_v13  ;;  %v1112_v63 = vsub.f32 %v1104_v53, %v1091_v37  ;;  %v1509_v53 = vrot.slane %v15324_v48, 4 }
 0x701   :  { %13945 = vpow2.f32 %v1134_v11  ;;  %v1123_v49 = vmul.f32 0.35355338, %v1115_v24  ;;  %v1075_v10 = vpop.xlane.xlu0 %1074 }
 0x702   :  { %13947 = vpow2.f32 %v1128_v34  ;;  %v1120_v6 = vmul.f32 0.35355338, %v1112_v63  ;;  %v1106_v55 = vsub.f32 %v1098_v47, %v1075_v10  ;;  %v1510_v47 = vadd.f32 %v1509_v53, %v15324_v48 }
 0x703   :  { %v15342_v35 = vpop.eup %13939  ;;  %v1138_v28 = vmul.f32 1.442695, %v1123_v49  ;;  %v1515_v48 = vmul.f32 2.0, %v15288_v21 }
 0x704   :  { %v15344_v8 = vpop.eup %13941  ;;  %v1132_v44 = vmul.f32 1.442695, %v1120_v6  ;;  %v1114_v46 = vsub.f32 %v1106_v55, %v1091_v37  ;;  %v1143_v4 = vsel %vm56_vm0, %v15342_v35, 0.0  ;;  %v1511_v63 = vrot.slane %v1510_v47, 2 }
 0x705   :  { %1144 = vadd.xlane.f32.xlu1 %v1143_v4  ;;  %v1140_v57 = vsel %vm56_vm0, %v15344_v8, 0.0  ;;  %v1516_v6 = vmul.f32 2.0, %v15284_v58 }
 0x706   :  { %13949 = vpow2.f32 %v1132_v44  ;;  %v1122_v54 = vmul.f32 0.35355338, %v1114_v46  ;;  %1141 = vadd.xlane.f32.xlu0 %v1140_v57  ;;  %v1512_v49 = vadd.f32 %v1511_v63, %v1510_v47  ;;  %v1517_v63 = vmul.f32 2.0, %v15296_v50 }
 0x707   :  { %13951 = vpow2.f32 %v1138_v28 }
 0x708   :  { %v15350_v59 = vpop.eup %13943  ;;  %v1136_v41 = vmul.f32 1.442695, %v1122_v54  ;;  %v1513_v10 = vrot.slane %v1512_v49, 1 }
 0x709   :  { %v1149_v27 = vsel %vm56_vm0, %v15350_v59, 0.0 }
 0x70a   :  { %1150 = vadd.xlane.f32.xlu0 %v1149_v27  ;;  %13953 = vpow2.f32 %v1136_v41  ;;  %v1514_v28 = vadd.f32 %v1513_v10, %v1512_v49 }
 0x70b   :  { %v15354_v33 = vpop.eup %13945 }
 0x70c   :  { %v15356_v37 = vpop.eup %13947  ;;  %v1155_v32 = vsel %vm56_vm0, %v15354_v33, 0.0 }
 0x70d   :  { %1156 = vadd.xlane.f32.xlu1 %v1155_v32  ;;  %v1146_v7 = vsel %vm56_vm0, %v15356_v37, 0.0 }
 0x70e   :  { %1147 = vadd.xlane.f32.xlu0 %v1146_v7 }
 0x710   :  { %v15362_v19 = vpop.eup %13949 }
 0x711   :  { %v1152_v22 = vsel %vm56_vm0, %v15362_v19, 0.0  ;;  %v15366_v13 = vpop.eup %13951 }
 0x712   :  { %1153 = vadd.xlane.f32.xlu0 %v1152_v22  ;;  %v1161_v11 = vsel %vm56_vm0, %v15366_v13, 0.0 }
 0x714   :  { %v15371_v24 = vpop.eup %13953 }
 0x715   :  { %v1158_v34 = vsel %vm56_vm0, %v15371_v24, 0.0 }
 0x716   :  { %1162 = vadd.xlane.f32.xlu0 %v1161_v11 }
 0x71a   :  { %1159 = vadd.xlane.f32.xlu0 %v1158_v34  ;;  %v1518_v34 = vmul.f32 2.0, %v15293_v62  ;;  %v1522_v62 = vmul.f32 2.0, %v15312_v14 }
 0x71e   :  { %1762 = vrot.lane.b32.xlu1 %v15039_v43, %s14605_s28 }
 0x722   :  { %1764 = vrot.lane.b32.xlu1 %v15051_v61, %s14605_s28 }
 0x726   :  { %1766 = vrot.lane.b32.xlu1 %v15055_v1, %s14605_s28 }
 0x728   :  { %v1483_v55 = vpop.xlane.xlu1 %1482 }
 0x729   :  { %v1524_v44 = vsub.f32 %v1516_v6, %v1483_v55  ;;  %v1480_v46 = vpop.xlane.xlu0 %1479  ;;  %v1520_v55 = vmul.f32 2.0, %v15302_v26 }
 0x72a   :  { %v1523_v4 = vsub.f32 %v1515_v48, %v1480_v46  ;;  %v1519_v46 = vmul.f32 2.0, %v15305_v18 }
 0x72b   :  { %v1532_v57 = vsub.f32 %v1524_v44, %v1514_v28 }
 0x72c   :  { %v1531_v54 = vsub.f32 %v1523_v4, %v1514_v28  ;;  %v15394_v11 = vpop.permute.xlu1 %1758 }
 0x72d   :  { %v1540_v41 = vmul.f32 0.35355338, %v1532_v57  ;;  %v15396_v47 = vpop.permute.xlu0 %1756 }
 0x72e   :  { %v1539_v32 = vmul.f32 0.35355338, %v1531_v54 }
 0x72f   :  { %v1549_v27 = vmul.f32 1.442695, %v1540_v41 }
 0x730   :  { %v1547_v7 = vmul.f32 1.442695, %v1539_v32 }
 0x731   :  { %13955 = vpow2.f32 %v1549_v27 }
 0x732   :  { %13957 = vpow2.f32 %v1547_v7 }
 0x73b   :  { %v15384_v22 = vpop.eup %13955 }
 0x73c   :  { %v1566_v58 = vsel %vm56_vm0, %v15384_v22, 0.0  ;;  %v15388_v21 = vpop.eup %13957 }
 0x73d   :  { %1567 = vadd.xlane.f32.xlu0 %v1566_v58  ;;  %v1563_v53 = vsel %vm56_vm0, %v15388_v21, 0.0 }
 0x74a   :  { %1564 = vadd.xlane.f32.xlu1 %v1563_v53  ;;  %v1521_v53 = vmul.f32 2.0, %v15315_v5 }
 0x753   :  { %1760 = vrot.lane.b32.xlu0 %v15041_v52, %s14605_s28 }
 0x75d   :  { %v1489_v49 = vpop.xlane.xlu1 %1488 }
 0x75e   :  { %v1526_v10 = vsub.f32 %v1518_v34, %v1489_v49  ;;  %v1486_v6 = vpop.xlane.xlu0 %1485 }
 0x75f   :  { %v1525_v48 = vsub.f32 %v1517_v63, %v1486_v6 }
 0x760   :  { %v1534_v44 = vsub.f32 %v1526_v10, %v1514_v28 }
 0x761   :  { %v1533_v4 = vsub.f32 %v1525_v48, %v1514_v28  ;;  %v1495_v57 = vpop.xlane.xlu1 %1494 }
 0x762   :  { %v1542_v54 = vmul.f32 0.35355338, %v1534_v44  ;;  %v1528_v41 = vsub.f32 %v1520_v55, %v1495_v57  ;;  %v1492_v27 = vpop.xlane.xlu0 %1491 }
 0x763   :  { %v1541_v32 = vmul.f32 0.35355338, %v1533_v4  ;;  %v1527_v7 = vsub.f32 %v1519_v46, %v1492_v27 }
 0x764   :  { %v1553_v58 = vmul.f32 1.442695, %v1542_v54  ;;  %v1536_v50 = vsub.f32 %v1528_v41, %v1514_v28 }
 0x765   :  { %v1551_v34 = vmul.f32 1.442695, %v1541_v32  ;;  %v1535_v63 = vsub.f32 %v1527_v7, %v1514_v28  ;;  %v1501_v49 = vpop.xlane.xlu1 %1500 }
 0x766   :  { %13959 = vpow2.f32 %v1553_v58  ;;  %v1544_v26 = vmul.f32 0.35355338, %v1536_v50  ;;  %v1530_v10 = vsub.f32 %v1522_v62, %v1501_v49  ;;  %v1498_v18 = vpop.xlane.xlu0 %1497 }
 0x767   :  { %13961 = vpow2.f32 %v1551_v34  ;;  %v1543_v6 = vmul.f32 0.35355338, %v1535_v63  ;;  %v1529_v48 = vsub.f32 %v1521_v53, %v1498_v18 }
 0x768   :  { %v1557_v55 = vmul.f32 1.442695, %v1544_v26  ;;  %v1538_v44 = vsub.f32 %v1530_v10, %v1514_v28 }
 0x769   :  { %v1555_v4 = vmul.f32 1.442695, %v1543_v6  ;;  %v1537_v46 = vsub.f32 %v1529_v48, %v1514_v28 }
 0x76a   :  { %13963 = vpow2.f32 %v1557_v55  ;;  %v1546_v14 = vmul.f32 0.35355338, %v1538_v44 }
 0x76b   :  { %v1545_v57 = vmul.f32 0.35355338, %v1537_v46  ;;  %13965 = vpow2.f32 %v1555_v4  ;;  %v13565_v4 = vunpack.i.h.bf16 %v15178_v42  ;;  %v13564_v46 = vunpack.i.l.bf16 %v15178_v42 }
 0x76c   :  { %v1561_v54 = vmul.f32 1.442695, %v1546_v14 }
 0x76d   :  { %v1559_v5 = vmul.f32 1.442695, %v1545_v57 }
 0x76e   :  { %13967 = vpow2.f32 %v1561_v54 }
 0x76f   :  { %13969 = vpow2.f32 %v1559_v5  ;;  %v13570_v5 = vunpack.i.h.bf16 %v15330_v2 }
 0x770   :  { %v15404_v41 = vpop.eup %13959 }
 0x771   :  { %v15406_v27 = vpop.eup %13961  ;;  %v1572_v32 = vsel %vm56_vm0, %v15404_v41, 0.0 }
 0x772   :  { %1573 = vadd.xlane.f32.xlu0 %v1572_v32  ;;  %v1569_v7 = vsel %vm56_vm0, %v15406_v27, 0.0  ;;  %v13569_v32 = vunpack.i.l.bf16 %v15330_v2 }
 0x773   :  { %1570 = vadd.xlane.f32.xlu1 %v1569_v7  ;;  %v12866_v7 = vpack.c.bf16 %v13565_v4, %v13564_v46 }
 0x774   :  { %v15412_v28 = vpop.eup %13963 }
 0x775   :  { %v1578_v62 = vsel %vm56_vm0, %v15412_v28, 0.0  ;;  %v15416_v58 = vpop.eup %13965 }
 0x776   :  { %v1575_v34 = vsel %vm56_vm0, %v15416_v58, 0.0 }
 0x777   :  { %1579 = vadd.xlane.f32.xlu1 %v1578_v62 }
 0x778   :  { %v15418_v50 = vpop.eup %13967 }
 0x779   :  { %v1584_v53 = vsel %vm56_vm0, %v15418_v50, 0.0  ;;  %v15424_v63 = vpop.eup %13969 }
 0x77a   :  { %1585 = vadd.xlane.f32.xlu0 %v1584_v53  ;;  %v1581_v49 = vsel %vm56_vm0, %v15424_v63, 0.0 }
 0x77b   :  { %1576 = vadd.xlane.f32.xlu1 %v1575_v34  ;;  %v12870_v34 = vpack.c.bf16 %v13570_v5, %v13569_v32 }
 0x77f   :  { %1582 = vadd.xlane.f32.xlu1 %v1581_v49 }
 0x790   :  { %1770 = vrot.lane.b32.xlu1 %v15073_v12, %s14605_s28  ;;  %1768 = vrot.lane.b32.xlu0 %v15061_v3, %s14605_s28 }
 0x792   :  { %v1145_v26 = vpop.xlane.xlu1 %1144 }
 0x793   :  { %13971 = vrcp.f32 %v1145_v26  ;;  %v1142_v10 = vpop.xlane.xlu0 %1141 }
 0x794   :  { %13973 = vrcp.f32 %v1142_v10  ;;  %13587 = vrot.lane.b32.xlu1 %v15077_v15, %s14606_s29  ;;  %13582 = vrot.lane.b32.xlu0 %v15085_v16, %s14606_s29 }
 0x797   :  { %v1151_v18 = vpop.xlane.xlu0 %1150 }
 0x798   :  { %13592 = vrot.lane.b32.xlu1 %v15099_v17, %s14606_s29  ;;  %13975 = vrcp.f32 %v1151_v18 }
 0x79a   :  { %v1157_v48 = vpop.xlane.xlu1 %1156 }
 0x79b   :  { %v1148_v6 = vpop.xlane.xlu0 %1147 }
 0x79c   :  { %13977 = vrcp.f32 %v1148_v6  ;;  %13597 = vrot.lane.b32.xlu1 %v15103_v23, %s14606_s29 }
 0x79d   :  { %v13972_v55 = vpop.eup %13971  ;;  %13979 = vrcp.f32 %v1157_v48 }
 0x79e   :  { %v13974_v44 = vpop.eup %13973  ;;  %v1173_v54 = vmul.f32 %v13972_v55, %v15342_v35  ;;  %v13579_v35 = vunpack.i.l.bf16 %v15332_v36 }
 0x79f   :  { %v1154_v14 = vpop.xlane.xlu0 %1153  ;;  %v1172_v57 = vmul.f32 %v13974_v44, %v15344_v8  ;;  %v13580_v8 = vunpack.i.h.bf16 %v15332_v36 }
 0x7a0   :  { %13981 = vrcp.f32 %v1154_v14 }
 0x7a1   :  { %11746 = vmatprep.mubr.msk.f32.mxu1 %vm56_vm0, %v1172_v57  ;;  %v12874_v18 = vpack.c.bf16 %v13580_v8, %v13579_v35 }
 0x7a2   :  { %11747 = vmatmul.mubr.msk.f32.vlgmr.msra.gmra.mrb[24].mxu1 %vm56_vm0, %v1173_v54  ;;  %v13976_v42 = vpop.eup %13975 }
 0x7a3   :  { %12865 = vmatpush3.bf16.msra.mxu1 %v15186_v9  ;;  %v1163_v62 = vpop.xlane.xlu0 %1162  ;;  %v1175_v2 = vmul.f32 %v13976_v42, %v15350_v59 }
 0x7a4   :  { %12867 = vmatprep.subr.bf16.mxu1 %v12866_v7  ;;  %13983 = vrcp.f32 %v1163_v62 }
 0x7a6   :  { %v13978_v53 = vpop.eup %13977 }
 0x7a7   :  { %12869 = vmatpush3.bf16.msra.mxu1 %v12866_v7  ;;  %v1160_v49 = vpop.xlane.xlu0 %1159  ;;  %v1174_v26 = vmul.f32 %v13978_v53, %v15356_v37  ;;  %v13980_v10 = vpop.eup %13979  ;;  %v12878_v37 = vpack.c.bf16 %v15394_v11, %v15396_v47 }
 0x7a8   :  { %12871 = vmatprep.subr.bf16.mxu1 %v12870_v34  ;;  %13985 = vrcp.f32 %v1160_v49  ;;  %v1177_v6 = vmul.f32 %v13980_v10, %v15354_v33  ;;  %v15467_v33 = vpop.permute.xlu1 %1762 }
 0x7a9   :  { %11749 = vmatprep.mubr.msk.f32.mxu1 %vm56_vm0, %v1174_v26 }
 0x7aa   :  { %v13982_v9 = vpop.eup %13981  ;;  %11750 = vmatmul.mubr.msk.f32.gmra.mrb[26].mxu1 %vm56_vm0, %v1175_v2 }
 0x7ab   :  { %12873 = vmatpush3.bf16.msra.mxu1 %v12870_v34  ;;  %v1176_v36 = vmul.f32 %v13982_v9, %v15362_v19 }
 0x7ac   :  { %12875 = vmatprep.subr.bf16.mxu1 %v12874_v18  ;;  %v15469_v44 = vpop.permute.xlu1 %1764 }
 0x7ad   :  { %11752 = vmatprep.mubr.msk.f32.mxu1 %vm56_vm0, %v1176_v36 }
 0x7ae   :  { %11753 = vmatmul.mubr.msk.f32.gmra.mrb[28].mxu1 %vm56_vm0, %v1177_v6  ;;  %v13984_v59 = vpop.eup %13983 }
 0x7af   :  { %12877 = vmatpush3.bf16.msra.mxu1 %v12874_v18  ;;  %v1179_v19 = vmul.f32 %v13984_v59, %v15366_v13 }
 0x7b0   :  { %12880 = vmatprep.subr.msk.bf16.mxu1 %vm15031_vm3, %v12878_v37  ;;  %v15471_v4 = vpop.permute.xlu1 %1766 }
 0x7b1   :  { %v12890_v7 = vpack.c.bf16 %v15471_v4, %v15469_v44 }
 0x7b2   :  { %v13986_v48 = vpop.eup %13985 }
 0x7b3   :  { %v1178_v55 = vmul.f32 %v13986_v48, %v15371_v24 }
 0x7b5   :  { %11755 = vmatprep.mubr.msk.f32.mxu1 %vm56_vm0, %v1178_v55 }
 0x7b6   :  { %11756 = vmatmul.mubr.msk.f32.gmra.mrb[30].mxu1 %vm56_vm0, %v1179_v19 }
 0x7ca   :  { %v1568_v46 = vpop.xlane.xlu0 %1567 }
 0x7cb   :  { %13987 = vrcp.f32 %v1568_v46 }
 0x7ce   :  { %v15473_v5 = vpop.permute.xlu0 %1760 }
 0x7cf   :  { %v12884_v32 = vpack.c.bf16 %v15467_v33, %v15473_v5 }
 0x7d5   :  { %v13988_v57 = vpop.eup %13987 }
 0x7d6   :  { %v1596_v24 = vmul.f32 %v13988_v57, %v15384_v22 }
 0x7d7   :  { %v1565_v14 = vpop.xlane.xlu1 %1564 }
 0x7d8   :  { %13989 = vrcp.f32 %v1565_v14 }
 0x7e2   :  { %v13990_v54 = vpop.eup %13989 }
 0x7e3   :  { %v1595_v13 = vmul.f32 %v13990_v54, %v15388_v21 }
 0x7e5   :  { %11802 = vmatprep.mubr.msk.f32.mxu1 %vm56_vm0, %v1595_v13 }
 0x7e6   :  { %11803 = vmatmul.mubr.msk.f32.vlgmr.msra.gmra.mrb[32].mxu1 %vm56_vm0, %v1596_v24 }
 0x7e7   :  { %12883 = vmatpush3.bf16.xpose.msk.msra.mxu1 %vm15031_vm3, %v12878_v37 }
 0x7e8   :  { %12886 = vmatprep.subr.msk.bf16.mxu1 %vm15031_vm3, %v12884_v32 }
 0x7ef   :  { %12889 = vmatpush3.bf16.xpose.msk.msra.mxu1 %vm15031_vm3, %v12884_v32 }
 0x7f0   :  { %12892 = vmatprep.subr.msk.bf16.mxu1 %vm15031_vm3, %v12890_v7 }
 0x7f7   :  { %12895 = vmatpush3.bf16.xpose.msk.msra.mxu1 %vm15031_vm3, %v12890_v7 }
 0x7ff   :  { %v1574_v22 = vpop.xlane.xlu0 %1573 }
 0x800   :  { %13991 = vrcp.f32 %v1574_v22  ;;  %v1571_v21 = vpop.xlane.xlu1 %1570 }
 0x801   :  { %13993 = vrcp.f32 %v1571_v21 }
 0x804   :  { %v1580_v62 = vpop.xlane.xlu1 %1579 }
 0x805   :  { %13995 = vrcp.f32 %v1580_v62 }
 0x807   :  { %v1586_v42 = vpop.xlane.xlu0 %1585 }
 0x808   :  { %v1577_v53 = vpop.xlane.xlu1 %1576 }
 0x809   :  { %13997 = vrcp.f32 %v1577_v53 }
 0x80a   :  { %v13992_v8 = vpop.eup %13991  ;;  %13999 = vrcp.f32 %v1586_v42 }
 0x80b   :  { %v13994_v35 = vpop.eup %13993  ;;  %v1769_v34 = vpop.permute.xlu0 %1768  ;;  %v1598_v2 = vmul.f32 %v13992_v8, %v15404_v41 }
 0x80c   :  { %v1583_v49 = vpop.xlane.xlu1 %1582  ;;  %v1597_v26 = vmul.f32 %v13994_v35, %v15406_v27 }
 0x80d   :  { %14001 = vrcp.f32 %v1583_v49 }
 0x80e   :  { %11805 = vmatprep.mubr.msk.f32.mxu1 %vm56_vm0, %v1597_v26 }
 0x80f   :  { %11806 = vmatmul.mubr.msk.f32.gmra.mrb[34].mxu1 %vm56_vm0, %v1598_v2  ;;  %v13583_v10 = vpop.permute.xlu0 %13582  ;;  %v13996_v37 = vpop.eup %13995 }
 0x810   :  { %v13585_v9 = vunpack.i.h.bf16 %v13583_v10  ;;  %v13584_v18 = vunpack.i.l.bf16 %v13583_v10  ;;  %v1771_v36 = vpop.permute.xlu1 %1770  ;;  %v1600_v46 = vmul.f32 %v13996_v37, %v15412_v28 }
 0x811   :  { %v12896_v6 = vpack.c.bf16 %v1771_v36, %v1769_v34 }
 0x812   :  { %v12902_v59 = vpack.c.bf16 %v13585_v9, %v13584_v18 }
 0x813   :  { %v13998_v48 = vpop.eup %13997  ;;  %12898 = vmatprep.subr.msk.bf16.mxu1 %vm15031_vm3, %v12896_v6 }
 0x814   :  { %v13588_v55 = vpop.permute.xlu1 %13587  ;;  %12901 = vmatpush3.bf16.xpose.msk.msra.mxu1 %vm15031_vm3, %v12896_v6  ;;  %12903 = vmatprep.subr.bf16.mxu0 %v12902_v59  ;;  %v1599_v41 = vmul.f32 %v13998_v48, %v15416_v58  ;;  %v14000_v14 = vpop.eup %13999 }
 0x815   :  { %v13590_v27 = vunpack.i.h.bf16 %v13588_v55  ;;  %v13589_v19 = vunpack.i.l.bf16 %v13588_v55  ;;  %12905 = vmatpush3.bf16.msra.mxu0 %v12902_v59  ;;  %v1602_v58 = vmul.f32 %v14000_v14, %v15418_v50 }
 0x816   :  { %11808 = vmatprep.mubr.msk.f32.mxu1 %vm56_vm0, %v1599_v41 }
 0x817   :  { %v14002_v57 = vpop.eup %14001  ;;  %11809 = vmatmul.mubr.msk.f32.gmra.mrb[36].mxu1 %vm56_vm0, %v1600_v46  ;;  %v12906_v54 = vpack.c.bf16 %v13590_v27, %v13589_v19 }
 0x818   :  { %v13593_v13 = vpop.permute.xlu1 %13592  ;;  %v1601_v24 = vmul.f32 %v14002_v57, %v15424_v63 }
 0x819   :  { %v13595_v32 = vunpack.i.h.bf16 %v13593_v13  ;;  %v13594_v7 = vunpack.i.l.bf16 %v13593_v13  ;;  %12907 = vmatprep.subr.bf16.mxu0 %v12906_v54 }
 0x81a   :  { %11811 = vmatprep.mubr.msk.f32.mxu1 %vm56_vm0, %v1601_v24  ;;  %12909 = vmatpush3.bf16.msra.mxu0 %v12906_v54 }
 0x81b   :  { %11812 = vmatmul.mubr.msk.f32.gmra.mrb[38].mxu1 %vm56_vm0, %v1602_v58  ;;  %v12910_v28 = vpack.c.bf16 %v13595_v32, %v13594_v7 }
 0x81c   :  { %v13598_v22 = vpop.permute.xlu1 %13597  ;;  %11830 = vmatprep.mubr.msk.f32.mxu1 %vm917_vm2, %v15396_v47 }
 0x81d   :  { %v13600_v21 = vunpack.i.h.bf16 %v13598_v22  ;;  %v13599_v62 = vunpack.i.l.bf16 %v13598_v22  ;;  %12911 = vmatprep.subr.bf16.mxu0 %v12910_v28 }
 0x81e   :  { %12913 = vmatpush3.bf16.msra.mxu0 %v12910_v28 }
 0x81f   :  { %11831 = vmatmul.mubr.msk.f32.vlgmr.msra.gmra.mrb[40].mxu1 %vm917_vm2, %v15394_v11  ;;  %v12914_v63 = vpack.c.bf16 %v13600_v21, %v13599_v62 }
 0x820   :  { %11833 = vmatprep.mubr.msk.f32.mxu1 %vm917_vm2, %v15473_v5 }
 0x821   :  { %12915 = vmatprep.subr.bf16.mxu0 %v12914_v63 }
 0x822   :  { %12917 = vmatpush3.bf16.msra.mxu0 %v12914_v63 }
 0x823   :  { %11834 = vmatmul.mubr.msk.f32.gmra.mrb[42].mxu1 %vm917_vm2, %v15467_v33 }
 0x824   :  { %11836 = vmatprep.mubr.msk.f32.mxu1 %vm917_vm2, %v15469_v44 }
 0x827   :  { %11837 = vmatmul.mubr.msk.f32.gmra.mrb[44].mxu1 %vm917_vm2, %v15471_v4 }
 0x828   :  { %11839 = vmatprep.mubr.msk.f32.mxu1 %vm917_vm2, %v1769_v34 }
 0x82b   :  { %11840 = vmatmul.mubr.msk.f32.gmra.mrb[46].mxu1 %vm917_vm2, %v1771_v36 }
 0x875   :  { %v15523_v11 = vpop.f32.mrb[24].mxu1 }
 0x876   :  { %19192 = vst [vmem:[#allocation31_spill] sm:$0xff] %v15523_v11  ;;  %v15525_v47 = vpop.f32.mrb[25].mxu1 }
 0x877   :  { %19193 = vst [vmem:[#allocation32_spill] sm:$0xff] %v15525_v47 }
 0x87d   :  { %v15527_v50 = vpop.f32.mrb[26].mxu1 }
 0x87e   :  { %19194 = vst [vmem:[#allocation33_spill] sm:$0xff] %v15527_v50  ;;  %v15529_v5 = vpop.f32.mrb[27].mxu1 }
 0x87f   :  { %19195 = vst [vmem:[#allocation34_spill] sm:$0xff] %v15529_v5 }
 0x881   :  { %v15531_v42 = vpop.f32.mrb[28].mxu1 }
 0x882   :  { %19196 = vst [vmem:[#allocation35_spill] sm:$0xff] %v15531_v42  ;;  %v15533_v33 = vpop.f32.mrb[29].mxu1 }
 0x883   :  { %19197 = vst [vmem:[#allocation36_spill] sm:$0xff] %v15533_v33 }
 0x889   :  { %v15535_v44 = vpop.f32.mrb[30].mxu1 }
 0x88a   :  { %19198 = vst [vmem:[#allocation37_spill] sm:$0xff] %v15535_v44  ;;  %v15537_v53 = vpop.f32.mrb[31].mxu1 }
 0x88b   :  { %19199 = vst [vmem:[#allocation38_spill] sm:$0xff] %v15537_v53 }
 0x8b9   :  { %v15539_v4 = vpop.f32.mrb[32].mxu1 }
 0x8ba   :  { %v15541_v8 = vpop.f32.mrb[33].mxu1 }
 0x8e2   :  { %v15543_v35 = vpop.f32.mrb[34].mxu1 }
 0x8e3   :  { %v15545_v34 = vpop.f32.mrb[35].mxu1 }
 0x8ea   :  { %v15547_v49 = vpop.f32.mrb[36].mxu1 }
 0x8eb   :  { %19200 = vst [vmem:[#allocation39_spill] sm:$0xff] %v15547_v49  ;;  %v15549_v26 = vpop.f32.mrb[37].mxu1 }
 0x8ec   :  { %19201 = vst [vmem:[#allocation40_spill] sm:$0xff] %v15549_v26 }
 0x8ee   :  { %v15551_v2 = vpop.f32.mrb[38].mxu1 }
 0x8ef   :  { %19202 = vst [vmem:[#allocation41_spill] sm:$0xff] %v15551_v2  ;;  %v15553_v10 = vpop.f32.mrb[39].mxu1 }
 0x8f0   :  { %19203 = vst [vmem:[#allocation42_spill] sm:$0xff] %v15553_v10 }
 0x8f2   :  { %v11832_v9 = vpop.f32.mrb[40].mxu1 }
 0x8f3   :  { %v1894_v18 = vmul.f32 %v11832_v9, %v15217_v29  ;;  %v1854_v36 = vpop.f32.mrb[41].mxu1 }
 0x8f4   :  { %v1893_v6 = vmul.f32 %v15220_v51, %v1854_v36 }
 0x8f5   :  { %v1904_v37 = vsel %vm56_vm0, %v1894_v18, 0.0 }
 0x8f6   :  { %1905 = vadd.xlane.f32.xlu1 %v1904_v37  ;;  %v11835_v59 = vpop.f32.mrb[42].mxu1  ;;  %v1901_v48 = vsel %vm56_vm0, %v1893_v6, 0.0 }
 0x8f7   :  { %v1896_v55 = vmul.f32 %v11835_v59, %v15233_v40  ;;  %1902 = vadd.xlane.f32.xlu0 %v1901_v48  ;;  %v1925_v41 = vadd.f32 %v1904_v37, %v1901_v48  ;;  %v1864_v27 = vpop.f32.mrb[43].mxu1 }
 0x8f8   :  { %v1895_v19 = vmul.f32 %v15237_v45, %v1864_v27 }
 0x8f9   :  { %v1910_v46 = vsel %vm56_vm0, %v1896_v55, 0.0 }
 0x8fa   :  { %v11838_v14 = vpop.f32.mrb[44].mxu1  ;;  %v1907_v57 = vsel %vm56_vm0, %v1895_v19, 0.0 }
 0x8fb   :  { %v1898_v54 = vmul.f32 %v11838_v14, %v15251_v25  ;;  %1911 = vadd.xlane.f32.xlu0 %v1910_v46  ;;  %v1874_v13 = vpop.f32.mrb[45].mxu1  ;;  %v1926_v24 = vadd.f32 %v1925_v41, %v1907_v57 }
 0x8fc   :  { %v1897_v32 = vmul.f32 %v15255_v60, %v1874_v13 }
 0x8fd   :  { %v1916_v7 = vsel %vm56_vm0, %v1898_v54, 0.0  ;;  %v1927_v58 = vadd.f32 %v1926_v24, %v1910_v46 }
 0x8fe   :  { %1917 = vadd.xlane.f32.xlu1 %v1916_v7  ;;  %v11841_v28 = vpop.f32.mrb[46].mxu1  ;;  %v1913_v22 = vsel %vm56_vm0, %v1897_v32, 0.0  ;;  %v1939_v32 = vmul.f32 2.0, %v11832_v9 }
 0x8ff   :  { %v1900_v21 = vmul.f32 %v11841_v28, %v15267_v56  ;;  %1908 = vadd.xlane.f32.xlu0 %v1907_v57  ;;  %v1884_v62 = vpop.f32.mrb[47].mxu1  ;;  %v1928_v63 = vadd.f32 %v1927_v58, %v1913_v22 }
 0x900   :  { %v1899_v18 = vmul.f32 %v15271_v31, %v1884_v62 }
 0x901   :  { %v1922_v6 = vsel %vm56_vm0, %v1900_v21, 0.0  ;;  %v1929_v37 = vadd.f32 %v1928_v63, %v1916_v7  ;;  %v1938_v7 = vmul.f32 2.0, %v1854_v36 }
 0x902   :  { %1923 = vadd.xlane.f32.xlu1 %v1922_v6  ;;  %v1919_v48 = vsel %vm56_vm0, %v1899_v18, 0.0 }
 0x903   :  { %1914 = vadd.xlane.f32.xlu0 %v1913_v22  ;;  %v1930_v55 = vadd.f32 %v1929_v37, %v1919_v48  ;;  %v1941_v37 = vmul.f32 2.0, %v11835_v59 }
 0x905   :  { %v1931_v41 = vadd.f32 %v1930_v55, %v1922_v6 }
 0x907   :  { %1920 = vadd.xlane.f32.xlu0 %v1919_v48  ;;  %v1932_v19 = vrot.slane %v1931_v41, 4 }
 0x909   :  { %v1933_v46 = vadd.f32 %v1932_v19, %v1931_v41  ;;  %v1940_v41 = vmul.f32 2.0, %v1864_v27 }
 0x90b   :  { %v1934_v57 = vrot.slane %v1933_v46, 2 }
 0x90d   :  { %v1935_v54 = vadd.f32 %v1934_v57, %v1933_v46 }
 0x90f   :  { %v1936_v24 = vrot.slane %v1935_v54, 1 }
 0x911   :  { %v1937_v21 = vadd.f32 %v1936_v24, %v1935_v54  ;;  %v1945_v24 = vmul.f32 2.0, %v11841_v28 }
 0x913   :  { %2181 = vrot.lane.b32.xlu1 %v15023_v39, %s14607_s30 }
 0x91d   :  { %2179 = vrot.lane.b32.xlu0 %v15025_v38, %s14607_s30  ;;  %v1943_v38 = vmul.f32 2.0, %v11838_v14  ;;  %v1944_v14 = vmul.f32 2.0, %v1884_v62 }
 0x983   :  { %v1906_v58 = vpop.xlane.xlu1 %1905 }
 0x984   :  { %v1947_v22 = vsub.f32 %v1939_v32, %v1906_v58  ;;  %v1903_v63 = vpop.xlane.xlu0 %1902 }
 0x985   :  { %v1946_v18 = vsub.f32 %v1938_v7, %v1903_v63  ;;  %v1942_v7 = vmul.f32 2.0, %v1874_v13 }
 0x986   :  { %v1955_v6 = vsub.f32 %v1947_v22, %v1937_v21 }
 0x987   :  { %v1954_v48 = vsub.f32 %v1946_v18, %v1937_v21 }
 0x988   :  { %v1963_v55 = vmul.f32 0.35355338, %v1955_v6  ;;  %v1912_v39 = vpop.xlane.xlu0 %1911 }
 0x989   :  { %v1962_v44 = vmul.f32 0.35355338, %v1954_v48  ;;  %v1949_v53 = vsub.f32 %v1941_v37, %v1912_v39 }
 0x98a   :  { %v1972_v42 = vmul.f32 1.442695, %v1963_v55 }
 0x98b   :  { %v1970_v19 = vmul.f32 1.442695, %v1962_v44  ;;  %v1957_v46 = vsub.f32 %v1949_v53, %v1937_v21  ;;  %v1918_v57 = vpop.xlane.xlu1 %1917 }
 0x98c   :  { %14003 = vpow2.f32 %v1972_v42  ;;  %v1951_v9 = vsub.f32 %v1943_v38, %v1918_v57  ;;  %v1909_v36 = vpop.xlane.xlu0 %1908 }
 0x98d   :  { %14005 = vpow2.f32 %v1970_v19  ;;  %v1948_v54 = vsub.f32 %v1940_v41, %v1909_v36  ;;  %v1965_v19 = vmul.f32 0.35355338, %v1957_v46 }
 0x98e   :  { %v1959_v32 = vsub.f32 %v1951_v9, %v1937_v21 }
 0x98f   :  { %v1956_v59 = vsub.f32 %v1948_v54, %v1937_v21  ;;  %v1924_v58 = vpop.xlane.xlu1 %1923  ;;  %v1976_v36 = vmul.f32 1.442695, %v1965_v19 }
 0x990   :  { %v1953_v22 = vsub.f32 %v1945_v24, %v1924_v58  ;;  %v1915_v63 = vpop.xlane.xlu0 %1914 }
 0x991   :  { %v1950_v18 = vsub.f32 %v1942_v7, %v1915_v63  ;;  %v1964_v62 = vmul.f32 0.35355338, %v1956_v59 }
 0x992   :  { %v1961_v6 = vsub.f32 %v1953_v22, %v1937_v21 }
 0x993   :  { %v1958_v37 = vsub.f32 %v1950_v18, %v1937_v21  ;;  %v15576_v39 = vpop.permute.xlu1 %2181  ;;  %v1974_v41 = vmul.f32 1.442695, %v1964_v62 }
 0x994   :  { %v1921_v27 = vpop.xlane.xlu0 %1920 }
 0x995   :  { %v1952_v44 = vsub.f32 %v1944_v14, %v1921_v27  ;;  %14007 = vpow2.f32 %v1974_v41  ;;  %v1966_v9 = vmul.f32 0.35355338, %v1958_v37 }
 0x996   :  { %v14004_v53 = vpop.eup %14003 }
 0x997   :  { %v14006_v48 = vpop.eup %14005  ;;  %v1960_v42 = vsub.f32 %v1952_v44, %v1937_v21  ;;  %v1989_v55 = vsel %vm56_vm0, %v14004_v53, 0.0  ;;  %v1967_v21 = vmul.f32 0.35355338, %v1959_v32  ;;  %v1978_v24 = vmul.f32 1.442695, %v1966_v9 }
 0x998   :  { %1990 = vadd.xlane.f32.xlu1 %v1989_v55  ;;  %v15578_v28 = vpop.permute.xlu0 %2179  ;;  %v1986_v13 = vsel %vm56_vm0, %v14006_v48, 0.0 }
 0x999   :  { %v12918_v38 = vpack.c.bf16 %v15576_v39, %v15578_v28  ;;  %1987 = vadd.xlane.f32.xlu0 %v1986_v13  ;;  %v1980_v57 = vmul.f32 1.442695, %v1967_v21  ;;  %v1968_v54 = vmul.f32 0.35355338, %v1960_v42 }
 0x99b   :  { %12920 = vmatprep.subr.msk.bf16.mxu0 %vm15031_vm3, %v12918_v38  ;;  %14009 = vpow2.f32 %v1980_v57 }
 0x99c   :  { %14011 = vpow2.f32 %v1976_v36 }
 0x99d   :  { %14013 = vpow2.f32 %v1978_v24 }
 0x9a9   :  { %2185 = vrot.lane.b32.xlu1 %v15039_v43, %s14607_s30  ;;  %v1969_v43 = vmul.f32 0.35355338, %v1961_v6 }
 0x9ab   :  { %v1984_v7 = vmul.f32 1.442695, %v1969_v43 }
 0x9ad   :  { %2187 = vrot.lane.b32.xlu1 %v15051_v61, %s14607_s30  ;;  %v1982_v61 = vmul.f32 1.442695, %v1968_v54 }
 0x9af   :  { %2183 = vrot.lane.b32.xlu0 %v15041_v52, %s14607_s30  ;;  %v14008_v52 = vpop.eup %14007  ;;  %14015 = vpow2.f32 %v1982_v61 }
 0x9b0   :  { %14017 = vpow2.f32 %v1984_v7  ;;  %v15594_v32 = vpop.eup %14009 }
 0x9b1   :  { %2189 = vrot.lane.b32.xlu1 %v15055_v1, %s14607_s30  ;;  %v1992_v1 = vsel %vm56_vm0, %v14008_v52, 0.0  ;;  %v14012_v46 = vpop.eup %14011  ;;  %v2001_v59 = vsel %vm56_vm0, %v15594_v32, 0.0 }
 0x9b2   :  { %v14014_v58 = vpop.eup %14013  ;;  %v1995_v22 = vsel %vm56_vm0, %v14012_v46, 0.0 }
 0x9b3   :  { %v1998_v18 = vsel %vm56_vm0, %v14014_v58, 0.0 }
 0x9b9   :  { %v14016_v63 = vpop.eup %14015 }
 0x9ba   :  { %v14018_v6 = vpop.eup %14017  ;;  %v2004_v14 = vsel %vm56_vm0, %v14016_v63, 0.0 }
 0x9bb   :  { %v2007_v37 = vsel %vm56_vm0, %v14018_v6, 0.0 }
 0x9ce   :  { %1993 = vadd.xlane.f32.xlu0 %v1992_v1 }
 0x9d2   :  { %2002 = vadd.xlane.f32.xlu0 %v2001_v59 }
 0x9d5   :  { %1996 = vadd.xlane.f32.xlu1 %v1995_v22 }
 0x9d6   :  { %1999 = vadd.xlane.f32.xlu0 %v1998_v18 }
 0x9d9   :  { %2005 = vadd.xlane.f32.xlu1 %v2004_v14 }
 0x9da   :  { %2008 = vadd.xlane.f32.xlu0 %v2007_v37 }
 0x9ea   :  { %2193 = vrot.lane.b32.xlu1 %v15073_v12, %s14607_s30 }
 0x9f0   :  { %2191 = vrot.lane.b32.xlu0 %v15061_v3, %s14607_s30 }
 0xa25   :  { %v1991_v27 = vpop.xlane.xlu1 %1990 }
 0xa26   :  { %14019 = vrcp.f32 %v1991_v27  ;;  %v1988_v44 = vpop.xlane.xlu0 %1987 }
 0xa27   :  { %14021 = vrcp.f32 %v1988_v44 }
 0xa29   :  { %v2186_v42 = vpop.permute.xlu1 %2185 }
 0xa2a   :  { %v2184_v62 = vpop.permute.xlu0 %2183 }
 0xa2b   :  { %v12924_v57 = vpack.c.bf16 %v2186_v42, %v2184_v62 }
 0xa2d   :  { %v2188_v19 = vpop.permute.xlu1 %2187 }
 0xa30   :  { %v14020_v55 = vpop.eup %14019 }
 0xa31   :  { %v14022_v13 = vpop.eup %14021  ;;  %v2019_v41 = vmul.f32 %v14020_v55, %v14004_v53  ;;  %v2190_v3 = vpop.permute.xlu1 %2189 }
 0xa32   :  { %v2018_v21 = vmul.f32 %v14022_v13, %v14006_v48  ;;  %v12930_v12 = vpack.c.bf16 %v2190_v3, %v2188_v19 }
 0xa34   :  { %11858 = vmatprep.mubr.msk.f32.mxu0 %vm56_vm0, %v2018_v21 }
 0xa35   :  { %11859 = vmatmul.mubr.msk.f32.vlgmr.msra.gmra.mrb[24].mxu0 %vm56_vm0, %v2019_v41 }
 0xa36   :  { %12923 = vmatpush3.bf16.xpose.msk.msra.mxu0 %vm15031_vm3, %v12918_v38 }
 0xa37   :  { %12926 = vmatprep.subr.msk.bf16.mxu0 %vm15031_vm3, %v12924_v57 }
 0xa3e   :  { %12929 = vmatpush3.bf16.xpose.msk.msra.mxu0 %vm15031_vm3, %v12924_v57 }
 0xa3f   :  { %12932 = vmatprep.subr.msk.bf16.mxu0 %vm15031_vm3, %v12930_v12 }
 0xa46   :  { %12935 = vmatpush3.bf16.xpose.msk.msra.mxu0 %vm15031_vm3, %v12930_v12 }
 0xa5b   :  { %v1994_v53 = vpop.xlane.xlu0 %1993 }
 0xa5c   :  { %14023 = vrcp.f32 %v1994_v53 }
 0xa5f   :  { %v2003_v48 = vpop.xlane.xlu0 %2002 }
 0xa62   :  { %v1997_v9 = vpop.xlane.xlu1 %1996 }
 0xa63   :  { %14025 = vrcp.f32 %v1997_v9  ;;  %v2000_v38 = vpop.xlane.xlu0 %1999 }
 0xa64   :  { %14027 = vrcp.f32 %v2000_v38 }
 0xa65   :  { %14029 = vrcp.f32 %v2003_v48 }
 0xa66   :  { %v14024_v36 = vpop.eup %14023  ;;  %v2006_v54 = vpop.xlane.xlu1 %2005 }
 0xa67   :  { %14031 = vrcp.f32 %v2006_v54  ;;  %v2009_v43 = vpop.xlane.xlu0 %2008  ;;  %v2020_v24 = vmul.f32 %v14024_v36, %v14008_v52 }
 0xa68   :  { %14033 = vrcp.f32 %v2009_v43 }
 0xa69   :  { %11861 = vmatprep.mubr.msk.f32.mxu0 %vm56_vm0, %v2020_v24 }
 0xa6a   :  { %v2194_v61 = vpop.permute.xlu1 %2193 }
 0xa6b   :  { %v2192_v7 = vpop.permute.xlu0 %2191 }
 0xa6c   :  { %v12936_v1 = vpack.c.bf16 %v2194_v61, %v2192_v7 }
 0xa6d   :  { %v14026_v59 = vpop.eup %14025 }
 0xa6e   :  { %v14028_v22 = vpop.eup %14027  ;;  %12938 = vmatprep.subr.msk.bf16.mxu0 %vm15031_vm3, %v12936_v1  ;;  %v2021_v18 = vmul.f32 %v14026_v59, %v14012_v46 }
 0xa6f   :  { %v14030_v14 = vpop.eup %14029  ;;  %12941 = vmatpush3.bf16.xpose.msk.msra.mxu0 %vm15031_vm3, %v12936_v1  ;;  %v2022_v37 = vmul.f32 %v14028_v22, %v14014_v58 }
 0xa70   :  { %11862 = vmatmul.mubr.msk.f32.gmra.mrb[26].mxu0 %vm56_vm0, %v2021_v18  ;;  %v2023_v27 = vmul.f32 %v14030_v14, %v15594_v32 }
 0xa71   :  { %v14032_v52 = vpop.eup %14031  ;;  %11864 = vmatprep.mubr.msk.f32.mxu0 %vm56_vm0, %v2022_v37 }
 0xa72   :  { %v2024_v44 = vmul.f32 %v14032_v52, %v14016_v63  ;;  %v14034_v55 = vpop.eup %14033 }
 0xa73   :  { %v2025_v13 = vmul.f32 %v14034_v55, %v14018_v6 }
 0xa74   :  { %11865 = vmatmul.mubr.msk.f32.gmra.mrb[28].mxu0 %vm56_vm0, %v2023_v27 }
 0xa75   :  { %11867 = vmatprep.mubr.msk.f32.mxu0 %vm56_vm0, %v2024_v44 }
 0xa78   :  { %11868 = vmatmul.mubr.msk.f32.gmra.mrb[30].mxu0 %vm56_vm0, %v2025_v13 }
 0xa79   :  { %11886 = vmatprep.mubr.msk.f32.mxu0 %vm917_vm2, %v15578_v28 }
 0xa7c   :  { %11887 = vmatmul.mubr.msk.f32.vlgmr.msra.gmra.mrb[32].mxu0 %vm917_vm2, %v15576_v39 }
 0xa7d   :  { %11889 = vmatprep.mubr.msk.f32.mxu0 %vm917_vm2, %v2184_v62 }
 0xa80   :  { %11890 = vmatmul.mubr.msk.f32.gmra.mrb[34].mxu0 %vm917_vm2, %v2186_v42 }
 0xa81   :  { %11892 = vmatprep.mubr.msk.f32.mxu0 %vm917_vm2, %v2188_v19 }
 0xa84   :  { %11893 = vmatmul.mubr.msk.f32.gmra.mrb[36].mxu0 %vm917_vm2, %v2190_v3 }
 0xa85   :  { %11895 = vmatprep.mubr.msk.f32.mxu0 %vm917_vm2, %v2192_v7 }
 0xa88   :  { %11896 = vmatmul.mubr.msk.f32.gmra.mrb[38].mxu0 %vm917_vm2, %v2194_v61 }
 0xb08   :  { %v15639_v32 = vpop.f32.mrb[24].mxu0 }
 0xb09   :  { %v15641_v46 = vpop.f32.mrb[25].mxu0 }
 0xb43   :  { %v15643_v28 = vpop.f32.mrb[26].mxu0 }
 0xb44   :  { %v15645_v58 = vpop.f32.mrb[27].mxu0 }
 0xb47   :  { %v15647_v39 = vpop.f32.mrb[28].mxu0 }
 0xb48   :  { %19204 = vst [vmem:[#allocation43_spill] sm:$0xff] %v15647_v39  ;;  %v15649_v63 = vpop.f32.mrb[29].mxu0 }
 0xb49   :  { %19205 = vst [vmem:[#allocation44_spill] sm:$0xff] %v15649_v63 }
 0xb4b   :  { %v15651_v6 = vpop.f32.mrb[30].mxu0 }
 0xb4c   :  { %19206 = vst [vmem:[#allocation45_spill] sm:$0xff] %v15651_v6  ;;  %v15653_v42 = vpop.f32.mrb[31].mxu0 }
 0xb4d   :  { %19207 = vst [vmem:[#allocation46_spill] sm:$0xff] %v15653_v42 }
 0xb4f   :  { %v11888_v62 = vpop.f32.mrb[32].mxu0 }
 0xb50   :  { %v2317_v21 = vmul.f32 %v11888_v62, %v15217_v29  ;;  %v2277_v41 = vpop.f32.mrb[33].mxu0 }
 0xb51   :  { %v2316_v19 = vmul.f32 %v15220_v51, %v2277_v41 }
 0xb52   :  { %v2327_v57 = vsel %vm56_vm0, %v2317_v21, 0.0 }
 0xb53   :  { %2328 = vadd.xlane.f32.xlu1 %v2327_v57  ;;  %v11891_v3 = vpop.f32.mrb[34].mxu0  ;;  %v2324_v12 = vsel %vm56_vm0, %v2316_v19, 0.0 }
 0xb54   :  { %v2319_v53 = vmul.f32 %v11891_v3, %v15233_v40  ;;  %2325 = vadd.xlane.f32.xlu0 %v2324_v12  ;;  %v2348_v48 = vadd.f32 %v2327_v57, %v2324_v12  ;;  %v2287_v9 = vpop.f32.mrb[35].mxu0 }
 0xb55   :  { %v2318_v38 = vmul.f32 %v15237_v45, %v2287_v9 }
 0xb56   :  { %v2333_v36 = vsel %vm56_vm0, %v2319_v53, 0.0 }
 0xb57   :  { %v11894_v54 = vpop.f32.mrb[36].mxu0  ;;  %v2330_v43 = vsel %vm56_vm0, %v2318_v38, 0.0 }
 0xb58   :  { %v2321_v24 = vmul.f32 %v11894_v54, %v15251_v25  ;;  %2334 = vadd.xlane.f32.xlu0 %v2333_v36  ;;  %v2297_v61 = vpop.f32.mrb[37].mxu0  ;;  %v2349_v7 = vadd.f32 %v2348_v48, %v2330_v43 }
 0xb59   :  { %v2320_v1 = vmul.f32 %v15255_v60, %v2297_v61 }
 0xb5a   :  { %v2339_v59 = vsel %vm56_vm0, %v2321_v24, 0.0  ;;  %v2350_v22 = vadd.f32 %v2349_v7, %v2333_v36  ;;  %v2361_v24 = vmul.f32 2.0, %v2277_v41 }
 0xb5b   :  { %2340 = vadd.xlane.f32.xlu1 %v2339_v59  ;;  %v11897_v18 = vpop.f32.mrb[38].mxu0  ;;  %v2336_v14 = vsel %vm56_vm0, %v2320_v1, 0.0 }
 0xb5c   :  { %v2323_v37 = vmul.f32 %v11897_v18, %v15267_v56  ;;  %2331 = vadd.xlane.f32.xlu0 %v2330_v43  ;;  %v2307_v52 = vpop.f32.mrb[39].mxu0  ;;  %v2351_v27 = vadd.f32 %v2350_v22, %v2336_v14  ;;  %v2362_v43 = vmul.f32 2.0, %v11888_v62 }
 0xb5d   :  { %v2322_v44 = vmul.f32 %v15271_v31, %v2307_v52 }
 0xb5e   :  { %v2345_v55 = vsel %vm56_vm0, %v2323_v37, 0.0  ;;  %v2352_v13 = vadd.f32 %v2351_v27, %v2339_v59  ;;  %v2364_v27 = vmul.f32 2.0, %v11891_v3 }
 0xb5f   :  { %2346 = vadd.xlane.f32.xlu1 %v2345_v55  ;;  %v2342_v21 = vsel %vm56_vm0, %v2322_v44, 0.0 }
 0xb60   :  { %2337 = vadd.xlane.f32.xlu0 %v2336_v14  ;;  %v2353_v19 = vadd.f32 %v2352_v13, %v2342_v21 }
 0xb62   :  { %v2354_v57 = vadd.f32 %v2353_v19, %v2345_v55 }
 0xb64   :  { %2343 = vadd.xlane.f32.xlu0 %v2342_v21  ;;  %v2355_v12 = vrot.slane %v2354_v57, 4  ;;  %v2366_v21 = vmul.f32 2.0, %v11894_v54  ;;  %v2367_v54 = vmul.f32 2.0, %v2307_v52 }
 0xb66   :  { %v2356_v53 = vadd.f32 %v2355_v12, %v2354_v57  ;;  %v2363_v57 = vmul.f32 2.0, %v2287_v9 }
 0xb68   :  { %v2357_v48 = vrot.slane %v2356_v53, 2 }
 0xb6a   :  { %v2358_v38 = vadd.f32 %v2357_v48, %v2356_v53 }
 0xb6c   :  { %v2359_v36 = vrot.slane %v2358_v38, 1 }
 0xb6e   :  { %v2360_v1 = vadd.f32 %v2359_v36, %v2358_v38  ;;  %v2368_v36 = vmul.f32 2.0, %v11897_v18 }
 0xbe0   :  { %v2329_v7 = vpop.xlane.xlu1 %2328 }
 0xbe1   :  { %v2370_v22 = vsub.f32 %v2362_v43, %v2329_v7  ;;  %v2326_v33 = vpop.xlane.xlu0 %2325  ;;  %v2365_v43 = vmul.f32 2.0, %v2297_v61 }
 0xbe2   :  { %v2369_v37 = vsub.f32 %v2361_v24, %v2326_v33 }
 0xbe3   :  { %v2378_v59 = vsub.f32 %v2370_v22, %v2360_v1 }
 0xbe4   :  { %v2377_v50 = vsub.f32 %v2369_v37, %v2360_v1 }
 0xbe5   :  { %v2386_v44 = vmul.f32 0.35355338, %v2378_v59  ;;  %v2335_v14 = vpop.xlane.xlu0 %2334 }
 0xbe6   :  { %v2385_v13 = vmul.f32 0.35355338, %v2377_v50  ;;  %v2372_v55 = vsub.f32 %v2364_v27, %v2335_v14 }
 0xbe7   :  { %v2395_v19 = vmul.f32 1.442695, %v2386_v44 }
 0xbe8   :  { %v2393_v12 = vmul.f32 1.442695, %v2385_v13  ;;  %v2380_v53 = vsub.f32 %v2372_v55, %v2360_v1  ;;  %v2341_v48 = vpop.xlane.xlu1 %2340 }
 0xbe9   :  { %14035 = vpow2.f32 %v2395_v19  ;;  %v2374_v62 = vsub.f32 %v2366_v21, %v2341_v48  ;;  %v2332_v41 = vpop.xlane.xlu0 %2331 }
 0xbea   :  { %14037 = vpow2.f32 %v2393_v12  ;;  %v2371_v38 = vsub.f32 %v2363_v57, %v2332_v41  ;;  %v2388_v21 = vmul.f32 0.35355338, %v2380_v53 }
 0xbeb   :  { %v2382_v33 = vsub.f32 %v2374_v62, %v2360_v1 }
 0xbec   :  { %v2379_v3 = vsub.f32 %v2371_v38, %v2360_v1  ;;  %v2347_v24 = vpop.xlane.xlu1 %2346  ;;  %v2399_v12 = vmul.f32 1.442695, %v2388_v21 }
 0xbed   :  { %v2376_v7 = vsub.f32 %v2368_v36, %v2347_v24  ;;  %v2338_v22 = vpop.xlane.xlu0 %2337 }
 0xbee   :  { %v2373_v50 = vsub.f32 %v2365_v43, %v2338_v22  ;;  %v2387_v52 = vmul.f32 0.35355338, %v2379_v3 }
 0xbef   :  { %v2384_v37 = vsub.f32 %v2376_v7, %v2360_v1 }
 0xbf0   :  { %v2381_v59 = vsub.f32 %v2373_v50, %v2360_v1  ;;  %v2397_v55 = vmul.f32 1.442695, %v2387_v52  ;;  %v19210_v52 = vld [vmem:[#allocation19_spill] sm:$0xff] }
 0xbf1   :  { %v2344_v9 = vpop.xlane.xlu0 %2343  ;;  %v2392_v48 = vmul.f32 0.35355338, %v2384_v37  ;;  %v14579_v37 = vld [vmem:[%s19095_s2 + $0x5] ss:$0 sm:$0xff] }
 0xbf2   :  { %v2375_v27 = vsub.f32 %v2367_v54, %v2344_v9  ;;  %14039 = vpow2.f32 %v2397_v55  ;;  %v2389_v57 = vmul.f32 0.35355338, %v2381_v59  ;;  %v15715_v54 = vadd.f32 %v14579_v37, %v15198_v0  ;;  %v19208_v9 = vld [vmem:[#allocation22_spill] sm:$0xff]  ;;  %v19211_v55 = vld [vmem:[#allocation20_spill] sm:$0xff] }
 0xbf3   :  { %v15671_v44 = vpop.eup %14035  ;;  %v15718_v59 = vadd.f32 %v14579_v37, %v15200_v30  ;;  %v15734_v21 = vadd.f32 %v14579_v37, %v19211_v55  ;;  %v19212_v0 = vld [vmem:[#allocation24_spill] sm:$0xff] }
 0xbf4   :  { %v15673_v14 = vpop.eup %14037  ;;  %v2383_v13 = vsub.f32 %v2375_v27, %v2360_v1  ;;  %v2412_v18 = vsel %vm56_vm0, %v15671_v44, 0.0  ;;  %v2390_v1 = vmul.f32 0.35355338, %v2382_v33  ;;  %v15721_v27 = vadd.f32 %v14579_v37, %v19208_v9 }
 0xbf5   :  { %2413 = vadd.xlane.f32.xlu1 %v2412_v18  ;;  %v2409_v61 = vsel %vm56_vm0, %v15673_v14, 0.0  ;;  %v15739_v30 = vadd.f32 %v14579_v37, %v19212_v0 }
 0xbf6   :  { %2410 = vadd.xlane.f32.xlu0 %v2409_v61  ;;  %v2403_v19 = vmul.f32 1.442695, %v2390_v1  ;;  %v2391_v62 = vmul.f32 0.35355338, %v2383_v13  ;;  %v19209_v13 = vld [vmem:[#allocation23_spill] sm:$0xff]  ;;  %v15728_v61 = vpack.i.bf16 %v15715_v54, %v15718_v59  ;;  %v15731_v1 = vadd.f32 %v14579_v37, %v19210_v52 }
 0xbf7   :  { %v15724_v18 = vadd.f32 %v14579_v37, %v19209_v13 }
 0xbf8   :  { %14041 = vpow2.f32 %v2403_v19  ;;  %v2405_v41 = vmul.f32 1.442695, %v2391_v62  ;;  %v19213_v19 = vld [vmem:[#allocation25_spill] sm:$0xff] }
 0xbf9   :  { %14043 = vpow2.f32 %v2399_v12  ;;  %v15746_v12 = vpack.i.bf16 %v15721_v27, %v15724_v18 }
 0xc06   :  { %13607 = vrot.lane.b32.xlu1 %v15077_v15, %s14608_s5  ;;  %v2401_v15 = vmul.f32 1.442695, %v2389_v57  ;;  %v15742_v57 = vadd.f32 %v14579_v37, %v19213_v19 }
 0xc08   :  { %14045 = vpow2.f32 %v2401_v15  ;;  %v15758_v15 = vpack.i.bf16 %v15739_v30, %v15742_v57 }
 0xc0a   :  { %13612 = vrot.lane.b32.xlu1 %v15099_v17, %s14608_s5  ;;  %v2407_v17 = vmul.f32 1.442695, %v2392_v48  ;;  %v15752_v48 = vpack.i.bf16 %v15731_v1, %v15734_v21 }
 0xc0c   :  { %13602 = vrot.lane.b32.xlu0 %v15085_v16, %s14608_s5  ;;  %v15687_v16 = vpop.eup %14039  ;;  %14047 = vpow2.f32 %v2407_v17 }
 0xc0d   :  { %14049 = vpow2.f32 %v2405_v41  ;;  %v15691_v53 = vpop.eup %14041 }
 0xc0e   :  { %13617 = vrot.lane.b32.xlu1 %v15103_v23, %s14608_s5  ;;  %v2415_v23 = vsel %vm56_vm0, %v15687_v16, 0.0  ;;  %v15693_v38 = vpop.eup %14043  ;;  %v2424_v36 = vsel %vm56_vm0, %v15691_v53, 0.0 }
 0xc0f   :  { %v2418_v43 = vsel %vm56_vm0, %v15693_v38, 0.0 }
 0xc12   :  { %v15697_v33 = vpop.eup %14045 }
 0xc13   :  { %v2421_v24 = vsel %vm56_vm0, %v15697_v33, 0.0 }
 0xc16   :  { %v15701_v3 = vpop.eup %14047 }
 0xc17   :  { %v15705_v7 = vpop.eup %14049  ;;  %v2430_v22 = vsel %vm56_vm0, %v15701_v3, 0.0 }
 0xc18   :  { %v2427_v50 = vsel %vm56_vm0, %v15705_v7, 0.0 }
 0xc2b   :  { %2416 = vadd.xlane.f32.xlu0 %v2415_v23 }
 0xc2f   :  { %2425 = vadd.xlane.f32.xlu0 %v2424_v36 }
 0xc32   :  { %2419 = vadd.xlane.f32.xlu1 %v2418_v43 }
 0xc33   :  { %2422 = vadd.xlane.f32.xlu0 %v2421_v24 }
 0xc36   :  { %2431 = vadd.xlane.f32.xlu1 %v2430_v22 }
 0xc37   :  { %2428 = vadd.xlane.f32.xlu0 %v2427_v50 }
 0xc47   :  { %13627 = vrot.lane.b32.xlu1 %v15728_v61, %s14601_s19 }
 0xc4b   :  { %13632 = vrot.lane.b32.xlu1 %v15746_v12, %s14601_s19 }
 0xc4d   :  { %13622 = vrot.lane.b32.xlu0 %v15752_v48, %s14601_s19 }
 0xc4f   :  { %13637 = vrot.lane.b32.xlu1 %v15758_v15, %s14601_s19 }
 0xc82   :  { %v2414_v62 = vpop.xlane.xlu1 %2413 }
 0xc83   :  { %v2411_v17 = vpop.xlane.xlu0 %2410 }
 0xc84   :  { %14051 = vrcp.f32 %v2411_v17 }
 0xc85   :  { %14053 = vrcp.f32 %v2414_v62  ;;  %v12958_v62 = vpack.c.bf16 %v15731_v1, %v15734_v21 }
 0xc86   :  { %v13608_v41 = vpop.permute.xlu1 %13607 }
 0xc87   :  { %v13603_v23 = vpop.permute.xlu0 %13602  ;;  %v13610_v36 = vunpack.i.h.bf16 %v13608_v41  ;;  %v13609_v43 = vunpack.i.l.bf16 %v13608_v41 }
 0xc88   :  { %v13605_v24 = vunpack.i.h.bf16 %v13603_v23  ;;  %v13604_v22 = vunpack.i.l.bf16 %v13603_v23 }
 0xc89   :  { %v12946_v52 = vpack.c.bf16 %v13610_v36, %v13609_v43 }
 0xc8a   :  { %v13613_v50 = vpop.permute.xlu1 %13612  ;;  %v12942_v37 = vpack.c.bf16 %v13605_v24, %v13604_v22 }
 0xc8b   :  { %v13615_v9 = vunpack.i.h.bf16 %v13613_v50  ;;  %v13614_v13 = vunpack.i.l.bf16 %v13613_v50 }
 0xc8c   :  { %12943 = vmatprep.subr.bf16.mxu1 %v12942_v37 }
 0xc8d   :  { %12945 = vmatpush3.bf16.msra.mxu1 %v12942_v37  ;;  %v12950_v11 = vpack.c.bf16 %v13615_v9, %v13614_v13 }
 0xc8e   :  { %v14052_v55 = vpop.eup %14051  ;;  %v13618_v0 = vpop.permute.xlu1 %13617  ;;  %12947 = vmatprep.subr.bf16.mxu1 %v12946_v52 }
 0xc8f   :  { %v2441_v19 = vmul.f32 %v14052_v55, %v15673_v14  ;;  %v13620_v17 = vunpack.i.h.bf16 %v13618_v0  ;;  %v13619_v5 = vunpack.i.l.bf16 %v13618_v0  ;;  %v14054_v23 = vpop.eup %14053  ;;  %v12964_v14 = vpack.c.bf16 %v15715_v54, %v15718_v59 }
 0xc90   :  { %v2442_v36 = vmul.f32 %v14054_v23, %v15671_v44 }
 0xc91   :  { %12949 = vmatpush3.bf16.msra.mxu1 %v12946_v52  ;;  %11914 = vmatprep.mubr.msk.f32.mxu1 %vm56_vm0, %v2441_v19  ;;  %v12954_v41 = vpack.c.bf16 %v13620_v17, %v13619_v5  ;;  %v12976_v5 = vpack.c.bf16 %v15739_v30, %v15742_v57 }
 0xc92   :  { %12951 = vmatprep.subr.bf16.mxu1 %v12950_v11 }
 0xc95   :  { %12953 = vmatpush3.bf16.msra.mxu1 %v12950_v11  ;;  %v12970_v11 = vpack.c.bf16 %v15721_v27, %v15724_v18 }
 0xc96   :  { %12955 = vmatprep.subr.bf16.mxu1 %v12954_v41 }
 0xc99   :  { %12957 = vmatpush3.bf16.msra.mxu1 %v12954_v41 }
 0xc9a   :  { %12960 = vmatprep.subr.msk.bf16.mxu1 %vm15031_vm3, %v12958_v62 }
 0xc9c   :  { %11915 = vmatmul.mubr.msk.f32.vlgmr.msra.gmra.mrb[48].mxu1 %vm56_vm0, %v2442_v36 }
 0xca2   :  { %12963 = vmatpush3.bf16.xpose.msk.msra.mxu1 %vm15031_vm3, %v12958_v62 }
 0xca3   :  { %12966 = vmatprep.subr.msk.bf16.mxu1 %vm15031_vm3, %v12964_v14 }
 0xcaa   :  { %12969 = vmatpush3.bf16.xpose.msk.msra.mxu1 %vm15031_vm3, %v12964_v14 }
 0xcab   :  { %12972 = vmatprep.subr.msk.bf16.mxu1 %vm15031_vm3, %v12970_v11 }
 0xcb2   :  { %12975 = vmatpush3.bf16.xpose.msk.msra.mxu1 %vm15031_vm3, %v12970_v11 }
 0xcb3   :  { %12978 = vmatprep.subr.msk.bf16.mxu1 %vm15031_vm3, %v12976_v5 }
 0xcb8   :  { %v2417_v44 = vpop.xlane.xlu0 %2416 }
 0xcb9   :  { %14055 = vrcp.f32 %v2417_v44 }
 0xcba   :  { %12981 = vmatpush3.bf16.xpose.msk.msra.mxu1 %vm15031_vm3, %v12976_v5 }
 0xcbc   :  { %v2426_v43 = vpop.xlane.xlu0 %2425 }
 0xcbf   :  { %v2420_v24 = vpop.xlane.xlu1 %2419 }
 0xcc0   :  { %14057 = vrcp.f32 %v2420_v24  ;;  %v2423_v22 = vpop.xlane.xlu0 %2422 }
 0xcc1   :  { %14059 = vrcp.f32 %v2423_v22 }
 0xcc2   :  { %14061 = vrcp.f32 %v2426_v43 }
 0xcc3   :  { %v14056_v50 = vpop.eup %14055  ;;  %v2432_v37 = vpop.xlane.xlu1 %2431 }
 0xcc4   :  { %v2429_v9 = vpop.xlane.xlu0 %2428  ;;  %v2443_v13 = vmul.f32 %v14056_v50, %v15687_v16 }
 0xcc5   :  { %14063 = vrcp.f32 %v2429_v9 }
 0xcc6   :  { %14065 = vrcp.f32 %v2432_v37  ;;  %11917 = vmatprep.mubr.msk.f32.mxu1 %vm56_vm0, %v2443_v13 }
 0xcc7   :  { %v13628_v52 = vpop.permute.xlu1 %13627 }
 0xcc8   :  { %v13623_v55 = vpop.permute.xlu0 %13622  ;;  %v13630_v0 = vunpack.i.h.bf16 %v13628_v52  ;;  %v13629_v19 = vunpack.i.l.bf16 %v13628_v52 }
 0xcc9   :  { %v13625_v17 = vunpack.i.h.bf16 %v13623_v55  ;;  %v13624_v41 = vunpack.i.l.bf16 %v13623_v55 }
 0xcca   :  { %v14058_v23 = vpop.eup %14057  ;;  %v12986_v24 = vpack.c.bf16 %v13630_v0, %v13629_v19 }
 0xccb   :  { %v14060_v62 = vpop.eup %14059  ;;  %v13633_v36 = vpop.permute.xlu1 %13632  ;;  %v2444_v14 = vmul.f32 %v14058_v23, %v15693_v38  ;;  %v12982_v11 = vpack.c.bf16 %v13625_v17, %v13624_v41 }
 0xccc   :  { %v14062_v5 = vpop.eup %14061  ;;  %v2445_v44 = vmul.f32 %v14060_v62, %v15697_v33  ;;  %v13635_v16 = vunpack.i.h.bf16 %v13633_v36  ;;  %v13634_v43 = vunpack.i.l.bf16 %v13633_v36 }
 0xccd   :  { %11918 = vmatmul.mubr.msk.f32.gmra.mrb[50].mxu1 %vm56_vm0, %v2444_v14  ;;  %12983 = vmatprep.subr.bf16.mxu0 %v12982_v11  ;;  %v2446_v37 = vmul.f32 %v14062_v5, %v15691_v53 }
 0xcce   :  { %11920 = vmatprep.mubr.msk.f32.mxu1 %vm56_vm0, %v2445_v44  ;;  %12985 = vmatpush3.bf16.msra.mxu0 %v12982_v11  ;;  %v12990_v33 = vpack.c.bf16 %v13635_v16, %v13634_v43 }
 0xccf   :  { %v14064_v22 = vpop.eup %14063  ;;  %v13638_v50 = vpop.permute.xlu1 %13637  ;;  %12987 = vmatprep.subr.bf16.mxu0 %v12986_v24 }
 0xcd0   :  { %v14066_v9 = vpop.eup %14065  ;;  %v2447_v38 = vmul.f32 %v14064_v22, %v15705_v7  ;;  %v13640_v13 = vunpack.i.h.bf16 %v13638_v50  ;;  %v13639_v52 = vunpack.i.l.bf16 %v13638_v50 }
 0xcd1   :  { %11921 = vmatmul.mubr.msk.f32.gmra.mrb[52].mxu1 %vm56_vm0, %v2446_v37  ;;  %v2448_v55 = vmul.f32 %v14066_v9, %v15701_v3 }
 0xcd2   :  { %11923 = vmatprep.mubr.msk.f32.mxu1 %vm56_vm0, %v2447_v38  ;;  %12989 = vmatpush3.bf16.msra.mxu0 %v12986_v24  ;;  %v12994_v0 = vpack.c.bf16 %v13640_v13, %v13639_v52 }
 0xcd3   :  { %12991 = vmatprep.subr.bf16.mxu0 %v12990_v33 }
 0xcd5   :  { %11924 = vmatmul.mubr.msk.f32.gmra.mrb[54].mxu1 %vm56_vm0, %v2448_v55 }
 0xcd6   :  { %11942 = vmatprep.mubr.msk.f32.mxu1 %vm917_vm2, %v15734_v21  ;;  %12993 = vmatpush3.bf16.msra.mxu0 %v12990_v33 }
 0xcd7   :  { %12995 = vmatprep.subr.bf16.mxu0 %v12994_v0 }
 0xcd9   :  { %11943 = vmatmul.mubr.msk.f32.vlgmr.msra.gmra.mrb[56].mxu1 %vm917_vm2, %v15731_v1 }
 0xcda   :  { %11945 = vmatprep.mubr.msk.f32.mxu1 %vm917_vm2, %v15718_v59  ;;  %12997 = vmatpush3.bf16.msra.mxu0 %v12994_v0 }
 0xcdd   :  { %11946 = vmatmul.mubr.msk.f32.gmra.mrb[58].mxu1 %vm917_vm2, %v15715_v54 }
 0xcde   :  { %11948 = vmatprep.mubr.msk.f32.mxu1 %vm917_vm2, %v15724_v18 }
 0xce1   :  { %11949 = vmatmul.mubr.msk.f32.gmra.mrb[60].mxu1 %vm917_vm2, %v15721_v27 }
 0xce2   :  { %11951 = vmatprep.mubr.msk.f32.mxu1 %vm917_vm2, %v15742_v57 }
 0xce5   :  { %11952 = vmatmul.mubr.msk.f32.gmra.mrb[62].mxu1 %vm917_vm2, %v15739_v30 }
 0xd6f   :  { %v15818_v53 = vpop.f32.mrb[48].mxu1 }
 0xd70   :  { %v15820_v3 = vpop.f32.mrb[49].mxu1 }
 0xda0   :  { %v15822_v7 = vpop.f32.mrb[50].mxu1 }
 0xda1   :  { %v15824_v19 = vpop.f32.mrb[51].mxu1 }
 0xda4   :  { %v15826_v17 = vpop.f32.mrb[52].mxu1 }
 0xda5   :  { %19214 = vst [vmem:[#allocation22_spill] sm:$0xff] %v15826_v17  ;;  %v15828_v41 = vpop.f32.mrb[53].mxu1 }
 0xda6   :  { %19215 = vst [vmem:[#allocation23_spill] sm:$0xff] %v15828_v41 }
 0xda8   :  { %v15830_v23 = vpop.f32.mrb[54].mxu1 }
 0xda9   :  { %19216 = vst [vmem:[#allocation19_spill] sm:$0xff] %v15830_v23  ;;  %v15832_v62 = vpop.f32.mrb[55].mxu1 }
 0xdaa   :  { %19217 = vst [vmem:[#allocation20_spill] sm:$0xff] %v15832_v62 }
 0xdac   :  { %v11944_v36 = vpop.f32.mrb[56].mxu1 }
 0xdad   :  { %v2854_v14 = vmul.f32 %v11944_v36, %v15217_v29  ;;  %v2814_v11 = vpop.f32.mrb[57].mxu1  ;;  %v2899_v6 = vmul.f32 2.0, %v11944_v36 }
 0xdae   :  { %v2853_v5 = vmul.f32 %v15220_v51, %v2814_v11 }
 0xdaf   :  { %v2864_v44 = vsel %vm56_vm0, %v2854_v14, 0.0 }
 0xdb0   :  { %2865 = vadd.xlane.f32.xlu1 %v2864_v44  ;;  %v11947_v16 = vpop.f32.mrb[58].mxu1  ;;  %v2861_v43 = vsel %vm56_vm0, %v2853_v5, 0.0 }
 0xdb1   :  { %v2856_v24 = vmul.f32 %v11947_v16, %v15233_v40  ;;  %2862 = vadd.xlane.f32.xlu0 %v2861_v43  ;;  %v2885_v22 = vadd.f32 %v2864_v44, %v2861_v43  ;;  %v2824_v50 = vpop.f32.mrb[59].mxu1 }
 0xdb2   :  { %v2855_v37 = vmul.f32 %v15237_v45, %v2824_v50 }
 0xdb3   :  { %v2870_v9 = vsel %vm56_vm0, %v2856_v24, 0.0 }
 0xdb4   :  { %2871 = vadd.xlane.f32.xlu1 %v2870_v9  ;;  %v11950_v38 = vpop.f32.mrb[60].mxu1  ;;  %v2867_v13 = vsel %vm56_vm0, %v2855_v37, 0.0 }
 0xdb5   :  { %v2858_v52 = vmul.f32 %v11950_v38, %v15251_v25  ;;  %2868 = vadd.xlane.f32.xlu0 %v2867_v13  ;;  %v2886_v33 = vadd.f32 %v2885_v22, %v2867_v13  ;;  %v2834_v55 = vpop.f32.mrb[61].mxu1 }
 0xdb6   :  { %v2857_v0 = vmul.f32 %v15255_v60, %v2834_v55  ;;  %v2902_v36 = vmul.f32 2.0, %v2834_v55 }
 0xdb7   :  { %v2876_v14 = vsel %vm56_vm0, %v2858_v52, 0.0  ;;  %v2887_v5 = vadd.f32 %v2886_v33, %v2870_v9 }
 0xdb8   :  { %2877 = vadd.xlane.f32.xlu1 %v2876_v14  ;;  %v11953_v44 = vpop.f32.mrb[62].mxu1  ;;  %v2873_v43 = vsel %vm56_vm0, %v2857_v0, 0.0 }
 0xdb9   :  { %v2860_v24 = vmul.f32 %v11953_v44, %v15267_v56  ;;  %2874 = vadd.xlane.f32.xlu0 %v2873_v43  ;;  %v2888_v47 = vadd.f32 %v2887_v5, %v2873_v43  ;;  %v2844_v62 = vpop.f32.mrb[63].mxu1 }
 0xdba   :  { %v2859_v37 = vmul.f32 %v15271_v31, %v2844_v62 }
 0xdbb   :  { %v2882_v23 = vsel %vm56_vm0, %v2860_v24, 0.0  ;;  %v2889_v22 = vadd.f32 %v2888_v47, %v2876_v14  ;;  %v2898_v24 = vmul.f32 2.0, %v2814_v11 }
 0xdbc   :  { %2883 = vadd.xlane.f32.xlu1 %v2882_v23  ;;  %v2879_v13 = vsel %vm56_vm0, %v2859_v37, 0.0 }
 0xdbd   :  { %2880 = vadd.xlane.f32.xlu0 %v2879_v13  ;;  %v2890_v52 = vadd.f32 %v2889_v22, %v2879_v13  ;;  %v2901_v22 = vmul.f32 2.0, %v11947_v16  ;;  %v2900_v13 = vmul.f32 2.0, %v2824_v50  ;;  %v2905_v16 = vmul.f32 2.0, %v11953_v44 }
 0xdbe   :  { %v2904_v50 = vmul.f32 2.0, %v2844_v62 }
 0xdbf   :  { %v2891_v9 = vadd.f32 %v2890_v52, %v2882_v23 }
 0xdc1   :  { %v2892_v33 = vrot.slane %v2891_v9, 4 }
 0xdc3   :  { %v2893_v0 = vadd.f32 %v2892_v33, %v2891_v9  ;;  %v2903_v33 = vmul.f32 2.0, %v11950_v38 }
 0xdc5   :  { %v2894_v5 = vrot.slane %v2893_v0, 2 }
 0xdc7   :  { %v2895_v43 = vadd.f32 %v2894_v5, %v2893_v0 }
 0xdc9   :  { %v2896_v42 = vrot.slane %v2895_v43, 1 }
 0xdcb   :  { %v2897_v14 = vadd.f32 %v2896_v42, %v2895_v43 }
 0xdcd   :  { %3141 = vrot.lane.b32.xlu1 %v15731_v1, %s14602_s26 }
 0xdd3   :  { %3139 = vrot.lane.b32.xlu0 %v15734_v21, %s14602_s26 }
 0xe3d   :  { %v2866_v47 = vpop.xlane.xlu1 %2865 }
 0xe3e   :  { %v2907_v10 = vsub.f32 %v2899_v6, %v2866_v47  ;;  %v2863_v37 = vpop.xlane.xlu0 %2862 }
 0xe3f   :  { %v2906_v2 = vsub.f32 %v2898_v24, %v2863_v37 }
 0xe40   :  { %v2915_v23 = vsub.f32 %v2907_v10, %v2897_v14 }
 0xe41   :  { %v2914_v52 = vsub.f32 %v2906_v2, %v2897_v14  ;;  %v2872_v41 = vpop.xlane.xlu1 %2871 }
 0xe42   :  { %v2923_v17 = vmul.f32 0.35355338, %v2915_v23  ;;  %v2909_v63 = vsub.f32 %v2901_v22, %v2872_v41  ;;  %v2869_v39 = vpop.xlane.xlu0 %2868 }
 0xe43   :  { %v2922_v26 = vmul.f32 0.35355338, %v2914_v52  ;;  %v2908_v9 = vsub.f32 %v2900_v13, %v2869_v39 }
 0xe44   :  { %v2932_v0 = vmul.f32 1.442695, %v2923_v17  ;;  %v2917_v5 = vsub.f32 %v2909_v63, %v2897_v14 }
 0xe45   :  { %v2930_v11 = vmul.f32 1.442695, %v2922_v26  ;;  %v2916_v49 = vsub.f32 %v2908_v9, %v2897_v14  ;;  %v2878_v42 = vpop.xlane.xlu1 %2877 }
 0xe46   :  { %14067 = vpow2.f32 %v2932_v0  ;;  %v2911_v6 = vsub.f32 %v2903_v33, %v2878_v42  ;;  %v2875_v43 = vpop.xlane.xlu0 %2874  ;;  %v2925_v9 = vmul.f32 0.35355338, %v2917_v5 }
 0xe47   :  { %14069 = vpow2.f32 %v2930_v11  ;;  %v2910_v10 = vsub.f32 %v2902_v36, %v2875_v43 }
 0xe48   :  { %v2919_v2 = vsub.f32 %v2911_v6, %v2897_v14  ;;  %v2936_v36 = vmul.f32 1.442695, %v2925_v9 }
 0xe49   :  { %v2918_v24 = vsub.f32 %v2910_v10, %v2897_v14  ;;  %v2884_v41 = vpop.xlane.xlu1 %2883 }
 0xe4a   :  { %v2913_v47 = vsub.f32 %v2905_v16, %v2884_v41  ;;  %v2881_v37 = vpop.xlane.xlu0 %2880  ;;  %v2927_v52 = vmul.f32 0.35355338, %v2919_v2 }
 0xe4b   :  { %v2912_v39 = vsub.f32 %v2904_v50, %v2881_v37  ;;  %v2926_v0 = vmul.f32 0.35355338, %v2918_v24 }
 0xe4c   :  { %v2921_v38 = vsub.f32 %v2913_v47, %v2897_v14  ;;  %v2940_v33 = vmul.f32 1.442695, %v2927_v52 }
 0xe4d   :  { %v2920_v17 = vsub.f32 %v2912_v39, %v2897_v14  ;;  %v15854_v63 = vpop.permute.xlu1 %3141  ;;  %v2924_v14 = vmul.f32 0.35355338, %v2916_v49  ;;  %v2938_v42 = vmul.f32 1.442695, %v2926_v0 }
 0xe4e   :  { %v15856_v26 = vpop.permute.xlu0 %3139  ;;  %v2929_v6 = vmul.f32 0.35355338, %v2921_v38 }
 0xe4f   :  { %v15860_v55 = vpack.c.bf16 %v15854_v63, %v15856_v26  ;;  %v2934_v13 = vmul.f32 1.442695, %v2924_v14  ;;  %v2928_v11 = vmul.f32 0.35355338, %v2920_v17 }
 0xe50   :  { %v14068_v22 = vpop.eup %14067  ;;  %v2944_v10 = vmul.f32 1.442695, %v2929_v6 }
 0xe51   :  { %v14070_v23 = vpop.eup %14069  ;;  %13000 = vmatprep.subr.msk.bf16.mxu0 %vm15031_vm3, %v15860_v55  ;;  %v2949_v62 = vsel %vm56_vm0, %v14068_v22, 0.0  ;;  %14071 = vpow2.f32 %v2934_v13  ;;  %v2942_v43 = vmul.f32 1.442695, %v2928_v11 }
 0xe52   :  { %2950 = vadd.xlane.f32.xlu1 %v2949_v62  ;;  %v2946_v44 = vsel %vm56_vm0, %v14070_v23, 0.0  ;;  %14073 = vpow2.f32 %v2940_v33 }
 0xe53   :  { %2947 = vadd.xlane.f32.xlu0 %v2946_v44  ;;  %14075 = vpow2.f32 %v2936_v36 }
 0xe54   :  { %14077 = vpow2.f32 %v2938_v42 }
 0xe55   :  { %14079 = vpow2.f32 %v2942_v43 }
 0xe56   :  { %14081 = vpow2.f32 %v2944_v10 }
 0xe5b   :  { %v14072_v16 = vpop.eup %14071 }
 0xe5c   :  { %v2952_v49 = vsel %vm56_vm0, %v14072_v16, 0.0  ;;  %v15876_v50 = vpop.eup %14073 }
 0xe5d   :  { %v15878_v5 = vpop.eup %14075  ;;  %v2961_v2 = vsel %vm56_vm0, %v15876_v50, 0.0 }
 0xe5e   :  { %v15882_v24 = vpop.eup %14077  ;;  %v2955_v41 = vsel %vm56_vm0, %v15878_v5, 0.0 }
 0xe5f   :  { %v15886_v47 = vpop.eup %14079  ;;  %v2958_v37 = vsel %vm56_vm0, %v15882_v24, 0.0 }
 0xe60   :  { %v15890_v39 = vpop.eup %14081  ;;  %v2964_v38 = vsel %vm56_vm0, %v15886_v47, 0.0 }
 0xe61   :  { %v2967_v17 = vsel %vm56_vm0, %v15890_v39, 0.0 }
 0xe63   :  { %3145 = vrot.lane.b32.xlu1 %v15715_v54, %s14602_s26 }
 0xe67   :  { %3147 = vrot.lane.b32.xlu1 %v15724_v18, %s14602_s26 }
 0xe69   :  { %3143 = vrot.lane.b32.xlu0 %v15718_v59, %s14602_s26 }
 0xe6b   :  { %3149 = vrot.lane.b32.xlu1 %v15721_v27, %s14602_s26 }
 0xe88   :  { %2953 = vadd.xlane.f32.xlu0 %v2952_v49 }
 0xe8c   :  { %2962 = vadd.xlane.f32.xlu0 %v2961_v2 }
 0xe8f   :  { %2956 = vadd.xlane.f32.xlu1 %v2955_v41 }
 0xe90   :  { %2959 = vadd.xlane.f32.xlu0 %v2958_v37 }
 0xe93   :  { %2965 = vadd.xlane.f32.xlu1 %v2964_v38 }
 0xe94   :  { %2968 = vadd.xlane.f32.xlu0 %v2967_v17 }
 0xea4   :  { %3153 = vrot.lane.b32.xlu1 %v15739_v30, %s14602_s26 }
 0xea8   :  { %13647 = vrot.lane.b32.xlu1 %v15728_v61, %s14603_s27 }
 0xeaa   :  { %3151 = vrot.lane.b32.xlu0 %v15742_v57, %s14602_s26 }
 0xeac   :  { %13652 = vrot.lane.b32.xlu1 %v15746_v12, %s14603_s27 }
 0xeae   :  { %13642 = vrot.lane.b32.xlu0 %v15752_v48, %s14603_s27 }
 0xeb0   :  { %13657 = vrot.lane.b32.xlu1 %v15758_v15, %s14603_s27 }
 0xedf   :  { %v2951_v62 = vpop.xlane.xlu1 %2950 }
 0xee0   :  { %14083 = vrcp.f32 %v2951_v62  ;;  %v2948_v44 = vpop.xlane.xlu0 %2947 }
 0xee1   :  { %14085 = vrcp.f32 %v2948_v44 }
 0xee3   :  { %v15908_v14 = vpop.permute.xlu1 %3145 }
 0xee4   :  { %v15910_v9 = vpop.permute.xlu0 %3143 }
 0xee5   :  { %v13004_v11 = vpack.c.bf16 %v15908_v14, %v15910_v9 }
 0xee7   :  { %v15912_v36 = vpop.permute.xlu1 %3147 }
 0xeea   :  { %v14084_v13 = vpop.eup %14083 }
 0xeeb   :  { %v14086_v52 = vpop.eup %14085  ;;  %v2979_v0 = vmul.f32 %v14084_v13, %v14068_v22  ;;  %v15923_v42 = vpop.permute.xlu1 %3149 }
 0xeec   :  { %v2978_v33 = vmul.f32 %v14086_v52, %v14070_v23  ;;  %v13010_v22 = vpack.c.bf16 %v15923_v42, %v15912_v36 }
 0xeee   :  { %11970 = vmatprep.mubr.msk.f32.mxu0 %vm56_vm0, %v2978_v33 }
 0xeef   :  { %11971 = vmatmul.mubr.msk.f32.vlgmr.msra.gmra.mrb[40].mxu0 %vm56_vm0, %v2979_v0 }
 0xef0   :  { %13003 = vmatpush3.bf16.xpose.msk.msra.mxu0 %vm15031_vm3, %v15860_v55 }
 0xef1   :  { %13006 = vmatprep.subr.msk.bf16.mxu0 %vm15031_vm3, %v13004_v11 }
 0xef8   :  { %13009 = vmatpush3.bf16.xpose.msk.msra.mxu0 %vm15031_vm3, %v13004_v11 }
 0xef9   :  { %13012 = vmatprep.subr.msk.bf16.mxu0 %vm15031_vm3, %v13010_v22 }
 0xf00   :  { %13015 = vmatpush3.bf16.xpose.msk.msra.mxu0 %vm15031_vm3, %v13010_v22 }
 0xf15   :  { %v2954_v23 = vpop.xlane.xlu0 %2953 }
 0xf16   :  { %14087 = vrcp.f32 %v2954_v23 }
 0xf19   :  { %v2963_v55 = vpop.xlane.xlu0 %2962 }
 0xf1c   :  { %v2957_v6 = vpop.xlane.xlu1 %2956 }
 0xf1d   :  { %14089 = vrcp.f32 %v2957_v6  ;;  %v2960_v43 = vpop.xlane.xlu0 %2959 }
 0xf1e   :  { %14091 = vrcp.f32 %v2960_v43 }
 0xf1f   :  { %14093 = vrcp.f32 %v2963_v55 }
 0xf20   :  { %v14088_v10 = vpop.eup %14087  ;;  %v2966_v49 = vpop.xlane.xlu1 %2965 }
 0xf21   :  { %14095 = vrcp.f32 %v2966_v49  ;;  %v2969_v2 = vpop.xlane.xlu0 %2968  ;;  %v2980_v41 = vmul.f32 %v14088_v10, %v14072_v16 }
 0xf22   :  { %14097 = vrcp.f32 %v2969_v2 }
 0xf23   :  { %11973 = vmatprep.mubr.msk.f32.mxu0 %vm56_vm0, %v2980_v41 }
 0xf24   :  { %v3154_v37 = vpop.permute.xlu1 %3153 }
 0xf25   :  { %v3152_v38 = vpop.permute.xlu0 %3151 }
 0xf26   :  { %v13016_v17 = vpack.c.bf16 %v3154_v37, %v3152_v38 }
 0xf27   :  { %v14090_v62 = vpop.eup %14089 }
 0xf28   :  { %v14092_v44 = vpop.eup %14091  ;;  %v13648_v13 = vpop.permute.xlu1 %13647  ;;  %13018 = vmatprep.subr.msk.bf16.mxu0 %vm15031_vm3, %v13016_v17  ;;  %v2981_v52 = vmul.f32 %v14090_v62, %v15878_v5 }
 0xf29   :  { %v14094_v33 = vpop.eup %14093  ;;  %13021 = vmatpush3.bf16.xpose.msk.msra.mxu0 %vm15031_vm3, %v13016_v17  ;;  %v13643_v0 = vpop.permute.xlu0 %13642  ;;  %v2982_v16 = vmul.f32 %v14092_v44, %v15882_v24  ;;  %v13650_v11 = vunpack.i.h.bf16 %v13648_v13  ;;  %v13649_v22 = vunpack.i.l.bf16 %v13648_v13 }
 0xf2a   :  { %v13645_v23 = vunpack.i.h.bf16 %v13643_v0  ;;  %v13644_v55 = vunpack.i.l.bf16 %v13643_v0  ;;  %11974 = vmatmul.mubr.msk.f32.gmra.mrb[42].mxu0 %vm56_vm0, %v2981_v52  ;;  %v2983_v10 = vmul.f32 %v14094_v33, %v15876_v50 }
 0xf2b   :  { %v14096_v6 = vpop.eup %14095  ;;  %11976 = vmatprep.mubr.msk.f32.mxu0 %vm56_vm0, %v2982_v16  ;;  %v13026_v24 = vpack.c.bf16 %v13650_v11, %v13649_v22 }
 0xf2c   :  { %v13653_v43 = vpop.permute.xlu1 %13652  ;;  %v13022_v5 = vpack.c.bf16 %v13645_v23, %v13644_v55  ;;  %v2984_v49 = vmul.f32 %v14096_v6, %v15886_v47  ;;  %v14098_v2 = vpop.eup %14097 }
 0xf2d   :  { %v13655_v41 = vunpack.i.h.bf16 %v13653_v43  ;;  %v13654_v17 = vunpack.i.l.bf16 %v13653_v43  ;;  %v2985_v44 = vmul.f32 %v14098_v2, %v15890_v39 }
 0xf2e   :  { %11977 = vmatmul.mubr.msk.f32.gmra.mrb[44].mxu0 %vm56_vm0, %v2983_v10  ;;  %13023 = vmatprep.subr.bf16.mxu1 %v13022_v5 }
 0xf2f   :  { %11979 = vmatprep.mubr.msk.f32.mxu0 %vm56_vm0, %v2984_v49  ;;  %13025 = vmatpush3.bf16.msra.mxu1 %v13022_v5  ;;  %v13030_v50 = vpack.c.bf16 %v13655_v41, %v13654_v17 }
 0xf30   :  { %v13658_v62 = vpop.permute.xlu1 %13657  ;;  %13027 = vmatprep.subr.bf16.mxu1 %v13026_v24 }
 0xf31   :  { %v13660_v13 = vunpack.i.h.bf16 %v13658_v62  ;;  %v13659_v52 = vunpack.i.l.bf16 %v13658_v62 }
 0xf32   :  { %11980 = vmatmul.mubr.msk.f32.gmra.mrb[46].mxu0 %vm56_vm0, %v2985_v44 }
 0xf33   :  { %11998 = vmatprep.mubr.msk.f32.mxu0 %vm917_vm2, %v15856_v26  ;;  %13029 = vmatpush3.bf16.msra.mxu1 %v13026_v24  ;;  %v13034_v47 = vpack.c.bf16 %v13660_v13, %v13659_v52 }
 0xf34   :  { %13031 = vmatprep.subr.bf16.mxu1 %v13030_v50 }
 0xf36   :  { %11999 = vmatmul.mubr.msk.f32.vlgmr.msra.gmra.mrb[48].mxu0 %vm917_vm2, %v15854_v63 }
 0xf37   :  { %12001 = vmatprep.mubr.msk.f32.mxu0 %vm917_vm2, %v15910_v9  ;;  %13033 = vmatpush3.bf16.msra.mxu1 %v13030_v50 }
 0xf38   :  { %13035 = vmatprep.subr.bf16.mxu1 %v13034_v47 }
 0xf3a   :  { %12002 = vmatmul.mubr.msk.f32.gmra.mrb[50].mxu0 %vm917_vm2, %v15908_v14 }
 0xf3b   :  { %12004 = vmatprep.mubr.msk.f32.mxu0 %vm917_vm2, %v15912_v36  ;;  %13037 = vmatpush3.bf16.msra.mxu1 %v13034_v47 }
 0xf3e   :  { %12005 = vmatmul.mubr.msk.f32.gmra.mrb[52].mxu0 %vm917_vm2, %v15923_v42 }
 0xf3f   :  { %12007 = vmatprep.mubr.msk.f32.mxu0 %vm917_vm2, %v3152_v38 }
 0xf42   :  { %12008 = vmatmul.mubr.msk.f32.gmra.mrb[54].mxu0 %vm917_vm2, %v3154_v37 }
 0xfc2   :  { %v15962_v63 = vpop.f32.mrb[40].mxu0 }
 0xfc3   :  { %19218 = vst [vmem:[#allocation24_spill] sm:$0xff] %v15962_v63  ;;  %v15964_v26 = vpop.f32.mrb[41].mxu0 }
 0xfc4   :  { %19219 = vst [vmem:[#allocation25_spill] sm:$0xff] %v15964_v26 }
 0xffd   :  { %v15966_v39 = vpop.f32.mrb[42].mxu0 }
 0xffe   :  { %19220 = vst [vmem:[#allocation47_spill] sm:$0xff] %v15966_v39  ;;  %v15968_v9 = vpop.f32.mrb[43].mxu0 }
 0xfff   :  { %19221 = vst [vmem:[#allocation48_spill] sm:$0xff] %v15968_v9 }
0x1001   :  { %v15970_v14 = vpop.f32.mrb[44].mxu0 }
0x1002   :  { %19222 = vst [vmem:[#allocation49_spill] sm:$0xff] %v15970_v14  ;;  %v15972_v33 = vpop.f32.mrb[45].mxu0 }
0x1003   :  { %19223 = vst [vmem:[#allocation50_spill] sm:$0xff] %v15972_v33 }
0x1005   :  { %v15974_v36 = vpop.f32.mrb[46].mxu0 }
0x1006   :  { %19224 = vst [vmem:[#allocation51_spill] sm:$0xff] %v15974_v36  ;;  %v15976_v0 = vpop.f32.mrb[47].mxu0 }
0x1007   :  { %19225 = vst [vmem:[#allocation52_spill] sm:$0xff] %v15976_v0 }
0x1009   :  { %v12000_v42 = vpop.f32.mrb[48].mxu0 }
0x100a   :  { %v3277_v38 = vmul.f32 %v12000_v42, %v15217_v29  ;;  %v3237_v37 = vpop.f32.mrb[49].mxu0 }
0x100b   :  { %v3276_v16 = vmul.f32 %v15220_v51, %v3237_v37 }
0x100c   :  { %v3287_v11 = vsel %vm56_vm0, %v3277_v38, 0.0 }
0x100d   :  { %3288 = vadd.xlane.f32.xlu1 %v3287_v11  ;;  %v12003_v22 = vpop.f32.mrb[50].mxu0  ;;  %v3284_v23 = vsel %vm56_vm0, %v3276_v16, 0.0 }
0x100e   :  { %v3279_v55 = vmul.f32 %v12003_v22, %v15233_v40  ;;  %3285 = vadd.xlane.f32.xlu0 %v3284_v23  ;;  %v3308_v6 = vadd.f32 %v3287_v11, %v3284_v23  ;;  %v3247_v43 = vpop.f32.mrb[51].mxu0 }
0x100f   :  { %v3278_v10 = vmul.f32 %v15237_v45, %v3247_v43 }
0x1010   :  { %v3293_v5 = vsel %vm56_vm0, %v3279_v55, 0.0 }
0x1011   :  { %v12006_v49 = vpop.f32.mrb[52].mxu0  ;;  %v3290_v2 = vsel %vm56_vm0, %v3278_v10, 0.0 }
0x1012   :  { %v3281_v41 = vmul.f32 %v12006_v49, %v15251_v25  ;;  %3294 = vadd.xlane.f32.xlu0 %v3293_v5  ;;  %v3257_v17 = vpop.f32.mrb[53].mxu0  ;;  %v3309_v24 = vadd.f32 %v3308_v6, %v3290_v2  ;;  %v3326_v9 = vmul.f32 2.0, %v12006_v49 }
0x1013   :  { %v3280_v62 = vmul.f32 %v15255_v60, %v3257_v17 }
0x1014   :  { %v3299_v44 = vsel %vm56_vm0, %v3281_v41, 0.0  ;;  %v3310_v13 = vadd.f32 %v3309_v24, %v3293_v5 }
0x1015   :  { %3300 = vadd.xlane.f32.xlu1 %v3299_v44  ;;  %v12009_v52 = vpop.f32.mrb[54].mxu0  ;;  %v3296_v50 = vsel %vm56_vm0, %v3280_v62, 0.0 }
0x1016   :  { %v3283_v47 = vmul.f32 %v12009_v52, %v15267_v56  ;;  %3291 = vadd.xlane.f32.xlu0 %v3290_v2  ;;  %v3267_v38 = vpop.f32.mrb[55].mxu0  ;;  %v3311_v16 = vadd.f32 %v3310_v13, %v3296_v50 }
0x1017   :  { %v3282_v11 = vmul.f32 %v15271_v31, %v3267_v38  ;;  %v3327_v49 = vmul.f32 2.0, %v3267_v38 }
0x1018   :  { %v3305_v23 = vsel %vm56_vm0, %v3283_v47, 0.0  ;;  %v3312_v55 = vadd.f32 %v3311_v16, %v3299_v44  ;;  %v3322_v47 = vmul.f32 2.0, %v12000_v42  ;;  %v3321_v44 = vmul.f32 2.0, %v3237_v37 }
0x1019   :  { %3306 = vadd.xlane.f32.xlu1 %v3305_v23  ;;  %v3302_v6 = vsel %vm56_vm0, %v3282_v11, 0.0 }
0x101a   :  { %3297 = vadd.xlane.f32.xlu0 %v3296_v50  ;;  %v3313_v10 = vadd.f32 %v3312_v55, %v3302_v6 }
0x101c   :  { %v3314_v5 = vadd.f32 %v3313_v10, %v3305_v23 }
0x101e   :  { %3303 = vadd.xlane.f32.xlu0 %v3302_v6  ;;  %v3315_v2 = vrot.slane %v3314_v5, 4  ;;  %v3324_v6 = vmul.f32 2.0, %v12003_v22 }
0x1020   :  { %v3316_v41 = vadd.f32 %v3315_v2, %v3314_v5  ;;  %v3323_v5 = vmul.f32 2.0, %v3247_v43 }
0x1022   :  { %v3317_v24 = vrot.slane %v3316_v41, 2 }
0x1024   :  { %v3318_v62 = vadd.f32 %v3317_v24, %v3316_v41 }
0x1026   :  { %v3319_v13 = vrot.slane %v3318_v62, 1 }
0x1028   :  { %v3320_v36 = vadd.f32 %v3319_v13, %v3318_v62  ;;  %v3328_v13 = vmul.f32 2.0, %v12009_v52 }
0x102a   :  { %3564 = vrot.lane.b32.xlu1 %v15731_v1, %s14605_s28 }
0x1034   :  { %3562 = vrot.lane.b32.xlu0 %v15734_v21, %s14605_s28 }
0x109a   :  { %v3289_v16 = vpop.xlane.xlu1 %3288 }
0x109b   :  { %v3330_v11 = vsub.f32 %v3322_v47, %v3289_v16  ;;  %v3286_v50 = vpop.xlane.xlu0 %3285 }
0x109c   :  { %v3329_v55 = vsub.f32 %v3321_v44, %v3286_v50  ;;  %v3325_v44 = vmul.f32 2.0, %v3257_v17 }
0x109d   :  { %v3338_v23 = vsub.f32 %v3330_v11, %v3320_v36 }
0x109e   :  { %v3337_v10 = vsub.f32 %v3329_v55, %v3320_v36 }
0x109f   :  { %v3346_v0 = vmul.f32 0.35355338, %v3338_v23  ;;  %v3295_v14 = vpop.xlane.xlu0 %3294 }
0x10a0   :  { %v3345_v33 = vmul.f32 0.35355338, %v3337_v10  ;;  %v3332_v39 = vsub.f32 %v3324_v6, %v3295_v14 }
0x10a1   :  { %v3355_v63 = vmul.f32 1.442695, %v3346_v0 }
0x10a2   :  { %v3353_v2 = vmul.f32 1.442695, %v3345_v33  ;;  %v3340_v41 = vsub.f32 %v3332_v39, %v3320_v36  ;;  %v3301_v24 = vpop.xlane.xlu1 %3300 }
0x10a3   :  { %14099 = vpow2.f32 %v3355_v63  ;;  %v3334_v42 = vsub.f32 %v3326_v9, %v3301_v24  ;;  %v3292_v37 = vpop.xlane.xlu0 %3291 }
0x10a4   :  { %14101 = vpow2.f32 %v3353_v2  ;;  %v3331_v62 = vsub.f32 %v3323_v5, %v3292_v37  ;;  %v3348_v2 = vmul.f32 0.35355338, %v3340_v41 }
0x10a5   :  { %v3342_v47 = vsub.f32 %v3334_v42, %v3320_v36 }
0x10a6   :  { %v3339_v22 = vsub.f32 %v3331_v62, %v3320_v36  ;;  %v3307_v16 = vpop.xlane.xlu1 %3306  ;;  %v3359_v37 = vmul.f32 1.442695, %v3348_v2 }
0x10a7   :  { %v3336_v11 = vsub.f32 %v3328_v13, %v3307_v16  ;;  %v3298_v50 = vpop.xlane.xlu0 %3297  ;;  %v3350_v10 = vmul.f32 0.35355338, %v3342_v47 }
0x10a8   :  { %v3333_v55 = vsub.f32 %v3325_v44, %v3298_v50 }
0x10a9   :  { %v3344_v14 = vsub.f32 %v3336_v11, %v3320_v36  ;;  %v3363_v24 = vmul.f32 1.442695, %v3350_v10 }
0x10aa   :  { %v3341_v0 = vsub.f32 %v3333_v55, %v3320_v36  ;;  %v16004_v23 = vpop.permute.xlu1 %3564 }
0x10ab   :  { %v3304_v43 = vpop.xlane.xlu0 %3303  ;;  %v3352_v13 = vmul.f32 0.35355338, %v3344_v14 }
0x10ac   :  { %v3335_v33 = vsub.f32 %v3327_v49, %v3304_v43  ;;  %v3349_v42 = vmul.f32 0.35355338, %v3341_v0 }
0x10ad   :  { %v15998_v39 = vpop.eup %14099  ;;  %v3367_v11 = vmul.f32 1.442695, %v3352_v13 }
0x10ae   :  { %v16000_v63 = vpop.eup %14101  ;;  %v3343_v9 = vsub.f32 %v3335_v33, %v3320_v36  ;;  %v3372_v52 = vsel %vm56_vm0, %v15998_v39, 0.0  ;;  %v3347_v36 = vmul.f32 0.35355338, %v3339_v22  ;;  %v3361_v44 = vmul.f32 1.442695, %v3349_v42 }
0x10af   :  { %3373 = vadd.xlane.f32.xlu1 %v3372_v52  ;;  %v16006_v17 = vpop.permute.xlu0 %3562  ;;  %v3369_v6 = vsel %vm56_vm0, %v16000_v63, 0.0 }
0x10b0   :  { %v16012_v38 = vpack.c.bf16 %v16004_v23, %v16006_v17  ;;  %3370 = vadd.xlane.f32.xlu0 %v3369_v6  ;;  %v3357_v5 = vmul.f32 1.442695, %v3347_v36  ;;  %v3351_v62 = vmul.f32 0.35355338, %v3343_v9 }
0x10b2   :  { %13040 = vmatprep.subr.msk.bf16.mxu1 %vm15031_vm3, %v16012_v38  ;;  %14103 = vpow2.f32 %v3357_v5  ;;  %v3365_v16 = vmul.f32 1.442695, %v3351_v62 }
0x10b3   :  { %14105 = vpow2.f32 %v3363_v24 }
0x10b4   :  { %14107 = vpow2.f32 %v3359_v37 }
0x10b5   :  { %14109 = vpow2.f32 %v3361_v44 }
0x10b6   :  { %14111 = vpow2.f32 %v3365_v16 }
0x10b7   :  { %14113 = vpow2.f32 %v3367_v11 }
0x10bc   :  { %v14104_v50 = vpop.eup %14103 }
0x10bd   :  { %v3375_v22 = vsel %vm56_vm0, %v14104_v50, 0.0  ;;  %v16026_v47 = vpop.eup %14105 }
0x10be   :  { %v16028_v41 = vpop.eup %14107  ;;  %v3384_v55 = vsel %vm56_vm0, %v16026_v47, 0.0 }
0x10bf   :  { %v16032_v49 = vpop.eup %14109  ;;  %v3378_v14 = vsel %vm56_vm0, %v16028_v41, 0.0 }
0x10c0   :  { %3568 = vrot.lane.b32.xlu1 %v15715_v54, %s14605_s28  ;;  %v16036_v0 = vpop.eup %14111  ;;  %v3381_v43 = vsel %vm56_vm0, %v16032_v49, 0.0 }
0x10c1   :  { %v16040_v33 = vpop.eup %14113  ;;  %v3387_v9 = vsel %vm56_vm0, %v16036_v0, 0.0 }
0x10c2   :  { %v3390_v52 = vsel %vm56_vm0, %v16040_v33, 0.0 }
0x10c4   :  { %3570 = vrot.lane.b32.xlu1 %v15724_v18, %s14605_s28 }
0x10c6   :  { %3566 = vrot.lane.b32.xlu0 %v15718_v59, %s14605_s28 }
0x10c8   :  { %3572 = vrot.lane.b32.xlu1 %v15721_v27, %s14605_s28 }
0x10e5   :  { %3376 = vadd.xlane.f32.xlu0 %v3375_v22 }
0x10e9   :  { %3385 = vadd.xlane.f32.xlu0 %v3384_v55 }
0x10ec   :  { %3379 = vadd.xlane.f32.xlu1 %v3378_v14 }
0x10ed   :  { %3382 = vadd.xlane.f32.xlu0 %v3381_v43 }
0x10f0   :  { %3388 = vadd.xlane.f32.xlu1 %v3387_v9 }
0x10f1   :  { %3391 = vadd.xlane.f32.xlu0 %v3390_v52 }
0x1101   :  { %3576 = vrot.lane.b32.xlu1 %v15739_v30, %s14605_s28 }
0x1105   :  { %13667 = vrot.lane.b32.xlu1 %v15728_v61, %s14606_s29 }
0x1107   :  { %3574 = vrot.lane.b32.xlu0 %v15742_v57, %s14605_s28 }
0x1109   :  { %13672 = vrot.lane.b32.xlu1 %v15746_v12, %s14606_s29 }
0x110b   :  { %13662 = vrot.lane.b32.xlu0 %v15752_v48, %s14606_s29 }
0x110d   :  { %13677 = vrot.lane.b32.xlu1 %v15758_v15, %s14606_s29 }
0x113c   :  { %v3374_v6 = vpop.xlane.xlu1 %3373 }
0x113d   :  { %14115 = vrcp.f32 %v3374_v6  ;;  %v3371_v36 = vpop.xlane.xlu0 %3370 }
0x113e   :  { %14117 = vrcp.f32 %v3371_v36 }
0x1140   :  { %v16058_v10 = vpop.permute.xlu1 %3568 }
0x1141   :  { %v16060_v24 = vpop.permute.xlu0 %3566 }
0x1142   :  { %v13044_v13 = vpack.c.bf16 %v16058_v10, %v16060_v24 }
0x1144   :  { %v16064_v62 = vpop.permute.xlu1 %3570 }
0x1147   :  { %v14116_v5 = vpop.eup %14115 }
0x1148   :  { %v14118_v2 = vpop.eup %14117  ;;  %v3402_v37 = vmul.f32 %v14116_v5, %v15998_v39  ;;  %v16075_v44 = vpop.permute.xlu1 %3572 }
0x1149   :  { %v3401_v42 = vmul.f32 %v14118_v2, %v16000_v63  ;;  %v13050_v39 = vpack.c.bf16 %v16075_v44, %v16064_v62 }
0x114b   :  { %12026 = vmatprep.mubr.msk.f32.mxu1 %vm56_vm0, %v3401_v42 }
0x114c   :  { %12027 = vmatmul.mubr.msk.f32.vlgmr.msra.gmra.mrb[64].mxu1 %vm56_vm0, %v3402_v37 }
0x114d   :  { %13043 = vmatpush3.bf16.xpose.msk.msra.mxu1 %vm15031_vm3, %v16012_v38 }
0x114e   :  { %13046 = vmatprep.subr.msk.bf16.mxu1 %vm15031_vm3, %v13044_v13 }
0x1155   :  { %13049 = vmatpush3.bf16.xpose.msk.msra.mxu1 %vm15031_vm3, %v13044_v13 }
0x1156   :  { %13052 = vmatprep.subr.msk.bf16.mxu1 %vm15031_vm3, %v13050_v39 }
0x115d   :  { %13055 = vmatpush3.bf16.xpose.msk.msra.mxu1 %vm15031_vm3, %v13050_v39 }
0x1172   :  { %v3377_v63 = vpop.xlane.xlu0 %3376 }
0x1173   :  { %14119 = vrcp.f32 %v3377_v63 }
0x1176   :  { %v3386_v38 = vpop.xlane.xlu0 %3385 }
0x1179   :  { %v3380_v16 = vpop.xlane.xlu1 %3379 }
0x117a   :  { %14121 = vrcp.f32 %v3380_v16  ;;  %v3383_v11 = vpop.xlane.xlu0 %3382 }
0x117b   :  { %14123 = vrcp.f32 %v3383_v11 }
0x117c   :  { %14125 = vrcp.f32 %v3386_v38 }
0x117d   :  { %v14120_v22 = vpop.eup %14119  ;;  %v3389_v55 = vpop.xlane.xlu1 %3388 }
0x117e   :  { %14127 = vrcp.f32 %v3389_v55  ;;  %v3392_v14 = vpop.xlane.xlu0 %3391  ;;  %v3403_v43 = vmul.f32 %v14120_v22, %v14104_v50 }
0x117f   :  { %14129 = vrcp.f32 %v3392_v14 }
0x1180   :  { %12029 = vmatprep.mubr.msk.f32.mxu1 %vm56_vm0, %v3403_v43 }
0x1181   :  { %v3577_v9 = vpop.permute.xlu1 %3576 }
0x1182   :  { %v3575_v52 = vpop.permute.xlu0 %3574 }
0x1183   :  { %v13056_v6 = vpack.c.bf16 %v3577_v9, %v3575_v52 }
0x1184   :  { %v14122_v36 = vpop.eup %14121 }
0x1185   :  { %v14124_v5 = vpop.eup %14123  ;;  %v13668_v2 = vpop.permute.xlu1 %13667  ;;  %13058 = vmatprep.subr.msk.bf16.mxu1 %vm15031_vm3, %v13056_v6  ;;  %v3404_v42 = vmul.f32 %v14122_v36, %v16028_v41 }
0x1186   :  { %v14126_v37 = vpop.eup %14125  ;;  %v13663_v13 = vpop.permute.xlu0 %13662  ;;  %13061 = vmatpush3.bf16.xpose.msk.msra.mxu1 %vm15031_vm3, %v13056_v6  ;;  %v3405_v50 = vmul.f32 %v14124_v5, %v16032_v49  ;;  %v13670_v39 = vunpack.i.h.bf16 %v13668_v2  ;;  %v13669_v63 = vunpack.i.l.bf16 %v13668_v2 }
0x1187   :  { %v13665_v38 = vunpack.i.h.bf16 %v13663_v13  ;;  %v13664_v16 = vunpack.i.l.bf16 %v13663_v13  ;;  %12030 = vmatmul.mubr.msk.f32.gmra.mrb[66].mxu1 %vm56_vm0, %v3404_v42  ;;  %v3406_v55 = vmul.f32 %v14126_v37, %v16026_v47 }
0x1188   :  { %v14128_v11 = vpop.eup %14127  ;;  %12032 = vmatprep.mubr.msk.f32.mxu1 %vm56_vm0, %v3405_v50  ;;  %v13066_v49 = vpack.c.bf16 %v13670_v39, %v13669_v63 }
0x1189   :  { %v13673_v22 = vpop.permute.xlu1 %13672  ;;  %v13062_v41 = vpack.c.bf16 %v13665_v38, %v13664_v16  ;;  %v3407_v14 = vmul.f32 %v14128_v11, %v16036_v0  ;;  %v14130_v43 = vpop.eup %14129 }
0x118a   :  { %v13675_v36 = vunpack.i.h.bf16 %v13673_v22  ;;  %v13674_v6 = vunpack.i.l.bf16 %v13673_v22  ;;  %v3408_v2 = vmul.f32 %v14130_v43, %v16040_v33 }
0x118b   :  { %12033 = vmatmul.mubr.msk.f32.gmra.mrb[68].mxu1 %vm56_vm0, %v3406_v55  ;;  %13063 = vmatprep.subr.bf16.mxu0 %v13062_v41 }
0x118c   :  { %12035 = vmatprep.mubr.msk.f32.mxu1 %vm56_vm0, %v3407_v14  ;;  %13065 = vmatpush3.bf16.msra.mxu0 %v13062_v41  ;;  %v13070_v47 = vpack.c.bf16 %v13675_v36, %v13674_v6 }
0x118d   :  { %v13678_v5 = vpop.permute.xlu1 %13677  ;;  %13067 = vmatprep.subr.bf16.mxu0 %v13066_v49 }
0x118e   :  { %v13680_v42 = vunpack.i.h.bf16 %v13678_v5  ;;  %v13679_v13 = vunpack.i.l.bf16 %v13678_v5 }
0x118f   :  { %12036 = vmatmul.mubr.msk.f32.gmra.mrb[70].mxu1 %vm56_vm0, %v3408_v2 }
0x1190   :  { %12054 = vmatprep.mubr.msk.f32.mxu1 %vm917_vm2, %v16006_v17  ;;  %13069 = vmatpush3.bf16.msra.mxu0 %v13066_v49  ;;  %v13074_v0 = vpack.c.bf16 %v13680_v42, %v13679_v13 }
0x1191   :  { %13071 = vmatprep.subr.bf16.mxu0 %v13070_v47 }
0x1193   :  { %12055 = vmatmul.mubr.msk.f32.vlgmr.msra.gmra.mrb[72].mxu1 %vm917_vm2, %v16004_v23 }
0x1194   :  { %12057 = vmatprep.mubr.msk.f32.mxu1 %vm917_vm2, %v16060_v24  ;;  %13073 = vmatpush3.bf16.msra.mxu0 %v13070_v47 }
0x1195   :  { %13075 = vmatprep.subr.bf16.mxu0 %v13074_v0 }
0x1197   :  { %12058 = vmatmul.mubr.msk.f32.gmra.mrb[74].mxu1 %vm917_vm2, %v16058_v10 }
0x1198   :  { %12060 = vmatprep.mubr.msk.f32.mxu1 %vm917_vm2, %v16064_v62  ;;  %13077 = vmatpush3.bf16.msra.mxu0 %v13074_v0 }
0x119b   :  { %12061 = vmatmul.mubr.msk.f32.gmra.mrb[76].mxu1 %vm917_vm2, %v16075_v44 }
0x119c   :  { %12063 = vmatprep.mubr.msk.f32.mxu1 %vm917_vm2, %v3575_v52 }
0x119f   :  { %12064 = vmatmul.mubr.msk.f32.gmra.mrb[78].mxu1 %vm917_vm2, %v3577_v9 }
0x121f   :  { %v16114_v23 = vpop.f32.mrb[64].mxu1 }
0x1220   :  { %v16116_v17 = vpop.f32.mrb[65].mxu1 }
0x125a   :  { %v16118_v33 = vpop.f32.mrb[66].mxu1 }
0x125b   :  { %v16120_v24 = vpop.f32.mrb[67].mxu1 }
0x125c   :  { %19226 = vst [vmem:[#allocation53_spill] sm:$0xff] %v16120_v24 }
0x125e   :  { %v16122_v10 = vpop.f32.mrb[68].mxu1 }
0x125f   :  { %19227 = vst [vmem:[#allocation54_spill] sm:$0xff] %v16122_v10  ;;  %v16124_v37 = vpop.f32.mrb[69].mxu1 }
0x1260   :  { %19228 = vst [vmem:[#allocation55_spill] sm:$0xff] %v16124_v37 }
0x1262   :  { %v16126_v62 = vpop.f32.mrb[70].mxu1 }
0x1263   :  { %19229 = vst [vmem:[#allocation56_spill] sm:$0xff] %v16126_v62  ;;  %v16128_v50 = vpop.f32.mrb[71].mxu1 }
0x1264   :  { %19230 = vst [vmem:[#allocation57_spill] sm:$0xff] %v16128_v50 }
0x1266   :  { %v12056_v44 = vpop.f32.mrb[72].mxu1 }
0x1267   :  { %v3700_v52 = vmul.f32 %v12056_v44, %v15217_v29  ;;  %v3660_v9 = vpop.f32.mrb[73].mxu1 }
0x1268   :  { %v3699_v39 = vmul.f32 %v15220_v51, %v3660_v9 }
0x1269   :  { %v3710_v63 = vsel %vm56_vm0, %v3700_v52, 0.0 }
0x126a   :  { %3711 = vadd.xlane.f32.xlu1 %v3710_v63  ;;  %v12059_v38 = vpop.f32.mrb[74].mxu1  ;;  %v3707_v16 = vsel %vm56_vm0, %v3699_v39, 0.0 }
0x126b   :  { %v3702_v11 = vmul.f32 %v12059_v38, %v15233_v40  ;;  %3708 = vadd.xlane.f32.xlu0 %v3707_v16  ;;  %v3731_v22 = vadd.f32 %v3710_v63, %v3707_v16  ;;  %v3670_v55 = vpop.f32.mrb[75].mxu1 }
0x126c   :  { %v3701_v41 = vmul.f32 %v15237_v45, %v3670_v55 }
0x126d   :  { %v3716_v14 = vsel %vm56_vm0, %v3702_v11, 0.0 }
0x126e   :  { %v12062_v43 = vpop.f32.mrb[76].mxu1  ;;  %v3713_v36 = vsel %vm56_vm0, %v3701_v41, 0.0 }
0x126f   :  { %v3704_v6 = vmul.f32 %v12062_v43, %v15251_v25  ;;  %3717 = vadd.xlane.f32.xlu0 %v3716_v14  ;;  %v3680_v49 = vpop.f32.mrb[77].mxu1  ;;  %v3732_v5 = vadd.f32 %v3731_v22, %v3713_v36 }
0x1270   :  { %v3703_v2 = vmul.f32 %v15255_v60, %v3680_v49 }
0x1271   :  { %v3722_v42 = vsel %vm56_vm0, %v3704_v6, 0.0  ;;  %v3733_v13 = vadd.f32 %v3732_v5, %v3716_v14 }
0x1272   :  { %3723 = vadd.xlane.f32.xlu1 %v3722_v42  ;;  %v12065_v47 = vpop.f32.mrb[78].mxu1  ;;  %v3719_v0 = vsel %vm56_vm0, %v3703_v2, 0.0 }
0x1273   :  { %v3706_v52 = vmul.f32 %v12065_v47, %v15267_v56  ;;  %3714 = vadd.xlane.f32.xlu0 %v3713_v36  ;;  %v3690_v39 = vpop.f32.mrb[79].mxu1  ;;  %v3734_v63 = vadd.f32 %v3733_v13, %v3719_v0 }
0x1274   :  { %v3705_v16 = vmul.f32 %v15271_v31, %v3690_v39 }
0x1275   :  { %v3728_v11 = vsel %vm56_vm0, %v3706_v52, 0.0  ;;  %v3735_v41 = vadd.f32 %v3734_v63, %v3722_v42  ;;  %v3745_v52 = vmul.f32 2.0, %v12056_v44  ;;  %v3744_v42 = vmul.f32 2.0, %v3660_v9 }
0x1276   :  { %3729 = vadd.xlane.f32.xlu1 %v3728_v11  ;;  %v3725_v22 = vsel %vm56_vm0, %v3705_v16, 0.0 }
0x1277   :  { %3720 = vadd.xlane.f32.xlu0 %v3719_v0  ;;  %v3736_v6 = vadd.f32 %v3735_v41, %v3725_v22 }
0x1279   :  { %v3737_v14 = vadd.f32 %v3736_v6, %v3728_v11 }
0x127b   :  { %3726 = vadd.xlane.f32.xlu0 %v3725_v22  ;;  %v3738_v36 = vrot.slane %v3737_v14, 4  ;;  %v3747_v22 = vmul.f32 2.0, %v12059_v38 }
0x127d   :  { %v3739_v5 = vadd.f32 %v3738_v36, %v3737_v14  ;;  %v3746_v14 = vmul.f32 2.0, %v3670_v55 }
0x127f   :  { %v3740_v2 = vrot.slane %v3739_v5, 2 }
0x1281   :  { %v3741_v13 = vadd.f32 %v3740_v2, %v3739_v5 }
0x1283   :  { %v3742_v26 = vrot.slane %v3741_v13, 1 }
0x1285   :  { %v3743_v50 = vadd.f32 %v3742_v26, %v3741_v13  ;;  %v3751_v13 = vmul.f32 2.0, %v12065_v47 }
0x1287   :  { %3987 = vrot.lane.b32.xlu1 %v15731_v1, %s14607_s30 }
0x1291   :  { %3985 = vrot.lane.b32.xlu0 %v15734_v21, %s14607_s30  ;;  %v3749_v21 = vmul.f32 2.0, %v12062_v43  ;;  %v3750_v43 = vmul.f32 2.0, %v3690_v39 }
0x12f7   :  { %v3712_v63 = vpop.xlane.xlu1 %3711 }
0x12f8   :  { %v3753_v16 = vsub.f32 %v3745_v52, %v3712_v63  ;;  %v3709_v0 = vpop.xlane.xlu0 %3708 }
0x12f9   :  { %v3752_v41 = vsub.f32 %v3744_v42, %v3709_v0  ;;  %v3748_v42 = vmul.f32 2.0, %v3680_v49 }
0x12fa   :  { %v3761_v11 = vsub.f32 %v3753_v16, %v3743_v50 }
0x12fb   :  { %v3760_v6 = vsub.f32 %v3752_v41, %v3743_v50 }
0x12fc   :  { %v3769_v62 = vmul.f32 0.35355338, %v3761_v11  ;;  %v3718_v1 = vpop.xlane.xlu0 %3717 }
0x12fd   :  { %v3768_v37 = vmul.f32 0.35355338, %v3760_v6  ;;  %v3755_v10 = vsub.f32 %v3747_v22, %v3718_v1 }
0x12fe   :  { %v3778_v24 = vmul.f32 1.442695, %v3769_v62 }
0x12ff   :  { %v3776_v36 = vmul.f32 1.442695, %v3768_v37  ;;  %v3763_v5 = vsub.f32 %v3755_v10, %v3743_v50  ;;  %v3724_v2 = vpop.xlane.xlu1 %3723 }
0x1300   :  { %14131 = vpow2.f32 %v3778_v24  ;;  %v3757_v44 = vsub.f32 %v3749_v21, %v3724_v2  ;;  %v3715_v9 = vpop.xlane.xlu0 %3714 }
0x1301   :  { %14133 = vpow2.f32 %v3776_v36  ;;  %v3754_v26 = vsub.f32 %v3746_v14, %v3715_v9  ;;  %v3771_v36 = vmul.f32 0.35355338, %v3763_v5 }
0x1302   :  { %v3765_v52 = vsub.f32 %v3757_v44, %v3743_v50 }
0x1303   :  { %v3762_v38 = vsub.f32 %v3754_v26, %v3743_v50  ;;  %v3730_v63 = vpop.xlane.xlu1 %3729  ;;  %v3782_v9 = vmul.f32 1.442695, %v3771_v36 }
0x1304   :  { %v3759_v16 = vsub.f32 %v3751_v13, %v3730_v63  ;;  %v3721_v0 = vpop.xlane.xlu0 %3720  ;;  %v3773_v39 = vmul.f32 0.35355338, %v3765_v52 }
0x1305   :  { %v3756_v41 = vsub.f32 %v3748_v42, %v3721_v0 }
0x1306   :  { %v3767_v11 = vsub.f32 %v3759_v16, %v3743_v50  ;;  %v3786_v2 = vmul.f32 1.442695, %v3773_v39 }
0x1307   :  { %v3764_v62 = vsub.f32 %v3756_v41, %v3743_v50  ;;  %v16151_v1 = vpop.permute.xlu1 %3987 }
0x1308   :  { %v3727_v55 = vpop.xlane.xlu0 %3726 }
0x1309   :  { %v3758_v37 = vsub.f32 %v3750_v43, %v3727_v55  ;;  %v3772_v44 = vmul.f32 0.35355338, %v3764_v62 }
0x130a   :  { %v14132_v10 = vpop.eup %14131 }
0x130b   :  { %v14134_v22 = vpop.eup %14133  ;;  %v3766_v24 = vsub.f32 %v3758_v37, %v3743_v50  ;;  %v3795_v6 = vsel %vm56_vm0, %v14132_v10, 0.0  ;;  %v3770_v50 = vmul.f32 0.35355338, %v3762_v38  ;;  %v3784_v13 = vmul.f32 1.442695, %v3772_v44 }
0x130c   :  { %v16153_v47 = vpop.permute.xlu0 %3985  ;;  %3796 = vadd.xlane.f32.xlu1 %v3795_v6  ;;  %v3792_v49 = vsel %vm56_vm0, %v14134_v22, 0.0 }
0x130d   :  { %v13078_v21 = vpack.c.bf16 %v16151_v1, %v16153_v47  ;;  %3793 = vadd.xlane.f32.xlu0 %v3792_v49  ;;  %v3780_v14 = vmul.f32 1.442695, %v3770_v50  ;;  %v3774_v26 = vmul.f32 0.35355338, %v3766_v24 }
0x130f   :  { %13080 = vmatprep.subr.msk.bf16.mxu0 %vm15031_vm3, %v13078_v21  ;;  %14135 = vpow2.f32 %v3780_v14 }
0x1310   :  { %14137 = vpow2.f32 %v3786_v2 }
0x1311   :  { %14139 = vpow2.f32 %v3782_v9 }
0x1312   :  { %14141 = vpow2.f32 %v3784_v13 }
0x131d   :  { %3991 = vrot.lane.b32.xlu1 %v15715_v54, %s14607_s30  ;;  %v3775_v54 = vmul.f32 0.35355338, %v3767_v11 }
0x131f   :  { %v3790_v42 = vmul.f32 1.442695, %v3775_v54 }
0x1321   :  { %3993 = vrot.lane.b32.xlu1 %v15724_v18, %s14607_s30  ;;  %v3788_v18 = vmul.f32 1.442695, %v3774_v26 }
0x1323   :  { %3989 = vrot.lane.b32.xlu0 %v15718_v59, %s14607_s30  ;;  %v14136_v59 = vpop.eup %14135  ;;  %14143 = vpow2.f32 %v3788_v18 }
0x1324   :  { %14145 = vpow2.f32 %v3790_v42  ;;  %v16169_v52 = vpop.eup %14137 }
0x1325   :  { %3995 = vrot.lane.b32.xlu1 %v15721_v27, %s14607_s30  ;;  %v3798_v27 = vsel %vm56_vm0, %v14136_v59, 0.0  ;;  %v14140_v5 = vpop.eup %14139  ;;  %v3807_v38 = vsel %vm56_vm0, %v16169_v52, 0.0 }
0x1326   :  { %v14142_v63 = vpop.eup %14141  ;;  %v3801_v16 = vsel %vm56_vm0, %v14140_v5, 0.0 }
0x1327   :  { %v3804_v41 = vsel %vm56_vm0, %v14142_v63, 0.0 }
0x132d   :  { %v14144_v0 = vpop.eup %14143 }
0x132e   :  { %v14146_v11 = vpop.eup %14145  ;;  %v3810_v43 = vsel %vm56_vm0, %v14144_v0, 0.0 }
0x132f   :  { %v3813_v62 = vsel %vm56_vm0, %v14146_v11, 0.0 }
0x1342   :  { %3799 = vadd.xlane.f32.xlu0 %v3798_v27 }
0x1346   :  { %3808 = vadd.xlane.f32.xlu0 %v3807_v38 }
0x1349   :  { %3802 = vadd.xlane.f32.xlu1 %v3801_v16 }
0x134a   :  { %3805 = vadd.xlane.f32.xlu0 %v3804_v41 }
0x134d   :  { %3811 = vadd.xlane.f32.xlu1 %v3810_v43 }
0x134e   :  { %3814 = vadd.xlane.f32.xlu0 %v3813_v62 }
0x135e   :  { %3999 = vrot.lane.b32.xlu1 %v15739_v30, %s14607_s30 }
0x1364   :  { %3997 = vrot.lane.b32.xlu0 %v15742_v57, %s14607_s30 }
0x1399   :  { %v3797_v55 = vpop.xlane.xlu1 %3796 }
0x139a   :  { %14147 = vrcp.f32 %v3797_v55  ;;  %v3794_v37 = vpop.xlane.xlu0 %3793 }
0x139b   :  { %14149 = vrcp.f32 %v3794_v37 }
0x139d   :  { %v3992_v24 = vpop.permute.xlu1 %3991 }
0x139e   :  { %v3990_v50 = vpop.permute.xlu0 %3989 }
0x139f   :  { %v13084_v2 = vpack.c.bf16 %v3992_v24, %v3990_v50 }
0x13a1   :  { %v3994_v36 = vpop.permute.xlu1 %3993 }
0x13a4   :  { %v14148_v6 = vpop.eup %14147 }
0x13a5   :  { %v14150_v49 = vpop.eup %14149  ;;  %v3825_v14 = vmul.f32 %v14148_v6, %v14132_v10  ;;  %v3996_v30 = vpop.permute.xlu1 %3995 }
0x13a6   :  { %v3824_v39 = vmul.f32 %v14150_v49, %v14134_v22  ;;  %v13090_v57 = vpack.c.bf16 %v3996_v30, %v3994_v36 }
0x13a8   :  { %12082 = vmatprep.mubr.msk.f32.mxu0 %vm56_vm0, %v3824_v39 }
0x13a9   :  { %12083 = vmatmul.mubr.msk.f32.vlgmr.msra.gmra.mrb[56].mxu0 %vm56_vm0, %v3825_v14 }
0x13aa   :  { %13083 = vmatpush3.bf16.xpose.msk.msra.mxu0 %vm15031_vm3, %v13078_v21 }
0x13ab   :  { %13086 = vmatprep.subr.msk.bf16.mxu0 %vm15031_vm3, %v13084_v2 }
0x13b2   :  { %13089 = vmatpush3.bf16.xpose.msk.msra.mxu0 %vm15031_vm3, %v13084_v2 }
0x13b3   :  { %13092 = vmatprep.subr.msk.bf16.mxu0 %vm15031_vm3, %v13090_v57 }
0x13ba   :  { %13095 = vmatpush3.bf16.xpose.msk.msra.mxu0 %vm15031_vm3, %v13090_v57 }
0x13cf   :  { %v3800_v10 = vpop.xlane.xlu0 %3799 }
0x13d0   :  { %14151 = vrcp.f32 %v3800_v10 }
0x13d3   :  { %v3809_v22 = vpop.xlane.xlu0 %3808 }
0x13d6   :  { %v3803_v44 = vpop.xlane.xlu1 %3802 }
0x13d7   :  { %14153 = vrcp.f32 %v3803_v44  ;;  %v3806_v21 = vpop.xlane.xlu0 %3805 }
0x13d8   :  { %14155 = vrcp.f32 %v3806_v21 }
0x13d9   :  { %14157 = vrcp.f32 %v3809_v22 }
0x13da   :  { %v14152_v9 = vpop.eup %14151  ;;  %v3812_v26 = vpop.xlane.xlu1 %3811 }
0x13db   :  { %14159 = vrcp.f32 %v3812_v26  ;;  %v3815_v54 = vpop.xlane.xlu0 %3814  ;;  %v3826_v13 = vmul.f32 %v14152_v9, %v14136_v59 }
0x13dc   :  { %14161 = vrcp.f32 %v3815_v54 }
0x13dd   :  { %12085 = vmatprep.mubr.msk.f32.mxu0 %vm56_vm0, %v3826_v13 }
0x13de   :  { %v4000_v18 = vpop.permute.xlu1 %3999 }
0x13df   :  { %v3998_v42 = vpop.permute.xlu0 %3997 }
0x13e0   :  { %v13096_v27 = vpack.c.bf16 %v4000_v18, %v3998_v42 }
0x13e1   :  { %v14154_v38 = vpop.eup %14153 }
0x13e2   :  { %v14156_v16 = vpop.eup %14155  ;;  %13098 = vmatprep.subr.msk.bf16.mxu0 %vm15031_vm3, %v13096_v27  ;;  %v3827_v41 = vmul.f32 %v14154_v38, %v14140_v5 }
0x13e3   :  { %v14158_v43 = vpop.eup %14157  ;;  %13101 = vmatpush3.bf16.xpose.msk.msra.mxu0 %vm15031_vm3, %v13096_v27  ;;  %v3828_v62 = vmul.f32 %v14156_v16, %v14142_v63 }
0x13e4   :  { %12086 = vmatmul.mubr.msk.f32.gmra.mrb[58].mxu0 %vm56_vm0, %v3827_v41  ;;  %v3829_v55 = vmul.f32 %v14158_v43, %v16169_v52 }
0x13e5   :  { %v14160_v59 = vpop.eup %14159  ;;  %12088 = vmatprep.mubr.msk.f32.mxu0 %vm56_vm0, %v3828_v62 }
0x13e6   :  { %v3830_v37 = vmul.f32 %v14160_v59, %v14144_v0  ;;  %v14162_v6 = vpop.eup %14161 }
0x13e7   :  { %v3831_v49 = vmul.f32 %v14162_v6, %v14146_v11 }
0x13e8   :  { %12089 = vmatmul.mubr.msk.f32.gmra.mrb[60].mxu0 %vm56_vm0, %v3829_v55 }
0x13e9   :  { %12091 = vmatprep.mubr.msk.f32.mxu0 %vm56_vm0, %v3830_v37 }
0x13ec   :  { %12092 = vmatmul.mubr.msk.f32.gmra.mrb[62].mxu0 %vm56_vm0, %v3831_v49 }
0x13ed   :  { %12110 = vmatprep.mubr.msk.f32.mxu0 %vm917_vm2, %v16153_v47 }
0x13f0   :  { %12111 = vmatmul.mubr.msk.f32.vlgmr.msra.gmra.mrb[64].mxu0 %vm917_vm2, %v16151_v1 }
0x13f1   :  { %12113 = vmatprep.mubr.msk.f32.mxu0 %vm917_vm2, %v3990_v50 }
0x13f4   :  { %12114 = vmatmul.mubr.msk.f32.gmra.mrb[66].mxu0 %vm917_vm2, %v3992_v24 }
0x13f5   :  { %12116 = vmatprep.mubr.msk.f32.mxu0 %vm917_vm2, %v3994_v36 }
0x13f8   :  { %12117 = vmatmul.mubr.msk.f32.gmra.mrb[68].mxu0 %vm917_vm2, %v3996_v30 }
0x13f9   :  { %12119 = vmatprep.mubr.msk.f32.mxu0 %vm917_vm2, %v3998_v42 }
0x13fc   :  { %12120 = vmatmul.mubr.msk.f32.gmra.mrb[70].mxu0 %vm917_vm2, %v4000_v18 }
0x147c   :  { %v16214_v52 = vpop.f32.mrb[56].mxu0 }
0x147d   :  { %v16216_v5 = vpop.f32.mrb[57].mxu0 }
0x14b7   :  { %v16218_v47 = vpop.f32.mrb[58].mxu0 }
0x14b8   :  { %v16220_v63 = vpop.f32.mrb[59].mxu0 }
0x14bb   :  { %v16222_v1 = vpop.f32.mrb[60].mxu0 }
0x14bc   :  { %v16224_v0 = vpop.f32.mrb[61].mxu0 }
0x14bf   :  { %v16226_v11 = vpop.f32.mrb[62].mxu0 }
0x14c0   :  { %v16228_v24 = vpop.f32.mrb[63].mxu0 }
0x14c3   :  { %v16230_v50 = vpop.f32.mrb[64].mxu0 }
0x14c4   :  { %v4123_v39 = vmul.f32 %v16230_v50, %v15217_v29  ;;  %v16234_v14 = vpop.f32.mrb[65].mxu0 }
0x14c5   :  { %v4122_v36 = vmul.f32 %v15220_v51, %v16234_v14 }
0x14c6   :  { %v16239_v2 = vsel %vm56_vm0, %v4123_v39, 0.0 }
0x14c7   :  { %v16242_v30 = vsel %vm56_vm0, %v4122_v36, 0.0  ;;  %v16244_v57 = vpop.f32.mrb[66].mxu0 }
0x14c8   :  { %v16246_v10 = vpop.f32.mrb[67].mxu0  ;;  %v4125_v22 = vmul.f32 %v16244_v57, %v15233_v40  ;;  %v4154_v21 = vadd.f32 %v16239_v2, %v16242_v30 }
0x14c9   :  { %v4124_v44 = vmul.f32 %v15237_v45, %v16246_v10 }
0x14ca   :  { %v16260_v42 = vsel %vm56_vm0, %v4125_v22, 0.0 }
0x14cb   :  { %v16255_v9 = vsel %vm56_vm0, %v4124_v44, 0.0  ;;  %v12118_v26 = vpop.f32.mrb[68].mxu0  ;;  %v14580_v44 = vld [vmem:[%s19094_s1 + $0x40] sm:$0xff] }
0x14cc   :  { %v4155_v54 = vadd.f32 %v4154_v21, %v16255_v9  ;;  %v4127_v13 = vmul.f32 %v12118_v26, %v15251_v25  ;;  %v4103_v18 = vpop.f32.mrb[69].mxu0  ;;  %v14581_v21 = vld [vmem:[%s19094_s1 + $0x60] sm:$0xff] }
0x14cd   :  { %v4126_v27 = vmul.f32 %v15255_v60, %v4103_v18 }
0x14ce   :  { %v4145_v38 = vsel %vm56_vm0, %v4127_v13, 0.0  ;;  %v4156_v16 = vadd.f32 %v4155_v54, %v16260_v42  ;;  %v13706_v54 = vpack.i.bf16 %v14581_v21, %v14580_v44  ;;  %v4171_v13 = vmul.f32 2.0, %v4103_v18 }
0x14cf   :  { %4146 = vadd.xlane.f32.xlu1 %v4145_v38  ;;  %v12121_v41 = vpop.f32.mrb[70].mxu0  ;;  %v4142_v43 = vsel %vm56_vm0, %v4126_v27, 0.0 }
0x14d0   :  { %4143 = vadd.xlane.f32.xlu0 %v4142_v43  ;;  %v4157_v62 = vadd.f32 %v4156_v16, %v4142_v43  ;;  %v4113_v59 = vpop.f32.mrb[71].mxu0  ;;  %v4129_v55 = vmul.f32 %v12121_v41, %v15267_v56 }
0x14d1   :  { %v4128_v37 = vmul.f32 %v15271_v31, %v4113_v59  ;;  %v4173_v43 = vmul.f32 2.0, %v4113_v59 }
0x14d2   :  { %v4158_v6 = vadd.f32 %v4157_v62, %v4145_v38  ;;  %v4151_v36 = vsel %vm56_vm0, %v4129_v55, 0.0 }
0x14d3   :  { %v4148_v49 = vsel %vm56_vm0, %v4128_v37, 0.0 }
0x14d4   :  { %4149 = vadd.xlane.f32.xlu0 %v4148_v49  ;;  %v4159_v39 = vadd.f32 %v4158_v6, %v4148_v49 }
0x14d6   :  { %v4160_v22 = vadd.f32 %v4159_v39, %v4151_v36  ;;  %v4174_v39 = vmul.f32 2.0, %v12121_v41 }
0x14d8   :  { %4152 = vadd.xlane.f32.xlu0 %v4151_v36 }
0x14e0   :  { %13687 = vrot.lane.b32.xlu1 %v15728_v61, %s14608_s5  ;;  %v14582_v61 = vld [vmem:[%s19094_s1] sm:$0xff] }
0x14e4   :  { %13692 = vrot.lane.b32.xlu1 %v15746_v12, %s14608_s5  ;;  %v14583_v12 = vld [vmem:[%s19094_s1 + $0x20] sm:$0xff] }
0x14e8   :  { %13697 = vrot.lane.b32.xlu1 %v15758_v15, %s14608_s5  ;;  %v13701_v15 = vpack.i.bf16 %v14583_v12, %v14582_v61 }
0x14ec   :  { %13707 = vrot.lane.b32.xlu1 %v13706_v54, %s14609_s12 }
0x14ee   :  { %13682 = vrot.lane.b32.xlu0 %v15752_v48, %s14608_s5 }
0x14f0   :  { %2612 = vrot.lane.b32.xlu1 %v15539_v4, %s14610_s17  ;;  %v4161_v4 = vrot.slane %v4160_v22, 4 }
0x14f2   :  { %13702 = vrot.lane.b32.xlu0 %v13701_v15, %s14609_s12 }
0x14f4   :  { %2644 = vrot.lane.b32.xlu1 %v15639_v32, %s14611_s18 }
0x14f6   :  { %2610 = vrot.lane.b32.xlu0 %v15541_v8, %s14610_s17  ;;  %v4162_v8 = vadd.f32 %v4161_v4, %v4160_v22 }
0x14f8   :  { %2676 = vrot.lane.b32.xlu1 %v15818_v53, %s14612_s20  ;;  %v4163_v32 = vrot.slane %v4162_v8, 2  ;;  %v4172_v53 = vmul.f32 2.0, %v12118_v26 }
0x14fa   :  { %2642 = vrot.lane.b32.xlu0 %v15641_v46, %s14611_s18  ;;  %v4164_v48 = vadd.f32 %v4163_v32, %v4162_v8 }
0x14fc   :  { %2616 = vrot.lane.b32.xlu1 %v15543_v35, %s14610_s17  ;;  %v4165_v46 = vrot.slane %v4164_v48, 1 }
0x14fe   :  { %2674 = vrot.lane.b32.xlu0 %v15820_v3, %s14612_s20  ;;  %v16312_v27 = vadd.f32 %v4165_v46, %v4164_v48 }
0x1500   :  { %2648 = vrot.lane.b32.xlu1 %v15643_v28, %s14611_s18 }
0x1502   :  { %2614 = vrot.lane.b32.xlu0 %v15545_v34, %s14610_s17 }
0x1506   :  { %2646 = vrot.lane.b32.xlu0 %v15645_v58, %s14611_s18 }
0x155c   :  { %v4147_v35 = vpop.xlane.xlu1 %4146 }
0x155d   :  { %v4180_v3 = vsub.f32 %v4172_v53, %v4147_v35  ;;  %v4144_v38 = vpop.xlane.xlu0 %4143 }
0x155e   :  { %v4179_v16 = vsub.f32 %v4171_v13, %v4144_v38 }
0x155f   :  { %v4188_v28 = vsub.f32 %v4180_v3, %v16312_v27 }
0x1560   :  { %v4187_v34 = vsub.f32 %v4179_v16, %v16312_v27  ;;  %v13688_v49 = vpop.permute.xlu1 %13687 }
0x1561   :  { %v4196_v62 = vmul.f32 0.35355338, %v4188_v28  ;;  %v4150_v58 = vpop.xlane.xlu0 %4149  ;;  %v13690_v54 = vunpack.i.h.bf16 %v13688_v49  ;;  %v13689_v61 = vunpack.i.l.bf16 %v13688_v49 }
0x1562   :  { %v4195_v55 = vmul.f32 0.35355338, %v4187_v34  ;;  %v4181_v37 = vsub.f32 %v4173_v43, %v4150_v58 }
0x1563   :  { %v4209_v6 = vmul.f32 1.442695, %v4196_v62  ;;  %v13106_v46 = vpack.c.bf16 %v13690_v54, %v13689_v61  ;;  %v19235_v54 = vld [vmem:[#allocation22_spill] sm:$0xff] }
0x1564   :  { %v4207_v26 = vmul.f32 1.442695, %v4195_v55  ;;  %v4189_v18 = vsub.f32 %v4181_v37, %v16312_v27  ;;  %v13693_v12 = vpop.permute.xlu1 %13692  ;;  %v19238_v61 = vld [vmem:[#allocation42_spill] sm:$0xff] }
0x1565   :  { %14163 = vpow2.f32 %v4209_v6  ;;  %v4153_v36 = vpop.xlane.xlu0 %4152  ;;  %v13695_v53 = vunpack.i.h.bf16 %v13693_v12  ;;  %v13694_v13 = vunpack.i.l.bf16 %v13693_v12  ;;  %v19239_v12 = vld [vmem:[#allocation45_spill] sm:$0xff] }
0x1566   :  { %14165 = vpow2.f32 %v4207_v26  ;;  %v4197_v22 = vmul.f32 0.35355338, %v4189_v18  ;;  %v4182_v44 = vsub.f32 %v4174_v39, %v4153_v36 }
0x1567   :  { %v13110_v43 = vpack.c.bf16 %v13695_v53, %v13694_v13 }
0x1568   :  { %v4211_v21 = vmul.f32 1.442695, %v4197_v22  ;;  %v4190_v59 = vsub.f32 %v4182_v44, %v16312_v27  ;;  %v13698_v3 = vpop.permute.xlu1 %13697  ;;  %v19231_v22 = vld [vmem:[#allocation39_spill] sm:$0xff]  ;;  %v19232_v44 = vld [vmem:[#allocation40_spill] sm:$0xff] }
0x1569   :  { %v13683_v15 = vpop.permute.xlu0 %13682  ;;  %v13700_v34 = vunpack.i.h.bf16 %v13698_v3  ;;  %v13699_v62 = vunpack.i.l.bf16 %v13698_v3 }
0x156a   :  { %14167 = vpow2.f32 %v4211_v21  ;;  %v4198_v4 = vmul.f32 0.35355338, %v4190_v59  ;;  %v13685_v8 = vunpack.i.h.bf16 %v13683_v15  ;;  %v13684_v32 = vunpack.i.l.bf16 %v13683_v15  ;;  %v19233_v21 = vld [vmem:[#allocation43_spill] sm:$0xff]  ;;  %v19234_v59 = vld [vmem:[#allocation44_spill] sm:$0xff]  ;;  %v19240_v15 = vld [vmem:[#allocation46_spill] sm:$0xff] }
0x156b   :  { %v13114_v39 = vpack.c.bf16 %v13700_v34, %v13699_v62 }
0x156c   :  { %v4213_v41 = vmul.f32 1.442695, %v4198_v4  ;;  %v13102_v48 = vpack.c.bf16 %v13685_v8, %v13684_v32  ;;  %v19241_v4 = vld [vmem:[#allocation19_spill] sm:$0xff]  ;;  %v19242_v8 = vld [vmem:[#allocation20_spill] sm:$0xff]  ;;  %v13708_v32 = vpop.permute.xlu1 %13707 }
0x156d   :  { %v13703_v58 = vpop.permute.xlu0 %13702 }
0x156e   :  { %14169 = vpow2.f32 %v4213_v41  ;;  %13103 = vmatprep.subr.bf16.mxu0 %v13102_v48  ;;  %13510 = vmatprep.subr.bf16.mxu1 %v13102_v48  ;;  %v13705_v37 = vunpack.i.h.bf16 %v13703_v58  ;;  %v13704_v6 = vunpack.i.l.bf16 %v13703_v58 }
0x156f   :  { %v16318_v35 = vpop.eup %14163  ;;  %13105 = vmatpush3.bf16.msra.mxu0 %v13102_v48  ;;  %13514 = vmatpush3.bf16.msra.mxu1 %v13102_v48 }
0x1570   :  { %v16320_v38 = vpop.eup %14165  ;;  %13107 = vmatprep.subr.bf16.mxu0 %v13106_v46  ;;  %13511 = vmatprep.subr.bf16.mxu1 %v13106_v46  ;;  %v4230_v16 = vsel %vm56_vm0, %v16318_v35, 0.0  ;;  %v13118_v18 = vpack.c.bf16 %v13705_v37, %v13704_v6  ;;  %v2613_v41 = vpop.permute.xlu1 %2612  ;;  %v13710_v6 = vunpack.i.h.bf16 %v13708_v32 }
0x1571   :  { %4231 = vadd.xlane.f32.xlu1 %v4230_v16  ;;  %v4227_v28 = vsel %vm56_vm0, %v16320_v38, 0.0  ;;  %v2611_v48 = vpop.permute.xlu0 %2610 }
0x1572   :  { %4228 = vadd.xlane.f32.xlu0 %v4227_v28 }
0x1573   :  { %13109 = vmatpush3.bf16.msra.mxu0 %v13106_v46  ;;  %13515 = vmatpush3.bf16.msra.mxu1 %v13106_v46 }
0x1574   :  { %v16326_v55 = vpop.eup %14167  ;;  %13111 = vmatprep.subr.bf16.mxu0 %v13110_v43  ;;  %13512 = vmatprep.subr.bf16.mxu1 %v13110_v43  ;;  %v2645_v46 = vpop.permute.xlu1 %2644 }
0x1575   :  { %v4233_v49 = vsel %vm56_vm0, %v16326_v55, 0.0  ;;  %v2643_v53 = vpop.permute.xlu0 %2642 }
0x1576   :  { %4234 = vadd.xlane.f32.xlu0 %v4233_v49  ;;  %v13709_v49 = vunpack.i.l.bf16 %v13708_v32 }
0x1577   :  { %13113 = vmatpush3.bf16.msra.mxu0 %v13110_v43  ;;  %13516 = vmatpush3.bf16.msra.mxu1 %v13110_v43 }
0x1578   :  { %v16330_v26 = vpop.eup %14169  ;;  %13115 = vmatprep.subr.bf16.mxu0 %v13114_v39  ;;  %13513 = vmatprep.subr.bf16.mxu1 %v13114_v39  ;;  %v2677_v13 = vpop.permute.xlu1 %2676 }
0x1579   :  { %v4236_v36 = vsel %vm56_vm0, %v16330_v26, 0.0  ;;  %v2675_v3 = vpop.permute.xlu0 %2674 }
0x157a   :  { %4237 = vadd.xlane.f32.xlu1 %v4236_v36 }
0x157b   :  { %13117 = vmatpush3.bf16.msra.mxu0 %v13114_v39  ;;  %13517 = vmatpush3.bf16.msra.mxu1 %v13114_v39 }
0x157c   :  { %13119 = vmatprep.subr.bf16.mxu1 %v13118_v18  ;;  %v2617_v16 = vpop.permute.xlu1 %2616 }
0x157d   :  { %v2615_v28 = vpop.permute.xlu0 %2614 }
0x1580   :  { %v2649_v43 = vpop.permute.xlu1 %2648 }
0x1581   :  { %v2647_v34 = vpop.permute.xlu0 %2646 }
0x158b   :  { %2680 = vrot.lane.b32.xlu1 %v15822_v7, %s14612_s20  ;;  %v19236_v7 = vld [vmem:[#allocation23_spill] sm:$0xff] }
0x158c   :  { %2678 = vrot.lane.b32.xlu0 %v15824_v19, %s14612_s20  ;;  %v19237_v19 = vld [vmem:[#allocation41_spill] sm:$0xff] }
0x158f   :  { %2620 = vrot.lane.b32.xlu1 %v19231_v22, %s14610_s17 }
0x1590   :  { %2618 = vrot.lane.b32.xlu0 %v19232_v44, %s14610_s17 }
0x1593   :  { %2652 = vrot.lane.b32.xlu1 %v19233_v21, %s14611_s18 }
0x1594   :  { %2650 = vrot.lane.b32.xlu0 %v19234_v59, %s14611_s18  ;;  %v13122_v59 = vpack.c.bf16 %v13710_v6, %v13709_v49 }
0x1597   :  { %2684 = vrot.lane.b32.xlu1 %v19235_v54, %s14612_s20 }
0x1598   :  { %2682 = vrot.lane.b32.xlu0 %v19236_v7, %s14612_s20 }
0x159b   :  { %2624 = vrot.lane.b32.xlu1 %v19237_v19, %s14610_s17 }
0x159c   :  { %2622 = vrot.lane.b32.xlu0 %v19238_v61, %s14610_s17 }
0x159f   :  { %2656 = vrot.lane.b32.xlu1 %v19239_v12, %s14611_s18 }
0x15a0   :  { %2654 = vrot.lane.b32.xlu0 %v19240_v15, %s14611_s18 }
0x15a3   :  { %2688 = vrot.lane.b32.xlu1 %v19241_v4, %s14612_s20 }
0x15a4   :  { %2686 = vrot.lane.b32.xlu0 %v19242_v8, %s14612_s20 }
0x15c3   :  { %4131 = vadd.xlane.f32.xlu0 %v16242_v30 }
0x15c7   :  { %4134 = vadd.xlane.f32.xlu1 %v16239_v2  ;;  %4137 = vadd.xlane.f32.xlu0 %v16255_v9 }
0x15cb   :  { %4140 = vadd.xlane.f32.xlu0 %v16260_v42 }
0x15fe   :  { %v4232_v62 = vpop.xlane.xlu1 %4231 }
0x15ff   :  { %14171 = vrcp.f32 %v4232_v62  ;;  %v4229_v30 = vpop.xlane.xlu0 %4228 }
0x1600   :  { %14173 = vrcp.f32 %v4229_v30  ;;  %v19245_v30 = vld [vmem:[#allocation34_spill] sm:$0xff] }
0x1603   :  { %v4235_v2 = vpop.xlane.xlu0 %4234 }
0x1604   :  { %14175 = vrcp.f32 %v4235_v2 }
0x1607   :  { %v4238_v9 = vpop.xlane.xlu1 %4237  ;;  %v2679_v58 = vpop.permute.xlu0 %2678 }
0x1608   :  { %14177 = vrcp.f32 %v4238_v9 }
0x1609   :  { %v14172_v42 = vpop.eup %14171 }
0x160a   :  { %v14174_v37 = vpop.eup %14173  ;;  %v4252_v44 = vmul.f32 %v14172_v42, %v16318_v35  ;;  %v19246_v42 = vld [vmem:[#allocation33_spill] sm:$0xff] }
0x160b   :  { %v2681_v39 = vpop.permute.xlu1 %2680  ;;  %v2619_v36 = vpop.permute.xlu0 %2618  ;;  %v4251_v22 = vmul.f32 %v14174_v37, %v16320_v38  ;;  %v19243_v38 = vld [vmem:[#allocation32_spill] sm:$0xff] }
0x160c   :  { %v2698_v35 = vsel %vm917_vm2, %v19243_v38, %v2611_v48  ;;  %v2700_v48 = vsel %vm917_vm2, %v19245_v30, %v2615_v28  ;;  %v19247_v37 = vld [vmem:[#allocation36_spill] sm:$0xff] }
0x160d   :  { %12144 = vmatprep.mubr.msk.f32.mxu1 %vm56_vm0, %v4251_v22  ;;  %v2702_v28 = vsel %vm917_vm2, %v19247_v37, %v2619_v36  ;;  %v19248_v22 = vld [vmem:[#allocation35_spill] sm:$0xff] }
0x160e   :  { %v14176_v21 = vpop.eup %14175  ;;  %12145 = vmatmul.mubr.msk.f32.vlgmr.msra.gmra.mrb[80].mxu1 %vm56_vm0, %v4252_v44  ;;  %v19249_v44 = vld [vmem:[#allocation38_spill] sm:$0xff] }
0x160f   :  { %13121 = vmatpush3.bf16.msra.mxu1 %v13118_v18  ;;  %v2621_v54 = vpop.permute.xlu1 %2620  ;;  %v2651_v7 = vpop.permute.xlu0 %2650  ;;  %v4253_v19 = vmul.f32 %v14176_v21, %v16326_v55  ;;  %v2707_v18 = vsel %vm2706_vm12, %v2698_v35, %v2643_v53  ;;  %v19244_v55 = vld [vmem:[#allocation31_spill] sm:$0xff]  ;;  %v2709_v53 = vsel %vm2706_vm12, %v2700_v48, %v2647_v34 }
0x1610   :  { %13123 = vmatprep.subr.bf16.mxu1 %v13122_v59  ;;  %v2716_v8 = vsel %vm2715_vm13, %v2707_v18, %v2675_v3  ;;  %v2699_v32 = vsel %vm917_vm2, %v19244_v55, %v2613_v41  ;;  %v2718_v3 = vsel %vm2715_vm13, %v2709_v53, %v2679_v58  ;;  %v2701_v41 = vsel %vm917_vm2, %v19246_v42, %v2617_v16 }
0x1611   :  { %12147 = vmatprep.mubr.msk.f32.mxu1 %vm56_vm0, %v4253_v19  ;;  %v2708_v62 = vsel %vm2706_vm12, %v2699_v32, %v2645_v46  ;;  %v2710_v46 = vsel %vm2706_vm12, %v2701_v41, %v2649_v43  ;;  %v2711_v34 = vsel %vm2706_vm12, %v2702_v28, %v2651_v7  ;;  %v2703_v16 = vsel %vm917_vm2, %v19248_v22, %v2621_v54 }
0x1612   :  { %v14178_v61 = vpop.eup %14177  ;;  %v4168_v55 = vmul.f32 2.0, %v16230_v50 }
0x1613   :  { %13125 = vmatpush3.bf16.msra.mxu1 %v13122_v59  ;;  %v2653_v12 = vpop.permute.xlu1 %2652  ;;  %v2683_v15 = vpop.permute.xlu0 %2682  ;;  %v4254_v4 = vmul.f32 %v14178_v61, %v16330_v26  ;;  %v2717_v26 = vsel %vm2715_vm13, %v2708_v62, %v2677_v13  ;;  %v2719_v13 = vsel %vm2715_vm13, %v2710_v46, %v2681_v39  ;;  %v19250_v61 = vld [vmem:[#allocation37_spill] sm:$0xff]  ;;  %v4167_v62 = vmul.f32 2.0, %v16234_v14 }
0x1614   :  { %v2720_v58 = vsel %vm2715_vm13, %v2711_v34, %v2683_v15  ;;  %v2712_v43 = vsel %vm2706_vm12, %v2703_v16, %v2653_v12 }
0x1615   :  { %12148 = vmatmul.mubr.msk.f32.gmra.mrb[82].mxu1 %vm56_vm0, %v4254_v4 }
0x1616   :  { %12158 = vmatprep.mubr.msk.f32.mxu1 %vm270_vm1, %v2716_v8 }
0x1617   :  { %v2685_v2 = vpop.permute.xlu1 %2684  ;;  %v2623_v9 = vpop.permute.xlu0 %2622 }
0x1618   :  { %v2704_v21 = vsel %vm917_vm2, %v19249_v44, %v2623_v9  ;;  %v2721_v7 = vsel %vm2715_vm13, %v2712_v43, %v2685_v2  ;;  %v4170_v9 = vmul.f32 2.0, %v16244_v57  ;;  %v16432_v57 = vld [vmem:[%s19095_s2 + $0x6] ss:$0 sm:$0xff] }
0x1619   :  { %12159 = vmatmul.mubr.msk.f32.vlgmr.msra.gmra.mrb[84].mxu1 %vm270_vm1, %v2717_v26  ;;  %v4169_v26 = vmul.f32 2.0, %v16246_v10 }
0x161a   :  { %12161 = vmatprep.mubr.msk.f32.mxu1 %vm270_vm1, %v2718_v3 }
0x161b   :  { %v2625_v6 = vpop.permute.xlu1 %2624  ;;  %v2655_v49 = vpop.permute.xlu0 %2654 }
0x161c   :  { %v2713_v36 = vsel %vm2706_vm12, %v2704_v21, %v2655_v49  ;;  %v2705_v54 = vsel %vm917_vm2, %v19250_v61, %v2625_v6  ;;  %v19251_v49 = vld [vmem:[#allocation2_spill] sm:$0xff] }
0x161d   :  { %12162 = vmatmul.mubr.msk.f32.gmra.mrb[86].mxu1 %vm270_vm1, %v2719_v13 }
0x161e   :  { %12164 = vmatprep.mubr.msk.f32.mxu1 %vm270_vm1, %v2720_v58  ;;  %v19252_v58 = vld [vmem:[#allocation3_spill] sm:$0xff] }
0x161f   :  { %v2657_v59 = vpop.permute.xlu1 %2656  ;;  %v2687_v39 = vpop.permute.xlu0 %2686 }
0x1620   :  { %v2722_v19 = vsel %vm2715_vm13, %v2713_v36, %v2687_v39  ;;  %v2714_v38 = vsel %vm2706_vm12, %v2705_v54, %v2657_v59  ;;  %v19256_v54 = vld [vmem:[#allocation5_spill] sm:$0xff] }
0x1621   :  { %12165 = vmatmul.mubr.msk.f32.gmra.mrb[88].mxu1 %vm270_vm1, %v2721_v7  ;;  %v19255_v7 = vld [vmem:[#allocation4_spill] sm:$0xff] }
0x1622   :  { %12167 = vmatprep.mubr.msk.f32.mxu1 %vm270_vm1, %v2722_v19 }
0x1623   :  { %v2689_v35 = vpop.permute.xlu1 %2688 }
0x1624   :  { %v2723_v12 = vsel %vm2715_vm13, %v2714_v38, %v2689_v35 }
0x1625   :  { %12168 = vmatmul.mubr.msk.f32.gmra.mrb[90].mxu1 %vm270_vm1, %v2723_v12 }
0x1650   :  { %v4132_v15 = vpop.xlane.xlu0 %4131 }
0x1651   :  { %v4175_v48 = vsub.f32 %v4167_v62, %v4132_v15  ;;  %v19259_v62 = vld [vmem:[#allocation9_spill] sm:$0xff] }
0x1653   :  { %v4183_v41 = vsub.f32 %v4175_v48, %v16312_v27 }
0x1654   :  { %v4138_v4 = vpop.xlane.xlu0 %4137  ;;  %v4135_v18 = vpop.xlane.xlu1 %4134 }
0x1655   :  { %v4176_v30 = vsub.f32 %v4168_v55, %v4135_v18  ;;  %v4177_v46 = vsub.f32 %v4169_v26, %v4138_v4  ;;  %v4191_v10 = vmul.f32 0.35355338, %v4183_v41 }
0x1657   :  { %v4184_v53 = vsub.f32 %v4176_v30, %v16312_v27  ;;  %v4185_v6 = vsub.f32 %v4177_v46, %v16312_v27  ;;  %v4199_v59 = vmul.f32 1.442695, %v4191_v10 }
0x1658   :  { %v4141_v2 = vpop.xlane.xlu0 %4140 }
0x1659   :  { %v4178_v3 = vsub.f32 %v4170_v9, %v4141_v2  ;;  %v4192_v37 = vmul.f32 0.35355338, %v4184_v53  ;;  %v4193_v39 = vmul.f32 0.35355338, %v4185_v6  ;;  %v19260_v9 = vld [vmem:[#allocation6_spill] sm:$0xff]  ;;  %v19264_v6 = vld [vmem:[#allocation8_spill] sm:$0xff] }
0x165b   :  { %v4186_v14 = vsub.f32 %v4178_v3, %v16312_v27  ;;  %v4201_v44 = vmul.f32 1.442695, %v4192_v37  ;;  %v4203_v55 = vmul.f32 1.442695, %v4193_v39  ;;  %v19263_v37 = vld [vmem:[#allocation7_spill] sm:$0xff] }
0x165d   :  { %v4194_v21 = vmul.f32 0.35355338, %v4186_v14  ;;  %14179 = vpow2.f32 %v4201_v44 }
0x165e   :  { %14181 = vpow2.f32 %v4199_v59 }
0x165f   :  { %v4205_v15 = vmul.f32 1.442695, %v4194_v21 }
0x1661   :  { %14183 = vpow2.f32 %v4205_v15 }
0x1662   :  { %14185 = vpow2.f32 %v4203_v55 }
0x1667   :  { %v16481_v44 = vpop.eup %14179 }
0x1668   :  { %v4218_v59 = vsel %vm56_vm0, %v16481_v44, 0.0 }
0x16e1   :  { %v16414_v8 = vpop.f32.mrb[80].mxu1 }
0x16e2   :  { %v16417_v32 = vpop.f32.mrb[81].mxu1 }
0x16e8   :  { %v16423_v42 = vpop.f32.mrb[82].mxu1 }
0x16e9   :  { %v16426_v50 = vpop.f32.mrb[83].mxu1 }
0x16ec   :  { %v12160_v28 = vpop.f32.mrb[84].mxu1 }
0x16ed   :  { %v4734_v13 = vadd.f32 %v12160_v28, %v19251_v49  ;;  %v4654_v34 = vpop.f32.mrb[85].mxu1 }
0x16ee   :  { %v4733_v22 = vadd.f32 %v4654_v34, %v19252_v58 }
0x16ef   :  { %v16438_v16 = vadd.f32 %v16432_v57, %v4734_v13 }
0x16f0   :  { %v16441_v43 = vadd.f32 %v16432_v57, %v4733_v22  ;;  %v12163_v36 = vpop.f32.mrb[86].mxu1 }
0x16f1   :  { %19253 = vst [vmem:[#allocation39_spill] sm:$0xff] %v16438_v16  ;;  %v4736_v19 = vadd.f32 %v12163_v36, %v19255_v7  ;;  %v4664_v61 = vpop.f32.mrb[87].mxu1  ;;  %v4771_v27 = vsel %vm270_vm1, %v16438_v16, 0.0  ;;  %v16485_v36 = vpop.eup %14181 }
0x16f2   :  { %19254 = vst [vmem:[#allocation40_spill] sm:$0xff] %v16441_v43  ;;  %v4735_v38 = vadd.f32 %v4664_v61, %v19256_v54  ;;  %4772 = vadd.xlane.f32.xlu1 %v4771_v27  ;;  %v4768_v35 = vsel %vm270_vm1, %v16441_v43, 0.0  ;;  %v16489_v39 = vpop.eup %14183  ;;  %v4215_v7 = vsel %vm56_vm0, %v16485_v36, 0.0 }
0x16f3   :  { %v16450_v12 = vadd.f32 %v16432_v57, %v4736_v19  ;;  %4769 = vadd.xlane.f32.xlu0 %v4768_v35  ;;  %v16493_v19 = vpop.eup %14185  ;;  %v4224_v61 = vsel %vm56_vm0, %v16489_v39, 0.0 }
0x16f4   :  { %v16453_v4 = vadd.f32 %v16432_v57, %v4735_v38  ;;  %v12166_v18 = vpop.f32.mrb[88].mxu1  ;;  %v4221_v27 = vsel %vm56_vm0, %v16493_v19, 0.0 }
0x16f5   :  { %19257 = vst [vmem:[#allocation43_spill] sm:$0xff] %v16450_v12  ;;  %v4738_v30 = vadd.f32 %v12166_v18, %v19259_v62  ;;  %v4674_v48 = vpop.f32.mrb[89].mxu1  ;;  %v4777_v2 = vsel %vm270_vm1, %v16450_v12, 0.0 }
0x16f6   :  { %19258 = vst [vmem:[#allocation44_spill] sm:$0xff] %v16453_v4  ;;  %v4737_v26 = vadd.f32 %v4674_v48, %v19260_v9  ;;  %4778 = vadd.xlane.f32.xlu1 %v4777_v2  ;;  %v4774_v53 = vsel %vm270_vm1, %v16453_v4, 0.0 }
0x16f7   :  { %v16462_v3 = vadd.f32 %v16432_v57, %v4738_v30  ;;  %4775 = vadd.xlane.f32.xlu0 %v4774_v53 }
0x16f8   :  { %v16465_v41 = vadd.f32 %v16432_v57, %v4737_v26  ;;  %v12169_v46 = vpop.f32.mrb[90].mxu1 }
0x16f9   :  { %19261 = vst [vmem:[#allocation22_spill] sm:$0xff] %v16462_v3  ;;  %v4740_v14 = vadd.f32 %v12169_v46, %v19263_v37  ;;  %v4684_v28 = vpop.f32.mrb[91].mxu1  ;;  %v4783_v10 = vsel %vm270_vm1, %v16462_v3, 0.0 }
0x16fa   :  { %19262 = vst [vmem:[#allocation23_spill] sm:$0xff] %v16465_v41  ;;  %v4739_v49 = vadd.f32 %v4684_v28, %v19264_v6  ;;  %4784 = vadd.xlane.f32.xlu1 %v4783_v10  ;;  %v4780_v13 = vsel %vm270_vm1, %v16465_v41, 0.0 }
0x16fb   :  { %v16474_v34 = vadd.f32 %v16432_v57, %v4740_v14  ;;  %4781 = vadd.xlane.f32.xlu0 %v4780_v13 }
0x16fc   :  { %v16477_v58 = vadd.f32 %v16432_v57, %v4739_v49 }
0x16fd   :  { %19265 = vst [vmem:[#allocation41_spill] sm:$0xff] %v16474_v34  ;;  %v4789_v22 = vsel %vm270_vm1, %v16474_v34, 0.0 }
0x16fe   :  { %19266 = vst [vmem:[#allocation42_spill] sm:$0xff] %v16477_v58  ;;  %4790 = vadd.xlane.f32.xlu1 %v4789_v22  ;;  %v4786_v21 = vsel %vm270_vm1, %v16477_v58, 0.0 }
0x16ff   :  { %4787 = vadd.xlane.f32.xlu0 %v4786_v21 }
0x1702   :  { %4219 = vadd.xlane.f32.xlu1 %v4218_v59 }
0x1703   :  { %4216 = vadd.xlane.f32.xlu0 %v4215_v7 }
0x1706   :  { %4225 = vadd.xlane.f32.xlu1 %v4224_v61 }
0x1707   :  { %4222 = vadd.xlane.f32.xlu0 %v4221_v27 }
0x177f   :  { %v4773_v54 = vpop.xlane.xlu1 %4772 }
0x1780   :  { %v4817_v38 = vmul.f32 0.03125, %v4773_v54  ;;  %v4770_v35 = vpop.xlane.xlu0 %4769 }
0x1781   :  { %v4816_v15 = vmul.f32 0.03125, %v4770_v35 }
0x1782   :  { %v16500_v18 = vsub.f32 %v16438_v16, %v4817_v38 }
0x1783   :  { %v16503_v55 = vsub.f32 %v16441_v43, %v4816_v15  ;;  %v4779_v62 = vpop.xlane.xlu1 %4778 }
0x1784   :  { %v4819_v30 = vmul.f32 0.03125, %v4779_v62  ;;  %v4776_v48 = vpop.xlane.xlu0 %4775  ;;  %v4849_v2 = vmul.f32 %v16500_v18, %v16500_v18 }
0x1785   :  { %v4818_v9 = vmul.f32 0.03125, %v4776_v48  ;;  %v4848_v26 = vmul.f32 %v16503_v55, %v16503_v55 }
0x1786   :  { %v16510_v53 = vsub.f32 %v16450_v12, %v4819_v30  ;;  %v4867_v46 = vsel %vm270_vm1, %v4849_v2, 0.0 }
0x1787   :  { %v16514_v37 = vsub.f32 %v16453_v4, %v4818_v9  ;;  %v4785_v14 = vpop.xlane.xlu1 %4784  ;;  %4868 = vadd.xlane.f32.xlu1 %v4867_v46  ;;  %v4864_v28 = vsel %vm270_vm1, %v4848_v26, 0.0 }
0x1788   :  { %v4821_v10 = vmul.f32 0.03125, %v4785_v14  ;;  %4865 = vadd.xlane.f32.xlu0 %v4864_v28  ;;  %v4782_v6 = vpop.xlane.xlu0 %4781  ;;  %v4851_v49 = vmul.f32 %v16510_v53, %v16510_v53 }
0x1789   :  { %v4820_v13 = vmul.f32 0.03125, %v4782_v6  ;;  %v4850_v22 = vmul.f32 %v16514_v37, %v16514_v37 }
0x178a   :  { %v16522_v21 = vsub.f32 %v16462_v3, %v4821_v10  ;;  %v4873_v59 = vsel %vm270_vm1, %v4851_v49, 0.0 }
0x178b   :  { %v16526_v7 = vsub.f32 %v16465_v41, %v4820_v13  ;;  %v4791_v61 = vpop.xlane.xlu1 %4790  ;;  %4874 = vadd.xlane.f32.xlu1 %v4873_v59  ;;  %v4870_v27 = vsel %vm270_vm1, %v4850_v22, 0.0 }
0x178c   :  { %v4823_v54 = vmul.f32 0.03125, %v4791_v61  ;;  %4871 = vadd.xlane.f32.xlu0 %v4870_v27  ;;  %v4788_v38 = vpop.xlane.xlu0 %4787  ;;  %v4853_v35 = vmul.f32 %v16522_v21, %v16522_v21 }
0x178d   :  { %v4822_v15 = vmul.f32 0.03125, %v4788_v38  ;;  %v4852_v62 = vmul.f32 %v16526_v7, %v16526_v7 }
0x178e   :  { %v16534_v30 = vsub.f32 %v16474_v34, %v4823_v54  ;;  %v4879_v48 = vsel %vm270_vm1, %v4853_v35, 0.0 }
0x178f   :  { %v16538_v2 = vsub.f32 %v16477_v58, %v4822_v15  ;;  %v4220_v9 = vpop.xlane.xlu1 %4219  ;;  %4880 = vadd.xlane.f32.xlu1 %v4879_v48  ;;  %v4876_v26 = vsel %vm270_vm1, %v4852_v62, 0.0 }
0x1790   :  { %14187 = vrcp.f32 %v4220_v9  ;;  %4877 = vadd.xlane.f32.xlu0 %v4876_v26  ;;  %v4217_v46 = vpop.xlane.xlu0 %4216  ;;  %v4855_v14 = vmul.f32 %v16534_v30, %v16534_v30 }
0x1791   :  { %14189 = vrcp.f32 %v4217_v46  ;;  %v4854_v28 = vmul.f32 %v16538_v2, %v16538_v2 }
0x1792   :  { %v4885_v10 = vsel %vm270_vm1, %v4855_v14, 0.0 }
0x1793   :  { %4886 = vadd.xlane.f32.xlu1 %v4885_v10  ;;  %v4226_v6 = vpop.xlane.xlu1 %4225  ;;  %v4882_v49 = vsel %vm270_vm1, %v4854_v28, 0.0 }
0x1794   :  { %14191 = vrcp.f32 %v4226_v6  ;;  %4883 = vadd.xlane.f32.xlu0 %v4882_v49  ;;  %v4223_v13 = vpop.xlane.xlu0 %4222 }
0x1795   :  { %14193 = vrcp.f32 %v4223_v13 }
0x179a   :  { %v14188_v22 = vpop.eup %14187 }
0x179b   :  { %v14190_v59 = vpop.eup %14189  ;;  %v4248_v27 = vmul.f32 %v14188_v22, %v16481_v44  ;;  %v5009_v44 = vld [vmem:[%s19094_s1 + $0x28] sm:$0xff] }
0x179c   :  { %v4247_v61 = vmul.f32 %v14190_v59, %v16485_v36  ;;  %v5008_v36 = vld [vmem:[%s19094_s1 + $0x8] sm:$0xff] }
0x179d   :  { %v13126_v62 = vpack.c.bf16 %v5009_v44, %v5008_v36 }
0x179e   :  { %v14192_v54 = vpop.eup %14191  ;;  %12138 = vmatprep.mubr.msk.f32.mxu0 %vm56_vm0, %v4247_v61 }
0x179f   :  { %v14194_v38 = vpop.eup %14193  ;;  %12139 = vmatmul.mubr.msk.f32.vlgmr.msra.gmra.mrb[72].mxu0 %vm56_vm0, %v4248_v27  ;;  %v4250_v15 = vmul.f32 %v14192_v54, %v16489_v39  ;;  %13127 = vmatprep.subr.bf16.mxu0 %v13126_v62  ;;  %v5010_v39 = vld [vmem:[%s19094_s1 + $0x48] sm:$0xff] }
0x17a0   :  { %v4249_v35 = vmul.f32 %v14194_v38, %v16493_v19  ;;  %13129 = vmatpush3.bf16.msra.mxu0 %v13126_v62  ;;  %v5011_v19 = vld [vmem:[%s19094_s1 + $0x68] sm:$0xff]  ;;  %v16578_v62 = vld [vmem:[%s19095_s2 + $0x7] ss:$0 sm:$0xff] }
0x17a1   :  { %v13130_v48 = vpack.c.bf16 %v5011_v19, %v5010_v39 }
0x17a2   :  { %12141 = vmatprep.mubr.msk.f32.mxu0 %vm56_vm0, %v4249_v35 }
0x17a3   :  { %12142 = vmatmul.mubr.msk.f32.gmra.mrb[74].mxu0 %vm56_vm0, %v4250_v15  ;;  %13131 = vmatprep.subr.bf16.mxu0 %v13130_v48 }
0x17a4   :  { %4418 = vrot.lane.b32.xlu1 %v16114_v23, %s14610_s17  ;;  %13133 = vmatpush3.bf16.msra.mxu0 %v13130_v48 }
0x17a8   :  { %4448 = vrot.lane.b32.xlu1 %v16216_v5, %s14611_s18 }
0x17aa   :  { %4416 = vrot.lane.b32.xlu0 %v16116_v17, %s14610_s17 }
0x17ac   :  { %4450 = vrot.lane.b32.xlu1 %v16214_v52, %s14611_s18 }
0x1814   :  { %v4869_v23 = vpop.xlane.xlu1 %4868 }
0x1815   :  { %v4913_v9 = vmul.f32 0.03125, %v4869_v23  ;;  %v4866_v26 = vpop.xlane.xlu0 %4865 }
0x1816   :  { %v4912_v46 = vmul.f32 0.03125, %v4866_v26 }
0x1817   :  { %v4929_v14 = vadd.f32 1e-05, %v4913_v9 }
0x1818   :  { %v4928_v28 = vadd.f32 1e-05, %v4912_v46  ;;  %v4875_v10 = vpop.xlane.xlu1 %4874  ;;  %v16586_v46 = vld [vmem:[%s19095_s2 + $0x10] ss:$0 sm:$0xff] }
0x1819   :  { %14195 = vrsqrt.f32 %v4929_v14  ;;  %v4915_v6 = vmul.f32 0.03125, %v4875_v10  ;;  %v4872_v49 = vpop.xlane.xlu0 %4871 }
0x181a   :  { %14197 = vrsqrt.f32 %v4928_v28  ;;  %v4914_v5 = vmul.f32 0.03125, %v4872_v49 }
0x181b   :  { %v4931_v13 = vadd.f32 1e-05, %v4915_v6 }
0x181c   :  { %v4930_v22 = vadd.f32 1e-05, %v4914_v5  ;;  %v4881_v17 = vpop.xlane.xlu1 %4880 }
0x181d   :  { %14199 = vrsqrt.f32 %v4931_v13  ;;  %v4917_v59 = vmul.f32 0.03125, %v4881_v17  ;;  %v4878_v61 = vpop.xlane.xlu0 %4877 }
0x181e   :  { %14201 = vrsqrt.f32 %v4930_v22  ;;  %v4916_v52 = vmul.f32 0.03125, %v4878_v61 }
0x181f   :  { %v4933_v27 = vadd.f32 1e-05, %v4917_v59 }
0x1820   :  { %v4932_v54 = vadd.f32 1e-05, %v4916_v52  ;;  %v4887_v38 = vpop.xlane.xlu1 %4886 }
0x1821   :  { %14203 = vrsqrt.f32 %v4933_v27  ;;  %v4919_v35 = vmul.f32 0.03125, %v4887_v38  ;;  %v4884_v15 = vpop.xlane.xlu0 %4883 }
0x1822   :  { %14205 = vrsqrt.f32 %v4932_v54  ;;  %v4918_v36 = vmul.f32 0.03125, %v4884_v15 }
0x1823   :  { %v14196_v44 = vpop.eup %14195  ;;  %v4935_v39 = vadd.f32 1e-05, %v4919_v35 }
0x1824   :  { %v14198_v19 = vpop.eup %14197  ;;  %v4961_v48 = vmul.f32 %v14196_v44, %v16500_v18  ;;  %v4934_v23 = vadd.f32 1e-05, %v4918_v36 }
0x1825   :  { %14207 = vrsqrt.f32 %v4935_v39  ;;  %v4960_v9 = vmul.f32 %v14198_v19, %v16503_v55 }
0x1826   :  { %v4977_v26 = vmul.f32 %v4961_v48, %v16578_v62  ;;  %14209 = vrsqrt.f32 %v4934_v23 }
0x1827   :  { %v14200_v14 = vpop.eup %14199  ;;  %v4976_v28 = vmul.f32 %v4960_v9, %v16578_v62  ;;  %v19267_v9 = vld [vmem:[#allocation53_spill] sm:$0xff] }
0x1828   :  { %v14202_v10 = vpop.eup %14201  ;;  %v4963_v6 = vmul.f32 %v14200_v14, %v16510_v53  ;;  %v4993_v55 = vadd.f32 %v4977_v26, %v16586_v46  ;;  %v19268_v26 = vld [vmem:[#allocation54_spill] sm:$0xff]  ;;  %v19269_v14 = vld [vmem:[#allocation55_spill] sm:$0xff] }
0x1829   :  { %v4992_v18 = vadd.f32 %v4976_v28, %v16586_v46  ;;  %v4962_v49 = vmul.f32 %v14202_v10, %v16514_v37 }
0x182a   :  { %v4979_v5 = vmul.f32 %v4963_v6, %v16578_v62  ;;  %v19273_v6 = vld [vmem:[#allocation24_spill] sm:$0xff] }
0x182b   :  { %v14204_v13 = vpop.eup %14203  ;;  %12190 = vmatprep.mubr.msk.f32.mxu0 %vm270_vm1, %v4992_v18  ;;  %v4978_v22 = vmul.f32 %v4962_v49, %v16578_v62 }
0x182c   :  { %v14206_v17 = vpop.eup %14205  ;;  %12191 = vmatmul.mubr.msk.f32.vlgmr.msra.gmra.mrb[76].mxu0 %vm270_vm1, %v4993_v55  ;;  %v4965_v59 = vmul.f32 %v14204_v13, %v16522_v21  ;;  %v4995_v37 = vadd.f32 %v4979_v5, %v16586_v46 }
0x182d   :  { %v4994_v53 = vadd.f32 %v4978_v22, %v16586_v46  ;;  %v4964_v61 = vmul.f32 %v14206_v17, %v16526_v7  ;;  %v19274_v17 = vld [vmem:[#allocation48_spill] sm:$0xff] }
0x182e   :  { %v4981_v52 = vmul.f32 %v4965_v59, %v16578_v62 }
0x182f   :  { %v14208_v27 = vpop.eup %14207  ;;  %12193 = vmatprep.mubr.msk.f32.mxu0 %vm270_vm1, %v4994_v53  ;;  %v4980_v54 = vmul.f32 %v4964_v61, %v16578_v62  ;;  %v19275_v61 = vld [vmem:[#allocation47_spill] sm:$0xff] }
0x1830   :  { %v14210_v38 = vpop.eup %14209  ;;  %12194 = vmatmul.mubr.msk.f32.gmra.mrb[78].mxu0 %vm270_vm1, %v4995_v37  ;;  %v4967_v35 = vmul.f32 %v14208_v27, %v16534_v30  ;;  %v4997_v7 = vadd.f32 %v4981_v52, %v16586_v46 }
0x1831   :  { %v4996_v21 = vadd.f32 %v4980_v54, %v16586_v46  ;;  %v4966_v15 = vmul.f32 %v14210_v38, %v16538_v2 }
0x1832   :  { %v4983_v36 = vmul.f32 %v4967_v35, %v16578_v62 }
0x1833   :  { %12196 = vmatprep.mubr.msk.f32.mxu0 %vm270_vm1, %v4996_v21  ;;  %v4982_v44 = vmul.f32 %v4966_v15, %v16578_v62 }
0x1834   :  { %12197 = vmatmul.mubr.msk.f32.gmra.mrb[80].mxu0 %vm270_vm1, %v4997_v7  ;;  %v4999_v19 = vadd.f32 %v4983_v36, %v16586_v46 }
0x1835   :  { %v4998_v39 = vadd.f32 %v4982_v44, %v16586_v46  ;;  %v19276_v44 = vld [vmem:[#allocation50_spill] sm:$0xff] }
0x1837   :  { %12199 = vmatprep.mubr.msk.f32.mxu0 %vm270_vm1, %v4998_v39 }
0x1838   :  { %12200 = vmatmul.mubr.msk.f32.gmra.mrb[82].mxu0 %vm270_vm1, %v4999_v19 }
0x1872   :  { %v12140_v30 = vpop.f32.mrb[72].mxu0 }
0x1873   :  { %4482 = vrot.lane.b32.xlu1 %v12140_v30, %s14612_s20  ;;  %v4369_v2 = vpop.f32.mrb[73].mxu0  ;;  %v5012_v30 = vld [vmem:[%s19095_s2 + $0x11] ss:$0 sm:$0xff] }
0x1874   :  { %4480 = vrot.lane.b32.xlu0 %v4369_v2, %s14612_s20  ;;  %v19277_v2 = vld [vmem:[#allocation49_spill] sm:$0xff] }
0x1876   :  { %v12143_v48 = vpop.f32.mrb[74].mxu0 }
0x1877   :  { %4422 = vrot.lane.b32.xlu1 %v16118_v33, %s14610_s17  ;;  %v4379_v23 = vpop.f32.mrb[75].mxu0  ;;  %v19270_v33 = vld [vmem:[#allocation56_spill] sm:$0xff] }
0x1878   :  { %4420 = vrot.lane.b32.xlu0 %v19267_v9, %s14610_s17 }
0x187b   :  { %4454 = vrot.lane.b32.xlu1 %v16218_v47, %s14611_s18  ;;  %v19271_v47 = vld [vmem:[#allocation57_spill] sm:$0xff] }
0x187c   :  { %4452 = vrot.lane.b32.xlu0 %v16220_v63, %s14611_s18  ;;  %v4419_v63 = vpop.permute.xlu1 %4418 }
0x187f   :  { %4486 = vrot.lane.b32.xlu1 %v12143_v48, %s14612_s20 }
0x1880   :  { %4484 = vrot.lane.b32.xlu0 %v4379_v23, %s14612_s20 }
0x1883   :  { %4426 = vrot.lane.b32.xlu1 %v19268_v26, %s14610_s17 }
0x1884   :  { %4424 = vrot.lane.b32.xlu0 %v19269_v14, %s14610_s17 }
0x1887   :  { %4458 = vrot.lane.b32.xlu1 %v16222_v1, %s14611_s18  ;;  %v4449_v1 = vpop.permute.xlu1 %4448 }
0x1888   :  { %4456 = vrot.lane.b32.xlu0 %v16224_v0, %s14611_s18 }
0x188b   :  { %4490 = vrot.lane.b32.xlu1 %v16414_v8, %s14612_s20  ;;  %v4451_v0 = vpop.permute.xlu1 %4450  ;;  %v4417_v8 = vpop.permute.xlu0 %4416 }
0x188c   :  { %4488 = vrot.lane.b32.xlu0 %v16417_v32, %s14612_s20  ;;  %v19272_v32 = vld [vmem:[#allocation25_spill] sm:$0xff] }
0x188d   :  { %v4504_v28 = vsel %vm917_vm2, %v19272_v32, %v4417_v8 }
0x188e   :  { %v4512_v18 = vsel %vm2706_vm12, %v4504_v28, %v4449_v1 }
0x188f   :  { %4430 = vrot.lane.b32.xlu1 %v19270_v33, %s14610_s17 }
0x1890   :  { %4428 = vrot.lane.b32.xlu0 %v19271_v47, %s14610_s17 }
0x1893   :  { %4462 = vrot.lane.b32.xlu1 %v16226_v11, %s14611_s18  ;;  %v4505_v11 = vsel %vm917_vm2, %v19273_v6, %v4419_v63 }
0x1894   :  { %4460 = vrot.lane.b32.xlu0 %v16228_v24, %s14611_s18  ;;  %v4513_v49 = vsel %vm2706_vm12, %v4505_v11, %v4451_v0 }
0x1897   :  { %4494 = vrot.lane.b32.xlu1 %v16423_v42, %s14612_s20 }
0x1898   :  { %4492 = vrot.lane.b32.xlu0 %v16426_v50, %s14612_s20 }
0x18e5   :  { %v4483_v10 = vpop.permute.xlu1 %4482 }
0x18e6   :  { %v4481_v24 = vpop.permute.xlu0 %4480  ;;  %v4521_v50 = vsel %vm2715_vm13, %v4513_v49, %v4483_v10 }
0x18e7   :  { %v4520_v42 = vsel %vm2715_vm13, %v4512_v18, %v4481_v24 }
0x18e8   :  { %12170 = vmatprep.mubr.msk.f32.mxu1 %vm270_vm1, %v4520_v42 }
0x18e9   :  { %v4423_v55 = vpop.permute.xlu1 %4422  ;;  %12171 = vmatmul.mubr.msk.f32.gmra.mrb[92].mxu1 %vm270_vm1, %v4521_v50 }
0x18ea   :  { %v4421_v5 = vpop.permute.xlu0 %4420  ;;  %v4507_v37 = vsel %vm917_vm2, %v19275_v61, %v4423_v55 }
0x18eb   :  { %v4506_v59 = vsel %vm917_vm2, %v19274_v17, %v4421_v5 }
0x18ed   :  { %v4455_v13 = vpop.permute.xlu1 %4454 }
0x18ee   :  { %v4453_v22 = vpop.permute.xlu0 %4452  ;;  %v4515_v54 = vsel %vm2706_vm12, %v4507_v37, %v4455_v13  ;;  %v19280_v13 = vld [vmem:[#allocation52_spill] sm:$0xff] }
0x18ef   :  { %v4514_v52 = vsel %vm2706_vm12, %v4506_v59, %v4453_v22 }
0x18f1   :  { %v4487_v53 = vpop.permute.xlu1 %4486 }
0x18f2   :  { %v4485_v27 = vpop.permute.xlu0 %4484  ;;  %v4523_v35 = vsel %vm2715_vm13, %v4515_v54, %v4487_v53  ;;  %v19281_v53 = vld [vmem:[#allocation51_spill] sm:$0xff] }
0x18f3   :  { %v4522_v38 = vsel %vm2715_vm13, %v4514_v52, %v4485_v27 }
0x18f4   :  { %12173 = vmatprep.mubr.msk.f32.mxu1 %vm270_vm1, %v4522_v38 }
0x18f5   :  { %v4427_v21 = vpop.permute.xlu1 %4426  ;;  %12174 = vmatmul.mubr.msk.f32.gmra.mrb[94].mxu1 %vm270_vm1, %v4523_v35 }
0x18f6   :  { %v4425_v15 = vpop.permute.xlu0 %4424  ;;  %v4509_v48 = vsel %vm917_vm2, %v19277_v2, %v4427_v21 }
0x18f7   :  { %v4508_v39 = vsel %vm917_vm2, %v19276_v44, %v4425_v15 }
0x18f9   :  { %v4459_v7 = vpop.permute.xlu1 %4458 }
0x18fa   :  { %v4457_v36 = vpop.permute.xlu0 %4456  ;;  %v4517_v26 = vsel %vm2706_vm12, %v4509_v48, %v4459_v7 }
0x18fb   :  { %v4516_v23 = vsel %vm2706_vm12, %v4508_v39, %v4457_v36 }
0x18fd   :  { %v4491_v19 = vpop.permute.xlu1 %4490 }
0x18fe   :  { %v4489_v9 = vpop.permute.xlu0 %4488  ;;  %v4525_v47 = vsel %vm2715_vm13, %v4517_v26, %v4491_v19 }
0x18ff   :  { %v4524_v14 = vsel %vm2715_vm13, %v4516_v23, %v4489_v9  ;;  %v12192_v33 = vpop.f32.mrb[76].mxu0 }
0x1900   :  { %v16684_v63 = vadd.f32 %v12192_v33, %v5012_v30  ;;  %12176 = vmatprep.mubr.msk.f32.mxu1 %vm270_vm1, %v4524_v14  ;;  %v5127_v1 = vpop.f32.mrb[77].mxu0 }
0x1901   :  { %v16687_v0 = vadd.f32 %v5127_v1, %v5012_v30  ;;  %v4431_v8 = vpop.permute.xlu1 %4430  ;;  %12177 = vmatmul.mubr.msk.f32.gmra.mrb[96].mxu1 %vm270_vm1, %v4525_v47 }
0x1902   :  { %19278 = vst [vmem:[#allocation45_spill] sm:$0xff] %v16684_v63  ;;  %5623 = vrot.lane.b32.xlu1 %v16684_v63, %s14602_s26  ;;  %v4429_v32 = vpop.permute.xlu0 %4428  ;;  %v4511_v61 = vsel %vm917_vm2, %v19281_v53, %v4431_v8 }
0x1903   :  { %19279 = vst [vmem:[#allocation46_spill] sm:$0xff] %v16687_v0  ;;  %5621 = vrot.lane.b32.xlu0 %v16687_v0, %s14602_s26  ;;  %v12195_v28 = vpop.f32.mrb[78].mxu0  ;;  %v13134_v10 = vpack.c.bf16 %v16684_v63, %v16687_v0  ;;  %v4510_v22 = vsel %vm917_vm2, %v19280_v13, %v4429_v32  ;;  %v19282_v32 = vld [vmem:[#allocation10_spill] sm:$0xff] }
0x1904   :  { %v16696_v6 = vadd.f32 %v12195_v28, %v5012_v30  ;;  %v5137_v11 = vpop.f32.mrb[79].mxu0 }
0x1905   :  { %v16698_v18 = vadd.f32 %v5137_v11, %v5012_v30  ;;  %v4463_v24 = vpop.permute.xlu1 %4462  ;;  %13136 = vmatprep.subr.msk.bf16.mxu1 %vm15031_vm3, %v13134_v10  ;;  %v19283_v11 = vld [vmem:[#allocation11_spill] sm:$0xff] }
0x1906   :  { %13139 = vmatpush3.bf16.xpose.msk.msra.mxu1 %vm15031_vm3, %v13134_v10  ;;  %5627 = vrot.lane.b32.xlu1 %v16696_v6, %s14602_s26  ;;  %v4461_v49 = vpop.permute.xlu0 %4460  ;;  %v4519_v27 = vsel %vm2706_vm12, %v4511_v61, %v4463_v24  ;;  %v19287_v61 = vld [vmem:[#allocation13_spill] sm:$0xff] }
0x1907   :  { %5625 = vrot.lane.b32.xlu0 %v16698_v18, %s14602_s26  ;;  %v12198_v42 = vpop.f32.mrb[80].mxu0  ;;  %v13140_v50 = vpack.c.bf16 %v16696_v6, %v16698_v18  ;;  %v4518_v37 = vsel %vm2706_vm12, %v4510_v22, %v4461_v49 }
0x1908   :  { %v16710_v55 = vadd.f32 %v12198_v42, %v5012_v30  ;;  %v5147_v5 = vpop.f32.mrb[81].mxu0 }
0x1909   :  { %v16714_v17 = vadd.f32 %v5147_v5, %v5012_v30  ;;  %v4495_v59 = vpop.permute.xlu1 %4494  ;;  %13142 = vmatprep.subr.msk.bf16.mxu1 %vm15031_vm3, %v13140_v50 }
0x190a   :  { %5631 = vrot.lane.b32.xlu1 %v16710_v55, %s14602_s26  ;;  %v4493_v52 = vpop.permute.xlu0 %4492  ;;  %v4527_v35 = vsel %vm2715_vm13, %v4519_v27, %v4495_v59  ;;  %v19286_v59 = vld [vmem:[#allocation12_spill] sm:$0xff] }
0x190b   :  { %v4526_v54 = vsel %vm2715_vm13, %v4518_v37, %v4493_v52  ;;  %5629 = vrot.lane.b32.xlu0 %v16714_v17, %s14602_s26  ;;  %v12201_v38 = vpop.f32.mrb[82].mxu0  ;;  %v13146_v36 = vpack.c.bf16 %v16710_v55, %v16714_v17 }
0x190c   :  { %v16728_v21 = vadd.f32 %v12201_v38, %v5012_v30  ;;  %12179 = vmatprep.mubr.msk.f32.mxu1 %vm270_vm1, %v4526_v54  ;;  %v5157_v15 = vpop.f32.mrb[83].mxu0 }
0x190d   :  { %v16731_v7 = vadd.f32 %v5157_v15, %v5012_v30  ;;  %12180 = vmatmul.mubr.msk.f32.gmra.mrb[98].mxu1 %vm270_vm1, %v4527_v35  ;;  %v19290_v15 = vld [vmem:[#allocation14_spill] sm:$0xff] }
0x190e   :  { %13145 = vmatpush3.bf16.xpose.msk.msra.mxu1 %vm15031_vm3, %v13140_v50  ;;  %5635 = vrot.lane.b32.xlu1 %v16728_v21, %s14602_s26 }
0x190f   :  { %12230 = vmatprep.mubr.msk.f32.mxu1 %vm917_vm2, %v16687_v0  ;;  %13148 = vmatprep.subr.msk.bf16.mxu1 %vm15031_vm3, %v13146_v36  ;;  %v13152_v44 = vpack.c.bf16 %v16728_v21, %v16731_v7 }
0x1910   :  { %5633 = vrot.lane.b32.xlu0 %v16731_v7, %s14602_s26 }
0x1916   :  { %13151 = vmatpush3.bf16.xpose.msk.msra.mxu1 %vm15031_vm3, %v13146_v36 }
0x1917   :  { %13154 = vmatprep.subr.msk.bf16.mxu1 %vm15031_vm3, %v13152_v44 }
0x191e   :  { %13157 = vmatpush3.bf16.xpose.msk.msra.mxu1 %vm15031_vm3, %v13152_v44 }
0x1925   :  { %12231 = vmatmul.mubr.msk.f32.vlgmr.msra.gmra.mrb[100].mxu1 %vm917_vm2, %v16684_v63 }
0x1926   :  { %12233 = vmatprep.mubr.msk.f32.mxu1 %vm917_vm2, %v16698_v18 }
0x1929   :  { %12234 = vmatmul.mubr.msk.f32.gmra.mrb[102].mxu1 %vm917_vm2, %v16696_v6 }
0x192a   :  { %12236 = vmatprep.mubr.msk.f32.mxu1 %vm917_vm2, %v16714_v17 }
0x192d   :  { %12237 = vmatmul.mubr.msk.f32.gmra.mrb[104].mxu1 %vm917_vm2, %v16710_v55 }
0x192e   :  { %12239 = vmatprep.mubr.msk.f32.mxu1 %vm917_vm2, %v16731_v7 }
0x1931   :  { %12240 = vmatmul.mubr.msk.f32.gmra.mrb[106].mxu1 %vm917_vm2, %v16728_v21 }
0x1974   :  { %v5624_v39 = vpop.permute.xlu1 %5623 }
0x1975   :  { %v5622_v19 = vpop.permute.xlu0 %5621 }
0x1976   :  { %v13174_v30 = vpack.c.bf16 %v5624_v39, %v5622_v19  ;;  %12286 = vmatprep.mubr.msk.f32.mxu1 %vm917_vm2, %v5622_v19 }
0x1978   :  { %v5628_v2 = vpop.permute.xlu1 %5627  ;;  %13176 = vmatprep.subr.msk.bf16.mxu1 %vm15031_vm3, %v13174_v30 }
0x1979   :  { %13179 = vmatpush3.bf16.xpose.msk.msra.mxu1 %vm15031_vm3, %v13174_v30  ;;  %v5626_v48 = vpop.permute.xlu0 %5625 }
0x197a   :  { %v13180_v23 = vpack.c.bf16 %v5628_v2, %v5626_v48 }
0x197c   :  { %13182 = vmatprep.subr.msk.bf16.mxu1 %vm15031_vm3, %v13180_v23  ;;  %v5632_v9 = vpop.permute.xlu1 %5631 }
0x197d   :  { %v5630_v26 = vpop.permute.xlu0 %5629 }
0x197e   :  { %v13186_v14 = vpack.c.bf16 %v5632_v9, %v5630_v26 }
0x1980   :  { %v5636_v33 = vpop.permute.xlu1 %5635 }
0x1981   :  { %13185 = vmatpush3.bf16.xpose.msk.msra.mxu1 %vm15031_vm3, %v13180_v23 }
0x1982   :  { %13188 = vmatprep.subr.msk.bf16.mxu1 %vm15031_vm3, %v13186_v14  ;;  %v5634_v47 = vpop.permute.xlu0 %5633 }
0x1983   :  { %v13192_v1 = vpack.c.bf16 %v5636_v33, %v5634_v47 }
0x1989   :  { %13191 = vmatpush3.bf16.xpose.msk.msra.mxu1 %vm15031_vm3, %v13186_v14  ;;  %v19294_v14 = vld [vmem:[#allocation16_spill] sm:$0xff] }
0x198a   :  { %13194 = vmatprep.subr.msk.bf16.mxu1 %vm15031_vm3, %v13192_v1 }
0x1991   :  { %13197 = vmatpush3.bf16.xpose.msk.msra.mxu1 %vm15031_vm3, %v13192_v1 }
0x1998   :  { %12287 = vmatmul.mubr.msk.f32.vlgmr.msra.gmra.mrb[108].mxu1 %vm917_vm2, %v5624_v39  ;;  %v19291_v39 = vld [vmem:[#allocation15_spill] sm:$0xff] }
0x1999   :  { %12289 = vmatprep.mubr.msk.f32.mxu1 %vm917_vm2, %v5626_v48 }
0x199c   :  { %12290 = vmatmul.mubr.msk.f32.gmra.mrb[110].mxu1 %vm917_vm2, %v5628_v2 }
0x199d   :  { %12292 = vmatprep.mubr.msk.f32.mxu1 %vm917_vm2, %v5630_v26 }
0x19a0   :  { %12293 = vmatmul.mubr.msk.f32.gmra.mrb[112].mxu1 %vm917_vm2, %v5632_v9 }
0x19a1   :  { %12295 = vmatprep.mubr.msk.f32.mxu1 %vm917_vm2, %v5634_v47  ;;  %v19295_v47 = vld [vmem:[#allocation17_spill] sm:$0xff] }
0x19a4   :  { %12296 = vmatmul.mubr.msk.f32.gmra.mrb[114].mxu1 %vm917_vm2, %v5636_v33 }
0x19bc   :  { %v12172_v8 = vpop.f32.mrb[92].mxu1 }
0x19bd   :  { %v4742_v28 = vadd.f32 %v12172_v8, %v19282_v32  ;;  %v4694_v10 = vpop.f32.mrb[93].mxu1 }
0x19be   :  { %v4741_v24 = vadd.f32 %v4694_v10, %v19283_v11 }
0x19bf   :  { %v16795_v49 = vadd.f32 %v16432_v57, %v4742_v28 }
0x19c0   :  { %v16798_v42 = vadd.f32 %v16432_v57, %v4741_v24 }
0x19c1   :  { %19284 = vst [vmem:[#allocation19_spill] sm:$0xff] %v16795_v49  ;;  %v4795_v50 = vsel %vm270_vm1, %v16795_v49, 0.0 }
0x19c2   :  { %19285 = vst [vmem:[#allocation20_spill] sm:$0xff] %v16798_v42  ;;  %4796 = vadd.xlane.f32.xlu1 %v4795_v50  ;;  %v4792_v5 = vsel %vm270_vm1, %v16798_v42, 0.0 }
0x19c3   :  { %4793 = vadd.xlane.f32.xlu0 %v4792_v5 }
0x19c8   :  { %v12175_v13 = vpop.f32.mrb[94].mxu1 }
0x19c9   :  { %v4704_v22 = vpop.f32.mrb[95].mxu1  ;;  %v4744_v53 = vadd.f32 %v12175_v13, %v19286_v59 }
0x19ca   :  { %v4743_v37 = vadd.f32 %v4704_v22, %v19287_v61 }
0x19cb   :  { %v16810_v27 = vadd.f32 %v16432_v57, %v4744_v53 }
0x19cc   :  { %v16807_v52 = vadd.f32 %v16432_v57, %v4743_v37 }
0x19cd   :  { %19289 = vst [vmem:[#allocation31_spill] sm:$0xff] %v16810_v27  ;;  %v4801_v38 = vsel %vm270_vm1, %v16810_v27, 0.0 }
0x19ce   :  { %19288 = vst [vmem:[#allocation32_spill] sm:$0xff] %v16807_v52  ;;  %v4798_v54 = vsel %vm270_vm1, %v16807_v52, 0.0 }
0x19cf   :  { %4799 = vadd.xlane.f32.xlu0 %v4798_v54 }
0x19d3   :  { %4802 = vadd.xlane.f32.xlu0 %v4801_v38 }
0x19d4   :  { %v12178_v35 = vpop.f32.mrb[96].mxu1 }
0x19d5   :  { %v4746_v36 = vadd.f32 %v12178_v35, %v19290_v15  ;;  %v4714_v44 = vpop.f32.mrb[97].mxu1 }
0x19d6   :  { %v4745_v19 = vadd.f32 %v4714_v44, %v19291_v39 }
0x19d7   :  { %v16819_v30 = vadd.f32 %v16432_v57, %v4746_v36 }
0x19d8   :  { %v16822_v2 = vadd.f32 %v16432_v57, %v4745_v19 }
0x19d9   :  { %19292 = vst [vmem:[#allocation34_spill] sm:$0xff] %v16819_v30  ;;  %v4807_v48 = vsel %vm270_vm1, %v16819_v30, 0.0 }
0x19da   :  { %19293 = vst [vmem:[#allocation33_spill] sm:$0xff] %v16822_v2  ;;  %4808 = vadd.xlane.f32.xlu1 %v4807_v48  ;;  %v4804_v23 = vsel %vm270_vm1, %v16822_v2, 0.0 }
0x19db   :  { %4805 = vadd.xlane.f32.xlu0 %v4804_v23 }
0x19e0   :  { %v12181_v9 = vpop.f32.mrb[98].mxu1 }
0x19e1   :  { %v4724_v26 = vpop.f32.mrb[99].mxu1  ;;  %v4748_v33 = vadd.f32 %v12181_v9, %v19294_v14 }
0x19e2   :  { %v4747_v1 = vadd.f32 %v4724_v26, %v19295_v47 }
0x19e3   :  { %v16834_v32 = vadd.f32 %v16432_v57, %v4748_v33 }
0x19e4   :  { %v16831_v8 = vadd.f32 %v16432_v57, %v4747_v1 }
0x19e5   :  { %19297 = vst [vmem:[#allocation35_spill] sm:$0xff] %v16834_v32  ;;  %v4813_v10 = vsel %vm270_vm1, %v16834_v32, 0.0 }
0x19e6   :  { %19296 = vst [vmem:[#allocation36_spill] sm:$0xff] %v16831_v8  ;;  %v4810_v28 = vsel %vm270_vm1, %v16831_v8, 0.0 }
0x19e7   :  { %4811 = vadd.xlane.f32.xlu1 %v4810_v28 }
0x19eb   :  { %4814 = vadd.xlane.f32.xlu1 %v4813_v10 }
0x19f8   :  { %v16840_v11 = vpop.f32.mrb[100].mxu1 }
0x19f9   :  { %v16842_v24 = vpop.f32.mrb[101].mxu1 }
0x19fc   :  { %v16844_v50 = vpop.f32.mrb[102].mxu1 }
0x19fd   :  { %v16846_v5 = vpop.f32.mrb[103].mxu1 }
0x1a00   :  { %v16848_v13 = vpop.f32.mrb[104].mxu1 }
0x1a01   :  { %v16850_v57 = vpop.f32.mrb[105].mxu1 }
0x1a04   :  { %v16852_v22 = vpop.f32.mrb[106].mxu1 }
0x1a05   :  { %v16854_v59 = vpop.f32.mrb[107].mxu1 }
0x1a4f   :  { %v4797_v53 = vpop.xlane.xlu1 %4796 }
0x1a50   :  { %v4825_v61 = vmul.f32 0.03125, %v4797_v53  ;;  %v4794_v37 = vpop.xlane.xlu0 %4793 }
0x1a51   :  { %v4824_v54 = vmul.f32 0.03125, %v4794_v37 }
0x1a52   :  { %v16857_v38 = vsub.f32 %v16795_v49, %v4825_v61 }
0x1a53   :  { %v16860_v35 = vsub.f32 %v16798_v42, %v4824_v54 }
0x1a54   :  { %v4857_v15 = vmul.f32 %v16857_v38, %v16857_v38 }
0x1a55   :  { %v4856_v36 = vmul.f32 %v16860_v35, %v16860_v35 }
0x1a56   :  { %v4891_v44 = vsel %vm270_vm1, %v4857_v15, 0.0 }
0x1a57   :  { %4892 = vadd.xlane.f32.xlu1 %v4891_v44  ;;  %v4888_v39 = vsel %vm270_vm1, %v4856_v36, 0.0 }
0x1a58   :  { %4889 = vadd.xlane.f32.xlu0 %v4888_v39 }
0x1a5c   :  { %v4800_v19 = vpop.xlane.xlu0 %4799 }
0x1a5d   :  { %v4826_v48 = vmul.f32 0.03125, %v4800_v19 }
0x1a5f   :  { %v16869_v23 = vsub.f32 %v16807_v52, %v4826_v48  ;;  %v5338_v52 = vmul.f32 %v16844_v50, %v15233_v40 }
0x1a60   :  { %v4803_v9 = vpop.xlane.xlu0 %4802 }
0x1a61   :  { %v4827_v26 = vmul.f32 0.03125, %v4803_v9  ;;  %v4858_v14 = vmul.f32 %v16869_v23, %v16869_v23  ;;  %v16979_v49 = vsel %vm56_vm0, %v5338_v52, 0.0 }
0x1a63   :  { %v16874_v33 = vsub.f32 %v16810_v27, %v4827_v26  ;;  %v4894_v47 = vsel %vm270_vm1, %v4858_v14, 0.0  ;;  %v5339_v27 = vmul.f32 %v15255_v60, %v16850_v57 }
0x1a64   :  { %4895 = vadd.xlane.f32.xlu0 %v4894_v47 }
0x1a65   :  { %v4859_v1 = vmul.f32 %v16874_v33, %v16874_v33  ;;  %v16982_v58 = vsel %vm56_vm0, %v5339_v27, 0.0 }
0x1a67   :  { %v4809_v28 = vpop.xlane.xlu1 %4808  ;;  %v4897_v10 = vsel %vm270_vm1, %v4859_v1, 0.0 }
0x1a68   :  { %v4829_v53 = vmul.f32 0.03125, %v4809_v28  ;;  %4898 = vadd.xlane.f32.xlu1 %v4897_v10  ;;  %v4806_v61 = vpop.xlane.xlu0 %4805 }
0x1a69   :  { %v4828_v37 = vmul.f32 0.03125, %v4806_v61 }
0x1a6a   :  { %v16881_v54 = vsub.f32 %v16819_v30, %v4829_v53 }
0x1a6b   :  { %v16884_v15 = vsub.f32 %v16822_v2, %v4828_v37  ;;  %v16886_v36 = vpop.f32.mrb[108].mxu1 }
0x1a6c   :  { %v16888_v44 = vpop.f32.mrb[109].mxu1  ;;  %v4861_v39 = vmul.f32 %v16881_v54, %v16881_v54  ;;  %v5759_v52 = vmul.f32 %v16886_v36, %v15217_v29 }
0x1a6d   :  { %v4860_v19 = vmul.f32 %v16884_v15, %v16884_v15  ;;  %v5758_v34 = vmul.f32 %v15220_v51, %v16888_v44 }
0x1a6e   :  { %v4903_v48 = vsel %vm270_vm1, %v4861_v39, 0.0 }
0x1a6f   :  { %v16895_v9 = vpop.f32.mrb[110].mxu1  ;;  %4904 = vadd.xlane.f32.xlu1 %v4903_v48  ;;  %v4900_v26 = vsel %vm270_vm1, %v4860_v19, 0.0  ;;  %v17004_v12 = vsel %vm56_vm0, %v5758_v34, 0.0 }
0x1a70   :  { %v16898_v14 = vpop.f32.mrb[111].mxu1  ;;  %4901 = vadd.xlane.f32.xlu0 %v4900_v26 }
0x1a73   :  { %v16900_v47 = vpop.f32.mrb[112].mxu1 }
0x1a74   :  { %v4812_v1 = vpop.xlane.xlu1 %4811  ;;  %v16902_v28 = vpop.f32.mrb[113].mxu1 }
0x1a75   :  { %v4830_v10 = vmul.f32 0.03125, %v4812_v1 }
0x1a77   :  { %v16905_v53 = vsub.f32 %v16831_v8, %v4830_v10  ;;  %v16907_v61 = vpop.f32.mrb[114].mxu1  ;;  %v16922_v8 = vpack.i.bf16 %v16684_v63, %v16687_v0 }
0x1a78   :  { %v4815_v37 = vpop.xlane.xlu1 %4814  ;;  %v16909_v39 = vpop.f32.mrb[115].mxu1 }
0x1a79   :  { %v4831_v48 = vmul.f32 0.03125, %v4815_v37  ;;  %v4862_v19 = vmul.f32 %v16905_v53, %v16905_v53  ;;  %19298 = vst [vmem:[#allocation38_spill] sm:$0xff] %v16922_v8  ;;  %v16926_v37 = vpack.i.bf16 %v16696_v6, %v16698_v18 }
0x1a7b   :  { %v16914_v26 = vsub.f32 %v16834_v32, %v4831_v48  ;;  %v4906_v2 = vsel %vm270_vm1, %v4862_v19, 0.0  ;;  %v16942_v48 = vpack.i.bf16 %v16728_v21, %v16731_v7  ;;  %v5336_v19 = vmul.f32 %v16840_v11, %v15217_v29 }
0x1a7c   :  { %4907 = vadd.xlane.f32.xlu0 %v4906_v2  ;;  %v16934_v2 = vpack.i.bf16 %v16710_v55, %v16714_v17  ;;  %v5337_v32 = vmul.f32 %v15237_v45, %v16846_v5 }
0x1a7d   :  { %v4863_v1 = vmul.f32 %v16914_v26, %v16914_v26  ;;  %19300 = vst [vmem:[#allocation2_spill] sm:$0xff] %v16942_v48 }
0x1a7e   :  { %19299 = vst [vmem:[#allocation37_spill] sm:$0xff] %v16934_v2  ;;  %v16971_v42 = vsel %vm56_vm0, %v5337_v32, 0.0  ;;  %v5342_v32 = vmul.f32 %v16852_v22, %v15267_v56 }
0x1a7f   :  { %v4909_v10 = vsel %vm270_vm1, %v4863_v1, 0.0  ;;  %v5335_v1 = vmul.f32 %v15220_v51, %v16842_v24 }
0x1a80   :  { %4910 = vadd.xlane.f32.xlu1 %v4909_v10  ;;  %v16957_v10 = vsel %vm56_vm0, %v5336_v19, 0.0  ;;  %v5340_v19 = vmul.f32 %v16848_v13, %v15251_v25  ;;  %v17001_v27 = vsel %vm56_vm0, %v5342_v32, 0.0 }
0x1a81   :  { %v16963_v30 = vsel %vm56_vm0, %v5335_v1, 0.0  ;;  %v5341_v1 = vmul.f32 %v15271_v31, %v16854_v59 }
0x1a82   :  { %v16991_v41 = vsel %vm56_vm0, %v5340_v19, 0.0  ;;  %v17009_v19 = vsel %vm56_vm0, %v5759_v52, 0.0 }
0x1a83   :  { %v16994_v3 = vsel %vm56_vm0, %v5341_v1, 0.0 }
0x1a91   :  { %13712 = vrot.lane.b32.xlu1 %v16922_v8, %s14601_s19 }
0x1a92   :  { %13717 = vrot.lane.b32.xlu0 %v16926_v37, %s14601_s19 }
0x1a95   :  { %13722 = vrot.lane.b32.xlu1 %v16934_v2, %s14601_s19 }
0x1a96   :  { %13732 = vrot.lane.b32.xlu0 %v16926_v37, %s14603_s27 }
0x1a99   :  { %13727 = vrot.lane.b32.xlu1 %v16922_v8, %s14603_s27 }
0x1a9a   :  { %13742 = vrot.lane.b32.xlu0 %v16942_v48, %s14601_s19 }
0x1a9d   :  { %13737 = vrot.lane.b32.xlu1 %v16934_v2, %s14603_s27 }
0x1aa1   :  { %13747 = vrot.lane.b32.xlu1 %v16942_v48, %s14603_s27 }
0x1ab9   :  { %5347 = vadd.xlane.f32.xlu0 %v16957_v10 }
0x1abd   :  { %5344 = vadd.xlane.f32.xlu0 %v16963_v30 }
0x1ac1   :  { %5350 = vadd.xlane.f32.xlu0 %v16971_v42 }
0x1ac5   :  { %5353 = vadd.xlane.f32.xlu1 %v16979_v49  ;;  %5356 = vadd.xlane.f32.xlu0 %v16982_v58 }
0x1ac9   :  { %5359 = vadd.xlane.f32.xlu1 %v16991_v41  ;;  %5362 = vadd.xlane.f32.xlu0 %v16994_v3 }
0x1acd   :  { %5365 = vadd.xlane.f32.xlu1 %v17001_v27  ;;  %5767 = vadd.xlane.f32.xlu0 %v17004_v12 }
0x1ad1   :  { %5770 = vadd.xlane.f32.xlu1 %v17009_v19 }
0x1ae2   :  { %6046 = vrot.lane.b32.xlu1 %v16684_v63, %s14605_s28 }
0x1ae3   :  { %6044 = vrot.lane.b32.xlu0 %v16687_v0, %s14605_s28 }
0x1ae4   :  { %v4893_v1 = vpop.xlane.xlu1 %4892 }
0x1ae5   :  { %v4921_v32 = vmul.f32 0.03125, %v4893_v1  ;;  %v4890_v4 = vpop.xlane.xlu0 %4889 }
0x1ae6   :  { %v4920_v34 = vmul.f32 0.03125, %v4890_v4 }
0x1ae7   :  { %v4937_v16 = vadd.f32 1e-05, %v4921_v32 }
0x1ae8   :  { %v4936_v43 = vadd.f32 1e-05, %v4920_v34 }
0x1ae9   :  { %14211 = vrsqrt.f32 %v4937_v16 }
0x1aea   :  { %14213 = vrsqrt.f32 %v4936_v43 }
0x1af1   :  { %v4896_v51 = vpop.xlane.xlu0 %4895 }
0x1af2   :  { %v4922_v29 = vmul.f32 0.03125, %v4896_v51 }
0x1af3   :  { %v14212_v52 = vpop.eup %14211 }
0x1af4   :  { %v14214_v20 = vpop.eup %14213  ;;  %v4938_v48 = vadd.f32 1e-05, %v4922_v29  ;;  %v4969_v2 = vmul.f32 %v14212_v52, %v16857_v38 }
0x1af5   :  { %v4899_v8 = vpop.xlane.xlu1 %4898  ;;  %v4968_v63 = vmul.f32 %v14214_v20, %v16860_v35  ;;  %v5760_v20 = vmul.f32 %v15237_v45, %v16898_v14 }
0x1af6   :  { %14215 = vrsqrt.f32 %v4938_v48  ;;  %v4923_v0 = vmul.f32 0.03125, %v4899_v8  ;;  %v4985_v1 = vmul.f32 %v4969_v2, %v16578_v62  ;;  %v5762_v48 = vmul.f32 %v15255_v60, %v16902_v28 }
0x1af7   :  { %v4984_v4 = vmul.f32 %v4968_v63, %v16578_v62  ;;  %v5761_v63 = vmul.f32 %v16895_v9, %v15233_v40  ;;  %v17031_v34 = vsel %vm56_vm0, %v5760_v20, 0.0 }
0x1af8   :  { %v4939_v32 = vadd.f32 1e-05, %v4923_v0  ;;  %v5001_v51 = vadd.f32 %v4985_v1, %v16586_v46 }
0x1af9   :  { %v5000_v16 = vadd.f32 %v4984_v4, %v16586_v46 }
0x1afa   :  { %14217 = vrsqrt.f32 %v4939_v32  ;;  %v5763_v32 = vmul.f32 %v16900_v47, %v15251_v25 }
0x1afb   :  { %12202 = vmatprep.mubr.msk.f32.mxu0 %vm270_vm1, %v5000_v16  ;;  %v17039_v16 = vsel %vm56_vm0, %v5761_v63, 0.0 }
0x1afc   :  { %v4905_v29 = vpop.xlane.xlu1 %4904  ;;  %12203 = vmatmul.mubr.msk.f32.gmra.mrb[84].mxu0 %vm270_vm1, %v5001_v51  ;;  %v5764_v51 = vmul.f32 %v15271_v31, %v16909_v39 }
0x1afd   :  { %v4925_v43 = vmul.f32 0.03125, %v4905_v29  ;;  %v4902_v8 = vpop.xlane.xlu0 %4901  ;;  %v17044_v29 = vsel %vm56_vm0, %v5762_v48, 0.0 }
0x1afe   :  { %v4924_v38 = vmul.f32 0.03125, %v4902_v8  ;;  %v5765_v8 = vmul.f32 %v16907_v61, %v15267_v56 }
0x1aff   :  { %v4941_v35 = vadd.f32 1e-05, %v4925_v43 }
0x1b00   :  { %v14216_v2 = vpop.eup %14215  ;;  %v4940_v0 = vadd.f32 1e-05, %v4924_v38 }
0x1b01   :  { %14219 = vrsqrt.f32 %v4941_v35  ;;  %v4970_v52 = vmul.f32 %v14216_v2, %v16869_v23  ;;  %v17055_v35 = vsel %vm56_vm0, %v5763_v32, 0.0  ;;  %v17058_v2 = vsel %vm56_vm0, %v5764_v51, 0.0 }
0x1b02   :  { %14221 = vrsqrt.f32 %v4940_v0  ;;  %5773 = vadd.xlane.f32.xlu0 %v17031_v34 }
0x1b03   :  { %v4986_v1 = vmul.f32 %v4970_v52, %v16578_v62 }
0x1b04   :  { %v14218_v4 = vpop.eup %14217 }
0x1b05   :  { %v5002_v23 = vadd.f32 %v4986_v1, %v16586_v46  ;;  %v4971_v20 = vmul.f32 %v14218_v4, %v16874_v33 }
0x1b06   :  { %5776 = vadd.xlane.f32.xlu1 %v17039_v16  ;;  %5779 = vadd.xlane.f32.xlu0 %v17044_v29 }
0x1b07   :  { %12205 = vmatprep.mubr.msk.f32.mxu0 %vm270_vm1, %v5002_v23  ;;  %v4987_v43 = vmul.f32 %v4971_v20, %v16578_v62  ;;  %v17066_v23 = vsel %vm56_vm0, %v5765_v8, 0.0 }
0x1b09   :  { %v4908_v38 = vpop.xlane.xlu0 %4907  ;;  %v5003_v33 = vadd.f32 %v4987_v43, %v16586_v46 }
0x1b0a   :  { %v4926_v63 = vmul.f32 0.03125, %v4908_v38  ;;  %5782 = vadd.xlane.f32.xlu1 %v17055_v35  ;;  %5785 = vadd.xlane.f32.xlu0 %v17058_v2 }
0x1b0b   :  { %v14220_v0 = vpop.eup %14219  ;;  %12206 = vmatmul.mubr.msk.f32.gmra.mrb[86].mxu0 %vm270_vm1, %v5003_v33 }
0x1b0c   :  { %v14222_v48 = vpop.eup %14221  ;;  %v4942_v52 = vadd.f32 1e-05, %v4926_v63  ;;  %v4973_v1 = vmul.f32 %v14220_v0, %v16881_v54 }
0x1b0d   :  { %v4911_v4 = vpop.xlane.xlu1 %4910  ;;  %v13718_v32 = vpop.permute.xlu0 %13717  ;;  %v4972_v51 = vmul.f32 %v14222_v48, %v16884_v15 }
0x1b0e   :  { %14223 = vrsqrt.f32 %v4942_v52  ;;  %v4927_v20 = vmul.f32 0.03125, %v4911_v4  ;;  %5788 = vadd.xlane.f32.xlu1 %v17066_v23  ;;  %v4989_v38 = vmul.f32 %v4973_v1, %v16578_v62  ;;  %v13720_v31 = vunpack.i.h.bf16 %v13718_v32 }
0x1b0f   :  { %v4988_v43 = vmul.f32 %v4972_v51, %v16578_v62  ;;  %v13719_v63 = vunpack.i.l.bf16 %v13718_v32 }
0x1b10   :  { %v4943_v33 = vadd.f32 1e-05, %v4927_v20  ;;  %v5005_v15 = vadd.f32 %v4989_v38, %v16586_v46 }
0x1b11   :  { %v13713_v56 = vpop.permute.xlu1 %13712  ;;  %v17072_v54 = vpop.permute.xlu0 %13732  ;;  %v5004_v0 = vadd.f32 %v4988_v43, %v16586_v46  ;;  %v13162_v32 = vpack.c.bf16 %v13720_v31, %v13719_v63  ;;  %v5367_v43 = vadd.f32 %v16957_v10, %v16963_v30 }
0x1b12   :  { %14225 = vrsqrt.f32 %v4943_v33  ;;  %v13715_v8 = vunpack.i.h.bf16 %v13713_v56  ;;  %v13714_v60 = vunpack.i.l.bf16 %v13713_v56 }
0x1b13   :  { %12208 = vmatprep.mubr.msk.f32.mxu0 %vm270_vm1, %v5004_v0 }
0x1b14   :  { %12209 = vmatmul.mubr.msk.f32.gmra.mrb[88].mxu0 %vm270_vm1, %v5005_v15  ;;  %v13158_v48 = vpack.c.bf16 %v13715_v8, %v13714_v60  ;;  %v5368_v15 = vadd.f32 %v5367_v43, %v16971_v42 }
0x1b15   :  { %v13723_v52 = vpop.permute.xlu1 %13722  ;;  %v13743_v51 = vpop.permute.xlu0 %13742 }
0x1b16   :  { %v13725_v1 = vunpack.i.h.bf16 %v13723_v52  ;;  %v13724_v4 = vunpack.i.l.bf16 %v13723_v52  ;;  %13159 = vmatprep.subr.bf16.mxu0 %v13158_v48  ;;  %v13745_v38 = vunpack.i.h.bf16 %v13743_v51  ;;  %v13744_v33 = vunpack.i.l.bf16 %v13743_v51 }
0x1b17   :  { %13161 = vmatpush3.bf16.msra.mxu0 %v13158_v48  ;;  %v5369_v30 = vadd.f32 %v5368_v15, %v16979_v49 }
0x1b18   :  { %v14224_v20 = vpop.eup %14223  ;;  %13163 = vmatprep.subr.bf16.mxu0 %v13162_v32  ;;  %v13166_v0 = vpack.c.bf16 %v13725_v1, %v13724_v4  ;;  %v13170_v48 = vpack.c.bf16 %v13745_v38, %v13744_v33 }
0x1b19   :  { %v4974_v56 = vmul.f32 %v14224_v20, %v16905_v53  ;;  %v13728_v52 = vpop.permute.xlu1 %13727  ;;  %v5370_v4 = vadd.f32 %v5369_v30, %v16982_v58 }
0x1b1a   :  { %v13730_v10 = vunpack.i.h.bf16 %v13728_v52  ;;  %v13729_v53 = vunpack.i.l.bf16 %v13728_v52 }
0x1b1b   :  { %13165 = vmatpush3.bf16.msra.mxu0 %v13162_v32  ;;  %v4990_v60 = vmul.f32 %v4974_v56, %v16578_v62  ;;  %v5371_v49 = vadd.f32 %v5370_v4, %v16991_v41 }
0x1b1c   :  { %v14226_v8 = vpop.eup %14225  ;;  %13167 = vmatprep.subr.bf16.mxu0 %v13166_v0  ;;  %v17091_v32 = vpack.c.bf16 %v13730_v10, %v13729_v53 }
0x1b1d   :  { %v5006_v31 = vadd.f32 %v4990_v60, %v16586_v46  ;;  %v4975_v63 = vmul.f32 %v14226_v8, %v16914_v26  ;;  %v5372_v26 = vadd.f32 %v5371_v49, %v16994_v3 }
0x1b1f   :  { %12211 = vmatprep.mubr.msk.f32.mxu0 %vm270_vm1, %v5006_v31  ;;  %13169 = vmatpush3.bf16.msra.mxu0 %v13166_v0  ;;  %v4991_v42 = vmul.f32 %v4975_v63, %v16578_v62  ;;  %v5373_v51 = vadd.f32 %v5372_v26, %v17001_v27  ;;  %v5790_v62 = vadd.f32 %v17009_v19, %v17004_v12  ;;  %v5381_v27 = vmul.f32 2.0, %v16840_v11 }
0x1b20   :  { %13171 = vmatprep.subr.bf16.mxu0 %v13170_v48 }
0x1b21   :  { %v5007_v1 = vadd.f32 %v4991_v42, %v16586_v46  ;;  %v5374_v20 = vrot.slane %v5373_v51, 4  ;;  %v5791_v46 = vadd.f32 %v5790_v62, %v17031_v34  ;;  %v17106_v34 = vpop.permute.xlu1 %13737  ;;  %v5383_v42 = vmul.f32 2.0, %v16844_v50 }
0x1b23   :  { %12212 = vmatmul.mubr.msk.f32.gmra.mrb[90].mxu0 %vm270_vm1, %v5007_v1  ;;  %v5375_v58 = vadd.f32 %v5374_v20, %v5373_v51  ;;  %v5792_v43 = vadd.f32 %v5791_v46, %v17039_v16  ;;  %v5380_v16 = vmul.f32 2.0, %v16842_v24  ;;  %v5384_v24 = vmul.f32 2.0, %v16850_v57 }
0x1b24   :  { %13173 = vmatpush3.bf16.msra.mxu0 %v13170_v48  ;;  %v5385_v46 = vmul.f32 2.0, %v16848_v13 }
0x1b25   :  { %13199 = vmatprep.subr.bf16.mxu0 %v17091_v32  ;;  %v5376_v56 = vrot.slane %v5375_v58, 2  ;;  %v5793_v38 = vadd.f32 %v5792_v43, %v17044_v29  ;;  %v17110_v30 = vpop.permute.xlu1 %13747 }
0x1b27   :  { %v5377_v33 = vadd.f32 %v5376_v56, %v5375_v58  ;;  %v5794_v0 = vadd.f32 %v5793_v38, %v17055_v35  ;;  %v5382_v35 = vmul.f32 2.0, %v16846_v5 }
0x1b29   :  { %v5378_v41 = vrot.slane %v5377_v33, 1  ;;  %v5795_v3 = vadd.f32 %v5794_v0, %v17058_v2 }
0x1b2b   :  { %v5379_v60 = vadd.f32 %v5378_v41, %v5377_v33  ;;  %v5796_v12 = vadd.f32 %v5795_v3, %v17066_v23  ;;  %v5386_v33 = vmul.f32 2.0, %v16854_v59  ;;  %v5387_v41 = vmul.f32 2.0, %v16852_v22 }
0x1b2d   :  { %v5797_v29 = vrot.slane %v5796_v12, 4 }
0x1b2f   :  { %v5798_v10 = vadd.f32 %v5797_v29, %v5796_v12 }
0x1b31   :  { %v5799_v51 = vrot.slane %v5798_v10, 2 }
0x1b33   :  { %v5800_v50 = vadd.f32 %v5799_v51, %v5798_v10 }
0x1b46   :  { %v5348_v15 = vpop.xlane.xlu0 %5347 }
0x1b47   :  { %v5389_v19 = vsub.f32 %v5381_v27, %v5348_v15 }
0x1b49   :  { %v5397_v8 = vsub.f32 %v5389_v19, %v5379_v60 }
0x1b4a   :  { %v5345_v52 = vpop.xlane.xlu0 %5344 }
0x1b4b   :  { %v5405_v31 = vmul.f32 0.35355338, %v5397_v8  ;;  %v5388_v63 = vsub.f32 %v5380_v16, %v5345_v52  ;;  %v5801_v52 = vrot.slane %v5800_v50, 1 }
0x1b4d   :  { %v5414_v48 = vmul.f32 1.442695, %v5405_v31  ;;  %v5396_v2 = vsub.f32 %v5388_v63, %v5379_v60  ;;  %v5804_v31 = vmul.f32 2.0, %v16886_v36 }
0x1b4e   :  { %v5351_v11 = vpop.xlane.xlu0 %5350 }
0x1b4f   :  { %14227 = vpow2.f32 %v5414_v48  ;;  %v5404_v23 = vmul.f32 0.35355338, %v5396_v2  ;;  %v5390_v53 = vsub.f32 %v5382_v35, %v5351_v11 }
0x1b51   :  { %v5412_v1 = vmul.f32 1.442695, %v5404_v23  ;;  %v5398_v4 = vsub.f32 %v5390_v53, %v5379_v60  ;;  %v17126_v23 = vadd.f32 %v5801_v52, %v5800_v50 }
0x1b52   :  { %v5354_v49 = vpop.xlane.xlu1 %5353  ;;  %v5357_v26 = vpop.xlane.xlu0 %5356 }
0x1b53   :  { %14229 = vpow2.f32 %v5412_v1  ;;  %v5391_v5 = vsub.f32 %v5383_v42, %v5354_v49  ;;  %v5392_v62 = vsub.f32 %v5384_v24, %v5357_v26  ;;  %v5406_v20 = vmul.f32 0.35355338, %v5398_v4 }
0x1b55   :  { %v5399_v58 = vsub.f32 %v5391_v5, %v5379_v60  ;;  %v5400_v43 = vsub.f32 %v5392_v62, %v5379_v60  ;;  %v5416_v3 = vmul.f32 1.442695, %v5406_v20 }
0x1b56   :  { %v5360_v56 = vpop.xlane.xlu1 %5359  ;;  %v5363_v38 = vpop.xlane.xlu0 %5362 }
0x1b57   :  { %v5407_v0 = vmul.f32 0.35355338, %v5399_v58  ;;  %v5393_v57 = vsub.f32 %v5385_v46, %v5360_v56  ;;  %v5408_v12 = vmul.f32 0.35355338, %v5400_v43  ;;  %v5394_v16 = vsub.f32 %v5386_v33, %v5363_v38 }
0x1b59   :  { %v17117_v27 = vpop.eup %14227  ;;  %v5418_v15 = vmul.f32 1.442695, %v5407_v0  ;;  %v5401_v19 = vsub.f32 %v5393_v57, %v5379_v60  ;;  %v5420_v63 = vmul.f32 1.442695, %v5408_v12  ;;  %v5402_v48 = vsub.f32 %v5394_v16, %v5379_v60 }
0x1b5a   :  { %v5366_v8 = vpop.xlane.xlu1 %5365  ;;  %v5431_v13 = vsel %vm56_vm0, %v17117_v27, 0.0 }
0x1b5b   :  { %14231 = vpow2.f32 %v5418_v15  ;;  %v5409_v29 = vmul.f32 0.35355338, %v5401_v19  ;;  %v5395_v59 = vsub.f32 %v5387_v41, %v5366_v8  ;;  %5432 = vadd.xlane.f32.xlu1 %v5431_v13  ;;  %v5410_v24 = vmul.f32 0.35355338, %v5402_v48  ;;  %v5768_v41 = vpop.xlane.xlu0 %5767 }
0x1b5c   :  { %14233 = vpow2.f32 %v5416_v3  ;;  %v5803_v3 = vmul.f32 2.0, %v16888_v44  ;;  %v5805_v19 = vmul.f32 2.0, %v16898_v14  ;;  %v5807_v44 = vmul.f32 2.0, %v16902_v28 }
0x1b5d   :  { %v17122_v22 = vpop.eup %14229  ;;  %v5422_v35 = vmul.f32 1.442695, %v5409_v29  ;;  %v5403_v2 = vsub.f32 %v5395_v59, %v5379_v60  ;;  %v5424_v49 = vmul.f32 1.442695, %v5410_v24  ;;  %v5806_v29 = vmul.f32 2.0, %v16895_v9 }
0x1b5e   :  { %v5771_v11 = vpop.xlane.xlu1 %5770  ;;  %v5428_v10 = vsel %vm56_vm0, %v17122_v22, 0.0  ;;  %v5811_v15 = vsub.f32 %v5803_v3, %v5768_v41 }
0x1b5f   :  { %14235 = vpow2.f32 %v5422_v35  ;;  %v5411_v53 = vmul.f32 0.35355338, %v5403_v2  ;;  %v5812_v42 = vsub.f32 %v5804_v31, %v5771_v11  ;;  %5429 = vadd.xlane.f32.xlu0 %v5428_v10  ;;  %v17164_v12 = vpop.permute.xlu0 %6044  ;;  %v5808_v2 = vmul.f32 2.0, %v16900_v47 }
0x1b60   :  { %14237 = vpow2.f32 %v5420_v63  ;;  %v5819_v16 = vsub.f32 %v5811_v15, %v17126_v23 }
0x1b61   :  { %v5426_v36 = vmul.f32 1.442695, %v5411_v53  ;;  %v5820_v1 = vsub.f32 %v5812_v42, %v17126_v23 }
0x1b62   :  { %v17168_v8 = vpop.permute.xlu1 %6046  ;;  %v5827_v59 = vmul.f32 0.35355338, %v5819_v16 }
0x1b63   :  { %14239 = vpow2.f32 %v5426_v36  ;;  %v5828_v60 = vmul.f32 0.35355338, %v5820_v1  ;;  %v5809_v36 = vmul.f32 2.0, %v16909_v39  ;;  %v5810_v1 = vmul.f32 2.0, %v16907_v61 }
0x1b64   :  { %14241 = vpow2.f32 %v5424_v49  ;;  %v5835_v11 = vmul.f32 1.442695, %v5827_v59 }
0x1b65   :  { %v17129_v4 = vpop.eup %14231  ;;  %v5837_v62 = vmul.f32 1.442695, %v5828_v60 }
0x1b66   :  { %v17131_v26 = vpop.eup %14233  ;;  %v5437_v51 = vsel %vm56_vm0, %v17129_v4, 0.0 }
0x1b67   :  { %5438 = vadd.xlane.f32.xlu0 %v5437_v51  ;;  %v5434_v46 = vsel %vm56_vm0, %v17131_v26, 0.0  ;;  %14243 = vpow2.f32 %v5837_v62 }
0x1b68   :  { %14245 = vpow2.f32 %v5835_v11 }
0x1b69   :  { %v17135_v5 = vpop.eup %14235 }
0x1b6a   :  { %v5443_v20 = vsel %vm56_vm0, %v17135_v5, 0.0  ;;  %v17141_v58 = vpop.eup %14237 }
0x1b6b   :  { %5444 = vadd.xlane.f32.xlu1 %v5443_v20  ;;  %5435 = vadd.xlane.f32.xlu0 %v5434_v46  ;;  %v5440_v43 = vsel %vm56_vm0, %v17141_v58, 0.0 }
0x1b6d   :  { %v17145_v56 = vpop.eup %14239 }
0x1b6e   :  { %v5449_v38 = vsel %vm56_vm0, %v17145_v56, 0.0  ;;  %v17149_v33 = vpop.eup %14241 }
0x1b6f   :  { %5441 = vadd.xlane.f32.xlu0 %v5440_v43  ;;  %v5446_v50 = vsel %vm56_vm0, %v17149_v33, 0.0 }
0x1b71   :  { %v17153_v0 = vpop.eup %14243 }
0x1b72   :  { %v5854_v57 = vsel %vm56_vm0, %v17153_v0, 0.0 }
0x1b73   :  { %5450 = vadd.xlane.f32.xlu0 %v5449_v38 }
0x1b77   :  { %5447 = vadd.xlane.f32.xlu0 %v5446_v50 }
0x1b7b   :  { %5855 = vadd.xlane.f32.xlu0 %v5854_v57 }
0x1b7c   :  { %6050 = vrot.lane.b32.xlu1 %v16696_v6, %s14605_s28 }
0x1b80   :  { %6052 = vrot.lane.b32.xlu1 %v16714_v17, %s14605_s28 }
0x1b84   :  { %6054 = vrot.lane.b32.xlu1 %v16710_v55, %s14605_s28 }
0x1b8f   :  { %v5774_v13 = vpop.xlane.xlu0 %5773 }
0x1b90   :  { %v5813_v52 = vsub.f32 %v5805_v19, %v5774_v13  ;;  %v17183_v19 = vpop.eup %14245 }
0x1b91   :  { %6048 = vrot.lane.b32.xlu0 %v16698_v18, %s14605_s28  ;;  %v5851_v13 = vsel %vm56_vm0, %v17183_v19, 0.0 }
0x1b92   :  { %v5821_v31 = vsub.f32 %v5813_v52, %v17126_v23 }
0x1b93   :  { %v5777_v63 = vpop.xlane.xlu1 %5776  ;;  %v5780_v35 = vpop.xlane.xlu0 %5779 }
0x1b94   :  { %v5814_v48 = vsub.f32 %v5806_v29, %v5777_v63  ;;  %v5815_v14 = vsub.f32 %v5807_v44, %v5780_v35  ;;  %v5829_v10 = vmul.f32 0.35355338, %v5821_v31 }
0x1b96   :  { %v5822_v53 = vsub.f32 %v5814_v48, %v17126_v23  ;;  %v5823_v28 = vsub.f32 %v5815_v14, %v17126_v23  ;;  %v5839_v60 = vmul.f32 1.442695, %v5829_v10  ;;  %v19301_v10 = vld [vmem:[#allocation38_spill] sm:$0xff] }
0x1b97   :  { %v5783_v42 = vpop.xlane.xlu1 %5782  ;;  %v5786_v24 = vpop.xlane.xlu0 %5785 }
0x1b98   :  { %v5816_v9 = vsub.f32 %v5808_v2, %v5783_v42  ;;  %v5830_v49 = vmul.f32 0.35355338, %v5822_v53  ;;  %v5817_v62 = vsub.f32 %v5809_v36, %v5786_v24  ;;  %v5831_v38 = vmul.f32 0.35355338, %v5823_v28  ;;  %v19302_v24 = vld [vmem:[#allocation37_spill] sm:$0xff]  ;;  %v19303_v36 = vld [vmem:[#allocation2_spill] sm:$0xff] }
0x1b99   :  { %14247 = vpow2.f32 %v5839_v60 }
0x1b9a   :  { %v5824_v51 = vsub.f32 %v5816_v9, %v17126_v23  ;;  %v5841_v43 = vmul.f32 1.442695, %v5830_v49  ;;  %v5825_v39 = vsub.f32 %v5817_v62, %v17126_v23  ;;  %v5843_v41 = vmul.f32 1.442695, %v5831_v38 }
0x1b9b   :  { %v5789_v47 = vpop.xlane.xlu1 %5788  ;;  %v13734_v38 = vunpack.i.l.bf16 %v17072_v54 }
0x1b9c   :  { %v5832_v20 = vmul.f32 0.35355338, %v5824_v51  ;;  %v5818_v46 = vsub.f32 %v5810_v1, %v5789_v47  ;;  %14249 = vpow2.f32 %v5841_v43  ;;  %v5833_v3 = vmul.f32 0.35355338, %v5825_v39 }
0x1b9d   :  { %v13735_v43 = vunpack.i.h.bf16 %v17072_v54 }
0x1b9e   :  { %v5845_v50 = vmul.f32 1.442695, %v5832_v20  ;;  %v5826_v57 = vsub.f32 %v5818_v46, %v17126_v23  ;;  %v5847_v16 = vmul.f32 1.442695, %v5833_v3  ;;  %v13740_v3 = vunpack.i.h.bf16 %v17106_v34 }
0x1ba0   :  { %v5834_v61 = vmul.f32 0.35355338, %v5826_v57  ;;  %14251 = vpow2.f32 %v5845_v50 }
0x1ba1   :  { %14253 = vpow2.f32 %v5843_v41 }
0x1ba2   :  { %v5849_v15 = vmul.f32 1.442695, %v5834_v61 }
0x1ba3   :  { %v17187_v52 = vpop.eup %14247 }
0x1ba4   :  { %14255 = vpow2.f32 %v5849_v15  ;;  %v5857_v23 = vsel %vm56_vm0, %v17187_v52, 0.0  ;;  %v13739_v15 = vunpack.i.l.bf16 %v17106_v34 }
0x1ba5   :  { %14257 = vpow2.f32 %v5847_v16  ;;  %v13202_v16 = vpack.c.bf16 %v13735_v43, %v13734_v38 }
0x1ba6   :  { %v17189_v29 = vpop.eup %14249 }
0x1ba7   :  { %v5860_v44 = vsel %vm56_vm0, %v17189_v29, 0.0 }
0x1ba8   :  { %5852 = vadd.xlane.f32.xlu1 %v5851_v13  ;;  %v13206_v13 = vpack.c.bf16 %v13740_v3, %v13739_v15 }
0x1baa   :  { %v17193_v59 = vpop.eup %14251 }
0x1bab   :  { %v17195_v31 = vpop.eup %14253  ;;  %v5866_v63 = vsel %vm56_vm0, %v17193_v59, 0.0 }
0x1bac   :  { %5858 = vadd.xlane.f32.xlu1 %v5857_v23  ;;  %v5863_v14 = vsel %vm56_vm0, %v17195_v31, 0.0 }
0x1bae   :  { %v17201_v35 = vpop.eup %14255 }
0x1baf   :  { %v5872_v48 = vsel %vm56_vm0, %v17201_v35, 0.0  ;;  %v17207_v2 = vpop.eup %14257 }
0x1bb0   :  { %5861 = vadd.xlane.f32.xlu0 %v5860_v44  ;;  %5867 = vadd.xlane.f32.xlu1 %v5866_v63  ;;  %v5869_v11 = vsel %vm56_vm0, %v17207_v2, 0.0 }
0x1bb4   :  { %5873 = vadd.xlane.f32.xlu0 %v5872_v48  ;;  %5864 = vadd.xlane.f32.xlu1 %v5863_v14 }
0x1bb8   :  { %5870 = vadd.xlane.f32.xlu1 %v5869_v11 }
0x1bc9   :  { %6058 = vrot.lane.b32.xlu1 %v16728_v21, %s14605_s28 }
0x1bca   :  { %6056 = vrot.lane.b32.xlu0 %v16731_v7, %s14605_s28 }
0x1bcd   :  { %13757 = vrot.lane.b32.xlu1 %v16926_v37, %s14606_s29 }
0x1bce   :  { %13752 = vrot.lane.b32.xlu0 %v19301_v10, %s14606_s29 }
0x1bcf   :  { %v17219_v53 = vpop.f32.mrb[84].mxu0 }
0x1bd0   :  { %v17221_v42 = vpop.f32.mrb[85].mxu0 }
0x1bd1   :  { %13762 = vrot.lane.b32.xlu1 %v19302_v24, %s14606_s29 }
0x1bd5   :  { %13767 = vrot.lane.b32.xlu1 %v19303_v36, %s14606_s29 }
0x1bde   :  { %v17227_v9 = vpop.f32.mrb[86].mxu0 }
0x1bdf   :  { %v17229_v1 = vpop.f32.mrb[87].mxu0 }
0x1be7   :  { %v17231_v49 = vpop.f32.mrb[88].mxu0 }
0x1be8   :  { %v17233_v28 = vpop.f32.mrb[89].mxu0  ;;  %v5433_v60 = vpop.xlane.xlu1 %5432 }
0x1be9   :  { %14259 = vrcp.f32 %v5433_v60 }
0x1bec   :  { %v5430_v51 = vpop.xlane.xlu0 %5429 }
0x1bed   :  { %14261 = vrcp.f32 %v5430_v51 }
0x1bf3   :  { %v14260_v47 = vpop.eup %14259 }
0x1bf4   :  { %v5439_v62 = vpop.xlane.xlu0 %5438  ;;  %v5461_v61 = vmul.f32 %v14260_v47, %v17117_v27  ;;  %v13750_v27 = vunpack.i.h.bf16 %v17110_v30 }
0x1bf5   :  { %14263 = vrcp.f32 %v5439_v62  ;;  %v19345_v62 = vmov 0.0  }
0x1bf6   :  { %v17235_v20 = vpop.f32.mrb[90].mxu0 }
0x1bf7   :  { %v14262_v46 = vpop.eup %14261  ;;  %v17239_v50 = vpop.f32.mrb[91].mxu0 }
0x1bf8   :  { %v5436_v39 = vpop.xlane.xlu0 %5435  ;;  %v5460_v57 = vmul.f32 %v14262_v46, %v17122_v22  ;;  %v5445_v41 = vpop.xlane.xlu1 %5444  ;;  %v13749_v22 = vunpack.i.l.bf16 %v17110_v30  ;;  %v13214_v30 = vpack.c.bf16 %v17168_v8, %v17164_v12 }
0x1bf9   :  { %14265 = vrcp.f32 %v5436_v39 }
0x1bfa   :  { %12258 = vmatprep.mubr.msk.f32.mxu0 %vm56_vm0, %v5460_v57  ;;  %14267 = vrcp.f32 %v5445_v41  ;;  %v13210_v63 = vpack.c.bf16 %v13750_v27, %v13749_v22 }
0x1bfb   :  { %12259 = vmatmul.mubr.msk.f32.vlgmr.msra.gmra.mrb[92].mxu0 %vm56_vm0, %v5461_v61 }
0x1bfc   :  { %13201 = vmatpush3.bf16.msra.mxu0 %v17091_v32  ;;  %v5442_v54 = vpop.xlane.xlu0 %5441 }
0x1bfd   :  { %14269 = vrcp.f32 %v5442_v54  ;;  %13203 = vmatprep.subr.bf16.mxu0 %v13202_v16 }
0x1bff   :  { %v14264_v44 = vpop.eup %14263 }
0x1c00   :  { %13205 = vmatpush3.bf16.msra.mxu0 %v13202_v16  ;;  %v5451_v23 = vpop.xlane.xlu0 %5450  ;;  %v5463_v11 = vmul.f32 %v14264_v44, %v17129_v4 }
0x1c01   :  { %13207 = vmatprep.subr.bf16.mxu0 %v13206_v13  ;;  %14271 = vrcp.f32 %v5451_v23 }
0x1c03   :  { %v14266_v34 = vpop.eup %14265 }
0x1c04   :  { %13209 = vmatpush3.bf16.msra.mxu0 %v13206_v13  ;;  %v5448_v48 = vpop.xlane.xlu0 %5447  ;;  %v5462_v32 = vmul.f32 %v14266_v34, %v17131_v26  ;;  %v14268_v14 = vpop.eup %14267 }
0x1c05   :  { %14273 = vrcp.f32 %v5448_v48  ;;  %13211 = vmatprep.subr.bf16.mxu0 %v13210_v63  ;;  %v5465_v26 = vmul.f32 %v14268_v14, %v17135_v5 }
0x1c06   :  { %12261 = vmatprep.mubr.msk.f32.mxu0 %vm56_vm0, %v5462_v32 }
0x1c07   :  { %v14270_v60 = vpop.eup %14269  ;;  %12262 = vmatmul.mubr.msk.f32.gmra.mrb[94].mxu0 %vm56_vm0, %v5463_v11 }
0x1c08   :  { %v5464_v51 = vmul.f32 %v14270_v60, %v17141_v58  ;;  %13213 = vmatpush3.bf16.msra.mxu0 %v13210_v63  ;;  %v17266_v58 = vpop.permute.xlu1 %6050  ;;  %v5856_v57 = vpop.xlane.xlu0 %5855 }
0x1c09   :  { %13216 = vmatprep.subr.msk.bf16.mxu0 %vm15031_vm3, %v13214_v30  ;;  %14275 = vrcp.f32 %v5856_v57 }
0x1c0a   :  { %12264 = vmatprep.mubr.msk.f32.mxu0 %vm56_vm0, %v5464_v51 }
0x1c0b   :  { %12265 = vmatmul.mubr.msk.f32.gmra.mrb[96].mxu0 %vm56_vm0, %v5465_v26  ;;  %v14272_v4 = vpop.eup %14271 }
0x1c0c   :  { %v5467_v43 = vmul.f32 %v14272_v4, %v17145_v56  ;;  %v17268_v38 = vpop.permute.xlu1 %6052  ;;  %v17272_v61 = vpop.permute.xlu0 %6048 }
0x1c0d   :  { %v13220_v23 = vpack.c.bf16 %v17266_v58, %v17272_v61 }
0x1c0f   :  { %v14274_v47 = vpop.eup %14273 }
0x1c10   :  { %v5466_v46 = vmul.f32 %v14274_v47, %v17149_v33  ;;  %v17270_v39 = vpop.permute.xlu1 %6054 }
0x1c12   :  { %12267 = vmatprep.mubr.msk.f32.mxu0 %vm56_vm0, %v5466_v46 }
0x1c13   :  { %12268 = vmatmul.mubr.msk.f32.gmra.mrb[98].mxu0 %vm56_vm0, %v5467_v43  ;;  %v14276_v3 = vpop.eup %14275 }
0x1c14   :  { %v5884_v22 = vmul.f32 %v14276_v3, %v17153_v0 }
0x1c35   :  { %v5853_v5 = vpop.xlane.xlu1 %5852 }
0x1c36   :  { %14277 = vrcp.f32 %v5853_v5 }
0x1c39   :  { %v5859_v41 = vpop.xlane.xlu1 %5858 }
0x1c3a   :  { %14279 = vrcp.f32 %v5859_v41 }
0x1c3d   :  { %v5868_v33 = vpop.xlane.xlu1 %5867  ;;  %v5862_v56 = vpop.xlane.xlu0 %5861 }
0x1c3e   :  { %14281 = vrcp.f32 %v5862_v56 }
0x1c3f   :  { %14283 = vrcp.f32 %v5868_v33 }
0x1c40   :  { %v14278_v15 = vpop.eup %14277 }
0x1c41   :  { %v5865_v16 = vpop.xlane.xlu1 %5864  ;;  %v5874_v54 = vpop.xlane.xlu0 %5873  ;;  %v5883_v27 = vmul.f32 %v14278_v15, %v17183_v19 }
0x1c42   :  { %14285 = vrcp.f32 %v5865_v16 }
0x1c43   :  { %12314 = vmatprep.mubr.msk.f32.mxu0 %vm56_vm0, %v5883_v27  ;;  %14287 = vrcp.f32 %v5874_v54 }
0x1c44   :  { %v14280_v13 = vpop.eup %14279  ;;  %12315 = vmatmul.mubr.msk.f32.vlgmr.msra.gmra.mrb[100].mxu0 %vm56_vm0, %v5884_v22 }
0x1c45   :  { %13219 = vmatpush3.bf16.xpose.msk.msra.mxu0 %vm15031_vm3, %v13214_v30  ;;  %v5871_v44 = vpop.xlane.xlu1 %5870  ;;  %v6057_v63 = vpop.permute.xlu0 %6056  ;;  %v5885_v34 = vmul.f32 %v14280_v13, %v17187_v52  ;;  %v13226_v30 = vpack.c.bf16 %v17270_v39, %v17268_v38 }
0x1c46   :  { %14289 = vrcp.f32 %v5871_v44  ;;  %13222 = vmatprep.subr.msk.bf16.mxu0 %vm15031_vm3, %v13220_v23 }
0x1c47   :  { %12317 = vmatprep.mubr.msk.f32.mxu0 %vm56_vm0, %v5885_v34 }
0x1c48   :  { %v14282_v0 = vpop.eup %14281 }
0x1c49   :  { %v6059_v19 = vpop.permute.xlu1 %6058  ;;  %v13753_v48 = vpop.permute.xlu0 %13752  ;;  %v5886_v11 = vmul.f32 %v14282_v0, %v17189_v29 }
0x1c4a   :  { %v13755_v32 = vunpack.i.h.bf16 %v13753_v48  ;;  %v13754_v14 = vunpack.i.l.bf16 %v13753_v48  ;;  %v14284_v60 = vpop.eup %14283 }
0x1c4b   :  { %12318 = vmatmul.mubr.msk.f32.gmra.mrb[102].mxu0 %vm56_vm0, %v5886_v11  ;;  %v5888_v29 = vmul.f32 %v14284_v60, %v17193_v59  ;;  %v13232_v59 = vpack.c.bf16 %v6059_v19, %v6057_v63 }
0x1c4c   :  { %v14286_v51 = vpop.eup %14285  ;;  %v13238_v52 = vpack.c.bf16 %v13755_v32, %v13754_v14  ;;  %v19317_v14 = vld [vmem:[#allocation26_spill] sm:$0xff] }
0x1c4d   :  { %13225 = vmatpush3.bf16.xpose.msk.msra.mxu0 %vm15031_vm3, %v13220_v23  ;;  %v13758_v26 = vpop.permute.xlu1 %13757  ;;  %v5887_v4 = vmul.f32 %v14286_v51, %v17195_v31  ;;  %v14288_v43 = vpop.eup %14287  ;;  %v19318_v51 = vld [vmem:[#allocation27_spill] sm:$0xff] }
0x1c4e   :  { %v13760_v47 = vunpack.i.h.bf16 %v13758_v26  ;;  %v13759_v46 = vunpack.i.l.bf16 %v13758_v26  ;;  %13228 = vmatprep.subr.msk.bf16.mxu0 %vm15031_vm3, %v13226_v30  ;;  %13239 = vmatprep.subr.bf16.mxu1 %v13238_v52  ;;  %v5890_v3 = vmul.f32 %v14288_v43, %v17201_v35 }
0x1c4f   :  { %12320 = vmatprep.mubr.msk.f32.mxu0 %vm56_vm0, %v5887_v4  ;;  %13241 = vmatpush3.bf16.msra.mxu1 %v13238_v52 }
0x1c50   :  { %v14290_v57 = vpop.eup %14289  ;;  %12321 = vmatmul.mubr.msk.f32.gmra.mrb[104].mxu0 %vm56_vm0, %v5888_v29  ;;  %v13242_v5 = vpack.c.bf16 %v13760_v47, %v13759_v46 }
0x1c51   :  { %v13763_v41 = vpop.permute.xlu1 %13762  ;;  %v5889_v33 = vmul.f32 %v14290_v57, %v17207_v2 }
0x1c52   :  { %v13765_v31 = vunpack.i.h.bf16 %v13763_v41  ;;  %v13764_v56 = vunpack.i.l.bf16 %v13763_v41  ;;  %13243 = vmatprep.subr.bf16.mxu1 %v13242_v5 }
0x1c53   :  { %12323 = vmatprep.mubr.msk.f32.mxu0 %vm56_vm0, %v5889_v33  ;;  %13245 = vmatpush3.bf16.msra.mxu1 %v13242_v5 }
0x1c54   :  { %12324 = vmatmul.mubr.msk.f32.gmra.mrb[106].mxu0 %vm56_vm0, %v5890_v3  ;;  %v13246_v15 = vpack.c.bf16 %v13765_v31, %v13764_v56  ;;  %v19319_v3 = vld [vmem:[#allocation28_spill] sm:$0xff] }
0x1c55   :  { %13231 = vmatpush3.bf16.xpose.msk.msra.mxu0 %vm15031_vm3, %v13226_v30  ;;  %v13768_v16 = vpop.permute.xlu1 %13767  ;;  %12342 = vmatprep.mubr.msk.f32.mxu0 %vm917_vm2, %v17164_v12 }
0x1c56   :  { %v13770_v2 = vunpack.i.h.bf16 %v13768_v16  ;;  %v13769_v54 = vunpack.i.l.bf16 %v13768_v16  ;;  %13234 = vmatprep.subr.msk.bf16.mxu0 %vm15031_vm3, %v13232_v59  ;;  %13247 = vmatprep.subr.bf16.mxu1 %v13246_v15 }
0x1c57   :  { %13249 = vmatpush3.bf16.msra.mxu1 %v13246_v15 }
0x1c58   :  { %v13250_v35 = vpack.c.bf16 %v13770_v2, %v13769_v54 }
0x1c5a   :  { %13251 = vmatprep.subr.bf16.mxu1 %v13250_v35 }
0x1c5b   :  { %13253 = vmatpush3.bf16.msra.mxu1 %v13250_v35  ;;  %v19320_v35 = vld [vmem:[#allocation29_spill] sm:$0xff] }
0x1c5d   :  { %13237 = vmatpush3.bf16.xpose.msk.msra.mxu0 %vm15031_vm3, %v13232_v59 }
0x1c64   :  { %12343 = vmatmul.mubr.msk.f32.vlgmr.msra.gmra.mrb[108].mxu0 %vm917_vm2, %v17168_v8 }
0x1c65   :  { %12345 = vmatprep.mubr.msk.f32.mxu0 %vm917_vm2, %v17272_v61 }
0x1c68   :  { %12346 = vmatmul.mubr.msk.f32.gmra.mrb[110].mxu0 %vm917_vm2, %v17266_v58 }
0x1c69   :  { %12348 = vmatprep.mubr.msk.f32.mxu0 %vm917_vm2, %v17268_v38 }
0x1c6c   :  { %12349 = vmatmul.mubr.msk.f32.gmra.mrb[112].mxu0 %vm917_vm2, %v17270_v39 }
0x1c6d   :  { %12351 = vmatprep.mubr.msk.f32.mxu0 %vm917_vm2, %v6057_v63 }
0x1c70   :  { %12352 = vmatmul.mubr.msk.f32.gmra.mrb[114].mxu0 %vm917_vm2, %v6059_v19 }
0x1cce   :  { %v17322_v12 = vpop.f32.mrb[92].mxu0 }
0x1ccf   :  { %19305 = vst [vmem:[#allocation3_spill] sm:$0xff] %v17322_v12  ;;  %v17324_v27 = vpop.f32.mrb[93].mxu0 }
0x1cd0   :  { %19306 = vst [vmem:[#allocation4_spill] sm:$0xff] %v17324_v27 }
0x1cda   :  { %v17326_v8 = vpop.f32.mrb[94].mxu0 }
0x1cdb   :  { %19307 = vst [vmem:[#allocation5_spill] sm:$0xff] %v17326_v8  ;;  %v17328_v61 = vpop.f32.mrb[95].mxu0 }
0x1cdc   :  { %19308 = vst [vmem:[#allocation9_spill] sm:$0xff] %v17328_v61 }
0x1cde   :  { %v17330_v22 = vpop.f32.mrb[96].mxu0 }
0x1cdf   :  { %19309 = vst [vmem:[#allocation6_spill] sm:$0xff] %v17330_v22  ;;  %v17332_v58 = vpop.f32.mrb[97].mxu0 }
0x1ce0   :  { %19310 = vst [vmem:[#allocation7_spill] sm:$0xff] %v17332_v58 }
0x1ce6   :  { %v17334_v38 = vpop.f32.mrb[98].mxu0 }
0x1ce7   :  { %19311 = vst [vmem:[#allocation8_spill] sm:$0xff] %v17334_v38  ;;  %v17336_v13 = vpop.f32.mrb[99].mxu0 }
0x1ce8   :  { %19312 = vst [vmem:[#allocation53_spill] sm:$0xff] %v17336_v13 }
0x1d17   :  { %v17338_v39 = vpop.f32.mrb[100].mxu0 }
0x1d18   :  { %v17340_v23 = vpop.f32.mrb[101].mxu0 }
0x1d1e   :  { %v17342_v44 = vpop.f32.mrb[102].mxu0 }
0x1d1f   :  { %v17344_v63 = vpop.f32.mrb[103].mxu0 }
0x1d23   :  { %v17346_v34 = vpop.f32.mrb[104].mxu0 }
0x1d24   :  { %19313 = vst [vmem:[#allocation54_spill] sm:$0xff] %v17346_v34  ;;  %v17348_v0 = vpop.f32.mrb[105].mxu0 }
0x1d25   :  { %19314 = vst [vmem:[#allocation55_spill] sm:$0xff] %v17348_v0 }
0x1d27   :  { %v17350_v19 = vpop.f32.mrb[106].mxu0 }
0x1d28   :  { %19315 = vst [vmem:[#allocation56_spill] sm:$0xff] %v17350_v19  ;;  %v17352_v48 = vpop.f32.mrb[107].mxu0 }
0x1d29   :  { %19316 = vst [vmem:[#allocation57_spill] sm:$0xff] %v17352_v48 }
0x1d37   :  { %v12344_v32 = vpop.f32.mrb[108].mxu0 }
0x1d38   :  { %v6182_v11 = vmul.f32 %v12344_v32, %v19317_v14  ;;  %v6142_v60 = vpop.f32.mrb[109].mxu0 }
0x1d39   :  { %v6181_v30 = vmul.f32 %v19318_v51, %v6142_v60 }
0x1d3a   :  { %v6192_v52 = vsel %vm56_vm0, %v6182_v11, 0.0 }
0x1d3b   :  { %6193 = vadd.xlane.f32.xlu1 %v6192_v52  ;;  %v12347_v26 = vpop.f32.mrb[110].mxu0  ;;  %v6189_v4 = vsel %vm56_vm0, %v6181_v30, 0.0 }
0x1d3c   :  { %v6184_v47 = vmul.f32 %v12347_v26, %v15233_v40  ;;  %6190 = vadd.xlane.f32.xlu0 %v6189_v4  ;;  %v6213_v46 = vadd.f32 %v6192_v52, %v6189_v4  ;;  %v6152_v29 = vpop.f32.mrb[111].mxu0  ;;  %v19321_v4 = vld [vmem:[#allocation30_spill] sm:$0xff] }
0x1d3d   :  { %v6183_v43 = vmul.f32 %v15237_v45, %v6152_v29 }
0x1d3e   :  { %v6198_v57 = vsel %vm56_vm0, %v6184_v47, 0.0 }
0x1d3f   :  { %v12350_v5 = vpop.f32.mrb[112].mxu0  ;;  %v6195_v41 = vsel %vm56_vm0, %v6183_v43, 0.0 }
0x1d40   :  { %v6186_v33 = vmul.f32 %v12350_v5, %v15251_v25  ;;  %6199 = vadd.xlane.f32.xlu0 %v6198_v57  ;;  %v6162_v31 = vpop.f32.mrb[113].mxu0  ;;  %v6214_v56 = vadd.f32 %v6213_v46, %v6195_v41 }
0x1d41   :  { %v6185_v59 = vmul.f32 %v19319_v3, %v6162_v31 }
0x1d42   :  { %v6204_v15 = vsel %vm56_vm0, %v6186_v33, 0.0  ;;  %v6215_v16 = vadd.f32 %v6214_v56, %v6198_v57  ;;  %v19322_v56 = vld [vmem:[#allocation45_spill] sm:$0xff] }
0x1d43   :  { %6205 = vadd.xlane.f32.xlu1 %v6204_v15  ;;  %v12353_v2 = vpop.f32.mrb[114].mxu0  ;;  %v6201_v54 = vsel %vm56_vm0, %v6185_v59, 0.0  ;;  %v19323_v59 = vld [vmem:[#allocation46_spill] sm:$0xff] }
0x1d44   :  { %v6188_v11 = vmul.f32 %v12353_v2, %v19320_v35  ;;  %6196 = vadd.xlane.f32.xlu0 %v6195_v41  ;;  %v6172_v30 = vpop.f32.mrb[115].mxu0  ;;  %v6216_v52 = vadd.f32 %v6215_v16, %v6201_v54 }
0x1d45   :  { %v6187_v47 = vmul.f32 %v19321_v4, %v6172_v30 }
0x1d46   :  { %v6210_v43 = vsel %vm56_vm0, %v6188_v11, 0.0  ;;  %v6217_v38 = vadd.f32 %v6216_v52, %v6204_v15  ;;  %v6227_v11 = vmul.f32 2.0, %v12344_v32  ;;  %v6226_v15 = vmul.f32 2.0, %v6142_v60 }
0x1d47   :  { %6211 = vadd.xlane.f32.xlu1 %v6210_v43  ;;  %v6207_v46 = vsel %vm56_vm0, %v6187_v47, 0.0 }
0x1d48   :  { %6202 = vadd.xlane.f32.xlu0 %v6201_v54  ;;  %v6218_v33 = vadd.f32 %v6217_v38, %v6207_v46 }
0x1d4a   :  { %v6219_v57 = vadd.f32 %v6218_v33, %v6210_v43 }
0x1d4c   :  { %6208 = vadd.xlane.f32.xlu0 %v6207_v46  ;;  %v6220_v41 = vrot.slane %v6219_v57, 4  ;;  %v6229_v46 = vmul.f32 2.0, %v12347_v26 }
0x1d4e   :  { %v6221_v16 = vadd.f32 %v6220_v41, %v6219_v57  ;;  %v6228_v57 = vmul.f32 2.0, %v6152_v29 }
0x1d50   :  { %v6222_v13 = vrot.slane %v6221_v16, 2 }
0x1d52   :  { %v6223_v22 = vadd.f32 %v6222_v13, %v6221_v16 }
0x1d54   :  { %v6224_v58 = vrot.slane %v6223_v22, 1 }
0x1d56   :  { %v6225_v8 = vadd.f32 %v6224_v58, %v6223_v22  ;;  %v6233_v58 = vmul.f32 2.0, %v12353_v2 }
0x1d58   :  { %6469 = vrot.lane.b32.xlu1 %v19322_v56, %s14607_s30 }
0x1d62   :  { %6467 = vrot.lane.b32.xlu0 %v19323_v59, %s14607_s30  ;;  %v6231_v59 = vmul.f32 2.0, %v12350_v5  ;;  %v6232_v5 = vmul.f32 2.0, %v6172_v30 }
0x1dc8   :  { %v6194_v52 = vpop.xlane.xlu1 %6193 }
0x1dc9   :  { %v6235_v47 = vsub.f32 %v6227_v11, %v6194_v52  ;;  %v6191_v54 = vpop.xlane.xlu0 %6190 }
0x1dca   :  { %v6234_v38 = vsub.f32 %v6226_v15, %v6191_v54  ;;  %v6230_v15 = vmul.f32 2.0, %v6162_v31 }
0x1dcb   :  { %v6243_v43 = vsub.f32 %v6235_v47, %v6225_v8 }
0x1dcc   :  { %v6242_v33 = vsub.f32 %v6234_v38, %v6225_v8 }
0x1dcd   :  { %v6251_v61 = vmul.f32 0.35355338, %v6243_v43  ;;  %v6200_v56 = vpop.xlane.xlu0 %6199 }
0x1dce   :  { %v6250_v12 = vmul.f32 0.35355338, %v6242_v33  ;;  %v6237_v27 = vsub.f32 %v6229_v46, %v6200_v56 }
0x1dcf   :  { %v6260_v19 = vmul.f32 1.442695, %v6251_v61 }
0x1dd0   :  { %v6258_v41 = vmul.f32 1.442695, %v6250_v12  ;;  %v6245_v13 = vsub.f32 %v6237_v27, %v6225_v8  ;;  %v6206_v16 = vpop.xlane.xlu1 %6205 }
0x1dd1   :  { %14291 = vpow2.f32 %v6260_v19  ;;  %v6239_v32 = vsub.f32 %v6231_v59, %v6206_v16  ;;  %v6197_v60 = vpop.xlane.xlu0 %6196 }
0x1dd2   :  { %14293 = vpow2.f32 %v6258_v41  ;;  %v6236_v22 = vsub.f32 %v6228_v57, %v6197_v60  ;;  %v6253_v41 = vmul.f32 0.35355338, %v6245_v13 }
0x1dd3   :  { %v6247_v11 = vsub.f32 %v6239_v32, %v6225_v8 }
0x1dd4   :  { %v6244_v26 = vsub.f32 %v6236_v22, %v6225_v8  ;;  %v6212_v52 = vpop.xlane.xlu1 %6211  ;;  %v6264_v60 = vmul.f32 1.442695, %v6253_v41 }
0x1dd5   :  { %v6241_v47 = vsub.f32 %v6233_v58, %v6212_v52  ;;  %v6203_v54 = vpop.xlane.xlu0 %6202  ;;  %v6255_v30 = vmul.f32 0.35355338, %v6247_v11 }
0x1dd6   :  { %v6238_v38 = vsub.f32 %v6230_v15, %v6203_v54 }
0x1dd7   :  { %v6249_v43 = vsub.f32 %v6241_v47, %v6225_v8  ;;  %v6268_v16 = vmul.f32 1.442695, %v6255_v30 }
0x1dd8   :  { %v6246_v61 = vsub.f32 %v6238_v38, %v6225_v8  ;;  %v17375_v56 = vpop.permute.xlu1 %6469 }
0x1dd9   :  { %v6209_v29 = vpop.xlane.xlu0 %6208 }
0x1dda   :  { %v6240_v12 = vsub.f32 %v6232_v5, %v6209_v29  ;;  %v6254_v32 = vmul.f32 0.35355338, %v6246_v61 }
0x1ddb   :  { %v14292_v27 = vpop.eup %14291 }
0x1ddc   :  { %v14294_v46 = vpop.eup %14293  ;;  %v6248_v19 = vsub.f32 %v6240_v12, %v6225_v8  ;;  %v6277_v33 = vsel %vm56_vm0, %v14292_v27, 0.0  ;;  %v6252_v8 = vmul.f32 0.35355338, %v6244_v26  ;;  %v6266_v58 = vmul.f32 1.442695, %v6254_v32 }
0x1ddd   :  { %v17377_v2 = vpop.permute.xlu0 %6467  ;;  %6278 = vadd.xlane.f32.xlu1 %v6277_v33  ;;  %v6274_v31 = vsel %vm56_vm0, %v14294_v46, 0.0 }
0x1dde   :  { %v13254_v59 = vpack.c.bf16 %v17375_v56, %v17377_v2  ;;  %6275 = vadd.xlane.f32.xlu0 %v6274_v31  ;;  %v6262_v57 = vmul.f32 1.442695, %v6252_v8  ;;  %v6256_v22 = vmul.f32 0.35355338, %v6248_v19 }
0x1de0   :  { %13256 = vmatprep.subr.msk.bf16.mxu1 %vm15031_vm3, %v13254_v59  ;;  %14295 = vpow2.f32 %v6262_v57 }
0x1de1   :  { %14297 = vpow2.f32 %v6268_v16 }
0x1de2   :  { %14299 = vpow2.f32 %v6264_v60 }
0x1de3   :  { %14301 = vpow2.f32 %v6266_v58 }
0x1dee   :  { %6473 = vrot.lane.b32.xlu1 %v16696_v6, %s14607_s30  ;;  %v6257_v6 = vmul.f32 0.35355338, %v6249_v43 }
0x1df0   :  { %v6272_v15 = vmul.f32 1.442695, %v6257_v6 }
0x1df2   :  { %6475 = vrot.lane.b32.xlu1 %v16714_v17, %s14607_s30  ;;  %v6270_v17 = vmul.f32 1.442695, %v6256_v22 }
0x1df4   :  { %6471 = vrot.lane.b32.xlu0 %v16698_v18, %s14607_s30  ;;  %v14296_v18 = vpop.eup %14295  ;;  %14303 = vpow2.f32 %v6270_v17 }
0x1df5   :  { %14305 = vpow2.f32 %v6272_v15  ;;  %v17393_v11 = vpop.eup %14297 }
0x1df6   :  { %6477 = vrot.lane.b32.xlu1 %v16710_v55, %s14607_s30  ;;  %v6280_v55 = vsel %vm56_vm0, %v14296_v18, 0.0  ;;  %v14300_v13 = vpop.eup %14299  ;;  %v6289_v26 = vsel %vm56_vm0, %v17393_v11, 0.0 }
0x1df7   :  { %v14302_v52 = vpop.eup %14301  ;;  %v6283_v47 = vsel %vm56_vm0, %v14300_v13, 0.0 }
0x1df8   :  { %v6286_v38 = vsel %vm56_vm0, %v14302_v52, 0.0 }
0x1dfe   :  { %v14304_v54 = vpop.eup %14303 }
0x1dff   :  { %v14306_v43 = vpop.eup %14305  ;;  %v6292_v5 = vsel %vm56_vm0, %v14304_v54, 0.0 }
0x1e00   :  { %v6295_v61 = vsel %vm56_vm0, %v14306_v43, 0.0 }
0x1e13   :  { %6281 = vadd.xlane.f32.xlu0 %v6280_v55 }
0x1e17   :  { %6290 = vadd.xlane.f32.xlu0 %v6289_v26 }
0x1e1a   :  { %6284 = vadd.xlane.f32.xlu1 %v6283_v47 }
0x1e1b   :  { %6287 = vadd.xlane.f32.xlu0 %v6286_v38 }
0x1e1e   :  { %6293 = vadd.xlane.f32.xlu1 %v6292_v5 }
0x1e1f   :  { %6296 = vadd.xlane.f32.xlu0 %v6295_v61 }
0x1e2f   :  { %6481 = vrot.lane.b32.xlu1 %v16728_v21, %s14607_s30 }
0x1e35   :  { %6479 = vrot.lane.b32.xlu0 %v16731_v7, %s14607_s30 }
0x1e6a   :  { %v6279_v29 = vpop.xlane.xlu1 %6278 }
0x1e6b   :  { %14307 = vrcp.f32 %v6279_v29  ;;  %v6276_v12 = vpop.xlane.xlu0 %6275 }
0x1e6c   :  { %14309 = vrcp.f32 %v6276_v12 }
0x1e6e   :  { %v6474_v19 = vpop.permute.xlu1 %6473 }
0x1e6f   :  { %v6472_v8 = vpop.permute.xlu0 %6471 }
0x1e70   :  { %v13260_v16 = vpack.c.bf16 %v6474_v19, %v6472_v8 }
0x1e72   :  { %v6476_v41 = vpop.permute.xlu1 %6475 }
0x1e75   :  { %v14308_v33 = vpop.eup %14307 }
0x1e76   :  { %v14310_v31 = vpop.eup %14309  ;;  %v6307_v57 = vmul.f32 %v14308_v33, %v14292_v27  ;;  %v6478_v21 = vpop.permute.xlu1 %6477 }
0x1e77   :  { %v6306_v30 = vmul.f32 %v14310_v31, %v14294_v46  ;;  %v13266_v7 = vpack.c.bf16 %v6478_v21, %v6476_v41 }
0x1e79   :  { %12370 = vmatprep.mubr.msk.f32.mxu1 %vm56_vm0, %v6306_v30 }
0x1e7a   :  { %12371 = vmatmul.mubr.msk.f32.vlgmr.msra.gmra.mrb[116].mxu1 %vm56_vm0, %v6307_v57 }
0x1e7b   :  { %13259 = vmatpush3.bf16.xpose.msk.msra.mxu1 %vm15031_vm3, %v13254_v59 }
0x1e7c   :  { %13262 = vmatprep.subr.msk.bf16.mxu1 %vm15031_vm3, %v13260_v16 }
0x1e83   :  { %13265 = vmatpush3.bf16.xpose.msk.msra.mxu1 %vm15031_vm3, %v13260_v16 }
0x1e84   :  { %13268 = vmatprep.subr.msk.bf16.mxu1 %vm15031_vm3, %v13266_v7 }
0x1e8b   :  { %13271 = vmatpush3.bf16.xpose.msk.msra.mxu1 %vm15031_vm3, %v13266_v7 }
0x1ea0   :  { %v6282_v27 = vpop.xlane.xlu0 %6281 }
0x1ea1   :  { %14311 = vrcp.f32 %v6282_v27 }
0x1ea4   :  { %v6291_v46 = vpop.xlane.xlu0 %6290 }
0x1ea7   :  { %v6285_v32 = vpop.xlane.xlu1 %6284 }
0x1ea8   :  { %14313 = vrcp.f32 %v6285_v32  ;;  %v6288_v59 = vpop.xlane.xlu0 %6287 }
0x1ea9   :  { %14315 = vrcp.f32 %v6288_v59 }
0x1eaa   :  { %14317 = vrcp.f32 %v6291_v46 }
0x1eab   :  { %v14312_v60 = vpop.eup %14311  ;;  %v6294_v22 = vpop.xlane.xlu1 %6293 }
0x1eac   :  { %14319 = vrcp.f32 %v6294_v22  ;;  %v6297_v6 = vpop.xlane.xlu0 %6296  ;;  %v6308_v58 = vmul.f32 %v14312_v60, %v14296_v18 }
0x1ead   :  { %14321 = vrcp.f32 %v6297_v6 }
0x1eae   :  { %12373 = vmatprep.mubr.msk.f32.mxu1 %vm56_vm0, %v6308_v58 }
0x1eaf   :  { %v6482_v17 = vpop.permute.xlu1 %6481 }
0x1eb0   :  { %v6480_v15 = vpop.permute.xlu0 %6479 }
0x1eb1   :  { %v13272_v55 = vpack.c.bf16 %v6482_v17, %v6480_v15 }
0x1eb2   :  { %v14314_v26 = vpop.eup %14313 }
0x1eb3   :  { %v14316_v47 = vpop.eup %14315  ;;  %13274 = vmatprep.subr.msk.bf16.mxu1 %vm15031_vm3, %v13272_v55  ;;  %v6309_v38 = vmul.f32 %v14314_v26, %v14300_v13 }
0x1eb4   :  { %v14318_v5 = vpop.eup %14317  ;;  %13277 = vmatpush3.bf16.xpose.msk.msra.mxu1 %vm15031_vm3, %v13272_v55  ;;  %v6310_v61 = vmul.f32 %v14316_v47, %v14302_v52 }
0x1eb5   :  { %12374 = vmatmul.mubr.msk.f32.gmra.mrb[118].mxu1 %vm56_vm0, %v6309_v38  ;;  %v6311_v29 = vmul.f32 %v14318_v5, %v17393_v11 }
0x1eb6   :  { %v14320_v18 = vpop.eup %14319  ;;  %12376 = vmatprep.mubr.msk.f32.mxu1 %vm56_vm0, %v6310_v61 }
0x1eb7   :  { %v6312_v12 = vmul.f32 %v14320_v18, %v14304_v54  ;;  %v14322_v33 = vpop.eup %14321 }
0x1eb8   :  { %v6313_v31 = vmul.f32 %v14322_v33, %v14306_v43 }
0x1eb9   :  { %12377 = vmatmul.mubr.msk.f32.gmra.mrb[120].mxu1 %vm56_vm0, %v6311_v29 }
0x1eba   :  { %12379 = vmatprep.mubr.msk.f32.mxu1 %vm56_vm0, %v6312_v12 }
0x1ebd   :  { %12380 = vmatmul.mubr.msk.f32.gmra.mrb[122].mxu1 %vm56_vm0, %v6313_v31 }
0x1ebe   :  { %12398 = vmatprep.mubr.msk.f32.mxu1 %vm917_vm2, %v17377_v2 }
0x1ec1   :  { %12399 = vmatmul.mubr.msk.f32.vlgmr.msra.gmra.mrb[124].mxu1 %vm917_vm2, %v17375_v56 }
0x1ec2   :  { %12401 = vmatprep.mubr.msk.f32.mxu1 %vm917_vm2, %v6472_v8 }
0x1ec5   :  { %12402 = vmatmul.mubr.msk.f32.gmra.mrb[126].mxu1 %vm917_vm2, %v6474_v19 }
0x1ec6   :  { %12404 = vmatprep.mubr.msk.f32.mxu1 %vm917_vm2, %v6476_v41 }
0x1ec9   :  { %12405 = vmatmul.mubr.msk.f32.gmra.mrb[128].mxu1 %vm917_vm2, %v6478_v21 }
0x1eca   :  { %12407 = vmatprep.mubr.msk.f32.mxu1 %vm917_vm2, %v6480_v15 }
0x1ecd   :  { %12408 = vmatmul.mubr.msk.f32.gmra.mrb[130].mxu1 %vm917_vm2, %v6482_v17 }
0x1f4d   :  { %v17438_v11 = vpop.f32.mrb[116].mxu1 }
0x1f4e   :  { %v17440_v13 = vpop.f32.mrb[117].mxu1 }
0x1f88   :  { %v17442_v2 = vpop.f32.mrb[118].mxu1 }
0x1f89   :  { %v17444_v52 = vpop.f32.mrb[119].mxu1 }
0x1f8c   :  { %v17446_v56 = vpop.f32.mrb[120].mxu1 }
0x1f8d   :  { %19324 = vst [vmem:[#allocation25_spill] sm:$0xff] %v17446_v56  ;;  %v17448_v54 = vpop.f32.mrb[121].mxu1 }
0x1f8e   :  { %19325 = vst [vmem:[#allocation24_spill] sm:$0xff] %v17448_v54 }
0x1f90   :  { %v17450_v43 = vpop.f32.mrb[122].mxu1 }
0x1f91   :  { %19326 = vst [vmem:[#allocation48_spill] sm:$0xff] %v17450_v43  ;;  %v17452_v19 = vpop.f32.mrb[123].mxu1 }
0x1f92   :  { %19327 = vst [vmem:[#allocation47_spill] sm:$0xff] %v17452_v19 }
0x1f94   :  { %v12400_v8 = vpop.f32.mrb[124].mxu1 }
0x1f95   :  { %v6605_v30 = vmul.f32 %v12400_v8, %v19317_v14  ;;  %v6565_v57 = vpop.f32.mrb[125].mxu1 }
0x1f96   :  { %v6604_v41 = vmul.f32 %v19318_v51, %v6565_v57 }
0x1f97   :  { %v6615_v16 = vsel %vm56_vm0, %v6605_v30, 0.0 }
0x1f98   :  { %6616 = vadd.xlane.f32.xlu1 %v6615_v16  ;;  %v12403_v21 = vpop.f32.mrb[126].mxu1  ;;  %v6612_v7 = vsel %vm56_vm0, %v6604_v41, 0.0 }
0x1f99   :  { %v6607_v27 = vmul.f32 %v12403_v21, %v15233_v40  ;;  %6613 = vadd.xlane.f32.xlu0 %v6612_v7  ;;  %v6636_v46 = vadd.f32 %v6615_v16, %v6612_v7  ;;  %v6575_v32 = vpop.f32.mrb[127].mxu1 }
0x1f9a   :  { %v6606_v59 = vmul.f32 %v15237_v45, %v6575_v32 }
0x1f9b   :  { %v6621_v60 = vsel %vm56_vm0, %v6607_v27, 0.0 }
0x1f9c   :  { %v12406_v22 = vpop.f32.mrb[128].mxu1  ;;  %v6618_v6 = vsel %vm56_vm0, %v6606_v59, 0.0 }
0x1f9d   :  { %v6609_v58 = vmul.f32 %v12406_v22, %v15251_v25  ;;  %6622 = vadd.xlane.f32.xlu0 %v6621_v60  ;;  %v6585_v17 = vpop.f32.mrb[129].mxu1  ;;  %v6637_v15 = vadd.f32 %v6636_v46, %v6618_v6 }
0x1f9e   :  { %v6608_v55 = vmul.f32 %v19319_v3, %v6585_v17 }
0x1f9f   :  { %v6627_v26 = vsel %vm56_vm0, %v6609_v58, 0.0  ;;  %v6638_v47 = vadd.f32 %v6637_v15, %v6621_v60  ;;  %v6649_v58 = vmul.f32 2.0, %v6565_v57 }
0x1fa0   :  { %6628 = vadd.xlane.f32.xlu1 %v6627_v26  ;;  %v12409_v38 = vpop.f32.mrb[130].mxu1  ;;  %v6624_v5 = vsel %vm56_vm0, %v6608_v55, 0.0 }
0x1fa1   :  { %v6611_v61 = vmul.f32 %v12409_v38, %v19320_v35  ;;  %6619 = vadd.xlane.f32.xlu0 %v6618_v6  ;;  %v6595_v18 = vpop.f32.mrb[131].mxu1  ;;  %v6639_v29 = vadd.f32 %v6638_v47, %v6624_v5  ;;  %v6650_v6 = vmul.f32 2.0, %v12400_v8 }
0x1fa2   :  { %v6610_v12 = vmul.f32 %v19321_v4, %v6595_v18 }
0x1fa3   :  { %v6633_v33 = vsel %vm56_vm0, %v6611_v61, 0.0  ;;  %v6640_v31 = vadd.f32 %v6639_v29, %v6627_v26  ;;  %v6652_v29 = vmul.f32 2.0, %v12403_v21 }
0x1fa4   :  { %6634 = vadd.xlane.f32.xlu1 %v6633_v33  ;;  %v6630_v30 = vsel %vm56_vm0, %v6610_v12, 0.0 }
0x1fa5   :  { %6625 = vadd.xlane.f32.xlu0 %v6624_v5  ;;  %v6641_v41 = vadd.f32 %v6640_v31, %v6630_v30 }
0x1fa7   :  { %v6642_v16 = vadd.f32 %v6641_v41, %v6633_v33 }
0x1fa9   :  { %6631 = vadd.xlane.f32.xlu0 %v6630_v30  ;;  %v6643_v7 = vrot.slane %v6642_v16, 4  ;;  %v6654_v30 = vmul.f32 2.0, %v12406_v22  ;;  %v6655_v22 = vmul.f32 2.0, %v6595_v18 }
0x1fab   :  { %v6644_v27 = vadd.f32 %v6643_v7, %v6642_v16  ;;  %v6651_v16 = vmul.f32 2.0, %v6575_v32 }
0x1fad   :  { %v6645_v46 = vrot.slane %v6644_v27, 2 }
0x1faf   :  { %v6646_v59 = vadd.f32 %v6645_v46, %v6644_v27 }
0x1fb1   :  { %v6647_v60 = vrot.slane %v6646_v59, 1 }
0x1fb3   :  { %v6648_v55 = vadd.f32 %v6647_v60, %v6646_v59  ;;  %v6656_v60 = vmul.f32 2.0, %v12409_v38 }
0x2025   :  { %v6617_v15 = vpop.xlane.xlu1 %6616 }
0x2026   :  { %v6658_v47 = vsub.f32 %v6650_v6, %v6617_v15  ;;  %v6614_v43 = vpop.xlane.xlu0 %6613  ;;  %v6653_v6 = vmul.f32 2.0, %v6585_v17 }
0x2027   :  { %v6657_v61 = vsub.f32 %v6649_v58, %v6614_v43 }
0x2028   :  { %v6666_v26 = vsub.f32 %v6658_v47, %v6648_v55 }
0x2029   :  { %v6665_v19 = vsub.f32 %v6657_v61, %v6648_v55 }
0x202a   :  { %v6674_v12 = vmul.f32 0.35355338, %v6666_v26  ;;  %v6623_v5 = vpop.xlane.xlu0 %6622 }
0x202b   :  { %v6673_v31 = vmul.f32 0.35355338, %v6665_v19  ;;  %v6660_v33 = vsub.f32 %v6652_v29, %v6623_v5 }
0x202c   :  { %v6683_v41 = vmul.f32 1.442695, %v6674_v12 }
0x202d   :  { %v6681_v7 = vmul.f32 1.442695, %v6673_v31  ;;  %v6668_v27 = vsub.f32 %v6660_v33, %v6648_v55  ;;  %v6629_v46 = vpop.xlane.xlu1 %6628 }
0x202e   :  { %14323 = vpow2.f32 %v6683_v41  ;;  %v6662_v8 = vsub.f32 %v6654_v30, %v6629_v46  ;;  %v6620_v57 = vpop.xlane.xlu0 %6619 }
0x202f   :  { %14325 = vpow2.f32 %v6681_v7  ;;  %v6659_v59 = vsub.f32 %v6651_v16, %v6620_v57  ;;  %v6676_v30 = vmul.f32 0.35355338, %v6668_v27 }
0x2030   :  { %v6670_v43 = vsub.f32 %v6662_v8, %v6648_v55 }
0x2031   :  { %v6667_v21 = vsub.f32 %v6659_v59, %v6648_v55  ;;  %v6635_v58 = vpop.xlane.xlu1 %6634  ;;  %v6687_v7 = vmul.f32 1.442695, %v6676_v30 }
0x2032   :  { %v6664_v15 = vsub.f32 %v6656_v60, %v6635_v58  ;;  %v6626_v47 = vpop.xlane.xlu0 %6625 }
0x2033   :  { %v6661_v19 = vsub.f32 %v6653_v6, %v6626_v47  ;;  %v6675_v18 = vmul.f32 0.35355338, %v6667_v21 }
0x2034   :  { %v6672_v61 = vsub.f32 %v6664_v15, %v6648_v55 }
0x2035   :  { %v6669_v26 = vsub.f32 %v6661_v19, %v6648_v55  ;;  %v6685_v33 = vmul.f32 1.442695, %v6675_v18 }
0x2036   :  { %v6632_v32 = vpop.xlane.xlu0 %6631  ;;  %v6680_v46 = vmul.f32 0.35355338, %v6672_v61  ;;  %v14584_v61 = vld [vmem:[%s19095_s2 + $0x11] ss:$0 sm:$0xff] }
0x2037   :  { %v6663_v29 = vsub.f32 %v6655_v22, %v6632_v32  ;;  %14327 = vpow2.f32 %v6685_v33  ;;  %v6677_v16 = vmul.f32 0.35355338, %v6669_v26  ;;  %v17514_v22 = vadd.f32 %v14584_v61, %v17227_v9 }
0x2038   :  { %v17470_v12 = vpop.eup %14323  ;;  %v17517_v26 = vadd.f32 %v14584_v61, %v17229_v1  ;;  %v17520_v32 = vadd.f32 %v14584_v61, %v17231_v49  ;;  %v17538_v9 = vadd.f32 %v14584_v61, %v17235_v20  ;;  %v17541_v1 = vadd.f32 %v14584_v61, %v17239_v50 }
0x2039   :  { %v17472_v5 = vpop.eup %14325  ;;  %v6671_v31 = vsub.f32 %v6663_v29, %v6648_v55  ;;  %v6700_v38 = vsel %vm56_vm0, %v17470_v12, 0.0  ;;  %v6678_v55 = vmul.f32 0.35355338, %v6670_v43  ;;  %v17523_v29 = vadd.f32 %v14584_v61, %v17233_v28 }
0x203a   :  { %6701 = vadd.xlane.f32.xlu1 %v6700_v38  ;;  %v6697_v17 = vsel %vm56_vm0, %v17472_v5, 0.0  ;;  %v17530_v38 = vadd.f32 %v14584_v61, %v17219_v53 }
0x203b   :  { %6698 = vadd.xlane.f32.xlu0 %v6697_v17  ;;  %v6691_v41 = vmul.f32 1.442695, %v6678_v55  ;;  %v6679_v8 = vmul.f32 0.35355338, %v6671_v31  ;;  %v17527_v31 = vpack.i.bf16 %v17514_v22, %v17517_v26  ;;  %v17533_v17 = vadd.f32 %v14584_v61, %v17221_v42 }
0x203c   :  { %v17545_v49 = vpack.i.bf16 %v17520_v32, %v17523_v29  ;;  %v17557_v42 = vpack.i.bf16 %v17538_v9, %v17541_v1 }
0x203d   :  { %14329 = vpow2.f32 %v6691_v41  ;;  %v6693_v57 = vmul.f32 1.442695, %v6679_v8  ;;  %v17551_v53 = vpack.i.bf16 %v17530_v38, %v17533_v17  ;;  %v13294_v61 = vpack.c.bf16 %v17530_v38, %v17533_v17 }
0x203e   :  { %14331 = vpow2.f32 %v6687_v7 }
0x204b   :  { %13777 = vrot.lane.b32.xlu1 %v16926_v37, %s14608_s5  ;;  %v6689_v37 = vmul.f32 1.442695, %v6677_v16 }
0x204d   :  { %14333 = vpow2.f32 %v6689_v37 }
0x204f   :  { %13782 = vrot.lane.b32.xlu1 %v19302_v24, %s14608_s5  ;;  %v6695_v24 = vmul.f32 1.442695, %v6680_v46 }
0x2051   :  { %13772 = vrot.lane.b32.xlu0 %v19301_v10, %s14608_s5  ;;  %v17486_v10 = vpop.eup %14327  ;;  %14335 = vpow2.f32 %v6695_v24 }
0x2052   :  { %14337 = vpow2.f32 %v6693_v57  ;;  %v17490_v27 = vpop.eup %14329 }
0x2053   :  { %13787 = vrot.lane.b32.xlu1 %v19303_v36, %s14608_s5  ;;  %v6703_v36 = vsel %vm56_vm0, %v17486_v10, 0.0  ;;  %v17492_v59 = vpop.eup %14331  ;;  %v6712_v60 = vsel %vm56_vm0, %v17490_v27, 0.0 }
0x2054   :  { %v6706_v6 = vsel %vm56_vm0, %v17492_v59, 0.0 }
0x2057   :  { %v17496_v43 = vpop.eup %14333 }
0x2058   :  { %v6709_v58 = vsel %vm56_vm0, %v17496_v43, 0.0 }
0x205b   :  { %v17500_v21 = vpop.eup %14335 }
0x205c   :  { %v17504_v15 = vpop.eup %14337  ;;  %v6718_v47 = vsel %vm56_vm0, %v17500_v21, 0.0 }
0x205d   :  { %v6715_v19 = vsel %vm56_vm0, %v17504_v15, 0.0 }
0x2070   :  { %6704 = vadd.xlane.f32.xlu0 %v6703_v36 }
0x2074   :  { %6713 = vadd.xlane.f32.xlu0 %v6712_v60 }
0x2077   :  { %6707 = vadd.xlane.f32.xlu1 %v6706_v6 }
0x2078   :  { %6710 = vadd.xlane.f32.xlu0 %v6709_v58 }
0x207b   :  { %6719 = vadd.xlane.f32.xlu1 %v6718_v47 }
0x207c   :  { %6716 = vadd.xlane.f32.xlu0 %v6715_v19 }
0x208c   :  { %13797 = vrot.lane.b32.xlu1 %v17527_v31, %s14601_s19 }
0x2090   :  { %13802 = vrot.lane.b32.xlu1 %v17545_v49, %s14601_s19 }
0x2092   :  { %13792 = vrot.lane.b32.xlu0 %v17551_v53, %s14601_s19 }
0x2094   :  { %13807 = vrot.lane.b32.xlu1 %v17557_v42, %s14601_s19 }
0x20c7   :  { %v6702_v28 = vpop.xlane.xlu1 %6701 }
0x20c8   :  { %v6699_v20 = vpop.xlane.xlu0 %6698 }
0x20c9   :  { %14339 = vrcp.f32 %v6699_v20  ;;  %v13306_v20 = vpack.c.bf16 %v17520_v32, %v17523_v29 }
0x20ca   :  { %14341 = vrcp.f32 %v6702_v28 }
0x20cb   :  { %v13778_v50 = vpop.permute.xlu1 %13777 }
0x20cc   :  { %v13773_v18 = vpop.permute.xlu0 %13772  ;;  %v13780_v55 = vunpack.i.h.bf16 %v13778_v50  ;;  %v13779_v33 = vunpack.i.l.bf16 %v13778_v50 }
0x20cd   :  { %v13775_v30 = vunpack.i.h.bf16 %v13773_v18  ;;  %v13774_v41 = vunpack.i.l.bf16 %v13773_v18 }
0x20ce   :  { %v13282_v8 = vpack.c.bf16 %v13780_v55, %v13779_v33 }
0x20cf   :  { %v13783_v16 = vpop.permute.xlu1 %13782  ;;  %v13278_v7 = vpack.c.bf16 %v13775_v30, %v13774_v41 }
0x20d0   :  { %v13785_v46 = vunpack.i.h.bf16 %v13783_v16  ;;  %v13784_v37 = vunpack.i.l.bf16 %v13783_v16 }
0x20d1   :  { %13279 = vmatprep.subr.bf16.mxu0 %v13278_v7 }
0x20d2   :  { %13281 = vmatpush3.bf16.msra.mxu0 %v13278_v7  ;;  %v13286_v58 = vpack.c.bf16 %v13785_v46, %v13784_v37 }
0x20d3   :  { %v14340_v24 = vpop.eup %14339  ;;  %v13788_v57 = vpop.permute.xlu1 %13787  ;;  %13283 = vmatprep.subr.bf16.mxu0 %v13282_v8 }
0x20d4   :  { %v6729_v36 = vmul.f32 %v14340_v24, %v17472_v5  ;;  %v13790_v60 = vunpack.i.h.bf16 %v13788_v57  ;;  %v13789_v6 = vunpack.i.l.bf16 %v13788_v57  ;;  %v14342_v19 = vpop.eup %14341  ;;  %v13300_v5 = vpack.c.bf16 %v17514_v22, %v17517_v26 }
0x20d5   :  { %v6730_v28 = vmul.f32 %v14342_v19, %v17470_v12  ;;  %v13312_v12 = vpack.c.bf16 %v17538_v9, %v17541_v1 }
0x20d6   :  { %13285 = vmatpush3.bf16.msra.mxu0 %v13282_v8  ;;  %12426 = vmatprep.mubr.msk.f32.mxu0 %vm56_vm0, %v6729_v36  ;;  %v13290_v47 = vpack.c.bf16 %v13790_v60, %v13789_v6 }
0x20d7   :  { %13287 = vmatprep.subr.bf16.mxu0 %v13286_v58 }
0x20da   :  { %13289 = vmatpush3.bf16.msra.mxu0 %v13286_v58 }
0x20db   :  { %13291 = vmatprep.subr.bf16.mxu0 %v13290_v47 }
0x20de   :  { %13293 = vmatpush3.bf16.msra.mxu0 %v13290_v47 }
0x20df   :  { %13296 = vmatprep.subr.msk.bf16.mxu0 %vm15031_vm3, %v13294_v61 }
0x20e1   :  { %12427 = vmatmul.mubr.msk.f32.vlgmr.msra.gmra.mrb[116].mxu0 %vm56_vm0, %v6730_v28 }
0x20e7   :  { %13299 = vmatpush3.bf16.xpose.msk.msra.mxu0 %vm15031_vm3, %v13294_v61 }
0x20e8   :  { %13302 = vmatprep.subr.msk.bf16.mxu0 %vm15031_vm3, %v13300_v5 }
0x20ef   :  { %13305 = vmatpush3.bf16.xpose.msk.msra.mxu0 %vm15031_vm3, %v13300_v5 }
0x20f0   :  { %13308 = vmatprep.subr.msk.bf16.mxu0 %vm15031_vm3, %v13306_v20 }
0x20f7   :  { %13311 = vmatpush3.bf16.xpose.msk.msra.mxu0 %vm15031_vm3, %v13306_v20 }
0x20f8   :  { %13314 = vmatprep.subr.msk.bf16.mxu0 %vm15031_vm3, %v13312_v12 }
0x20fd   :  { %v6705_v50 = vpop.xlane.xlu0 %6704 }
0x20fe   :  { %14343 = vrcp.f32 %v6705_v50 }
0x20ff   :  { %13317 = vmatpush3.bf16.xpose.msk.msra.mxu0 %vm15031_vm3, %v13312_v12 }
0x2101   :  { %v6714_v18 = vpop.xlane.xlu0 %6713 }
0x2104   :  { %v6708_v55 = vpop.xlane.xlu1 %6707 }
0x2105   :  { %14345 = vrcp.f32 %v6708_v55  ;;  %v6711_v33 = vpop.xlane.xlu0 %6710 }
0x2106   :  { %14347 = vrcp.f32 %v6711_v33 }
0x2107   :  { %14349 = vrcp.f32 %v6714_v18 }
0x2108   :  { %v14344_v30 = vpop.eup %14343  ;;  %v6720_v41 = vpop.xlane.xlu1 %6719 }
0x2109   :  { %v6717_v16 = vpop.xlane.xlu0 %6716  ;;  %v6731_v7 = vmul.f32 %v14344_v30, %v17486_v10 }
0x210a   :  { %14351 = vrcp.f32 %v6717_v16 }
0x210b   :  { %14353 = vrcp.f32 %v6720_v41  ;;  %12429 = vmatprep.mubr.msk.f32.mxu0 %vm56_vm0, %v6731_v7 }
0x210c   :  { %v13798_v46 = vpop.permute.xlu1 %13797 }
0x210d   :  { %v13793_v37 = vpop.permute.xlu0 %13792  ;;  %v13800_v8 = vunpack.i.h.bf16 %v13798_v46  ;;  %v13799_v24 = vunpack.i.l.bf16 %v13798_v46 }
0x210e   :  { %v13795_v57 = vunpack.i.h.bf16 %v13793_v37  ;;  %v13794_v36 = vunpack.i.l.bf16 %v13793_v37 }
0x210f   :  { %v14346_v60 = vpop.eup %14345  ;;  %v13322_v20 = vpack.c.bf16 %v13800_v8, %v13799_v24 }
0x2110   :  { %v14348_v6 = vpop.eup %14347  ;;  %v13803_v58 = vpop.permute.xlu1 %13802  ;;  %v6732_v47 = vmul.f32 %v14346_v60, %v17492_v59  ;;  %v13318_v19 = vpack.c.bf16 %v13795_v57, %v13794_v36 }
0x2111   :  { %v14350_v61 = vpop.eup %14349  ;;  %v6733_v28 = vmul.f32 %v14348_v6, %v17496_v43  ;;  %v13805_v10 = vunpack.i.h.bf16 %v13803_v58  ;;  %v13804_v5 = vunpack.i.l.bf16 %v13803_v58 }
0x2112   :  { %12430 = vmatmul.mubr.msk.f32.gmra.mrb[118].mxu0 %vm56_vm0, %v6732_v47  ;;  %13319 = vmatprep.subr.bf16.mxu1 %v13318_v19  ;;  %v6734_v18 = vmul.f32 %v14350_v61, %v17490_v27 }
0x2113   :  { %12432 = vmatprep.mubr.msk.f32.mxu0 %vm56_vm0, %v6733_v28  ;;  %13321 = vmatpush3.bf16.msra.mxu1 %v13318_v19  ;;  %v13326_v43 = vpack.c.bf16 %v13805_v10, %v13804_v5 }
0x2114   :  { %v14352_v12 = vpop.eup %14351  ;;  %v13808_v50 = vpop.permute.xlu1 %13807  ;;  %13323 = vmatprep.subr.bf16.mxu1 %v13322_v20 }
0x2115   :  { %v14354_v55 = vpop.eup %14353  ;;  %v6735_v59 = vmul.f32 %v14352_v12, %v17504_v15  ;;  %v13810_v33 = vunpack.i.h.bf16 %v13808_v50  ;;  %v13809_v30 = vunpack.i.l.bf16 %v13808_v50 }
0x2116   :  { %12433 = vmatmul.mubr.msk.f32.gmra.mrb[120].mxu0 %vm56_vm0, %v6734_v18  ;;  %v6736_v41 = vmul.f32 %v14354_v55, %v17500_v21 }
0x2117   :  { %12435 = vmatprep.mubr.msk.f32.mxu0 %vm56_vm0, %v6735_v59  ;;  %13325 = vmatpush3.bf16.msra.mxu1 %v13322_v20  ;;  %v13330_v16 = vpack.c.bf16 %v13810_v33, %v13809_v30 }
0x2118   :  { %13327 = vmatprep.subr.bf16.mxu1 %v13326_v43 }
0x211a   :  { %12436 = vmatmul.mubr.msk.f32.gmra.mrb[122].mxu0 %vm56_vm0, %v6736_v41 }
0x211b   :  { %12454 = vmatprep.mubr.msk.f32.mxu0 %vm917_vm2, %v17533_v17  ;;  %13329 = vmatpush3.bf16.msra.mxu1 %v13326_v43 }
0x211c   :  { %13331 = vmatprep.subr.bf16.mxu1 %v13330_v16 }
0x211e   :  { %12455 = vmatmul.mubr.msk.f32.vlgmr.msra.gmra.mrb[124].mxu0 %vm917_vm2, %v17530_v38 }
0x211f   :  { %12457 = vmatprep.mubr.msk.f32.mxu0 %vm917_vm2, %v17517_v26  ;;  %13333 = vmatpush3.bf16.msra.mxu1 %v13330_v16 }
0x2122   :  { %12458 = vmatmul.mubr.msk.f32.gmra.mrb[126].mxu0 %vm917_vm2, %v17514_v22 }
0x2123   :  { %12460 = vmatprep.mubr.msk.f32.mxu0 %vm917_vm2, %v17523_v29 }
0x2126   :  { %12461 = vmatmul.mubr.msk.f32.gmra.mrb[128].mxu0 %vm917_vm2, %v17520_v32 }
0x2127   :  { %12463 = vmatprep.mubr.msk.f32.mxu0 %vm917_vm2, %v17541_v1 }
0x212a   :  { %12464 = vmatmul.mubr.msk.f32.gmra.mrb[130].mxu0 %vm917_vm2, %v17538_v9 }
0x21b4   :  { %v17617_v27 = vpop.f32.mrb[116].mxu0 }
0x21b5   :  { %v17619_v21 = vpop.f32.mrb[117].mxu0 }
0x21e5   :  { %v17621_v15 = vpop.f32.mrb[118].mxu0 }
0x21e6   :  { %v17623_v7 = vpop.f32.mrb[119].mxu0 }
0x21e9   :  { %v17625_v46 = vpop.f32.mrb[120].mxu0 }
0x21ea   :  { %19328 = vst [vmem:[#allocation50_spill] sm:$0xff] %v17625_v46  ;;  %v17627_v37 = vpop.f32.mrb[121].mxu0 }
0x21eb   :  { %19329 = vst [vmem:[#allocation49_spill] sm:$0xff] %v17627_v37 }
0x21ed   :  { %v17629_v8 = vpop.f32.mrb[122].mxu0 }
0x21ee   :  { %19330 = vst [vmem:[#allocation52_spill] sm:$0xff] %v17629_v8  ;;  %v17631_v24 = vpop.f32.mrb[123].mxu0 }
0x21ef   :  { %19331 = vst [vmem:[#allocation51_spill] sm:$0xff] %v17631_v24 }
0x21f1   :  { %v12456_v57 = vpop.f32.mrb[124].mxu0 }
0x21f2   :  { %v7140_v36 = vmul.f32 %v12456_v57, %v19317_v14  ;;  %v7100_v60 = vpop.f32.mrb[125].mxu0  ;;  %v7185_v8 = vmul.f32 2.0, %v12456_v57 }
0x21f3   :  { %v7139_v6 = vmul.f32 %v19318_v51, %v7100_v60 }
0x21f4   :  { %v7150_v58 = vsel %vm56_vm0, %v7140_v36, 0.0 }
0x21f5   :  { %7151 = vadd.xlane.f32.xlu1 %v7150_v58  ;;  %v12459_v47 = vpop.f32.mrb[126].mxu0  ;;  %v7147_v19 = vsel %vm56_vm0, %v7139_v6, 0.0 }
0x21f6   :  { %v7142_v61 = vmul.f32 %v12459_v47, %v15233_v40  ;;  %7148 = vadd.xlane.f32.xlu0 %v7147_v19  ;;  %v7171_v28 = vadd.f32 %v7150_v58, %v7147_v19  ;;  %v7110_v10 = vpop.f32.mrb[127].mxu0 }
0x21f7   :  { %v7141_v5 = vmul.f32 %v15237_v45, %v7110_v10 }
0x21f8   :  { %v7156_v20 = vsel %vm56_vm0, %v7142_v61, 0.0 }
0x21f9   :  { %7157 = vadd.xlane.f32.xlu1 %v7156_v20  ;;  %v12462_v12 = vpop.f32.mrb[128].mxu0  ;;  %v7153_v50 = vsel %vm56_vm0, %v7141_v5, 0.0 }
0x21fa   :  { %v7144_v18 = vmul.f32 %v12462_v12, %v15251_v25  ;;  %7154 = vadd.xlane.f32.xlu0 %v7153_v50  ;;  %v7172_v55 = vadd.f32 %v7171_v28, %v7153_v50  ;;  %v7120_v59 = vpop.f32.mrb[129].mxu0 }
0x21fb   :  { %v7143_v33 = vmul.f32 %v19319_v3, %v7120_v59  ;;  %v7188_v57 = vmul.f32 2.0, %v7120_v59 }
0x21fc   :  { %v7162_v30 = vsel %vm56_vm0, %v7144_v18, 0.0  ;;  %v7173_v43 = vadd.f32 %v7172_v55, %v7156_v20 }
0x21fd   :  { %7163 = vadd.xlane.f32.xlu1 %v7162_v30  ;;  %v12465_v41 = vpop.f32.mrb[130].mxu0  ;;  %v7159_v16 = vsel %vm56_vm0, %v7143_v33, 0.0 }
0x21fe   :  { %v7146_v36 = vmul.f32 %v12465_v41, %v19320_v35  ;;  %7160 = vadd.xlane.f32.xlu0 %v7159_v16  ;;  %v7174_v6 = vadd.f32 %v7173_v43, %v7159_v16  ;;  %v7130_v58 = vpop.f32.mrb[131].mxu0 }
0x21ff   :  { %v7145_v19 = vmul.f32 %v19321_v4, %v7130_v58 }
0x2200   :  { %v7168_v61 = vsel %vm56_vm0, %v7146_v36, 0.0  ;;  %v7175_v28 = vadd.f32 %v7174_v6, %v7162_v30  ;;  %v7184_v36 = vmul.f32 2.0, %v7100_v60 }
0x2201   :  { %7169 = vadd.xlane.f32.xlu1 %v7168_v61  ;;  %v7165_v5 = vsel %vm56_vm0, %v7145_v19, 0.0 }
0x2202   :  { %7166 = vadd.xlane.f32.xlu0 %v7165_v5  ;;  %v7176_v50 = vadd.f32 %v7175_v28, %v7165_v5  ;;  %v7187_v28 = vmul.f32 2.0, %v12459_v47  ;;  %v7186_v5 = vmul.f32 2.0, %v7110_v10  ;;  %v7191_v47 = vmul.f32 2.0, %v12465_v41 }
0x2203   :  { %v7190_v10 = vmul.f32 2.0, %v7130_v58 }
0x2204   :  { %v7177_v20 = vadd.f32 %v7176_v50, %v7168_v61 }
0x2206   :  { %v7178_v18 = vrot.slane %v7177_v20, 4 }
0x2208   :  { %v7179_v55 = vadd.f32 %v7178_v18, %v7177_v20  ;;  %v7189_v18 = vmul.f32 2.0, %v12462_v12 }
0x220a   :  { %v7180_v33 = vrot.slane %v7179_v55, 2 }
0x220c   :  { %v7181_v43 = vadd.f32 %v7180_v33, %v7179_v55 }
0x220e   :  { %v7182_v16 = vrot.slane %v7181_v43, 1 }
0x2210   :  { %v7183_v6 = vadd.f32 %v7182_v16, %v7181_v43 }
0x2212   :  { %7427 = vrot.lane.b32.xlu1 %v17530_v38, %s14602_s26 }
0x2218   :  { %7425 = vrot.lane.b32.xlu0 %v17533_v17, %s14602_s26 }
0x2282   :  { %v7152_v30 = vpop.xlane.xlu1 %7151 }
0x2283   :  { %v7193_v24 = vsub.f32 %v7185_v8, %v7152_v30  ;;  %v7149_v19 = vpop.xlane.xlu0 %7148 }
0x2284   :  { %v7192_v48 = vsub.f32 %v7184_v36, %v7149_v19 }
0x2285   :  { %v7201_v61 = vsub.f32 %v7193_v24, %v7183_v6 }
0x2286   :  { %v7200_v50 = vsub.f32 %v7192_v48, %v7183_v6  ;;  %v7158_v46 = vpop.xlane.xlu1 %7157 }
0x2287   :  { %v7209_v37 = vmul.f32 0.35355338, %v7201_v61  ;;  %v7195_v56 = vsub.f32 %v7187_v28, %v7158_v46  ;;  %v7155_v54 = vpop.xlane.xlu0 %7154 }
0x2288   :  { %v7208_v34 = vmul.f32 0.35355338, %v7200_v50  ;;  %v7194_v20 = vsub.f32 %v7186_v5, %v7155_v54 }
0x2289   :  { %v7218_v55 = vmul.f32 1.442695, %v7209_v37  ;;  %v7203_v33 = vsub.f32 %v7195_v56, %v7183_v6 }
0x228a   :  { %v7216_v60 = vmul.f32 1.442695, %v7208_v34  ;;  %v7202_v0 = vsub.f32 %v7194_v20, %v7183_v6  ;;  %v7164_v43 = vpop.xlane.xlu1 %7163 }
0x228b   :  { %14355 = vpow2.f32 %v7218_v55  ;;  %v7197_v8 = vsub.f32 %v7189_v18, %v7164_v43  ;;  %v7161_v16 = vpop.xlane.xlu0 %7160  ;;  %v7211_v20 = vmul.f32 0.35355338, %v7203_v33 }
0x228c   :  { %14357 = vpow2.f32 %v7216_v60  ;;  %v7196_v24 = vsub.f32 %v7188_v57, %v7161_v16 }
0x228d   :  { %v7205_v48 = vsub.f32 %v7197_v8, %v7183_v6  ;;  %v7222_v57 = vmul.f32 1.442695, %v7211_v20 }
0x228e   :  { %v7204_v36 = vsub.f32 %v7196_v24, %v7183_v6  ;;  %v7170_v46 = vpop.xlane.xlu1 %7169 }
0x228f   :  { %v7199_v30 = vsub.f32 %v7191_v47, %v7170_v46  ;;  %v7167_v19 = vpop.xlane.xlu0 %7166  ;;  %v7213_v50 = vmul.f32 0.35355338, %v7205_v48 }
0x2290   :  { %v7198_v54 = vsub.f32 %v7190_v10, %v7167_v19  ;;  %v7212_v55 = vmul.f32 0.35355338, %v7204_v36 }
0x2291   :  { %v7207_v12 = vsub.f32 %v7199_v30, %v7183_v6  ;;  %v7226_v18 = vmul.f32 1.442695, %v7213_v50 }
0x2292   :  { %v7206_v37 = vsub.f32 %v7198_v54, %v7183_v6  ;;  %v17653_v56 = vpop.permute.xlu1 %7427  ;;  %v7210_v6 = vmul.f32 0.35355338, %v7202_v0  ;;  %v7224_v43 = vmul.f32 1.442695, %v7212_v55 }
0x2293   :  { %v17655_v34 = vpop.permute.xlu0 %7425  ;;  %v7215_v8 = vmul.f32 0.35355338, %v7207_v12 }
0x2294   :  { %v17659_v59 = vpack.c.bf16 %v17653_v56, %v17655_v34  ;;  %v7220_v5 = vmul.f32 1.442695, %v7210_v6  ;;  %v7214_v60 = vmul.f32 0.35355338, %v7206_v37 }
0x2295   :  { %v14356_v28 = vpop.eup %14355  ;;  %v7230_v24 = vmul.f32 1.442695, %v7215_v8 }
0x2296   :  { %v14358_v61 = vpop.eup %14357  ;;  %13336 = vmatprep.subr.msk.bf16.mxu1 %vm15031_vm3, %v17659_v59  ;;  %v7235_v41 = vsel %vm56_vm0, %v14356_v28, 0.0  ;;  %14359 = vpow2.f32 %v7220_v5  ;;  %v7228_v16 = vmul.f32 1.442695, %v7214_v60 }
0x2297   :  { %7236 = vadd.xlane.f32.xlu1 %v7235_v41  ;;  %v7232_v58 = vsel %vm56_vm0, %v14358_v61, 0.0  ;;  %14361 = vpow2.f32 %v7226_v18 }
0x2298   :  { %7233 = vadd.xlane.f32.xlu0 %v7232_v58  ;;  %14363 = vpow2.f32 %v7222_v57 }
0x2299   :  { %14365 = vpow2.f32 %v7224_v43 }
0x229a   :  { %14367 = vpow2.f32 %v7228_v16 }
0x229b   :  { %14369 = vpow2.f32 %v7230_v24 }
0x22a0   :  { %v14360_v47 = vpop.eup %14359 }
0x22a1   :  { %v7238_v0 = vsel %vm56_vm0, %v14360_v47, 0.0  ;;  %v17675_v10 = vpop.eup %14361 }
0x22a2   :  { %v17677_v33 = vpop.eup %14363  ;;  %v7247_v48 = vsel %vm56_vm0, %v17675_v10, 0.0 }
0x22a3   :  { %v17681_v36 = vpop.eup %14365  ;;  %v7241_v46 = vsel %vm56_vm0, %v17677_v33, 0.0 }
0x22a4   :  { %v17685_v30 = vpop.eup %14367  ;;  %v7244_v19 = vsel %vm56_vm0, %v17681_v36, 0.0 }
0x22a5   :  { %v17689_v54 = vpop.eup %14369  ;;  %v7250_v12 = vsel %vm56_vm0, %v17685_v30, 0.0 }
0x22a6   :  { %v7253_v37 = vsel %vm56_vm0, %v17689_v54, 0.0 }
0x22a8   :  { %7431 = vrot.lane.b32.xlu1 %v17514_v22, %s14602_s26 }
0x22ac   :  { %7433 = vrot.lane.b32.xlu1 %v17523_v29, %s14602_s26 }
0x22ae   :  { %7429 = vrot.lane.b32.xlu0 %v17517_v26, %s14602_s26 }
0x22b0   :  { %7435 = vrot.lane.b32.xlu1 %v17520_v32, %s14602_s26 }
0x22cd   :  { %7239 = vadd.xlane.f32.xlu0 %v7238_v0 }
0x22d1   :  { %7248 = vadd.xlane.f32.xlu0 %v7247_v48 }
0x22d4   :  { %7242 = vadd.xlane.f32.xlu1 %v7241_v46 }
0x22d5   :  { %7245 = vadd.xlane.f32.xlu0 %v7244_v19 }
0x22d8   :  { %7251 = vadd.xlane.f32.xlu1 %v7250_v12 }
0x22d9   :  { %7254 = vadd.xlane.f32.xlu0 %v7253_v37 }
0x22e9   :  { %7439 = vrot.lane.b32.xlu1 %v17538_v9, %s14602_s26 }
0x22ed   :  { %13817 = vrot.lane.b32.xlu1 %v17527_v31, %s14603_s27 }
0x22ef   :  { %7437 = vrot.lane.b32.xlu0 %v17541_v1, %s14602_s26 }
0x22f1   :  { %13822 = vrot.lane.b32.xlu1 %v17545_v49, %s14603_s27 }
0x22f3   :  { %13812 = vrot.lane.b32.xlu0 %v17551_v53, %s14603_s27 }
0x22f5   :  { %13827 = vrot.lane.b32.xlu1 %v17557_v42, %s14603_s27 }
0x2324   :  { %v7237_v41 = vpop.xlane.xlu1 %7236 }
0x2325   :  { %14371 = vrcp.f32 %v7237_v41  ;;  %v7234_v58 = vpop.xlane.xlu0 %7233 }
0x2326   :  { %14373 = vrcp.f32 %v7234_v58 }
0x2328   :  { %v17707_v6 = vpop.permute.xlu1 %7431 }
0x2329   :  { %v17709_v20 = vpop.permute.xlu0 %7429 }
0x232a   :  { %v13340_v60 = vpack.c.bf16 %v17707_v6, %v17709_v20 }
0x232c   :  { %v17711_v57 = vpop.permute.xlu1 %7433 }
0x232f   :  { %v14372_v5 = vpop.eup %14371 }
0x2330   :  { %v14374_v50 = vpop.eup %14373  ;;  %v7265_v55 = vmul.f32 %v14372_v5, %v14356_v28  ;;  %v17722_v43 = vpop.permute.xlu1 %7435 }
0x2331   :  { %v7264_v18 = vmul.f32 %v14374_v50, %v14358_v61  ;;  %v13346_v28 = vpack.c.bf16 %v17722_v43, %v17711_v57 }
0x2333   :  { %12482 = vmatprep.mubr.msk.f32.mxu1 %vm56_vm0, %v7264_v18 }
0x2334   :  { %12483 = vmatmul.mubr.msk.f32.vlgmr.msra.gmra.mrb[132].mxu1 %vm56_vm0, %v7265_v55 }
0x2335   :  { %13339 = vmatpush3.bf16.xpose.msk.msra.mxu1 %vm15031_vm3, %v17659_v59 }
0x2336   :  { %13342 = vmatprep.subr.msk.bf16.mxu1 %vm15031_vm3, %v13340_v60 }
0x233d   :  { %13345 = vmatpush3.bf16.xpose.msk.msra.mxu1 %vm15031_vm3, %v13340_v60 }
0x233e   :  { %13348 = vmatprep.subr.msk.bf16.mxu1 %vm15031_vm3, %v13346_v28 }
0x2345   :  { %13351 = vmatpush3.bf16.xpose.msk.msra.mxu1 %vm15031_vm3, %v13346_v28 }
0x235a   :  { %v7240_v61 = vpop.xlane.xlu0 %7239 }
0x235b   :  { %14375 = vrcp.f32 %v7240_v61 }
0x235e   :  { %v7249_v59 = vpop.xlane.xlu0 %7248 }
0x2361   :  { %v7243_v8 = vpop.xlane.xlu1 %7242 }
0x2362   :  { %14377 = vrcp.f32 %v7243_v8  ;;  %v7246_v16 = vpop.xlane.xlu0 %7245 }
0x2363   :  { %14379 = vrcp.f32 %v7246_v16 }
0x2364   :  { %14381 = vrcp.f32 %v7249_v59 }
0x2365   :  { %v14376_v24 = vpop.eup %14375  ;;  %v7252_v0 = vpop.xlane.xlu1 %7251 }
0x2366   :  { %14383 = vrcp.f32 %v7252_v0  ;;  %v7255_v48 = vpop.xlane.xlu0 %7254  ;;  %v7266_v46 = vmul.f32 %v14376_v24, %v14360_v47 }
0x2367   :  { %14385 = vrcp.f32 %v7255_v48 }
0x2368   :  { %12485 = vmatprep.mubr.msk.f32.mxu1 %vm56_vm0, %v7266_v46 }
0x2369   :  { %v7440_v19 = vpop.permute.xlu1 %7439 }
0x236a   :  { %v7438_v12 = vpop.permute.xlu0 %7437 }
0x236b   :  { %v13352_v37 = vpack.c.bf16 %v7440_v19, %v7438_v12 }
0x236c   :  { %v14378_v41 = vpop.eup %14377 }
0x236d   :  { %v14380_v58 = vpop.eup %14379  ;;  %v13818_v5 = vpop.permute.xlu1 %13817  ;;  %13354 = vmatprep.subr.msk.bf16.mxu1 %vm15031_vm3, %v13352_v37  ;;  %v7267_v50 = vmul.f32 %v14378_v41, %v17677_v33 }
0x236e   :  { %v14382_v18 = vpop.eup %14381  ;;  %13357 = vmatpush3.bf16.xpose.msk.msra.mxu1 %vm15031_vm3, %v13352_v37  ;;  %v13813_v55 = vpop.permute.xlu0 %13812  ;;  %v7268_v47 = vmul.f32 %v14380_v58, %v17681_v36  ;;  %v13820_v60 = vunpack.i.h.bf16 %v13818_v5  ;;  %v13819_v28 = vunpack.i.l.bf16 %v13818_v5 }
0x236f   :  { %v13815_v61 = vunpack.i.h.bf16 %v13813_v55  ;;  %v13814_v59 = vunpack.i.l.bf16 %v13813_v55  ;;  %12486 = vmatmul.mubr.msk.f32.gmra.mrb[134].mxu1 %vm56_vm0, %v7267_v50  ;;  %v7269_v24 = vmul.f32 %v14382_v18, %v17675_v10 }
0x2370   :  { %v14384_v8 = vpop.eup %14383  ;;  %12488 = vmatprep.mubr.msk.f32.mxu1 %vm56_vm0, %v7268_v47  ;;  %v13362_v36 = vpack.c.bf16 %v13820_v60, %v13819_v28 }
0x2371   :  { %v13823_v16 = vpop.permute.xlu1 %13822  ;;  %v13358_v33 = vpack.c.bf16 %v13815_v61, %v13814_v59  ;;  %v7270_v0 = vmul.f32 %v14384_v8, %v17685_v30  ;;  %v14386_v48 = vpop.eup %14385 }
0x2372   :  { %v13825_v46 = vunpack.i.h.bf16 %v13823_v16  ;;  %v13824_v37 = vunpack.i.l.bf16 %v13823_v16  ;;  %v7271_v58 = vmul.f32 %v14386_v48, %v17689_v54 }
0x2373   :  { %12489 = vmatmul.mubr.msk.f32.gmra.mrb[136].mxu1 %vm56_vm0, %v7269_v24  ;;  %13359 = vmatprep.subr.bf16.mxu0 %v13358_v33 }
0x2374   :  { %12491 = vmatprep.mubr.msk.f32.mxu1 %vm56_vm0, %v7270_v0  ;;  %13361 = vmatpush3.bf16.msra.mxu0 %v13358_v33  ;;  %v13366_v10 = vpack.c.bf16 %v13825_v46, %v13824_v37 }
0x2375   :  { %v13828_v41 = vpop.permute.xlu1 %13827  ;;  %13363 = vmatprep.subr.bf16.mxu0 %v13362_v36 }
0x2376   :  { %v13830_v5 = vunpack.i.h.bf16 %v13828_v41  ;;  %v13829_v50 = vunpack.i.l.bf16 %v13828_v41 }
0x2377   :  { %12492 = vmatmul.mubr.msk.f32.gmra.mrb[138].mxu1 %vm56_vm0, %v7271_v58 }
0x2378   :  { %12510 = vmatprep.mubr.msk.f32.mxu1 %vm917_vm2, %v17655_v34  ;;  %13365 = vmatpush3.bf16.msra.mxu0 %v13362_v36  ;;  %v13370_v30 = vpack.c.bf16 %v13830_v5, %v13829_v50 }
0x2379   :  { %13367 = vmatprep.subr.bf16.mxu0 %v13366_v10 }
0x237b   :  { %12511 = vmatmul.mubr.msk.f32.vlgmr.msra.gmra.mrb[140].mxu1 %vm917_vm2, %v17653_v56 }
0x237c   :  { %12513 = vmatprep.mubr.msk.f32.mxu1 %vm917_vm2, %v17709_v20  ;;  %13369 = vmatpush3.bf16.msra.mxu0 %v13366_v10 }
0x237d   :  { %13371 = vmatprep.subr.bf16.mxu0 %v13370_v30 }
0x237f   :  { %12514 = vmatmul.mubr.msk.f32.gmra.mrb[142].mxu1 %vm917_vm2, %v17707_v6 }
0x2380   :  { %12516 = vmatprep.mubr.msk.f32.mxu1 %vm917_vm2, %v17711_v57  ;;  %13373 = vmatpush3.bf16.msra.mxu0 %v13370_v30 }
0x2383   :  { %12517 = vmatmul.mubr.msk.f32.gmra.mrb[144].mxu1 %vm917_vm2, %v17722_v43 }
0x2384   :  { %12519 = vmatprep.mubr.msk.f32.mxu1 %vm917_vm2, %v7438_v12 }
0x2387   :  { %12520 = vmatmul.mubr.msk.f32.gmra.mrb[146].mxu1 %vm917_vm2, %v7440_v19 }
0x2407   :  { %v17761_v56 = vpop.f32.mrb[132].mxu1 }
0x2408   :  { %19332 = vst [vmem:[#allocation10_spill] sm:$0xff] %v17761_v56  ;;  %v17763_v34 = vpop.f32.mrb[133].mxu1 }
0x2409   :  { %19333 = vst [vmem:[#allocation11_spill] sm:$0xff] %v17763_v34 }
0x2442   :  { %v17765_v54 = vpop.f32.mrb[134].mxu1 }
0x2443   :  { %19334 = vst [vmem:[#allocation12_spill] sm:$0xff] %v17765_v54  ;;  %v17767_v20 = vpop.f32.mrb[135].mxu1 }
0x2444   :  { %19335 = vst [vmem:[#allocation13_spill] sm:$0xff] %v17767_v20 }
0x2446   :  { %v17769_v6 = vpop.f32.mrb[136].mxu1 }
0x2447   :  { %19336 = vst [vmem:[#allocation14_spill] sm:$0xff] %v17769_v6  ;;  %v17771_v18 = vpop.f32.mrb[137].mxu1 }
0x2448   :  { %19337 = vst [vmem:[#allocation15_spill] sm:$0xff] %v17771_v18 }
0x244a   :  { %v17773_v57 = vpop.f32.mrb[138].mxu1 }
0x244b   :  { %19338 = vst [vmem:[#allocation16_spill] sm:$0xff] %v17773_v57  ;;  %v17775_v55 = vpop.f32.mrb[139].mxu1 }
0x244c   :  { %19339 = vst [vmem:[#allocation17_spill] sm:$0xff] %v17775_v55 }
0x244e   :  { %v12512_v43 = vpop.f32.mrb[140].mxu1 }
0x244f   :  { %v7563_v12 = vmul.f32 %v12512_v43, %v19317_v14  ;;  %v7523_v19 = vpop.f32.mrb[141].mxu1 }
0x2450   :  { %v7562_v47 = vmul.f32 %v19318_v51, %v7523_v19 }
0x2451   :  { %v7573_v60 = vsel %vm56_vm0, %v7563_v12, 0.0 }
0x2452   :  { %7574 = vadd.xlane.f32.xlu1 %v7573_v60  ;;  %v12515_v28 = vpop.f32.mrb[142].mxu1  ;;  %v7570_v61 = vsel %vm56_vm0, %v7562_v47, 0.0 }
0x2453   :  { %v7565_v59 = vmul.f32 %v12515_v28, %v15233_v40  ;;  %7571 = vadd.xlane.f32.xlu0 %v7570_v61  ;;  %v7594_v8 = vadd.f32 %v7573_v60, %v7570_v61  ;;  %v7533_v16 = vpop.f32.mrb[143].mxu1 }
0x2454   :  { %v7564_v24 = vmul.f32 %v15237_v45, %v7533_v16 }
0x2455   :  { %v7579_v33 = vsel %vm56_vm0, %v7565_v59, 0.0 }
0x2456   :  { %v12518_v0 = vpop.f32.mrb[144].mxu1  ;;  %v7576_v48 = vsel %vm56_vm0, %v7564_v24, 0.0 }
0x2457   :  { %v7567_v46 = vmul.f32 %v12518_v0, %v15251_v25  ;;  %7580 = vadd.xlane.f32.xlu0 %v7579_v33  ;;  %v7543_v37 = vpop.f32.mrb[145].mxu1  ;;  %v7595_v36 = vadd.f32 %v7594_v8, %v7576_v48  ;;  %v7612_v20 = vmul.f32 2.0, %v12518_v0 }
0x2458   :  { %v7566_v41 = vmul.f32 %v19319_v3, %v7543_v37 }
0x2459   :  { %v7585_v58 = vsel %vm56_vm0, %v7567_v46, 0.0  ;;  %v7596_v5 = vadd.f32 %v7595_v36, %v7579_v33 }
0x245a   :  { %7586 = vadd.xlane.f32.xlu1 %v7585_v58  ;;  %v12521_v50 = vpop.f32.mrb[146].mxu1  ;;  %v7582_v10 = vsel %vm56_vm0, %v7566_v41, 0.0 }
0x245b   :  { %v7569_v30 = vmul.f32 %v12521_v50, %v19320_v35  ;;  %7577 = vadd.xlane.f32.xlu0 %v7576_v48  ;;  %v7553_v12 = vpop.f32.mrb[147].mxu1  ;;  %v7597_v47 = vadd.f32 %v7596_v5, %v7582_v10 }
0x245c   :  { %v7568_v60 = vmul.f32 %v19321_v4, %v7553_v12  ;;  %v7613_v0 = vmul.f32 2.0, %v7553_v12 }
0x245d   :  { %v7591_v61 = vsel %vm56_vm0, %v7569_v30, 0.0  ;;  %v7598_v59 = vadd.f32 %v7597_v47, %v7585_v58  ;;  %v7608_v30 = vmul.f32 2.0, %v12512_v43  ;;  %v7607_v58 = vmul.f32 2.0, %v7523_v19 }
0x245e   :  { %7592 = vadd.xlane.f32.xlu1 %v7591_v61  ;;  %v7588_v8 = vsel %vm56_vm0, %v7568_v60, 0.0 }
0x245f   :  { %7583 = vadd.xlane.f32.xlu0 %v7582_v10  ;;  %v7599_v24 = vadd.f32 %v7598_v59, %v7588_v8 }
0x2461   :  { %v7600_v33 = vadd.f32 %v7599_v24, %v7591_v61 }
0x2463   :  { %7589 = vadd.xlane.f32.xlu0 %v7588_v8  ;;  %v7601_v48 = vrot.slane %v7600_v33, 4  ;;  %v7610_v8 = vmul.f32 2.0, %v12515_v28 }
0x2465   :  { %v7602_v46 = vadd.f32 %v7601_v48, %v7600_v33  ;;  %v7609_v33 = vmul.f32 2.0, %v7533_v16 }
0x2467   :  { %v7603_v36 = vrot.slane %v7602_v46, 2 }
0x2469   :  { %v7604_v41 = vadd.f32 %v7603_v36, %v7602_v46 }
0x246b   :  { %v7605_v5 = vrot.slane %v7604_v41, 1 }
0x246d   :  { %v7606_v57 = vadd.f32 %v7605_v5, %v7604_v41  ;;  %v7614_v5 = vmul.f32 2.0, %v12521_v50 }
0x246f   :  { %7850 = vrot.lane.b32.xlu1 %v17530_v38, %s14605_s28 }
0x2479   :  { %7848 = vrot.lane.b32.xlu0 %v17533_v17, %s14605_s28 }
0x24df   :  { %v7575_v47 = vpop.xlane.xlu1 %7574 }
0x24e0   :  { %v7616_v60 = vsub.f32 %v7608_v30, %v7575_v47  ;;  %v7572_v10 = vpop.xlane.xlu0 %7571 }
0x24e1   :  { %v7615_v59 = vsub.f32 %v7607_v58, %v7572_v10  ;;  %v7611_v58 = vmul.f32 2.0, %v7543_v37 }
0x24e2   :  { %v7624_v61 = vsub.f32 %v7616_v60, %v7606_v57 }
0x24e3   :  { %v7623_v24 = vsub.f32 %v7615_v59, %v7606_v57 }
0x24e4   :  { %v7632_v55 = vmul.f32 0.35355338, %v7624_v61  ;;  %v7581_v6 = vpop.xlane.xlu0 %7580 }
0x24e5   :  { %v7631_v18 = vmul.f32 0.35355338, %v7623_v24  ;;  %v7618_v54 = vsub.f32 %v7610_v8, %v7581_v6 }
0x24e6   :  { %v7641_v56 = vmul.f32 1.442695, %v7632_v55 }
0x24e7   :  { %v7639_v48 = vmul.f32 1.442695, %v7631_v18  ;;  %v7626_v46 = vsub.f32 %v7618_v54, %v7606_v57  ;;  %v7587_v36 = vpop.xlane.xlu1 %7586 }
0x24e8   :  { %14387 = vpow2.f32 %v7641_v56  ;;  %v7620_v43 = vsub.f32 %v7612_v20, %v7587_v36  ;;  %v7578_v19 = vpop.xlane.xlu0 %7577 }
0x24e9   :  { %14389 = vpow2.f32 %v7639_v48  ;;  %v7617_v41 = vsub.f32 %v7609_v33, %v7578_v19  ;;  %v7634_v48 = vmul.f32 0.35355338, %v7626_v46 }
0x24ea   :  { %v7628_v30 = vsub.f32 %v7620_v43, %v7606_v57 }
0x24eb   :  { %v7625_v28 = vsub.f32 %v7617_v41, %v7606_v57  ;;  %v7593_v47 = vpop.xlane.xlu1 %7592  ;;  %v7645_v19 = vmul.f32 1.442695, %v7634_v48 }
0x24ec   :  { %v7622_v60 = vsub.f32 %v7614_v5, %v7593_v47  ;;  %v7584_v10 = vpop.xlane.xlu0 %7583  ;;  %v7636_v24 = vmul.f32 0.35355338, %v7628_v30 }
0x24ed   :  { %v7619_v59 = vsub.f32 %v7611_v58, %v7584_v10 }
0x24ee   :  { %v7630_v6 = vsub.f32 %v7622_v60, %v7606_v57  ;;  %v7649_v36 = vmul.f32 1.442695, %v7636_v24 }
0x24ef   :  { %v7627_v55 = vsub.f32 %v7619_v59, %v7606_v57  ;;  %v17803_v61 = vpop.permute.xlu1 %7850 }
0x24f0   :  { %v7590_v16 = vpop.xlane.xlu0 %7589  ;;  %v7638_v5 = vmul.f32 0.35355338, %v7630_v6 }
0x24f1   :  { %v7621_v18 = vsub.f32 %v7613_v0, %v7590_v16  ;;  %v7635_v43 = vmul.f32 0.35355338, %v7627_v55 }
0x24f2   :  { %v17797_v54 = vpop.eup %14387  ;;  %v7653_v60 = vmul.f32 1.442695, %v7638_v5 }
0x24f3   :  { %v17799_v56 = vpop.eup %14389  ;;  %v7629_v20 = vsub.f32 %v7621_v18, %v7606_v57  ;;  %v7658_v50 = vsel %vm56_vm0, %v17797_v54, 0.0  ;;  %v7633_v57 = vmul.f32 0.35355338, %v7625_v28  ;;  %v7647_v58 = vmul.f32 1.442695, %v7635_v43 }
0x24f4   :  { %7659 = vadd.xlane.f32.xlu1 %v7658_v50  ;;  %v17805_v37 = vpop.permute.xlu0 %7848  ;;  %v7655_v8 = vsel %vm56_vm0, %v17799_v56, 0.0 }
0x24f5   :  { %v17811_v12 = vpack.c.bf16 %v17803_v61, %v17805_v37  ;;  %7656 = vadd.xlane.f32.xlu0 %v7655_v8  ;;  %v7643_v33 = vmul.f32 1.442695, %v7633_v57  ;;  %v7637_v41 = vmul.f32 0.35355338, %v7629_v20 }
0x24f7   :  { %13376 = vmatprep.subr.msk.bf16.mxu0 %vm15031_vm3, %v17811_v12  ;;  %14391 = vpow2.f32 %v7643_v33  ;;  %v7651_v47 = vmul.f32 1.442695, %v7637_v41 }
0x24f8   :  { %14393 = vpow2.f32 %v7649_v36 }
0x24f9   :  { %14395 = vpow2.f32 %v7645_v19 }
0x24fa   :  { %14397 = vpow2.f32 %v7647_v58 }
0x24fb   :  { %14399 = vpow2.f32 %v7651_v47 }
0x24fc   :  { %14401 = vpow2.f32 %v7653_v60 }
0x2501   :  { %v14392_v10 = vpop.eup %14391 }
0x2502   :  { %v7661_v28 = vsel %vm56_vm0, %v14392_v10, 0.0  ;;  %v17825_v30 = vpop.eup %14393 }
0x2503   :  { %v17827_v46 = vpop.eup %14395  ;;  %v7670_v59 = vsel %vm56_vm0, %v17825_v30, 0.0 }
0x2504   :  { %v17831_v0 = vpop.eup %14397  ;;  %v7664_v6 = vsel %vm56_vm0, %v17827_v46, 0.0 }
0x2505   :  { %7854 = vrot.lane.b32.xlu1 %v17514_v22, %s14605_s28  ;;  %v17835_v55 = vpop.eup %14399  ;;  %v7667_v16 = vsel %vm56_vm0, %v17831_v0, 0.0 }
0x2506   :  { %v17839_v18 = vpop.eup %14401  ;;  %v7673_v20 = vsel %vm56_vm0, %v17835_v55, 0.0 }
0x2507   :  { %v7676_v50 = vsel %vm56_vm0, %v17839_v18, 0.0 }
0x2509   :  { %7856 = vrot.lane.b32.xlu1 %v17523_v29, %s14605_s28 }
0x250b   :  { %7852 = vrot.lane.b32.xlu0 %v17517_v26, %s14605_s28 }
0x250d   :  { %7858 = vrot.lane.b32.xlu1 %v17520_v32, %s14605_s28 }
0x252a   :  { %7662 = vadd.xlane.f32.xlu0 %v7661_v28 }
0x252e   :  { %7671 = vadd.xlane.f32.xlu0 %v7670_v59 }
0x2531   :  { %7665 = vadd.xlane.f32.xlu1 %v7664_v6 }
0x2532   :  { %7668 = vadd.xlane.f32.xlu0 %v7667_v16 }
0x2535   :  { %7674 = vadd.xlane.f32.xlu1 %v7673_v20 }
0x2536   :  { %7677 = vadd.xlane.f32.xlu0 %v7676_v50 }
0x2546   :  { %7862 = vrot.lane.b32.xlu1 %v17538_v9, %s14605_s28 }
0x254a   :  { %13837 = vrot.lane.b32.xlu1 %v17527_v31, %s14606_s29 }
0x254c   :  { %7860 = vrot.lane.b32.xlu0 %v17541_v1, %s14605_s28 }
0x254e   :  { %13842 = vrot.lane.b32.xlu1 %v17545_v49, %s14606_s29 }
0x2550   :  { %13832 = vrot.lane.b32.xlu0 %v17551_v53, %s14606_s29 }
0x2552   :  { %13847 = vrot.lane.b32.xlu1 %v17557_v42, %s14606_s29  ;;  %s14613_s29 = smov 64  }
0x2581   :  { %v7660_v8 = vpop.xlane.xlu1 %7659 }
0x2582   :  { %14403 = vrcp.f32 %v7660_v8  ;;  %v7657_v57 = vpop.xlane.xlu0 %7656 }
0x2583   :  { %14405 = vrcp.f32 %v7657_v57 }
0x2585   :  { %v17857_v24 = vpop.permute.xlu1 %7854 }
0x2586   :  { %v17859_v36 = vpop.permute.xlu0 %7852 }
0x2587   :  { %v13380_v5 = vpack.c.bf16 %v17857_v24, %v17859_v36 }
0x2589   :  { %v17863_v41 = vpop.permute.xlu1 %7856 }
0x258c   :  { %v14404_v33 = vpop.eup %14403 }
0x258d   :  { %v14406_v48 = vpop.eup %14405  ;;  %v7688_v19 = vmul.f32 %v14404_v33, %v17797_v54  ;;  %v17874_v58 = vpop.permute.xlu1 %7858 }
0x258e   :  { %v7687_v43 = vmul.f32 %v14406_v48, %v17799_v56  ;;  %v13386_v54 = vpack.c.bf16 %v17874_v58, %v17863_v41 }
0x2590   :  { %12538 = vmatprep.mubr.msk.f32.mxu0 %vm56_vm0, %v7687_v43 }
0x2591   :  { %12539 = vmatmul.mubr.msk.f32.vlgmr.msra.gmra.mrb[132].mxu0 %vm56_vm0, %v7688_v19 }
0x2592   :  { %13379 = vmatpush3.bf16.xpose.msk.msra.mxu0 %vm15031_vm3, %v17811_v12 }
0x2593   :  { %13382 = vmatprep.subr.msk.bf16.mxu0 %vm15031_vm3, %v13380_v5 }
0x259a   :  { %13385 = vmatpush3.bf16.xpose.msk.msra.mxu0 %vm15031_vm3, %v13380_v5 }
0x259b   :  { %13388 = vmatprep.subr.msk.bf16.mxu0 %vm15031_vm3, %v13386_v54 }
0x25a2   :  { %13391 = vmatpush3.bf16.xpose.msk.msra.mxu0 %vm15031_vm3, %v13386_v54 }
0x25b7   :  { %v7663_v56 = vpop.xlane.xlu0 %7662 }
0x25b8   :  { %14407 = vrcp.f32 %v7663_v56 }
0x25bb   :  { %v7672_v12 = vpop.xlane.xlu0 %7671 }
0x25be   :  { %v7666_v47 = vpop.xlane.xlu1 %7665 }
0x25bf   :  { %14409 = vrcp.f32 %v7666_v47  ;;  %v7669_v60 = vpop.xlane.xlu0 %7668 }
0x25c0   :  { %14411 = vrcp.f32 %v7669_v60 }
0x25c1   :  { %14413 = vrcp.f32 %v7672_v12 }
0x25c2   :  { %v14408_v28 = vpop.eup %14407  ;;  %v7675_v59 = vpop.xlane.xlu1 %7674 }
0x25c3   :  { %14415 = vrcp.f32 %v7675_v59  ;;  %v7678_v6 = vpop.xlane.xlu0 %7677  ;;  %v7689_v16 = vmul.f32 %v14408_v28, %v14392_v10 }
0x25c4   :  { %14417 = vrcp.f32 %v7678_v6 }
0x25c5   :  { %12541 = vmatprep.mubr.msk.f32.mxu0 %vm56_vm0, %v7689_v16 }
0x25c6   :  { %v7863_v20 = vpop.permute.xlu1 %7862 }
0x25c7   :  { %v7861_v50 = vpop.permute.xlu0 %7860 }
0x25c8   :  { %v13392_v8 = vpack.c.bf16 %v7863_v20, %v7861_v50 }
0x25c9   :  { %v14410_v57 = vpop.eup %14409 }
0x25ca   :  { %v14412_v33 = vpop.eup %14411  ;;  %v13838_v48 = vpop.permute.xlu1 %13837  ;;  %13394 = vmatprep.subr.msk.bf16.mxu0 %vm15031_vm3, %v13392_v8  ;;  %v7690_v43 = vmul.f32 %v14410_v57, %v17827_v46 }
0x25cb   :  { %v14414_v19 = vpop.eup %14413  ;;  %v13833_v5 = vpop.permute.xlu0 %13832  ;;  %13397 = vmatpush3.bf16.xpose.msk.msra.mxu0 %vm15031_vm3, %v13392_v8  ;;  %v7691_v10 = vmul.f32 %v14412_v33, %v17831_v0  ;;  %v13840_v54 = vunpack.i.h.bf16 %v13838_v48  ;;  %v13839_v56 = vunpack.i.l.bf16 %v13838_v48 }
0x25cc   :  { %v13835_v12 = vunpack.i.h.bf16 %v13833_v5  ;;  %v13834_v47 = vunpack.i.l.bf16 %v13833_v5  ;;  %12542 = vmatmul.mubr.msk.f32.gmra.mrb[134].mxu0 %vm56_vm0, %v7690_v43  ;;  %v7692_v59 = vmul.f32 %v14414_v19, %v17825_v30 }
0x25cd   :  { %v14416_v60 = vpop.eup %14415  ;;  %12544 = vmatprep.mubr.msk.f32.mxu0 %vm56_vm0, %v7691_v10  ;;  %v13402_v0 = vpack.c.bf16 %v13840_v54, %v13839_v56 }
0x25ce   :  { %v13843_v28 = vpop.permute.xlu1 %13842  ;;  %v13398_v46 = vpack.c.bf16 %v13835_v12, %v13834_v47  ;;  %v7693_v6 = vmul.f32 %v14416_v60, %v17835_v55  ;;  %v14418_v16 = vpop.eup %14417 }
0x25cf   :  { %v13845_v57 = vunpack.i.h.bf16 %v13843_v28  ;;  %v13844_v8 = vunpack.i.l.bf16 %v13843_v28  ;;  %v7694_v48 = vmul.f32 %v14418_v16, %v17839_v18 }
0x25d0   :  { %12545 = vmatmul.mubr.msk.f32.gmra.mrb[136].mxu0 %vm56_vm0, %v7692_v59  ;;  %13399 = vmatprep.subr.bf16.mxu1 %v13398_v46 }
0x25d1   :  { %12547 = vmatprep.mubr.msk.f32.mxu0 %vm56_vm0, %v7693_v6  ;;  %13401 = vmatpush3.bf16.msra.mxu1 %v13398_v46  ;;  %v13406_v30 = vpack.c.bf16 %v13845_v57, %v13844_v8 }
0x25d2   :  { %v13848_v33 = vpop.permute.xlu1 %13847  ;;  %13403 = vmatprep.subr.bf16.mxu1 %v13402_v0 }
0x25d3   :  { %v13850_v43 = vunpack.i.h.bf16 %v13848_v33  ;;  %v13849_v5 = vunpack.i.l.bf16 %v13848_v33 }
0x25d4   :  { %12548 = vmatmul.mubr.msk.f32.gmra.mrb[138].mxu0 %vm56_vm0, %v7694_v48 }
0x25d5   :  { %12566 = vmatprep.mubr.msk.f32.mxu0 %vm917_vm2, %v17805_v37  ;;  %13405 = vmatpush3.bf16.msra.mxu1 %v13402_v0  ;;  %v13410_v55 = vpack.c.bf16 %v13850_v43, %v13849_v5 }
0x25d6   :  { %13407 = vmatprep.subr.bf16.mxu1 %v13406_v30 }
0x25d8   :  { %12567 = vmatmul.mubr.msk.f32.vlgmr.msra.gmra.mrb[140].mxu0 %vm917_vm2, %v17803_v61 }
0x25d9   :  { %12569 = vmatprep.mubr.msk.f32.mxu0 %vm917_vm2, %v17859_v36  ;;  %13409 = vmatpush3.bf16.msra.mxu1 %v13406_v30 }
0x25da   :  { %13411 = vmatprep.subr.bf16.mxu1 %v13410_v55 }
0x25dc   :  { %12570 = vmatmul.mubr.msk.f32.gmra.mrb[142].mxu0 %vm917_vm2, %v17857_v24 }
0x25dd   :  { %12572 = vmatprep.mubr.msk.f32.mxu0 %vm917_vm2, %v17863_v41  ;;  %13413 = vmatpush3.bf16.msra.mxu1 %v13410_v55 }
0x25e0   :  { %12573 = vmatmul.mubr.msk.f32.gmra.mrb[144].mxu0 %vm917_vm2, %v17874_v58 }
0x25e1   :  { %12575 = vmatprep.mubr.msk.f32.mxu0 %vm917_vm2, %v7861_v50 }
0x25e4   :  { %12576 = vmatmul.mubr.msk.f32.gmra.mrb[146].mxu0 %vm917_vm2, %v7863_v20 }
0x2664   :  { %v17913_v61 = vpop.f32.mrb[132].mxu0 }
0x2665   :  { %v17915_v37 = vpop.f32.mrb[133].mxu0 }
0x269f   :  { %v17917_v18 = vpop.f32.mrb[134].mxu0 }
0x26a0   :  { %19340 = vst [vmem:[#allocation38_spill] sm:$0xff] %v17917_v18  ;;  %v17919_v36 = vpop.f32.mrb[135].mxu0 }
0x26a3   :  { %v17921_v24 = vpop.f32.mrb[136].mxu0 }
0x26a4   :  { %19341 = vst [vmem:[#allocation37_spill] sm:$0xff] %v17921_v24  ;;  %v17923_v19 = vpop.f32.mrb[137].mxu0 }
0x26a5   :  { %19342 = vst [vmem:[#allocation2_spill] sm:$0xff] %v17923_v19 }
0x26a7   :  { %v17925_v41 = vpop.f32.mrb[138].mxu0 }
0x26a8   :  { %19343 = vst [vmem:[#allocation18_spill] sm:$0xff] %v17925_v41  ;;  %v17927_v10 = vpop.f32.mrb[139].mxu0 }
0x26a9   :  { %19344 = vst [vmem:[#allocation26_spill] sm:$0xff] %v17927_v10 }
0x26ab   :  { %v12568_v58 = vpop.f32.mrb[140].mxu0 }
0x26ac   :  { %v7986_v50 = vmul.f32 %v12568_v58, %v19317_v14  ;;  %v7946_v20 = vpop.f32.mrb[141].mxu0 }
0x26ad   :  { %v7985_v54 = vmul.f32 %v19318_v51, %v7946_v20 }
0x26ae   :  { %v7996_v56 = vsel %vm56_vm0, %v7986_v50, 0.0 }
0x26af   :  { %7997 = vadd.xlane.f32.xlu1 %v7996_v56  ;;  %v12571_v12 = vpop.f32.mrb[142].mxu0  ;;  %v7993_v47 = vsel %vm56_vm0, %v7985_v54, 0.0 }
0x26b0   :  { %v7988_v60 = vmul.f32 %v12571_v12, %v15233_v40  ;;  %7994 = vadd.xlane.f32.xlu0 %v7993_v47  ;;  %v8017_v28 = vadd.f32 %v7996_v56, %v7993_v47  ;;  %v7956_v59 = vpop.f32.mrb[143].mxu0 }
0x26b1   :  { %v7987_v46 = vmul.f32 %v15237_v45, %v7956_v59 }
0x26b2   :  { %v8002_v6 = vsel %vm56_vm0, %v7988_v60, 0.0 }
0x26b3   :  { %v12574_v16 = vpop.f32.mrb[144].mxu0  ;;  %v7999_v57 = vsel %vm56_vm0, %v7987_v46, 0.0 }
0x26b4   :  { %v7990_v8 = vmul.f32 %v12574_v16, %v15251_v25  ;;  %8003 = vadd.xlane.f32.xlu0 %v8002_v6  ;;  %v7966_v0 = vpop.f32.mrb[145].mxu0  ;;  %v8018_v33 = vadd.f32 %v8017_v28, %v7999_v57 }
0x26b5   :  { %v7989_v48 = vmul.f32 %v19319_v3, %v7966_v0 }
0x26b6   :  { %v8008_v43 = vsel %vm56_vm0, %v7990_v8, 0.0  ;;  %v8019_v5 = vadd.f32 %v8018_v33, %v8002_v6 }
0x26b7   :  { %8009 = vadd.xlane.f32.xlu1 %v8008_v43  ;;  %v12577_v30 = vpop.f32.mrb[146].mxu0  ;;  %v8005_v55 = vsel %vm56_vm0, %v7989_v48, 0.0 }
0x26b8   :  { %v7992_v50 = vmul.f32 %v12577_v30, %v19320_v35  ;;  %8000 = vadd.xlane.f32.xlu0 %v7999_v57  ;;  %v7976_v54 = vpop.f32.mrb[147].mxu0  ;;  %v8020_v56 = vadd.f32 %v8019_v5, %v8005_v55 }
0x26b9   :  { %v7991_v47 = vmul.f32 %v19321_v4, %v7976_v54 }
0x26ba   :  { %v8014_v60 = vsel %vm56_vm0, %v7992_v50, 0.0  ;;  %v8021_v46 = vadd.f32 %v8020_v56, %v8008_v43  ;;  %v8031_v50 = vmul.f32 2.0, %v12568_v58  ;;  %v8030_v43 = vmul.f32 2.0, %v7946_v20 }
0x26bb   :  { %8015 = vadd.xlane.f32.xlu1 %v8014_v60  ;;  %v8011_v28 = vsel %vm56_vm0, %v7991_v47, 0.0 }
0x26bc   :  { %8006 = vadd.xlane.f32.xlu0 %v8005_v55  ;;  %v8022_v8 = vadd.f32 %v8021_v46, %v8011_v28 }
0x26be   :  { %v8023_v6 = vadd.f32 %v8022_v8, %v8014_v60 }
0x26c0   :  { %8012 = vadd.xlane.f32.xlu0 %v8011_v28  ;;  %v8024_v57 = vrot.slane %v8023_v6, 4  ;;  %v8033_v28 = vmul.f32 2.0, %v12571_v12 }
0x26c2   :  { %v8025_v33 = vadd.f32 %v8024_v57, %v8023_v6  ;;  %v8032_v6 = vmul.f32 2.0, %v7956_v59 }
0x26c4   :  { %v8026_v48 = vrot.slane %v8025_v33, 2 }
0x26c6   :  { %v8027_v5 = vadd.f32 %v8026_v48, %v8025_v33 }
0x26c8   :  { %v8028_v34 = vrot.slane %v8027_v5, 1 }
0x26ca   :  { %v8029_v10 = vadd.f32 %v8028_v34, %v8027_v5  ;;  %v8037_v5 = vmul.f32 2.0, %v12577_v30 }
0x26cc   :  { %8273 = vrot.lane.b32.xlu1 %v17530_v38, %s14607_s30 }
0x26d6   :  { %8271 = vrot.lane.b32.xlu0 %v17533_v17, %s14607_s30  ;;  %v8035_v17 = vmul.f32 2.0, %v12574_v16  ;;  %v8036_v16 = vmul.f32 2.0, %v7976_v54 }
0x273c   :  { %v7998_v56 = vpop.xlane.xlu1 %7997 }
0x273d   :  { %v8039_v47 = vsub.f32 %v8031_v50, %v7998_v56  ;;  %v7995_v55 = vpop.xlane.xlu0 %7994 }
0x273e   :  { %v8038_v46 = vsub.f32 %v8030_v43, %v7995_v55  ;;  %v8034_v43 = vmul.f32 2.0, %v7966_v0 }
0x273f   :  { %v8047_v60 = vsub.f32 %v8039_v47, %v8029_v10 }
0x2740   :  { %v8046_v8 = vsub.f32 %v8038_v46, %v8029_v10 }
0x2741   :  { %v8055_v41 = vmul.f32 0.35355338, %v8047_v60  ;;  %v8004_v38 = vpop.xlane.xlu0 %8003 }
0x2742   :  { %v8054_v24 = vmul.f32 0.35355338, %v8046_v8  ;;  %v8041_v19 = vsub.f32 %v8033_v28, %v8004_v38 }
0x2743   :  { %v8064_v18 = vmul.f32 1.442695, %v8055_v41 }
0x2744   :  { %v8062_v57 = vmul.f32 1.442695, %v8054_v24  ;;  %v8049_v33 = vsub.f32 %v8041_v19, %v8029_v10  ;;  %v8010_v48 = vpop.xlane.xlu1 %8009 }
0x2745   :  { %14419 = vpow2.f32 %v8064_v18  ;;  %v8043_v58 = vsub.f32 %v8035_v17, %v8010_v48  ;;  %v8001_v20 = vpop.xlane.xlu0 %8000 }
0x2746   :  { %14421 = vpow2.f32 %v8062_v57  ;;  %v8040_v34 = vsub.f32 %v8032_v6, %v8001_v20  ;;  %v8057_v57 = vmul.f32 0.35355338, %v8049_v33 }
0x2747   :  { %v8051_v50 = vsub.f32 %v8043_v58, %v8029_v10 }
0x2748   :  { %v8048_v12 = vsub.f32 %v8040_v34, %v8029_v10  ;;  %v8016_v56 = vpop.xlane.xlu1 %8015  ;;  %v8068_v20 = vmul.f32 1.442695, %v8057_v57 }
0x2749   :  { %v8045_v47 = vsub.f32 %v8037_v5, %v8016_v56  ;;  %v8007_v55 = vpop.xlane.xlu0 %8006  ;;  %v8059_v54 = vmul.f32 0.35355338, %v8051_v50 }
0x274a   :  { %v8042_v46 = vsub.f32 %v8034_v43, %v8007_v55 }
0x274b   :  { %v8053_v60 = vsub.f32 %v8045_v47, %v8029_v10  ;;  %v8072_v48 = vmul.f32 1.442695, %v8059_v54 }
0x274c   :  { %v8050_v41 = vsub.f32 %v8042_v46, %v8029_v10  ;;  %v17950_v38 = vpop.permute.xlu1 %8273 }
0x274d   :  { %v8013_v59 = vpop.xlane.xlu0 %8012 }
0x274e   :  { %v8044_v24 = vsub.f32 %v8036_v16, %v8013_v59  ;;  %v8058_v58 = vmul.f32 0.35355338, %v8050_v41 }
0x274f   :  { %v14420_v19 = vpop.eup %14419 }
0x2750   :  { %v14422_v28 = vpop.eup %14421  ;;  %v8052_v18 = vsub.f32 %v8044_v24, %v8029_v10  ;;  %v8081_v8 = vsel %vm56_vm0, %v14420_v19, 0.0  ;;  %v8056_v10 = vmul.f32 0.35355338, %v8048_v12  ;;  %v8070_v5 = vmul.f32 1.442695, %v8058_v58 }
0x2751   :  { %v17952_v30 = vpop.permute.xlu0 %8271  ;;  %8082 = vadd.xlane.f32.xlu1 %v8081_v8  ;;  %v8078_v0 = vsel %vm56_vm0, %v14422_v28, 0.0 }
0x2752   :  { %v13414_v17 = vpack.c.bf16 %v17950_v38, %v17952_v30  ;;  %8079 = vadd.xlane.f32.xlu0 %v8078_v0  ;;  %v8066_v6 = vmul.f32 1.442695, %v8056_v10  ;;  %v8060_v34 = vmul.f32 0.35355338, %v8052_v18 }
0x2754   :  { %13416 = vmatprep.subr.msk.bf16.mxu1 %vm15031_vm3, %v13414_v17  ;;  %14423 = vpow2.f32 %v8066_v6 }
0x2755   :  { %14425 = vpow2.f32 %v8072_v48 }
0x2756   :  { %14427 = vpow2.f32 %v8068_v20 }
0x2757   :  { %14429 = vpow2.f32 %v8070_v5 }
0x2762   :  { %8277 = vrot.lane.b32.xlu1 %v17514_v22, %s14607_s30  ;;  %v8061_v22 = vmul.f32 0.35355338, %v8053_v60 }
0x2764   :  { %v8076_v43 = vmul.f32 1.442695, %v8061_v22 }
0x2766   :  { %8279 = vrot.lane.b32.xlu1 %v17523_v29, %s14607_s30  ;;  %v8074_v29 = vmul.f32 1.442695, %v8060_v34 }
0x2768   :  { %8275 = vrot.lane.b32.xlu0 %v17517_v26, %s14607_s30  ;;  %v14424_v26 = vpop.eup %14423  ;;  %14431 = vpow2.f32 %v8074_v29 }
0x2769   :  { %14433 = vpow2.f32 %v8076_v43  ;;  %v17968_v50 = vpop.eup %14425 }
0x276a   :  { %8281 = vrot.lane.b32.xlu1 %v17520_v32, %s14607_s30  ;;  %v8084_v32 = vsel %vm56_vm0, %v14424_v26, 0.0  ;;  %v14428_v33 = vpop.eup %14427  ;;  %v8093_v12 = vsel %vm56_vm0, %v17968_v50, 0.0 }
0x276b   :  { %v14430_v56 = vpop.eup %14429  ;;  %v8087_v47 = vsel %vm56_vm0, %v14428_v33, 0.0 }
0x276c   :  { %v8090_v46 = vsel %vm56_vm0, %v14430_v56, 0.0 }
0x2772   :  { %v14432_v55 = vpop.eup %14431 }
0x2773   :  { %v14434_v60 = vpop.eup %14433  ;;  %v8096_v16 = vsel %vm56_vm0, %v14432_v55, 0.0 }
0x2774   :  { %v8099_v41 = vsel %vm56_vm0, %v14434_v60, 0.0 }
0x2787   :  { %8085 = vadd.xlane.f32.xlu0 %v8084_v32 }
0x278b   :  { %8094 = vadd.xlane.f32.xlu0 %v8093_v12 }
0x278e   :  { %8088 = vadd.xlane.f32.xlu1 %v8087_v47 }
0x278f   :  { %8091 = vadd.xlane.f32.xlu0 %v8090_v46 }
0x2792   :  { %8097 = vadd.xlane.f32.xlu1 %v8096_v16 }
0x2793   :  { %8100 = vadd.xlane.f32.xlu0 %v8099_v41 }
0x27a3   :  { %8285 = vrot.lane.b32.xlu1 %v17538_v9, %s14607_s30 }
0x27a9   :  { %8283 = vrot.lane.b32.xlu0 %v17541_v1, %s14607_s30 }
0x27de   :  { %v8083_v59 = vpop.xlane.xlu1 %8082 }
0x27df   :  { %14435 = vrcp.f32 %v8083_v59  ;;  %v8080_v24 = vpop.xlane.xlu0 %8079 }
0x27e0   :  { %14437 = vrcp.f32 %v8080_v24 }
0x27e2   :  { %v8278_v18 = vpop.permute.xlu1 %8277 }
0x27e3   :  { %v8276_v10 = vpop.permute.xlu0 %8275 }
0x27e4   :  { %v13420_v48 = vpack.c.bf16 %v8278_v18, %v8276_v10 }
0x27e6   :  { %v8280_v57 = vpop.permute.xlu1 %8279 }
0x27e9   :  { %v14436_v8 = vpop.eup %14435 }
0x27ea   :  { %v14438_v0 = vpop.eup %14437  ;;  %v8111_v6 = vmul.f32 %v14436_v8, %v14420_v19  ;;  %v8282_v9 = vpop.permute.xlu1 %8281 }
0x27eb   :  { %v8110_v54 = vmul.f32 %v14438_v0, %v14422_v28  ;;  %v13426_v1 = vpack.c.bf16 %v8282_v9, %v8280_v57 }
0x27ed   :  { %12594 = vmatprep.mubr.msk.f32.mxu1 %vm56_vm0, %v8110_v54 }
0x27ee   :  { %12595 = vmatmul.mubr.msk.f32.vlgmr.msra.gmra.mrb[148].mxu1 %vm56_vm0, %v8111_v6 }
0x27ef   :  { %13419 = vmatpush3.bf16.xpose.msk.msra.mxu1 %vm15031_vm3, %v13414_v17 }
0x27f0   :  { %13422 = vmatprep.subr.msk.bf16.mxu1 %vm15031_vm3, %v13420_v48 }
0x27f7   :  { %13425 = vmatpush3.bf16.xpose.msk.msra.mxu1 %vm15031_vm3, %v13420_v48 }
0x27f8   :  { %13428 = vmatprep.subr.msk.bf16.mxu1 %vm15031_vm3, %v13426_v1 }
0x27ff   :  { %13431 = vmatpush3.bf16.xpose.msk.msra.mxu1 %vm15031_vm3, %v13426_v1 }
0x2814   :  { %v8086_v19 = vpop.xlane.xlu0 %8085 }
0x2815   :  { %14439 = vrcp.f32 %v8086_v19 }
0x2818   :  { %v8095_v28 = vpop.xlane.xlu0 %8094 }
0x281b   :  { %v8089_v58 = vpop.xlane.xlu1 %8088 }
0x281c   :  { %14441 = vrcp.f32 %v8089_v58  ;;  %v8092_v17 = vpop.xlane.xlu0 %8091 }
0x281d   :  { %14443 = vrcp.f32 %v8092_v17 }
0x281e   :  { %14445 = vrcp.f32 %v8095_v28 }
0x281f   :  { %v14440_v20 = vpop.eup %14439  ;;  %v8098_v34 = vpop.xlane.xlu1 %8097 }
0x2820   :  { %14447 = vrcp.f32 %v8098_v34  ;;  %v8101_v22 = vpop.xlane.xlu0 %8100  ;;  %v8112_v5 = vmul.f32 %v14440_v20, %v14424_v26 }
0x2821   :  { %14449 = vrcp.f32 %v8101_v22 }
0x2822   :  { %12597 = vmatprep.mubr.msk.f32.mxu1 %vm56_vm0, %v8112_v5 }
0x2823   :  { %v8286_v29 = vpop.permute.xlu1 %8285 }
0x2824   :  { %v8284_v43 = vpop.permute.xlu0 %8283 }
0x2825   :  { %v13432_v32 = vpack.c.bf16 %v8286_v29, %v8284_v43 }
0x2826   :  { %v14442_v12 = vpop.eup %14441 }
0x2827   :  { %v14444_v47 = vpop.eup %14443  ;;  %13434 = vmatprep.subr.msk.bf16.mxu1 %vm15031_vm3, %v13432_v32  ;;  %v8113_v46 = vmul.f32 %v14442_v12, %v14428_v33 }
0x2828   :  { %v14446_v16 = vpop.eup %14445  ;;  %13437 = vmatpush3.bf16.xpose.msk.msra.mxu1 %vm15031_vm3, %v13432_v32  ;;  %v8114_v41 = vmul.f32 %v14444_v47, %v14430_v56 }
0x2829   :  { %12598 = vmatmul.mubr.msk.f32.gmra.mrb[150].mxu1 %vm56_vm0, %v8113_v46  ;;  %v8115_v59 = vmul.f32 %v14446_v16, %v17968_v50 }
0x282a   :  { %v14448_v26 = vpop.eup %14447  ;;  %12600 = vmatprep.mubr.msk.f32.mxu1 %vm56_vm0, %v8114_v41 }
0x282b   :  { %v8116_v24 = vmul.f32 %v14448_v26, %v14432_v55  ;;  %v14450_v8 = vpop.eup %14449 }
0x282c   :  { %v8117_v0 = vmul.f32 %v14450_v8, %v14434_v60 }
0x282d   :  { %12601 = vmatmul.mubr.msk.f32.gmra.mrb[152].mxu1 %vm56_vm0, %v8115_v59 }
0x282e   :  { %12603 = vmatprep.mubr.msk.f32.mxu1 %vm56_vm0, %v8116_v24 }
0x2831   :  { %12604 = vmatmul.mubr.msk.f32.gmra.mrb[154].mxu1 %vm56_vm0, %v8117_v0 }
0x2832   :  { %12622 = vmatprep.mubr.msk.f32.mxu1 %vm917_vm2, %v17952_v30 }
0x2835   :  { %12623 = vmatmul.mubr.msk.f32.vlgmr.msra.gmra.mrb[156].mxu1 %vm917_vm2, %v17950_v38 }
0x2836   :  { %12625 = vmatprep.mubr.msk.f32.mxu1 %vm917_vm2, %v8276_v10 }
0x2839   :  { %12626 = vmatmul.mubr.msk.f32.gmra.mrb[158].mxu1 %vm917_vm2, %v8278_v18 }
0x283a   :  { %12628 = vmatprep.mubr.msk.f32.mxu1 %vm917_vm2, %v8280_v57 }
0x283d   :  { %12629 = vmatmul.mubr.msk.f32.gmra.mrb[160].mxu1 %vm917_vm2, %v8282_v9 }
0x283e   :  { %12631 = vmatprep.mubr.msk.f32.mxu1 %vm917_vm2, %v8284_v43 }
0x2841   :  { %12632 = vmatmul.mubr.msk.f32.gmra.mrb[162].mxu1 %vm917_vm2, %v8286_v29 }
0x2842   :  { %9431 = vmatprep.mubr.f32.mxu1 %v19345_v62 }
0x28c1   :  { %v18014_v50 = vpop.f32.mrb[148].mxu1 }
0x28c2   :  { %v18016_v30 = vpop.f32.mrb[149].mxu1 }
0x28fc   :  { %v18018_v33 = vpop.f32.mrb[150].mxu1 }
0x28fd   :  { %v18020_v38 = vpop.f32.mrb[151].mxu1 }
0x2900   :  { %v18022_v56 = vpop.f32.mrb[152].mxu1 }
0x2901   :  { %v18024_v55 = vpop.f32.mrb[153].mxu1 }
0x2904   :  { %v18026_v60 = vpop.f32.mrb[154].mxu1 }
0x2905   :  { %v18028_v18 = vpop.f32.mrb[155].mxu1 }
0x2908   :  { %v12624_v10 = vpop.f32.mrb[156].mxu1 }
0x2909   :  { %v8409_v54 = vmul.f32 %v12624_v10, %v19317_v14  ;;  %v8369_v6 = vpop.f32.mrb[157].mxu1 }
0x290a   :  { %v8408_v57 = vmul.f32 %v19318_v51, %v8369_v6 }
0x290b   :  { %v8419_v48 = vsel %vm56_vm0, %v8409_v54, 0.0  ;;  %v8454_v54 = vmul.f32 2.0, %v12624_v10 }
0x290c   :  { %8420 = vadd.xlane.f32.xlu1 %v8419_v48  ;;  %v12627_v9 = vpop.f32.mrb[158].mxu1  ;;  %v8416_v1 = vsel %vm56_vm0, %v8408_v57, 0.0  ;;  %v8453_v57 = vmul.f32 2.0, %v8369_v6 }
0x290d   :  { %v8411_v19 = vmul.f32 %v12627_v9, %v15233_v40  ;;  %8417 = vadd.xlane.f32.xlu0 %v8416_v1  ;;  %v8440_v28 = vadd.f32 %v8419_v48, %v8416_v1  ;;  %v8379_v58 = vpop.f32.mrb[159].mxu1 }
0x290e   :  { %v8410_v17 = vmul.f32 %v15237_v45, %v8379_v58 }
0x290f   :  { %v8425_v20 = vsel %vm56_vm0, %v8411_v19, 0.0 }
0x2910   :  { %v12630_v34 = vpop.f32.mrb[160].mxu1  ;;  %v8422_v14 = vsel %vm56_vm0, %v8410_v17, 0.0 }
0x2911   :  { %v8413_v51 = vmul.f32 %v12630_v34, %v15251_v25  ;;  %8426 = vadd.xlane.f32.xlu0 %v8425_v20  ;;  %v8389_v22 = vpop.f32.mrb[161].mxu1  ;;  %v8441_v5 = vadd.f32 %v8440_v28, %v8422_v14 }
0x2912   :  { %v8412_v29 = vmul.f32 %v19319_v3, %v8389_v22 }
0x2913   :  { %v8431_v43 = vsel %vm56_vm0, %v8413_v51, 0.0  ;;  %v8442_v40 = vadd.f32 %v8441_v5, %v8425_v20 }
0x2914   :  { %8432 = vadd.xlane.f32.xlu1 %v8431_v43  ;;  %v12633_v32 = vpop.f32.mrb[162].mxu1  ;;  %v8428_v12 = vsel %vm56_vm0, %v8412_v29, 0.0 }
0x2915   :  { %v8415_v45 = vmul.f32 %v12633_v32, %v19320_v35  ;;  %8423 = vadd.xlane.f32.xlu0 %v8422_v14  ;;  %v8399_v47 = vpop.f32.mrb[163].mxu1  ;;  %v8443_v46 = vadd.f32 %v8442_v40, %v8428_v12  ;;  %v8456_v14 = vmul.f32 2.0, %v12627_v9  ;;  %v8457_v9 = vmul.f32 2.0, %v8389_v22 }
0x2916   :  { %v8414_v16 = vmul.f32 %v19321_v4, %v8399_v47 }
0x2917   :  { %v8437_v25 = vsel %vm56_vm0, %v8415_v45, 0.0  ;;  %v8444_v41 = vadd.f32 %v8443_v46, %v8431_v43 }
0x2918   :  { %8438 = vadd.xlane.f32.xlu1 %v8437_v25  ;;  %v8434_v3 = vsel %vm56_vm0, %v8414_v16, 0.0 }
0x2919   :  { %8429 = vadd.xlane.f32.xlu0 %v8428_v12  ;;  %v8445_v26 = vadd.f32 %v8444_v41, %v8434_v3  ;;  %v8455_v12 = vmul.f32 2.0, %v8379_v58 }
0x291b   :  { %v8446_v59 = vadd.f32 %v8445_v26, %v8437_v25 }
0x291d   :  { %8435 = vadd.xlane.f32.xlu0 %v8434_v3  ;;  %v8447_v35 = vrot.slane %v8446_v59, 4  ;;  %v8460_v3 = vmul.f32 2.0, %v12633_v32 }
0x291f   :  { %v8448_v24 = vadd.f32 %v8447_v35, %v8446_v59 }
0x2921   :  { %v8449_v8 = vrot.slane %v8448_v24, 2 }
0x2923   :  { %v8450_v4 = vadd.f32 %v8449_v8, %v8448_v24 }
0x2925   :  { %v8451_v0 = vrot.slane %v8450_v4, 1 }
0x2927   :  { %v8452_v1 = vadd.f32 %v8451_v0, %v8450_v4 }
0x2929   :  { %13857 = vrot.lane.b32.xlu1 %v17527_v31, %s14608_s5 }
0x2933   :  { %13852 = vrot.lane.b32.xlu0 %v17551_v53, %s14608_s5  ;;  %v8458_v53 = vmul.f32 2.0, %v12630_v34 }
0x2999   :  { %v8421_v48 = vpop.xlane.xlu1 %8420 }
0x299a   :  { %v8462_v19 = vsub.f32 %v8454_v54, %v8421_v48  ;;  %v8418_v28 = vpop.xlane.xlu0 %8417 }
0x299b   :  { %v8461_v17 = vsub.f32 %v8453_v57, %v8418_v28  ;;  %v8459_v57 = vmul.f32 2.0, %v8399_v47 }
0x299c   :  { %v8470_v20 = vsub.f32 %v8462_v19, %v8452_v1 }
0x299d   :  { %v8469_v51 = vsub.f32 %v8461_v17, %v8452_v1 }
0x299e   :  { %v8478_v5 = vmul.f32 0.35355338, %v8470_v20  ;;  %v8427_v31 = vpop.xlane.xlu0 %8426 }
0x299f   :  { %v8477_v29 = vmul.f32 0.35355338, %v8469_v51  ;;  %v8464_v43 = vsub.f32 %v8456_v14, %v8427_v31 }
0x29a0   :  { %v8487_v40 = vmul.f32 1.442695, %v8478_v5 }
0x29a1   :  { %v8485_v45 = vmul.f32 1.442695, %v8477_v29  ;;  %v8472_v46 = vsub.f32 %v8464_v43, %v8452_v1  ;;  %v8433_v16 = vpop.xlane.xlu1 %8432 }
0x29a2   :  { %14451 = vpow2.f32 %v8487_v40  ;;  %v8466_v10 = vsub.f32 %v8458_v53, %v8433_v16  ;;  %v8424_v6 = vpop.xlane.xlu0 %8423 }
0x29a3   :  { %14453 = vpow2.f32 %v8485_v45  ;;  %v8480_v25 = vmul.f32 0.35355338, %v8472_v46  ;;  %v8463_v41 = vsub.f32 %v8455_v12, %v8424_v6 }
0x29a4   :  { %v8474_v26 = vsub.f32 %v8466_v10, %v8452_v1 }
0x29a5   :  { %v8491_v59 = vmul.f32 1.442695, %v8480_v25  ;;  %v8471_v35 = vsub.f32 %v8463_v41, %v8452_v1  ;;  %v8439_v24 = vpop.xlane.xlu1 %8438 }
0x29a6   :  { %v8482_v8 = vmul.f32 0.35355338, %v8474_v26  ;;  %v8468_v4 = vsub.f32 %v8460_v3, %v8439_v24  ;;  %v8430_v34 = vpop.xlane.xlu0 %8429 }
0x29a7   :  { %14455 = vpow2.f32 %v8491_v59  ;;  %v8479_v58 = vmul.f32 0.35355338, %v8471_v35  ;;  %v8465_v0 = vsub.f32 %v8457_v9, %v8430_v34 }
0x29a8   :  { %v8476_v54 = vsub.f32 %v8468_v4, %v8452_v1  ;;  %v8495_v48 = vmul.f32 1.442695, %v8482_v8 }
0x29a9   :  { %v8489_v19 = vmul.f32 1.442695, %v8479_v58  ;;  %v8473_v28 = vsub.f32 %v8465_v0, %v8452_v1  ;;  %v13858_v32 = vpop.permute.xlu1 %13857 }
0x29aa   :  { %v8436_v17 = vpop.xlane.xlu0 %8435  ;;  %v13860_v43 = vunpack.i.h.bf16 %v13858_v32  ;;  %v13859_v40 = vunpack.i.l.bf16 %v13858_v32  ;;  %v8484_v59 = vmul.f32 0.35355338, %v8476_v54 }
0x29ab   :  { %14457 = vpow2.f32 %v8489_v19  ;;  %v8481_v20 = vmul.f32 0.35355338, %v8473_v28  ;;  %v8467_v14 = vsub.f32 %v8459_v57, %v8436_v17  ;;  %v14587_v57 = vld [vmem:[%s19094_s1 + $0x8] sm:$0xff] }
0x29ac   :  { %v18050_v22 = vpop.eup %14451  ;;  %14459 = vpow2.f32 %v8495_v48  ;;  %v13442_v10 = vpack.c.bf16 %v13860_v43, %v13859_v40  ;;  %v8499_v24 = vmul.f32 1.442695, %v8484_v59  ;;  %v14588_v48 = vld [vmem:[%s19094_s1 + $0x28] sm:$0xff] }
0x29ad   :  { %v18052_v51 = vpop.eup %14453  ;;  %v8493_v5 = vmul.f32 1.442695, %v8481_v20  ;;  %v8475_v31 = vsub.f32 %v8467_v14, %v8452_v1  ;;  %v8504_v29 = vsel %vm56_vm0, %v18050_v22, 0.0  ;;  %v13871_v19 = vpack.i.bf16 %v14588_v48, %v14587_v57  ;;  %v19358_v20 = vld [vmem:[#allocation38_spill] sm:$0xff] }
0x29ae   :  { %v13853_v47 = vpop.permute.xlu0 %13852  ;;  %8505 = vadd.xlane.f32.xlu1 %v8504_v29  ;;  %v8501_v53 = vsel %vm56_vm0, %v18052_v51, 0.0 }
0x29af   :  { %14461 = vpow2.f32 %v8493_v5  ;;  %v13855_v12 = vunpack.i.h.bf16 %v13853_v47  ;;  %v13854_v45 = vunpack.i.l.bf16 %v13853_v47  ;;  %8502 = vadd.xlane.f32.xlu0 %v8501_v53  ;;  %v8483_v35 = vmul.f32 0.35355338, %v8475_v31 }
0x29b0   :  { %14463 = vpow2.f32 %v8499_v24 }
0x29b1   :  { %v18058_v46 = vpop.eup %14455  ;;  %v13438_v16 = vpack.c.bf16 %v13855_v12, %v13854_v45  ;;  %v8497_v8 = vmul.f32 1.442695, %v8483_v35 }
0x29b2   :  { %v8510_v1 = vsel %vm56_vm0, %v18058_v46, 0.0 }
0x29b3   :  { %13439 = vmatprep.subr.bf16.mxu0 %v13438_v16  ;;  %8511 = vadd.xlane.f32.xlu1 %v8510_v1  ;;  %14465 = vpow2.f32 %v8497_v8 }
0x29b4   :  { %13441 = vmatpush3.bf16.msra.mxu0 %v13438_v16 }
0x29b5   :  { %v18062_v6 = vpop.eup %14457  ;;  %13443 = vmatprep.subr.bf16.mxu0 %v13442_v10 }
0x29b6   :  { %v8507_v25 = vsel %vm56_vm0, %v18062_v6, 0.0  ;;  %v18066_v41 = vpop.eup %14459 }
0x29b7   :  { %8508 = vadd.xlane.f32.xlu0 %v8507_v25  ;;  %v8516_v9 = vsel %vm56_vm0, %v18066_v41, 0.0 }
0x29b8   :  { %13445 = vmatpush3.bf16.msra.mxu0 %v13442_v10 }
0x29b9   :  { %v18068_v3 = vpop.eup %14461 }
0x29ba   :  { %v8513_v26 = vsel %vm56_vm0, %v18068_v3, 0.0  ;;  %v18078_v4 = vpop.eup %14463 }
0x29bb   :  { %8514 = vadd.xlane.f32.xlu1 %v8513_v26  ;;  %8517 = vadd.xlane.f32.xlu0 %v8516_v9  ;;  %v8522_v0 = vsel %vm56_vm0, %v18078_v4, 0.0 }
0x29bd   :  { %v18080_v34 = vpop.eup %14465 }
0x29be   :  { %v8519_v58 = vsel %vm56_vm0, %v18080_v34, 0.0 }
0x29cc   :  { %13867 = vrot.lane.b32.xlu1 %v17557_v42, %s14608_s5  ;;  %v14586_v42 = vld [vmem:[%s19094_s1 + $0x68] sm:$0xff] }
0x29d1   :  { %13862 = vrot.lane.b32.xlu0 %v17545_v49, %s14608_s5  ;;  %v14585_v49 = vld [vmem:[%s19094_s1 + $0x48] sm:$0xff] }
0x29d2   :  { %v13876_v54 = vpack.i.bf16 %v14586_v42, %v14585_v49 }
0x29f0   :  { %8520 = vadd.xlane.f32.xlu1 %v8519_v58  ;;  %8523 = vadd.xlane.f32.xlu0 %v8522_v0 }
0x2a01   :  { %13877 = vrot.lane.b32.xlu1 %v13876_v54, %s14613_s29 }
0x2a05   :  { %6898 = vrot.lane.b32.xlu1 %v17340_v23, %s14610_s17  ;;  %v19347_v23 = vld [vmem:[#allocation54_spill] sm:$0xff] }
0x2a06   :  { %13872 = vrot.lane.b32.xlu0 %v13871_v19, %s14613_s29 }
0x2a09   :  { %6900 = vrot.lane.b32.xlu1 %v17338_v39, %s14610_s17  ;;  %v19346_v39 = vld [vmem:[#allocation55_spill] sm:$0xff] }
0x2a0a   :  { %6930 = vrot.lane.b32.xlu0 %v17440_v13, %s14611_s18  ;;  %v19351_v13 = vld [vmem:[#allocation50_spill] sm:$0xff] }
0x2a0d   :  { %6932 = vrot.lane.b32.xlu1 %v17438_v11, %s14611_s18  ;;  %v19350_v11 = vld [vmem:[#allocation49_spill] sm:$0xff] }
0x2a0e   :  { %6962 = vrot.lane.b32.xlu0 %v17619_v21, %s14612_s20  ;;  %v19355_v21 = vld [vmem:[#allocation48_spill] sm:$0xff] }
0x2a11   :  { %6964 = vrot.lane.b32.xlu1 %v17617_v27, %s14612_s20  ;;  %v19354_v27 = vld [vmem:[#allocation47_spill] sm:$0xff] }
0x2a12   :  { %6902 = vrot.lane.b32.xlu0 %v17344_v63, %s14610_s17  ;;  %v19349_v63 = vld [vmem:[#allocation25_spill] sm:$0xff] }
0x2a15   :  { %6904 = vrot.lane.b32.xlu1 %v17342_v44, %s14610_s17  ;;  %v19348_v44 = vld [vmem:[#allocation24_spill] sm:$0xff] }
0x2a16   :  { %6934 = vrot.lane.b32.xlu0 %v17444_v52, %s14611_s18  ;;  %v19353_v52 = vld [vmem:[#allocation56_spill] sm:$0xff] }
0x2a19   :  { %6936 = vrot.lane.b32.xlu1 %v17442_v2, %s14611_s18  ;;  %v19352_v2 = vld [vmem:[#allocation57_spill] sm:$0xff] }
0x2a1a   :  { %6966 = vrot.lane.b32.xlu0 %v17623_v7, %s14612_s20  ;;  %v19357_v7 = vld [vmem:[#allocation52_spill] sm:$0xff] }
0x2a1d   :  { %6968 = vrot.lane.b32.xlu1 %v17621_v15, %s14612_s20  ;;  %v19356_v15 = vld [vmem:[#allocation51_spill] sm:$0xff] }
0x2a1e   :  { %6906 = vrot.lane.b32.xlu0 %v19346_v39, %s14610_s17 }
0x2a21   :  { %6908 = vrot.lane.b32.xlu1 %v19347_v23, %s14610_s17 }
0x2a22   :  { %6938 = vrot.lane.b32.xlu0 %v19348_v44, %s14611_s18 }
0x2a25   :  { %6940 = vrot.lane.b32.xlu1 %v19349_v63, %s14611_s18 }
0x2a26   :  { %6970 = vrot.lane.b32.xlu0 %v19350_v11, %s14612_s20 }
0x2a29   :  { %6972 = vrot.lane.b32.xlu1 %v19351_v13, %s14612_s20 }
0x2a2a   :  { %6910 = vrot.lane.b32.xlu0 %v19352_v2, %s14610_s17 }
0x2a2d   :  { %6912 = vrot.lane.b32.xlu1 %v19353_v52, %s14610_s17 }
0x2a2e   :  { %6942 = vrot.lane.b32.xlu0 %v19354_v27, %s14611_s18  ;;  %v19362_v27 = vld [vmem:[#allocation3_spill] sm:$0xff] }
0x2a31   :  { %6944 = vrot.lane.b32.xlu1 %v19355_v21, %s14611_s18 }
0x2a32   :  { %6974 = vrot.lane.b32.xlu0 %v19356_v15, %s14612_s20 }
0x2a35   :  { %6976 = vrot.lane.b32.xlu1 %v19357_v7, %s14612_s20 }
0x2a36   :  { %8702 = vrot.lane.b32.xlu0 %v17915_v37, %s14610_s17 }
0x2a39   :  { %8704 = vrot.lane.b32.xlu1 %v17913_v61, %s14610_s17 }
0x2a3a   :  { %8734 = vrot.lane.b32.xlu0 %v18016_v30, %s14611_s18  ;;  %v19359_v30 = vld [vmem:[#allocation2_spill] sm:$0xff] }
0x2a3b   :  { %v8506_v17 = vpop.xlane.xlu1 %8505 }
0x2a3c   :  { %v8503_v28 = vpop.xlane.xlu0 %8502 }
0x2a3d   :  { %14467 = vrcp.f32 %v8503_v28  ;;  %8736 = vrot.lane.b32.xlu1 %v18014_v50, %s14611_s18  ;;  %v19363_v28 = vld [vmem:[#allocation9_spill] sm:$0xff] }
0x2a3e   :  { %8706 = vrot.lane.b32.xlu0 %v17919_v36, %s14610_s17  ;;  %v19360_v36 = vld [vmem:[#allocation37_spill] sm:$0xff]  ;;  %14469 = vrcp.f32 %v8506_v17 }
0x2a40   :  { %v8512_v37 = vpop.xlane.xlu1 %8511 }
0x2a41   :  { %8708 = vrot.lane.b32.xlu1 %v19358_v20, %s14610_s17 }
0x2a42   :  { %8738 = vrot.lane.b32.xlu0 %v18020_v38, %s14611_s18 }
0x2a44   :  { %v8509_v61 = vpop.xlane.xlu0 %8508 }
0x2a45   :  { %8740 = vrot.lane.b32.xlu1 %v18018_v33, %s14611_s18  ;;  %14471 = vrcp.f32 %v8509_v61 }
0x2a46   :  { %8710 = vrot.lane.b32.xlu0 %v19359_v30, %s14610_s17  ;;  %14473 = vrcp.f32 %v8512_v37 }
0x2a47   :  { %v14468_v32 = vpop.eup %14467 }
0x2a48   :  { %v8515_v50 = vpop.xlane.xlu1 %8514  ;;  %v8518_v14 = vpop.xlane.xlu0 %8517  ;;  %v8533_v5 = vmul.f32 %v14468_v32, %v18052_v51 }
0x2a49   :  { %8712 = vrot.lane.b32.xlu1 %v19360_v36, %s14610_s17  ;;  %14475 = vrcp.f32 %v8515_v50  ;;  %v14470_v51 = vpop.eup %14469 }
0x2a4a   :  { %12650 = vmatprep.mubr.msk.f32.mxu0 %vm56_vm0, %v8533_v5  ;;  %14477 = vrcp.f32 %v8518_v14  ;;  %v8534_v45 = vmul.f32 %v14470_v51, %v18050_v22  ;;  %v19364_v14 = vld [vmem:[#allocation5_spill] sm:$0xff] }
0x2a4c   :  { %v13868_v38 = vpop.permute.xlu1 %13867  ;;  %v13863_v31 = vpop.permute.xlu0 %13862 }
0x2a4d   :  { %v13870_v29 = vunpack.i.h.bf16 %v13868_v38  ;;  %v13869_v43 = vunpack.i.l.bf16 %v13868_v38  ;;  %v13865_v33 = vunpack.i.h.bf16 %v13863_v31  ;;  %v13864_v47 = vunpack.i.l.bf16 %v13863_v31 }
0x2a4f   :  { %v13446_v53 = vpack.c.bf16 %v13865_v33, %v13864_v47  ;;  %v13450_v40 = vpack.c.bf16 %v13870_v29, %v13869_v43  ;;  %v14472_v12 = vpop.eup %14471  ;;  %v19365_v43 = vld [vmem:[#allocation7_spill] sm:$0xff] }
0x2a50   :  { %v14474_v16 = vpop.eup %14473  ;;  %v8535_v1 = vmul.f32 %v14472_v12, %v18062_v6 }
0x2a51   :  { %13447 = vmatprep.subr.bf16.mxu0 %v13446_v53  ;;  %v8536_v25 = vmul.f32 %v14474_v16, %v18058_v46  ;;  %v19366_v16 = vld [vmem:[#allocation6_spill] sm:$0xff] }
0x2a52   :  { %13449 = vmatpush3.bf16.msra.mxu0 %v13446_v53 }
0x2a53   :  { %13451 = vmatprep.subr.bf16.mxu0 %v13450_v40  ;;  %v14476_v10 = vpop.eup %14475 }
0x2a54   :  { %v14478_v26 = vpop.eup %14477  ;;  %v8537_v9 = vmul.f32 %v14476_v10, %v18068_v3 }
0x2a55   :  { %v8538_v59 = vmul.f32 %v14478_v26, %v18066_v41  ;;  %v19361_v41 = vld [vmem:[#allocation4_spill] sm:$0xff] }
0x2a56   :  { %13453 = vmatpush3.bf16.msra.mxu0 %v13450_v40 }
0x2a59   :  { %12651 = vmatmul.mubr.msk.f32.vlgmr.msra.gmra.mrb[148].mxu0 %vm56_vm0, %v8534_v45 }
0x2a5a   :  { %12653 = vmatprep.mubr.msk.f32.mxu0 %vm56_vm0, %v8535_v1 }
0x2a5d   :  { %12654 = vmatmul.mubr.msk.f32.gmra.mrb[150].mxu0 %vm56_vm0, %v8536_v25 }
0x2a5e   :  { %12656 = vmatprep.mubr.msk.f32.mxu0 %vm56_vm0, %v8537_v9 }
0x2a61   :  { %12657 = vmatmul.mubr.msk.f32.gmra.mrb[152].mxu0 %vm56_vm0, %v8538_v59  ;;  %v19367_v59 = vld [vmem:[#allocation53_spill] sm:$0xff] }
0x2a7d   :  { %v8521_v22 = vpop.xlane.xlu1 %8520  ;;  %v8524_v6 = vpop.xlane.xlu0 %8523 }
0x2a7e   :  { %14479 = vrcp.f32 %v8521_v22 }
0x2a7f   :  { %14481 = vrcp.f32 %v8524_v6 }
0x2a81   :  { %v13878_v35 = vpop.permute.xlu1 %13877  ;;  %v13873_v24 = vpop.permute.xlu0 %13872 }
0x2a82   :  { %v13880_v8 = vunpack.i.h.bf16 %v13878_v35  ;;  %v13879_v58 = vunpack.i.l.bf16 %v13878_v35  ;;  %v13875_v46 = vunpack.i.h.bf16 %v13873_v24  ;;  %v13874_v0 = vunpack.i.l.bf16 %v13873_v24 }
0x2a84   :  { %v13458_v49 = vpack.c.bf16 %v13880_v8, %v13879_v58  ;;  %v13454_v3 = vpack.c.bf16 %v13875_v46, %v13874_v0  ;;  %v19368_v46 = vld [vmem:[#allocation8_spill] sm:$0xff] }
0x2a85   :  { %v6899_v42 = vpop.permute.xlu1 %6898  ;;  %v6931_v54 = vpop.permute.xlu0 %6930 }
0x2a86   :  { %13455 = vmatprep.subr.bf16.mxu0 %v13454_v3  ;;  %v6986_v48 = vsel %vm917_vm2, %v19361_v41, %v6899_v42 }
0x2a87   :  { %13457 = vmatpush3.bf16.msra.mxu0 %v13454_v3  ;;  %v6994_v11 = vsel %vm2706_vm12, %v6986_v48, %v6931_v54 }
0x2a88   :  { %v14480_v57 = vpop.eup %14479  ;;  %13459 = vmatprep.subr.bf16.mxu0 %v13458_v49 }
0x2a89   :  { %v14482_v19 = vpop.eup %14481  ;;  %v6901_v39 = vpop.permute.xlu1 %6900  ;;  %v8539_v44 = vmul.f32 %v14480_v57, %v18080_v34 }
0x2a8a   :  { %v6963_v23 = vpop.permute.xlu0 %6962  ;;  %v8540_v63 = vmul.f32 %v14482_v19, %v18078_v4  ;;  %v6987_v21 = vsel %vm917_vm2, %v19362_v27, %v6901_v39 }
0x2a8b   :  { %12659 = vmatprep.mubr.msk.f32.mxu0 %vm56_vm0, %v8539_v44  ;;  %13461 = vmatpush3.bf16.msra.mxu0 %v13458_v49  ;;  %v7002_v13 = vsel %vm2715_vm13, %v6994_v11, %v6963_v23  ;;  %v19369_v23 = vld [vmem:[#allocation18_spill] sm:$0xff] }
0x2a8c   :  { %12660 = vmatmul.mubr.msk.f32.gmra.mrb[154].mxu0 %vm56_vm0, %v8540_v63  ;;  %v19370_v44 = vld [vmem:[#allocation26_spill] sm:$0xff] }
0x2a8d   :  { %v6933_v2 = vpop.permute.xlu1 %6932  ;;  %12670 = vmatprep.mubr.msk.f32.mxu0 %vm270_vm1, %v7002_v13 }
0x2a8e   :  { %v6903_v52 = vpop.permute.xlu0 %6902  ;;  %v6995_v34 = vsel %vm2706_vm12, %v6987_v21, %v6933_v2  ;;  %v18246_v21 = vld [vmem:[%s19095_s2 + $0x12] ss:$0 sm:$0xff] }
0x2a8f   :  { %v6988_v17 = vsel %vm917_vm2, %v19363_v28, %v6903_v52  ;;  %v19371_v52 = vld [vmem:[#allocation40_spill] sm:$0xff] }
0x2a91   :  { %v6965_v15 = vpop.permute.xlu1 %6964 }
0x2a92   :  { %v6935_v4 = vpop.permute.xlu0 %6934  ;;  %v7003_v7 = vsel %vm2715_vm13, %v6995_v34, %v6965_v15  ;;  %v19373_v15 = vld [vmem:[#allocation44_spill] sm:$0xff] }
0x2a93   :  { %12671 = vmatmul.mubr.msk.f32.vlgmr.msra.gmra.mrb[156].mxu0 %vm270_vm1, %v7003_v7  ;;  %v6996_v20 = vsel %vm2706_vm12, %v6988_v17, %v6935_v4  ;;  %v19374_v17 = vld [vmem:[#allocation43_spill] sm:$0xff] }
0x2a95   :  { %v6905_v37 = vpop.permute.xlu1 %6904 }
0x2a96   :  { %v6967_v61 = vpop.permute.xlu0 %6966  ;;  %v6989_v5 = vsel %vm917_vm2, %v19364_v14, %v6905_v37 }
0x2a97   :  { %v7004_v30 = vsel %vm2715_vm13, %v6996_v20, %v6967_v61  ;;  %v19375_v61 = vld [vmem:[#allocation22_spill] sm:$0xff] }
0x2a98   :  { %12673 = vmatprep.mubr.msk.f32.mxu0 %vm270_vm1, %v7004_v30 }
0x2a99   :  { %v6937_v32 = vpop.permute.xlu1 %6936 }
0x2a9a   :  { %v6907_v50 = vpop.permute.xlu0 %6906  ;;  %v6997_v36 = vsel %vm2706_vm12, %v6989_v5, %v6937_v32 }
0x2a9b   :  { %v6990_v33 = vsel %vm917_vm2, %v19365_v43, %v6907_v50 }
0x2a9d   :  { %v6969_v38 = vpop.permute.xlu1 %6968 }
0x2a9e   :  { %v6939_v31 = vpop.permute.xlu0 %6938  ;;  %v7005_v29 = vsel %vm2715_vm13, %v6997_v36, %v6969_v38 }
0x2a9f   :  { %12674 = vmatmul.mubr.msk.f32.gmra.mrb[158].mxu0 %vm270_vm1, %v7005_v29  ;;  %v6998_v47 = vsel %vm2706_vm12, %v6990_v33, %v6939_v31  ;;  %v19376_v31 = vld [vmem:[#allocation23_spill] sm:$0xff] }
0x2aa1   :  { %v6909_v53 = vpop.permute.xlu1 %6908 }
0x2aa2   :  { %v6971_v40 = vpop.permute.xlu0 %6970  ;;  %v6991_v1 = vsel %vm917_vm2, %v19366_v16, %v6909_v53  ;;  %v19377_v16 = vld [vmem:[#allocation41_spill] sm:$0xff] }
0x2aa3   :  { %v7006_v51 = vsel %vm2715_vm13, %v6998_v47, %v6971_v40 }
0x2aa4   :  { %12676 = vmatprep.mubr.msk.f32.mxu0 %vm270_vm1, %v7006_v51 }
0x2aa5   :  { %v6941_v12 = vpop.permute.xlu1 %6940 }
0x2aa6   :  { %v6911_v45 = vpop.permute.xlu0 %6910  ;;  %v6999_v10 = vsel %vm2706_vm12, %v6991_v1, %v6941_v12 }
0x2aa7   :  { %v6992_v22 = vsel %vm917_vm2, %v19367_v59, %v6911_v45 }
0x2aa9   :  { %v6973_v25 = vpop.permute.xlu1 %6972 }
0x2aaa   :  { %v6943_v26 = vpop.permute.xlu0 %6942  ;;  %v7007_v9 = vsel %vm2715_vm13, %v6999_v10, %v6973_v25 }
0x2aab   :  { %12677 = vmatmul.mubr.msk.f32.gmra.mrb[160].mxu0 %vm270_vm1, %v7007_v9  ;;  %v7000_v6 = vsel %vm2706_vm12, %v6992_v22, %v6943_v26  ;;  %v19378_v26 = vld [vmem:[#allocation42_spill] sm:$0xff] }
0x2aad   :  { %v6913_v35 = vpop.permute.xlu1 %6912 }
0x2aae   :  { %v6975_v24 = vpop.permute.xlu0 %6974  ;;  %v6993_v0 = vsel %vm917_vm2, %v19368_v46, %v6913_v35 }
0x2aaf   :  { %v7008_v8 = vsel %vm2715_vm13, %v7000_v6, %v6975_v24 }
0x2ab0   :  { %12679 = vmatprep.mubr.msk.f32.mxu0 %vm270_vm1, %v7008_v8 }
0x2ab1   :  { %v6945_v58 = vpop.permute.xlu1 %6944 }
0x2ab2   :  { %v7001_v49 = vsel %vm2706_vm12, %v6993_v0, %v6945_v58  ;;  %v8703_v33 = vpop.permute.xlu0 %8702 }
0x2ab5   :  { %v6977_v3 = vpop.permute.xlu1 %6976 }
0x2ab6   :  { %v7009_v42 = vsel %vm2715_vm13, %v7001_v49, %v6977_v3  ;;  %v8735_v12 = vpop.permute.xlu0 %8734  ;;  %v19379_v3 = vld [vmem:[#allocation11_spill] sm:$0xff] }
0x2ab7   :  { %12680 = vmatmul.mubr.msk.f32.gmra.mrb[162].mxu0 %vm270_vm1, %v7009_v42  ;;  %v8790_v42 = vsel %vm917_vm2, %v19379_v3, %v8703_v33 }
0x2ab9   :  { %v8705_v5 = vpop.permute.xlu1 %8704 }
0x2aba   :  { %v8707_v24 = vpop.permute.xlu0 %8706 }
0x2abd   :  { %v8737_v51 = vpop.permute.xlu1 %8736 }
0x2abe   :  { %v8739_v46 = vpop.permute.xlu0 %8738 }
0x2ac1   :  { %v8709_v6 = vpop.permute.xlu1 %8708 }
0x2ac2   :  { %v8711_v49 = vpop.permute.xlu0 %8710 }
0x2ac5   :  { %v8741_v58 = vpop.permute.xlu1 %8740 }
0x2ac9   :  { %v8713_v0 = vpop.permute.xlu1 %8712 }
0x2b2c   :  { %v12652_v54 = vpop.f32.mrb[148].mxu0 }
0x2b2d   :  { %8768 = vrot.lane.b32.xlu1 %v12652_v54, %s14612_s20  ;;  %v8655_v57 = vpop.f32.mrb[149].mxu0 }
0x2b2e   :  { %8766 = vrot.lane.b32.xlu0 %v8655_v57, %s14612_s20  ;;  %v8798_v57 = vsel %vm2706_vm12, %v8790_v42, %v8735_v12 }
0x2b30   :  { %v12655_v41 = vpop.f32.mrb[150].mxu0 }
0x2b31   :  { %8744 = vrot.lane.b32.xlu1 %v18022_v56, %s14611_s18  ;;  %v8665_v48 = vpop.f32.mrb[151].mxu0 }
0x2b32   :  { %8742 = vrot.lane.b32.xlu0 %v18024_v55, %s14611_s18 }
0x2b34   :  { %v12658_v19 = vpop.f32.mrb[152].mxu0 }
0x2b35   :  { %8772 = vrot.lane.b32.xlu1 %v12655_v41, %s14612_s20  ;;  %v8675_v39 = vpop.f32.mrb[153].mxu0  ;;  %v19380_v41 = vld [vmem:[#allocation10_spill] sm:$0xff] }
0x2b36   :  { %8770 = vrot.lane.b32.xlu0 %v8665_v48, %s14612_s20  ;;  %v8791_v48 = vsel %vm917_vm2, %v19380_v41, %v8705_v5 }
0x2b39   :  { %8716 = vrot.lane.b32.xlu1 %v19369_v23, %s14610_s17 }
0x2b3a   :  { %8714 = vrot.lane.b32.xlu0 %v19370_v44, %s14610_s17 }
0x2b3d   :  { %8776 = vrot.lane.b32.xlu1 %v12658_v19, %s14612_s20 }
0x2b3e   :  { %8774 = vrot.lane.b32.xlu0 %v8675_v39, %s14612_s20  ;;  %v8799_v39 = vsel %vm2706_vm12, %v8791_v48, %v8737_v51 }
0x2b41   :  { %8748 = vrot.lane.b32.xlu1 %v18026_v60, %s14611_s18  ;;  %v19372_v60 = vld [vmem:[#allocation39_spill] sm:$0xff] }
0x2b42   :  { %8746 = vrot.lane.b32.xlu0 %v18028_v18, %s14611_s18 }
0x2b5f   :  { %v12661_v56 = vpop.f32.mrb[154].mxu0 }
0x2b60   :  { %8780 = vrot.lane.b32.xlu1 %v12661_v56, %s14612_s20  ;;  %v8685_v55 = vpop.f32.mrb[155].mxu0 }
0x2b61   :  { %8778 = vrot.lane.b32.xlu0 %v8685_v55, %s14612_s20 }
0x2b66   :  { %v12672_v63 = vpop.f32.mrb[156].mxu0 }
0x2b67   :  { %v8944_v11 = vpop.f32.mrb[157].mxu0  ;;  %v9024_v34 = vadd.f32 %v12672_v63, %v19372_v60  ;;  %v19381_v63 = vld [vmem:[#allocation13_spill] sm:$0xff] }
0x2b68   :  { %v9023_v27 = vadd.f32 %v8944_v11, %v19371_v52  ;;  %v8792_v11 = vsel %vm917_vm2, %v19381_v63, %v8707_v24  ;;  %v19382_v52 = vld [vmem:[#allocation12_spill] sm:$0xff] }
0x2b69   :  { %v18254_v7 = vadd.f32 %v18246_v21, %v9024_v34 }
0x2b6a   :  { %v18250_v18 = vadd.f32 %v18246_v21, %v9023_v27  ;;  %v8793_v27 = vsel %vm917_vm2, %v19382_v52, %v8709_v6  ;;  %v19395_v52 = vld [vmem:[#allocation33_spill] sm:$0xff] }
0x2b6b   :  { %v9061_v14 = vsel %vm270_vm1, %v18254_v7, 0.0  ;;  %v8801_v34 = vsel %vm2706_vm12, %v8793_v27, %v8741_v58  ;;  %v19388_v58 = vld [vmem:[#allocation20_spill] sm:$0xff] }
0x2b6c   :  { %v9058_v50 = vsel %vm270_vm1, %v18250_v18, 0.0 }
0x2b72   :  { %v12675_v13 = vpop.f32.mrb[158].mxu0 }
0x2b73   :  { %v8954_v2 = vpop.f32.mrb[159].mxu0  ;;  %v9026_v20 = vadd.f32 %v12675_v13, %v19374_v17 }
0x2b74   :  { %v9025_v4 = vadd.f32 %v8954_v2, %v19373_v15  ;;  %v8800_v2 = vsel %vm2706_vm12, %v8792_v11, %v8739_v46  ;;  %v19394_v11 = vld [vmem:[#allocation34_spill] sm:$0xff] }
0x2b75   :  { %v18266_v36 = vadd.f32 %v18246_v21, %v9026_v20  ;;  %v19383_v20 = vld [vmem:[#allocation15_spill] sm:$0xff] }
0x2b76   :  { %v18258_v37 = vadd.f32 %v18246_v21, %v9025_v4 }
0x2b77   :  { %v9067_v53 = vsel %vm270_vm1, %v18266_v36, 0.0 }
0x2b78   :  { %v9064_v43 = vsel %vm270_vm1, %v18258_v37, 0.0 }
0x2b7e   :  { %v12678_v28 = vpop.f32.mrb[160].mxu0 }
0x2b7f   :  { %v9028_v30 = vadd.f32 %v12678_v28, %v19375_v61  ;;  %v8964_v32 = vpop.f32.mrb[161].mxu0  ;;  %v8794_v61 = vsel %vm917_vm2, %v19383_v20, %v8711_v49 }
0x2b80   :  { %9059 = vadd.xlane.f32.xlu0 %v9058_v50  ;;  %v9027_v29 = vadd.f32 %v8964_v32, %v19376_v31  ;;  %v19384_v32 = vld [vmem:[#allocation14_spill] sm:$0xff] }
0x2b81   :  { %v18269_v38 = vadd.f32 %v18246_v21, %v9028_v30  ;;  %v8795_v50 = vsel %vm917_vm2, %v19384_v32, %v8713_v0 }
0x2b82   :  { %v18275_v47 = vadd.f32 %v18246_v21, %v9027_v29 }
0x2b83   :  { %v9073_v40 = vsel %vm270_vm1, %v18269_v38, 0.0 }
0x2b84   :  { %9062 = vadd.xlane.f32.xlu1 %v9061_v14  ;;  %9065 = vadd.xlane.f32.xlu0 %v9064_v43  ;;  %v9070_v25 = vsel %vm270_vm1, %v18275_v47, 0.0 }
0x2b88   :  { %9068 = vadd.xlane.f32.xlu0 %v9067_v53  ;;  %9074 = vadd.xlane.f32.xlu1 %v9073_v40  ;;  %v19385_v40 = vld [vmem:[#allocation17_spill] sm:$0xff] }
0x2b8a   :  { %v12681_v45 = vpop.f32.mrb[162].mxu0 }
0x2b8b   :  { %v9030_v1 = vadd.f32 %v12681_v45, %v19377_v16  ;;  %v8974_v10 = vpop.f32.mrb[163].mxu0  ;;  %v19386_v45 = vld [vmem:[#allocation16_spill] sm:$0xff] }
0x2b8c   :  { %v9029_v9 = vadd.f32 %v8974_v10, %v19378_v26  ;;  %9071 = vadd.xlane.f32.xlu0 %v9070_v25 }
0x2b8d   :  { %v18286_v59 = vadd.f32 %v18246_v21, %v9030_v1 }
0x2b8e   :  { %v18289_v22 = vadd.f32 %v18246_v21, %v9029_v9 }
0x2b8f   :  { %v9079_v35 = vsel %vm270_vm1, %v18286_v59, 0.0 }
0x2b90   :  { %9080 = vadd.xlane.f32.xlu1 %v9079_v35  ;;  %v9076_v8 = vsel %vm270_vm1, %v18289_v22, 0.0  ;;  %v19387_v35 = vld [vmem:[#allocation19_spill] sm:$0xff] }
0x2b91   :  { %9077 = vadd.xlane.f32.xlu0 %v9076_v8 }
0x2b9f   :  { %v8769_v54 = vpop.permute.xlu1 %8768 }
0x2ba0   :  { %v8767_v19 = vpop.permute.xlu0 %8766  ;;  %v8807_v44 = vsel %vm2715_vm13, %v8799_v39, %v8769_v54 }
0x2ba1   :  { %v8806_v23 = vsel %vm2715_vm13, %v8798_v57, %v8767_v19  ;;  %v19390_v57 = vld [vmem:[#allocation31_spill] sm:$0xff]  ;;  %v19391_v19 = vld [vmem:[#allocation32_spill] sm:$0xff] }
0x2ba2   :  { %12682 = vmatprep.mubr.msk.f32.mxu0 %vm270_vm1, %v8806_v23 }
0x2ba3   :  { %v8745_v56 = vpop.permute.xlu1 %8744  ;;  %12683 = vmatmul.mubr.msk.f32.gmra.mrb[164].mxu0 %vm270_vm1, %v8807_v44 }
0x2ba4   :  { %v8743_v55 = vpop.permute.xlu0 %8742  ;;  %v8803_v31 = vsel %vm2706_vm12, %v8795_v50, %v8745_v56 }
0x2ba5   :  { %v8802_v14 = vsel %vm2706_vm12, %v8794_v61, %v8743_v55 }
0x2ba7   :  { %v8773_v13 = vpop.permute.xlu1 %8772 }
0x2ba8   :  { %v8771_v60 = vpop.permute.xlu0 %8770  ;;  %v8809_v4 = vsel %vm2715_vm13, %v8801_v34, %v8773_v13 }
0x2ba9   :  { %v8808_v15 = vsel %vm2715_vm13, %v8800_v2, %v8771_v60 }
0x2baa   :  { %12685 = vmatprep.mubr.msk.f32.mxu0 %vm270_vm1, %v8808_v15 }
0x2bab   :  { %v8717_v28 = vpop.permute.xlu1 %8716  ;;  %12686 = vmatmul.mubr.msk.f32.gmra.mrb[166].mxu0 %vm270_vm1, %v8809_v4 }
0x2bac   :  { %v8715_v17 = vpop.permute.xlu0 %8714  ;;  %v8797_v16 = vsel %vm917_vm2, %v19386_v45, %v8717_v28 }
0x2bad   :  { %v8796_v51 = vsel %vm917_vm2, %v19385_v40, %v8715_v17 }
0x2baf   :  { %v8777_v30 = vpop.permute.xlu1 %8776 }
0x2bb0   :  { %v8775_v5 = vpop.permute.xlu0 %8774  ;;  %v8811_v43 = vsel %vm2715_vm13, %v8803_v31, %v8777_v30 }
0x2bb1   :  { %v8810_v29 = vsel %vm2715_vm13, %v8802_v14, %v8775_v5 }
0x2bb2   :  { %12688 = vmatprep.mubr.msk.f32.mxu0 %vm270_vm1, %v8810_v29  ;;  %v19398_v29 = vld [vmem:[#allocation35_spill] sm:$0xff] }
0x2bb3   :  { %12689 = vmatmul.mubr.msk.f32.gmra.mrb[168].mxu0 %vm270_vm1, %v8811_v43  ;;  %v8749_v33 = vpop.permute.xlu1 %8748 }
0x2bb4   :  { %v8747_v53 = vpop.permute.xlu0 %8746  ;;  %v8805_v25 = vsel %vm2706_vm12, %v8797_v16, %v8749_v33 }
0x2bb5   :  { %v8804_v1 = vsel %vm2706_vm12, %v8796_v51, %v8747_v53 }
0x2bd2   :  { %v8781_v12 = vpop.permute.xlu1 %8780 }
0x2bd3   :  { %v8779_v10 = vpop.permute.xlu0 %8778  ;;  %v8813_v9 = vsel %vm2715_vm13, %v8805_v25, %v8781_v12  ;;  %v19399_v12 = vld [vmem:[#allocation36_spill] sm:$0xff] }
0x2bd4   :  { %v8812_v26 = vsel %vm2715_vm13, %v8804_v1, %v8779_v10 }
0x2bd5   :  { %12691 = vmatprep.mubr.msk.f32.mxu0 %vm270_vm1, %v8812_v26 }
0x2bd6   :  { %12692 = vmatmul.mubr.msk.f32.gmra.mrb[170].mxu0 %vm270_vm1, %v8813_v9 }
0x2c0d   :  { %v9060_v28 = vpop.xlane.xlu0 %9059 }
0x2c0e   :  { %v9106_v32 = vmul.f32 0.03125, %v9060_v28 }
0x2c10   :  { %v18376_v53 = vsub.f32 %v18250_v18, %v9106_v32  ;;  %v9300_v32 = vld [vmem:[%s19094_s1 + $0x30] sm:$0xff] }
0x2c11   :  { %v9066_v17 = vpop.xlane.xlu0 %9065  ;;  %v9063_v20 = vpop.xlane.xlu1 %9062 }
0x2c12   :  { %v9107_v30 = vmul.f32 0.03125, %v9063_v20  ;;  %v9108_v40 = vmul.f32 0.03125, %v9066_v17  ;;  %v9299_v17 = vld [vmem:[%s19094_s1 + $0x18] sm:$0xff] }
0x2c13   :  { %v9301_v20 = vld [vmem:[%s19094_s1 + $0x38] sm:$0xff] }
0x2c14   :  { %v18372_v14 = vsub.f32 %v18254_v7, %v9107_v30  ;;  %v9298_v30 = vld [vmem:[%s19094_s1 + $0x10] sm:$0xff] }
0x2c15   :  { %v9069_v61 = vpop.xlane.xlu0 %9068  ;;  %v9075_v51 = vpop.xlane.xlu1 %9074 }
0x2c16   :  { %v9109_v5 = vmul.f32 0.03125, %v9069_v61  ;;  %v9111_v25 = vmul.f32 0.03125, %v9075_v51  ;;  %v9139_v9 = vmul.f32 %v18372_v14, %v18372_v14  ;;  %v13462_v61 = vpack.c.bf16 %v9301_v20, %v9299_v17 }
0x2c18   :  { %v18386_v10 = vsub.f32 %v18266_v36, %v9109_v5  ;;  %13463 = vmatprep.subr.bf16.mxu1 %v13462_v61  ;;  %v9303_v5 = vld [vmem:[%s19094_s1 + $0x58] sm:$0xff] }
0x2c19   :  { %v9072_v31 = vpop.xlane.xlu0 %9071 }
0x2c76   :  { %v12684_v6 = vpop.f32.mrb[164].mxu0 }
0x2c77   :  { %v9032_v24 = vadd.f32 %v12684_v6, %v19387_v35  ;;  %v8984_v8 = vpop.f32.mrb[165].mxu0  ;;  %v18393_v6 = vsub.f32 %v18258_v37, %v9108_v40  ;;  %v9110_v35 = vmul.f32 0.03125, %v9072_v31  ;;  %v9305_v31 = vld [vmem:[%s19094_s1 + $0x78] sm:$0xff] }
0x2c78   :  { %v9031_v46 = vadd.f32 %v8984_v8, %v19388_v58  ;;  %v9138_v8 = vmul.f32 %v18376_v53, %v18376_v53  ;;  %v9078_v58 = vpop.xlane.xlu0 %9077 }
0x2c79   :  { %v18338_v0 = vadd.f32 %v18246_v21, %v9032_v24  ;;  %v9081_v24 = vpop.xlane.xlu1 %9080 }
0x2c7a   :  { %v18341_v49 = vadd.f32 %v18246_v21, %v9031_v46  ;;  %v18400_v46 = vsub.f32 %v18269_v38, %v9111_v25 }
0x2c7b   :  { %v9085_v3 = vsel %vm270_vm1, %v18338_v0, 0.0 }
0x2c7c   :  { %19389 = vst [vmem:[#allocation27_spill] sm:$0xff] %v18341_v49  ;;  %9086 = vadd.xlane.f32.xlu1 %v9085_v3  ;;  %v9082_v42 = vsel %vm270_vm1, %v18341_v49, 0.0  ;;  %v9113_v3 = vmul.f32 0.03125, %v9081_v24 }
0x2c7d   :  { %9083 = vadd.xlane.f32.xlu0 %v9082_v42  ;;  %v9157_v42 = vsel %vm270_vm1, %v9139_v9, 0.0 }
0x2c7e   :  { %v12687_v54 = vpop.f32.mrb[166].mxu0 }
0x2c7f   :  { %v9034_v41 = vadd.f32 %v12687_v54, %v19390_v57  ;;  %v8994_v48 = vpop.f32.mrb[167].mxu0  ;;  %v9141_v54 = vmul.f32 %v18386_v10, %v18386_v10  ;;  %v18406_v57 = vsub.f32 %v18275_v47, %v9110_v35 }
0x2c80   :  { %v9033_v39 = vadd.f32 %v8994_v48, %v19391_v19  ;;  %v9154_v48 = vsel %vm270_vm1, %v9138_v8, 0.0  ;;  %v9140_v19 = vmul.f32 %v18393_v6, %v18393_v6 }
0x2c81   :  { %v18350_v23 = vadd.f32 %v18246_v21, %v9034_v41  ;;  %v9112_v41 = vmul.f32 0.03125, %v9078_v58 }
0x2c82   :  { %v18353_v44 = vadd.f32 %v18246_v21, %v9033_v39  ;;  %v18412_v39 = vsub.f32 %v18286_v59, %v9113_v3 }
0x2c83   :  { %19392 = vst [vmem:[#allocation28_spill] sm:$0xff] %v18350_v23  ;;  %v9091_v56 = vsel %vm270_vm1, %v18350_v23, 0.0 }
0x2c84   :  { %19393 = vst [vmem:[#allocation29_spill] sm:$0xff] %v18353_v44  ;;  %9092 = vadd.xlane.f32.xlu1 %v9091_v56  ;;  %v9088_v55 = vsel %vm270_vm1, %v18353_v44, 0.0  ;;  %v9163_v56 = vsel %vm270_vm1, %v9141_v54, 0.0 }
0x2c85   :  { %9089 = vadd.xlane.f32.xlu0 %v9088_v55  ;;  %v9143_v55 = vmul.f32 %v18400_v46, %v18400_v46 }
0x2c86   :  { %v12690_v63 = vpop.f32.mrb[168].mxu0 }
0x2c87   :  { %v9036_v13 = vadd.f32 %v12690_v63, %v19394_v11  ;;  %v9004_v2 = vpop.f32.mrb[169].mxu0  ;;  %v18418_v63 = vsub.f32 %v18289_v22, %v9112_v41  ;;  %v9160_v11 = vsel %vm270_vm1, %v9140_v19, 0.0 }
0x2c88   :  { %v9035_v27 = vadd.f32 %v9004_v2, %v19395_v52  ;;  %v9169_v2 = vsel %vm270_vm1, %v9143_v55, 0.0  ;;  %v9145_v52 = vmul.f32 %v18412_v39, %v18412_v39 }
0x2c89   :  { %v18362_v60 = vadd.f32 %v18246_v21, %v9036_v13  ;;  %v9142_v13 = vmul.f32 %v18406_v57, %v18406_v57 }
0x2c8a   :  { %v18365_v34 = vadd.f32 %v18246_v21, %v9035_v27 }
0x2c8b   :  { %19396 = vst [vmem:[#allocation30_spill] sm:$0xff] %v18362_v60  ;;  %v9097_v15 = vsel %vm270_vm1, %v18362_v60, 0.0  ;;  %v9166_v27 = vsel %vm270_vm1, %v9142_v13, 0.0 }
0x2c8c   :  { %19397 = vst [vmem:[#allocation45_spill] sm:$0xff] %v18365_v34  ;;  %9098 = vadd.xlane.f32.xlu1 %v9097_v15  ;;  %v9094_v4 = vsel %vm270_vm1, %v18365_v34, 0.0  ;;  %v9144_v15 = vmul.f32 %v18418_v63, %v18418_v63 }
0x2c8d   :  { %9095 = vadd.xlane.f32.xlu0 %v9094_v4  ;;  %v9175_v4 = vsel %vm270_vm1, %v9145_v52, 0.0 }
0x2c8e   :  { %v9172_v28 = vsel %vm270_vm1, %v9144_v15, 0.0 }
0x2ca9   :  { %v12693_v50 = vpop.f32.mrb[170].mxu0 }
0x2caa   :  { %v9038_v43 = vadd.f32 %v12693_v50, %v19398_v29  ;;  %v9014_v33 = vpop.f32.mrb[171].mxu0  ;;  %v13464_v50 = vpack.c.bf16 %v9300_v32, %v9298_v30  ;;  %v13466_v29 = vpack.c.bf16 %v9305_v31, %v9303_v5 }
0x2cab   :  { %v9037_v45 = vadd.f32 %v9014_v33, %v19399_v12  ;;  %v9304_v33 = vld [vmem:[%s19094_s1 + $0x70] sm:$0xff] }
0x2cac   :  { %v18380_v16 = vadd.f32 %v18246_v21, %v9038_v43  ;;  %13465 = vmatpush1.bf16.msra.mxu1 %v13464_v50  ;;  %v9302_v43 = vld [vmem:[%s19094_s1 + $0x50] sm:$0xff] }
0x2cad   :  { %v18383_v1 = vadd.f32 %v18246_v21, %v9037_v45  ;;  %v13468_v40 = vpack.c.bf16 %v9304_v33, %v9302_v43  ;;  %13467 = vmatprep.subr.bf16.mxu1 %v13466_v29 }
0x2cae   :  { %19400 = vst [vmem:[#allocation46_spill] sm:$0xff] %v18380_v16  ;;  %v9103_v26 = vsel %vm270_vm1, %v18380_v16, 0.0 }
0x2caf   :  { %19401 = vst [vmem:[#allocation55_spill] sm:$0xff] %v18383_v1  ;;  %9104 = vadd.xlane.f32.xlu1 %v9103_v26  ;;  %v9100_v21 = vsel %vm270_vm1, %v18383_v1, 0.0 }
0x2cb0   :  { %9101 = vadd.xlane.f32.xlu0 %v9100_v21  ;;  %13469 = vmatpush1.bf16.msra.mxu1 %v13468_v40 }
0x2cb3   :  { %9158 = vadd.xlane.f32.xlu1 %v9157_v42 }
0x2cb4   :  { %9155 = vadd.xlane.f32.xlu0 %v9154_v48 }
0x2cb7   :  { %9164 = vadd.xlane.f32.xlu1 %v9163_v56 }
0x2cb8   :  { %9161 = vadd.xlane.f32.xlu0 %v9160_v11 }
0x2cbb   :  { %9170 = vadd.xlane.f32.xlu1 %v9169_v2 }
0x2cbc   :  { %9167 = vadd.xlane.f32.xlu0 %v9166_v27 }
0x2cbf   :  { %9176 = vadd.xlane.f32.xlu1 %v9175_v4 }
0x2cc0   :  { %9173 = vadd.xlane.f32.xlu0 %v9172_v28 }
0x2d09   :  { %v9087_v51 = vpop.xlane.xlu1 %9086 }
0x2d0a   :  { %v9115_v12 = vmul.f32 0.03125, %v9087_v51  ;;  %v9084_v45 = vpop.xlane.xlu0 %9083 }
0x2d0b   :  { %v9114_v25 = vmul.f32 0.03125, %v9084_v45 }
0x2d0c   :  { %v18456_v26 = vsub.f32 %v18338_v0, %v9115_v12 }
0x2d0d   :  { %v18459_v9 = vsub.f32 %v18341_v49, %v9114_v25 }
0x2d0e   :  { %v9147_v35 = vmul.f32 %v18456_v26, %v18456_v26 }
0x2d0f   :  { %v9146_v24 = vmul.f32 %v18459_v9, %v18459_v9 }
0x2d10   :  { %v9181_v21 = vsel %vm270_vm1, %v9147_v35, 0.0 }
0x2d11   :  { %v9093_v8 = vpop.xlane.xlu1 %9092  ;;  %9182 = vadd.xlane.f32.xlu1 %v9181_v21  ;;  %v9178_v58 = vsel %vm270_vm1, %v9146_v24, 0.0 }
0x2d12   :  { %v9117_v3 = vmul.f32 0.03125, %v9093_v8  ;;  %v9090_v42 = vpop.xlane.xlu0 %9089  ;;  %9179 = vadd.xlane.f32.xlu0 %v9178_v58 }
0x2d13   :  { %v9116_v54 = vmul.f32 0.03125, %v9090_v42 }
0x2d14   :  { %v18468_v41 = vsub.f32 %v18350_v23, %v9117_v3 }
0x2d15   :  { %v18471_v48 = vsub.f32 %v18353_v44, %v9116_v54 }
0x2d16   :  { %v9149_v19 = vmul.f32 %v18468_v41, %v18468_v41 }
0x2d17   :  { %v9148_v56 = vmul.f32 %v18471_v48, %v18471_v48 }
0x2d18   :  { %v9187_v55 = vsel %vm270_vm1, %v9149_v19, 0.0 }
0x2d19   :  { %v9099_v11 = vpop.xlane.xlu1 %9098  ;;  %9188 = vadd.xlane.f32.xlu1 %v9187_v55  ;;  %v9184_v13 = vsel %vm270_vm1, %v9148_v56, 0.0 }
0x2d1a   :  { %v9119_v2 = vmul.f32 0.03125, %v9099_v11  ;;  %v9096_v52 = vpop.xlane.xlu0 %9095  ;;  %9185 = vadd.xlane.f32.xlu0 %v9184_v13 }
0x2d1b   :  { %v9118_v27 = vmul.f32 0.03125, %v9096_v52 }
0x2d1c   :  { %v18480_v15 = vsub.f32 %v18362_v60, %v9119_v2 }
0x2d1d   :  { %v18483_v4 = vsub.f32 %v18365_v34, %v9118_v27 }
0x2d1e   :  { %v9151_v28 = vmul.f32 %v18480_v15, %v18480_v15 }
0x2d1f   :  { %v9150_v17 = vmul.f32 %v18483_v4, %v18483_v4 }
0x2d20   :  { %v9193_v20 = vsel %vm270_vm1, %v9151_v28, 0.0 }
0x2d21   :  { %9194 = vadd.xlane.f32.xlu1 %v9193_v20  ;;  %v9190_v61 = vsel %vm270_vm1, %v9150_v17, 0.0  ;;  %v18506_v17 = vld [vmem:[%s19095_s2 + $0x13] ss:$0 sm:$0xff] }
0x2d22   :  { %9191 = vadd.xlane.f32.xlu0 %v9190_v61 }
0x2d3c   :  { %v9105_v30 = vpop.xlane.xlu1 %9104 }
0x2d3d   :  { %v9121_v32 = vmul.f32 0.03125, %v9105_v30  ;;  %v9102_v50 = vpop.xlane.xlu0 %9101 }
0x2d3e   :  { %v9120_v5 = vmul.f32 0.03125, %v9102_v50 }
0x2d3f   :  { %v18492_v31 = vsub.f32 %v18380_v16, %v9121_v32 }
0x2d40   :  { %v18495_v29 = vsub.f32 %v18383_v1, %v9120_v5  ;;  %v9159_v43 = vpop.xlane.xlu1 %9158  ;;  %v18513_v5 = vld [vmem:[%s19095_s2 + $0x14] ss:$0 sm:$0xff] }
0x2d41   :  { %v9203_v33 = vmul.f32 0.03125, %v9159_v43  ;;  %v9156_v40 = vpop.xlane.xlu0 %9155  ;;  %v9153_v51 = vmul.f32 %v18492_v31, %v18492_v31 }
0x2d42   :  { %v9202_v12 = vmul.f32 0.03125, %v9156_v40  ;;  %v9152_v45 = vmul.f32 %v18495_v29, %v18495_v29 }
0x2d43   :  { %v9219_v25 = vadd.f32 1e-05, %v9203_v33  ;;  %v9199_v35 = vsel %vm270_vm1, %v9153_v51, 0.0 }
0x2d44   :  { %v9218_v24 = vadd.f32 1e-05, %v9202_v12  ;;  %9200 = vadd.xlane.f32.xlu1 %v9199_v35  ;;  %v9165_v21 = vpop.xlane.xlu1 %9164  ;;  %v9196_v8 = vsel %vm270_vm1, %v9152_v45, 0.0 }
0x2d45   :  { %14483 = vrsqrt.f32 %v9219_v25  ;;  %v9205_v58 = vmul.f32 0.03125, %v9165_v21  ;;  %9197 = vadd.xlane.f32.xlu0 %v9196_v8  ;;  %v9162_v3 = vpop.xlane.xlu0 %9161 }
0x2d46   :  { %14485 = vrsqrt.f32 %v9218_v24  ;;  %v9204_v42 = vmul.f32 0.03125, %v9162_v3 }
0x2d47   :  { %v9221_v54 = vadd.f32 1e-05, %v9205_v58 }
0x2d48   :  { %v9220_v19 = vadd.f32 1e-05, %v9204_v42  ;;  %v9171_v56 = vpop.xlane.xlu1 %9170 }
0x2d49   :  { %v9168_v55 = vpop.xlane.xlu0 %9167  ;;  %v9207_v13 = vmul.f32 0.03125, %v9171_v56 }
0x2d4a   :  { %14487 = vrsqrt.f32 %v9220_v19  ;;  %v9206_v11 = vmul.f32 0.03125, %v9168_v55 }
0x2d4b   :  { %14489 = vrsqrt.f32 %v9221_v54  ;;  %v9223_v20 = vadd.f32 1e-05, %v9207_v13 }
0x2d4c   :  { %v9222_v2 = vadd.f32 1e-05, %v9206_v11  ;;  %v9177_v32 = vpop.xlane.xlu1 %9176 }
0x2d4d   :  { %v9174_v52 = vpop.xlane.xlu0 %9173  ;;  %v9209_v40 = vmul.f32 0.03125, %v9177_v32 }
0x2d4e   :  { %14491 = vrsqrt.f32 %v9222_v2  ;;  %v9208_v61 = vmul.f32 0.03125, %v9174_v52 }
0x2d4f   :  { %v14484_v27 = vpop.eup %14483  ;;  %14493 = vrsqrt.f32 %v9223_v20 }
0x2d50   :  { %v14486_v28 = vpop.eup %14485  ;;  %v9251_v50 = vmul.f32 %v14484_v27, %v18372_v14  ;;  %v9224_v51 = vadd.f32 1e-05, %v9208_v61  ;;  %v9225_v14 = vadd.f32 1e-05, %v9209_v40 }
0x2d51   :  { %v9250_v30 = vmul.f32 %v14486_v28, %v18376_v53 }
0x2d52   :  { %v9267_v45 = vmul.f32 %v9251_v50, %v18506_v17  ;;  %14495 = vrsqrt.f32 %v9224_v51 }
0x2d53   :  { %v9266_v43 = vmul.f32 %v9250_v30, %v18506_v17  ;;  %14497 = vrsqrt.f32 %v9225_v14 }
0x2d54   :  { %v14488_v33 = vpop.eup %14487  ;;  %v9283_v35 = vadd.f32 %v9267_v45, %v18513_v5 }
0x2d55   :  { %v9282_v12 = vadd.f32 %v9266_v43, %v18513_v5  ;;  %v9252_v53 = vmul.f32 %v14488_v33, %v18393_v6  ;;  %v14490_v25 = vpop.eup %14489 }
0x2d56   :  { %v9253_v21 = vmul.f32 %v14490_v25, %v18386_v10 }
0x2d57   :  { %10938 = vmatmul.mubr.msk.f32.vlgmr.msra.gmra.mrb[164].mxu1 %vm270_vm1, %v9282_v12  ;;  %v9268_v24 = vmul.f32 %v9252_v53, %v18506_v17 }
0x2d58   :  { %9437 = vmatprep.mubr.f32.mxu1 %v19345_v62  ;;  %v14492_v8 = vpop.eup %14491  ;;  %v9269_v58 = vmul.f32 %v9253_v21, %v18506_v17 }
0x2d59   :  { %v9284_v6 = vadd.f32 %v9268_v24, %v18513_v5  ;;  %v9254_v3 = vmul.f32 %v14492_v8, %v18406_v57  ;;  %v14494_v42 = vpop.eup %14493 }
0x2d5a   :  { %v9285_v54 = vadd.f32 %v9269_v58, %v18513_v5  ;;  %v9255_v19 = vmul.f32 %v14494_v42, %v18400_v46 }
0x2d5b   :  { %10939 = vmatmul.mubr.msk.f32.gmra.mrb[166].mxu1 %vm270_vm1, %v9283_v35  ;;  %v9270_v10 = vmul.f32 %v9254_v3, %v18506_v17 }
0x2d5c   :  { %9443 = vmatprep.mubr.f32.mxu1 %v19345_v62  ;;  %v14496_v56 = vpop.eup %14495  ;;  %v9271_v57 = vmul.f32 %v9255_v19, %v18506_v17 }
0x2d5d   :  { %v9286_v55 = vadd.f32 %v9270_v10, %v18513_v5  ;;  %v9256_v11 = vmul.f32 %v14496_v56, %v18418_v63  ;;  %v14498_v13 = vpop.eup %14497 }
0x2d5e   :  { %v9287_v2 = vadd.f32 %v9271_v57, %v18513_v5  ;;  %v9257_v52 = vmul.f32 %v14498_v13, %v18412_v39 }
0x2d5f   :  { %10940 = vmatmul.mubr.msk.f32.gmra.mrb[168].mxu1 %vm270_vm1, %v9284_v6  ;;  %v9272_v46 = vmul.f32 %v9256_v11, %v18506_v17 }
0x2d60   :  { %9449 = vmatprep.mubr.f32.mxu1 %v19345_v62  ;;  %v9273_v28 = vmul.f32 %v9257_v52, %v18506_v17 }
0x2d61   :  { %v9288_v27 = vadd.f32 %v9272_v46, %v18513_v5 }
0x2d62   :  { %v9289_v63 = vadd.f32 %v9273_v28, %v18513_v5 }
0x2d63   :  { %10941 = vmatmul.mubr.msk.f32.gmra.mrb[170].mxu1 %vm270_vm1, %v9285_v54 }
0x2d64   :  { %9455 = vmatprep.mubr.f32.mxu1 %v19345_v62 }
0x2d67   :  { %10942 = vmatmul.mubr.msk.f32.gmra.mrb[172].mxu1 %vm270_vm1, %v9286_v55 }
0x2d68   :  { %9461 = vmatprep.mubr.f32.mxu1 %v19345_v62 }
0x2d6b   :  { %10943 = vmatmul.mubr.msk.f32.gmra.mrb[174].mxu1 %vm270_vm1, %v9287_v2 }
0x2d6c   :  { %9467 = vmatprep.mubr.f32.mxu1 %v19345_v62 }
0x2d6f   :  { %10944 = vmatmul.mubr.msk.f32.gmra.mrb[176].mxu1 %vm270_vm1, %v9288_v27 }
0x2d70   :  { %9473 = vmatprep.mubr.f32.mxu1 %v19345_v62 }
0x2d73   :  { %10945 = vmatmul.mubr.msk.f32.gmra.mrb[178].mxu1 %vm270_vm1, %v9289_v63 }
0x2d74   :  { %9479 = vmatprep.mubr.f32.mxu1 %v19345_v62 }
0x2d9e   :  { %v9183_v20 = vpop.xlane.xlu1 %9182 }
0x2d9f   :  { %v9211_v39 = vmul.f32 0.03125, %v9183_v20  ;;  %v9180_v61 = vpop.xlane.xlu0 %9179  ;;  %v9976_v20 = vld [vmem:[%s19096_s3] sm:$0xff] }
0x2da0   :  { %v9210_v30 = vmul.f32 0.03125, %v9180_v61  ;;  %v9978_v61 = vld [vmem:[%s19096_s3 + $0x10] sm:$0xff] }
0x2da1   :  { %v9227_v32 = vadd.f32 1e-05, %v9211_v39 }
0x2da2   :  { %v9226_v50 = vadd.f32 1e-05, %v9210_v30  ;;  %v9979_v30 = vld [vmem:[%s19096_s3 + $0x18] sm:$0xff] }
0x2da3   :  { %14499 = vrsqrt.f32 %v9227_v32  ;;  %v13474_v32 = vpack.c.bf16 %v9979_v30, %v9978_v61 }
0x2da4   :  { %14501 = vrsqrt.f32 %v9226_v50  ;;  %v9980_v50 = vld [vmem:[%s19096_s3 + $0x20] sm:$0xff] }
0x2da6   :  { %v9189_v43 = vpop.xlane.xlu1 %9188 }
0x2da7   :  { %v9213_v33 = vmul.f32 0.03125, %v9189_v43  ;;  %v9186_v40 = vpop.xlane.xlu0 %9185  ;;  %v9981_v43 = vld [vmem:[%s19096_s3 + $0x28] sm:$0xff] }
0x2da8   :  { %v9212_v51 = vmul.f32 0.03125, %v9186_v40 }
0x2da9   :  { %v9229_v12 = vadd.f32 1e-05, %v9213_v33  ;;  %v13478_v33 = vpack.c.bf16 %v9981_v43, %v9980_v50 }
0x2daa   :  { %v9228_v45 = vadd.f32 1e-05, %v9212_v51  ;;  %v9982_v51 = vld [vmem:[%s19096_s3 + $0x30] sm:$0xff] }
0x2dab   :  { %14503 = vrsqrt.f32 %v9229_v12  ;;  %v9983_v12 = vld [vmem:[%s19096_s3 + $0x38] sm:$0xff] }
0x2dac   :  { %14505 = vrsqrt.f32 %v9228_v45 }
0x2dad   :  { %v14500_v53 = vpop.eup %14499 }
0x2dae   :  { %v14502_v25 = vpop.eup %14501  ;;  %v9195_v14 = vpop.xlane.xlu1 %9194  ;;  %v9259_v8 = vmul.f32 %v14500_v53, %v18456_v26 }
0x2daf   :  { %v9215_v35 = vmul.f32 0.03125, %v9195_v14  ;;  %v9192_v24 = vpop.xlane.xlu0 %9191  ;;  %v9258_v21 = vmul.f32 %v14502_v25, %v18459_v9  ;;  %v13482_v25 = vpack.c.bf16 %v9983_v12, %v9982_v51 }
0x2db0   :  { %v9214_v6 = vmul.f32 0.03125, %v9192_v24  ;;  %v9275_v10 = vmul.f32 %v9259_v8, %v18506_v17  ;;  %v9985_v8 = vld [vmem:[%s19096_s3 + $0x48] sm:$0xff] }
0x2db1   :  { %v9231_v58 = vadd.f32 1e-05, %v9215_v35  ;;  %v9274_v3 = vmul.f32 %v9258_v21, %v18506_v17  ;;  %v9984_v21 = vld [vmem:[%s19096_s3 + $0x40] sm:$0xff] }
0x2db2   :  { %v9230_v42 = vadd.f32 1e-05, %v9214_v6  ;;  %v9291_v9 = vadd.f32 %v9275_v10, %v18513_v5  ;;  %v13486_v6 = vpack.c.bf16 %v9985_v8, %v9984_v21  ;;  %v9989_v10 = vld [vmem:[%s19096_s3 + $0x68] sm:$0xff] }
0x2db3   :  { %14507 = vrsqrt.f32 %v9231_v58  ;;  %v9290_v54 = vadd.f32 %v9274_v3, %v18513_v5  ;;  %v9986_v58 = vld [vmem:[%s19096_s3 + $0x50] sm:$0xff]  ;;  %v9987_v3 = vld [vmem:[%s19096_s3 + $0x58] sm:$0xff] }
0x2db4   :  { %14509 = vrsqrt.f32 %v9230_v42  ;;  %v13490_v42 = vpack.c.bf16 %v9987_v3, %v9986_v58 }
0x2db5   :  { %v14504_v19 = vpop.eup %14503  ;;  %10946 = vmatmul.mubr.msk.f32.gmra.mrb[180].mxu1 %vm270_vm1, %v9290_v54  ;;  %v9988_v54 = vld [vmem:[%s19096_s3 + $0x60] sm:$0xff] }
0x2db6   :  { %v14506_v56 = vpop.eup %14505  ;;  %9485 = vmatprep.mubr.f32.mxu1 %v19345_v62  ;;  %v9261_v55 = vmul.f32 %v14504_v19, %v18468_v41  ;;  %v13494_v19 = vpack.c.bf16 %v9989_v10, %v9988_v54 }
0x2db7   :  { %v9260_v26 = vmul.f32 %v14506_v56, %v18471_v48 }
0x2db8   :  { %v9277_v13 = vmul.f32 %v9261_v55, %v18506_v17  ;;  %v9991_v55 = vld [vmem:[%s19096_s3 + $0x78] sm:$0xff] }
0x2db9   :  { %10947 = vmatmul.mubr.msk.f32.gmra.mrb[182].mxu1 %vm270_vm1, %v9291_v9  ;;  %v9276_v57 = vmul.f32 %v9260_v26, %v18506_v17  ;;  %v9990_v26 = vld [vmem:[%s19096_s3 + $0x70] sm:$0xff] }
0x2dba   :  { %9491 = vmatprep.mubr.f32.mxu1 %v19345_v62  ;;  %v9293_v48 = vadd.f32 %v9277_v13, %v18513_v5  ;;  %v13498_v13 = vpack.c.bf16 %v9991_v55, %v9990_v26 }
0x2dbb   :  { %v9292_v11 = vadd.f32 %v9276_v57, %v18513_v5 }
0x2dbd   :  { %v14508_v2 = vpop.eup %14507  ;;  %10948 = vmatmul.mubr.msk.f32.gmra.mrb[184].mxu1 %vm270_vm1, %v9292_v11 }
0x2dbe   :  { %v14510_v46 = vpop.eup %14509  ;;  %9497 = vmatprep.mubr.f32.mxu1 %v19345_v62  ;;  %v9263_v52 = vmul.f32 %v14508_v2, %v18480_v15 }
0x2dbf   :  { %v9262_v41 = vmul.f32 %v14510_v46, %v18483_v4  ;;  %v9977_v4 = vld [vmem:[%s19096_s3 + $0x8] sm:$0xff] }
0x2dc0   :  { %v9279_v63 = vmul.f32 %v9263_v52, %v18506_v17  ;;  %v13470_v39 = vpack.c.bf16 %v9977_v4, %v9976_v20 }
0x2dc1   :  { %10949 = vmatmul.mubr.msk.f32.gmra.mrb[186].mxu1 %vm270_vm1, %v9293_v48  ;;  %v9278_v27 = vmul.f32 %v9262_v41, %v18506_v17 }
0x2dc2   :  { %9503 = vmatprep.mubr.f32.mxu1 %v19345_v62  ;;  %13471 = vmatprep.subr.bf16.mxu0 %v13470_v39  ;;  %v9295_v15 = vadd.f32 %v9279_v63, %v18513_v5 }
0x2dc3   :  { %v9294_v28 = vadd.f32 %v9278_v27, %v18513_v5  ;;  %13473 = vmatpush3.bf16.msra.mxu0 %v13470_v39 }
0x2dc4   :  { %13475 = vmatprep.subr.bf16.mxu0 %v13474_v32 }
0x2dc5   :  { %10950 = vmatmul.mubr.msk.f32.gmra.mrb[188].mxu1 %vm270_vm1, %v9294_v28 }
0x2dc6   :  { %9509 = vmatprep.mubr.f32.mxu1 %v19345_v62 }
0x2dc7   :  { %13477 = vmatpush3.bf16.msra.mxu0 %v13474_v32 }
0x2dc8   :  { %13479 = vmatprep.subr.bf16.mxu0 %v13478_v33 }
0x2dc9   :  { %10951 = vmatmul.mubr.msk.f32.gmra.mrb[190].mxu1 %vm270_vm1, %v9295_v15 }
0x2dca   :  { %9515 = vmatprep.mubr.f32.mxu1 %v19345_v62 }
0x2dcb   :  { %13481 = vmatpush3.bf16.msra.mxu0 %v13478_v33 }
0x2dcc   :  { %13483 = vmatprep.subr.bf16.mxu0 %v13482_v25 }
0x2dcf   :  { %13485 = vmatpush3.bf16.msra.mxu0 %v13482_v25 }
0x2dd0   :  { %13487 = vmatprep.subr.bf16.mxu0 %v13486_v6 }
0x2dd1   :  { %v9201_v40 = vpop.xlane.xlu1 %9200 }
0x2dd2   :  { %v9217_v45 = vmul.f32 0.03125, %v9201_v40  ;;  %v9198_v53 = vpop.xlane.xlu0 %9197 }
0x2dd3   :  { %v9216_v14 = vmul.f32 0.03125, %v9198_v53  ;;  %13489 = vmatpush3.bf16.msra.mxu0 %v13486_v6 }
0x2dd4   :  { %v9233_v35 = vadd.f32 1e-05, %v9217_v45  ;;  %13491 = vmatprep.subr.bf16.mxu0 %v13490_v42 }
0x2dd5   :  { %v9232_v24 = vadd.f32 1e-05, %v9216_v14 }
0x2dd6   :  { %14511 = vrsqrt.f32 %v9233_v35 }
0x2dd7   :  { %14513 = vrsqrt.f32 %v9232_v24  ;;  %13493 = vmatpush3.bf16.msra.mxu0 %v13490_v42 }
0x2dd8   :  { %13495 = vmatprep.subr.bf16.mxu0 %v13494_v19 }
0x2ddb   :  { %13497 = vmatpush3.bf16.msra.mxu0 %v13494_v19 }
0x2ddc   :  { %13499 = vmatprep.subr.bf16.mxu0 %v13498_v13 }
0x2ddf   :  { %13501 = vmatpush3.bf16.msra.mxu0 %v13498_v13 }
0x2de0   :  { %v14512_v56 = vpop.eup %14511 }
0x2de1   :  { %v14514_v9 = vpop.eup %14513  ;;  %v9265_v11 = vmul.f32 %v14512_v56, %v18492_v31  ;;  %v10937_v31 = vld [vmem:[%s19095_s2 + $0x15] ss:$8 sm:$0x3] }
0x2de2   :  { %v9264_v57 = vmul.f32 %v14514_v9, %v18495_v29  ;;  %v19402_v29 = vld [vmem:[#allocation21_spill] sm:$0xff] }
0x2de3   :  { %v9281_v48 = vmul.f32 %v9265_v11, %v18506_v17  ;;  %v9315_v52 = vsub.s32 1, %v19402_v29  ;;  %v9311_v8 = vsub.s32 0, %v19402_v29 }
0x2de4   :  { %v9280_v2 = vmul.f32 %v9264_v57, %v18506_v17 }
0x2de5   :  { %v9297_v41 = vadd.f32 %v9281_v48, %v18513_v5  ;;  %v18644_v27 = vrot.slane %v10937_v31, %v9315_v52  ;;  %v18684_v26 = vrot.slane %v10937_v31, %v9311_v8 }
0x2de6   :  { %v9296_v46 = vadd.f32 %v9280_v2, %v18513_v5 }
0x2de8   :  { %10952 = vmatmul.mubr.msk.f32.gmra.mrb[192].mxu1 %vm270_vm1, %v9296_v46 }
0x2de9   :  { %9521 = vmatprep.mubr.f32.mxu1 %v19345_v62 }
0x2dec   :  { %10953 = vmatmul.mubr.msk.f32.gmra.mrb[194].mxu1 %vm270_vm1, %v9297_v41 }
0x2e2a   :  { %v9433_v28 = vpop.f32.mrb[164].mxu1 }
0x2e2b   :  { %v9435_v63 = vpop.f32.mrb[165].mxu1 }
0x2e2c   :  { %v9436_v17 = vadd.f32 %v9435_v63, %v18644_v27 }
0x2e2e   :  { %v18647_v20 = vmul.f32 0.70710677, %v9436_v17  ;;  %v9439_v4 = vpop.f32.mrb[166].mxu1 }
0x2e2f   :  { %v9441_v62 = vpop.f32.mrb[167].mxu1 }
0x2e30   :  { %v9560_v5 = vand.u32 2147483647, %v18647_v20  ;;  %v18651_v39 = vadd.f32 %v9441_v62, %v18644_v27  ;;  %v18698_v62 = vadd.f32 %v9433_v28, %v18684_v26  ;;  %v18712_v28 = vadd.f32 %v9439_v4, %v18684_v26 }
0x2e31   :  { %vm9880_vm14 = vcmp.ge.f32.partialorder %v18647_v20, 0.0 }
0x2e32   :  { %v9576_v15 = vmul.f32 0.3275911, %v9560_v5  ;;  %v18654_v61 = vmul.f32 0.70710677, %v18651_v39  ;;  %v18656_v30 = vpop.f32.mrb[168].mxu1  ;;  %v9784_v35 = vsub.f32 0.0, %v9560_v5 }
0x2e33   :  { %v9447_v43 = vpop.f32.mrb[169].mxu1 }
0x2e34   :  { %v9592_v32 = vadd.f32 1.0, %v9576_v15  ;;  %v9561_v50 = vand.u32 2147483647, %v18654_v61  ;;  %v18660_v33 = vadd.f32 %v9447_v43, %v18644_v27  ;;  %v9800_v19 = vmul.f32 %v9784_v35, %v9560_v5 }
0x2e35   :  { %v18700_v5 = vmul.f32 0.5, %v9436_v17  ;;  %vm9881_vm15 = vcmp.ge.f32.partialorder %v18654_v61, 0.0 }
0x2e36   :  { %14515 = vrcp.f32 %v9592_v32  ;;  %v9577_v40 = vmul.f32 0.3275911, %v9561_v50  ;;  %v18662_v51 = vpop.f32.mrb[170].mxu1  ;;  %v18665_v12 = vmul.f32 0.70710677, %v18660_v33  ;;  %v9785_v3 = vsub.f32 0.0, %v9561_v50 }
0x2e37   :  { %v9453_v45 = vpop.f32.mrb[171].mxu1  ;;  %v9816_v29 = vmul.f32 1.442695, %v9800_v19 }
0x2e38   :  { %v9593_v53 = vadd.f32 1.0, %v9577_v40  ;;  %v18668_v25 = vadd.f32 %v9453_v45, %v18644_v27  ;;  %v9562_v14 = vand.u32 2147483647, %v18665_v12  ;;  %v9801_v11 = vmul.f32 %v9785_v3, %v9561_v50 }
0x2e39   :  { %vm9882_vm2 = vcmp.ge.f32.partialorder %v18665_v12, 0.0 }
0x2e3a   :  { %14517 = vrcp.f32 %v9593_v53  ;;  %v18672_v24 = vmul.f32 0.70710677, %v18668_v25  ;;  %v18674_v21 = vpop.f32.mrb[172].mxu1  ;;  %v9578_v6 = vmul.f32 0.3275911, %v9562_v14  ;;  %v9786_v52 = vsub.f32 0.0, %v9562_v14 }
0x2e3b   :  { %v9459_v58 = vpop.f32.mrb[173].mxu1  ;;  %v9818_v40 = vmul.f32 1.442695, %v9801_v11 }
0x2e3c   :  { %v9563_v42 = vand.u32 2147483647, %v18672_v24  ;;  %v18679_v54 = vadd.f32 %v9459_v58, %v18644_v27  ;;  %v9594_v10 = vadd.f32 1.0, %v9578_v6  ;;  %v9802_v58 = vmul.f32 %v9786_v52, %v9562_v14 }
0x2e3d   :  { %vm9883_vm3 = vcmp.ge.f32.partialorder %v18672_v24, 0.0 }
0x2e3e   :  { %v9579_v56 = vmul.f32 0.3275911, %v9563_v42  ;;  %v18682_v9 = vmul.f32 0.70710677, %v18679_v54  ;;  %14519 = vrcp.f32 %v9594_v10  ;;  %v18686_v55 = vpop.f32.mrb[174].mxu1  ;;  %v9787_v45 = vsub.f32 0.0, %v9563_v42 }
0x2e3f   :  { %v9465_v46 = vpop.f32.mrb[175].mxu1 }
0x2e40   :  { %v18688_v57 = vpop.eup %14515  ;;  %v9595_v13 = vadd.f32 1.0, %v9579_v56  ;;  %v9564_v2 = vand.u32 2147483647, %v18682_v9  ;;  %v18693_v41 = vadd.f32 %v9465_v46, %v18644_v27  ;;  %v18722_v46 = vmul.f32 0.5, %v18651_v39 }
0x2e41   :  { %v9640_v48 = vmul.f32 1.0614054, %v18688_v57  ;;  %v9803_v4 = vmul.f32 %v9787_v45, %v9563_v42  ;;  %v9820_v39 = vmul.f32 1.442695, %v9802_v58  ;;  %vm9884_vm4 = vcmp.ge.f32.partialorder %v18682_v9, 0.0 }
0x2e42   :  { %14521 = vrcp.f32 %v9595_v13  ;;  %v9580_v31 = vmul.f32 0.3275911, %v9564_v2  ;;  %v18695_v63 = vpop.f32.mrb[176].mxu1  ;;  %v18703_v32 = vmul.f32 0.70710677, %v18693_v41  ;;  %v9788_v3 = vsub.f32 0.0, %v9564_v2 }
0x2e43   :  { %v9656_v15 = vadd.f32 -1.4531521, %v9640_v48  ;;  %v9471_v50 = vpop.f32.mrb[177].mxu1 }
0x2e44   :  { %v18705_v43 = vpop.eup %14517  ;;  %v9596_v53 = vadd.f32 1.0, %v9580_v31  ;;  %v18708_v35 = vadd.f32 %v9471_v50, %v18644_v27  ;;  %v9565_v6 = vand.u32 2147483647, %v18703_v32  ;;  %vm9885_vm5 = vcmp.ge.f32.partialorder %v18703_v32, 0.0 }
0x2e45   :  { %v9672_v8 = vmul.f32 %v18688_v57, %v9656_v15  ;;  %v9641_v17 = vmul.f32 1.0614054, %v18705_v43 }
0x2e46   :  { %14523 = vrcp.f32 %v9596_v53  ;;  %v18717_v10 = vmul.f32 0.70710677, %v18708_v35  ;;  %v18719_v19 = vpop.f32.mrb[178].mxu1  ;;  %v9581_v13 = vmul.f32 0.3275911, %v9565_v6  ;;  %v9789_v1 = vsub.f32 0.0, %v9565_v6 }
0x2e47   :  { %v9688_v56 = vadd.f32 1.4214138, %v9672_v8  ;;  %14525 = vpow2.f32 %v9816_v29  ;;  %v9657_v11 = vadd.f32 -1.4531521, %v9641_v17  ;;  %v9477_v14 = vpop.f32.mrb[179].mxu1  ;;  %v9804_v8 = vmul.f32 %v9788_v3, %v9564_v2 }
0x2e48   :  { %14527 = vpow2.f32 %v9818_v40  ;;  %v18725_v48 = vand.u32 2147483647, %v18717_v10  ;;  %v18727_v52 = vpop.eup %14519  ;;  %v9597_v50 = vadd.f32 1.0, %v9581_v13  ;;  %v18732_v29 = vadd.f32 %v9477_v14, %v18644_v27 }
0x2e49   :  { %v9704_v31 = vmul.f32 %v18688_v57, %v9688_v56  ;;  %v9673_v15 = vmul.f32 %v18705_v43, %v9657_v11  ;;  %v9642_v53 = vmul.f32 1.0614054, %v18727_v52  ;;  %v18738_v17 = vadd.f32 %v18656_v30, %v18684_v26 }
0x2e4a   :  { %v9582_v42 = vmul.f32 0.3275911, %v18725_v48  ;;  %14529 = vrcp.f32 %v9597_v50  ;;  %v9822_v13 = vmul.f32 1.442695, %v9803_v4  ;;  %v18746_v3 = vmul.f32 0.70710677, %v18732_v29 }
0x2e4b   :  { %v9720_v40 = vadd.f32 -0.28449672, %v9704_v31  ;;  %v9689_v45 = vadd.f32 1.4214138, %v9673_v15  ;;  %v9658_v11 = vadd.f32 -1.4531521, %v9642_v53  ;;  %14531 = vpow2.f32 %v9820_v39 }
0x2e4c   :  { %v18740_v56 = vpop.eup %14521  ;;  %v9598_v14 = vadd.f32 1.0, %v9582_v42  ;;  %v9824_v30 = vmul.f32 1.442695, %v9804_v8  ;;  %v14589_v15 = vld [vmem:[%s19094_s1 + $0x8] sm:$0xff]  ;;  %v9805_v39 = vmul.f32 %v9789_v1, %v9565_v6  ;;  %v18759_v8 = vand.u32 2147483647, %v18746_v3 }
0x2e4d   :  { %v9736_v16 = vmul.f32 %v18688_v57, %v9720_v40  ;;  %v9705_v58 = vmul.f32 %v18705_v43, %v9689_v45  ;;  %v9643_v2 = vmul.f32 1.0614054, %v18740_v56  ;;  %v9674_v31 = vmul.f32 %v18727_v52, %v9658_v11  ;;  %v14590_v4 = vld [vmem:[%s19094_s1 + $0x28] sm:$0xff] }
0x2e4e   :  { %v13881_v50 = vpack.i.bf16 %v14590_v4, %v14589_v15  ;;  %14533 = vrcp.f32 %v9598_v14  ;;  %v9583_v1 = vmul.f32 0.3275911, %v18759_v8  ;;  %v14591_v6 = vld [vmem:[%s19094_s1 + $0x48] sm:$0xff]  ;;  %vm9886_vm6 = vcmp.ge.f32.partialorder %v18717_v10, 0.0 }
0x2e4f   :  { %v9752_v53 = vadd.f32 0.2548296, %v9736_v16  ;;  %v9721_v42 = vadd.f32 -0.28449672, %v9705_v58  ;;  %v9659_v40 = vadd.f32 -1.4531521, %v9643_v2  ;;  %14535 = vpow2.f32 %v9822_v13 }
0x2e50   :  { %v18755_v45 = vpop.eup %14523  ;;  %v9690_v11 = vadd.f32 1.4214138, %v9674_v31  ;;  %13882 = vrot.lane.b32.xlu0 %v13881_v50, %s14609_s12  ;;  %14537 = vpow2.f32 %v9824_v30  ;;  %v9790_v30 = vsub.f32 0.0, %v18725_v48  ;;  %vm9887_vm7 = vcmp.ge.f32.partialorder %v18746_v3, 0.0 }
0x2e51   :  { %v14526_v34 = vpop.eup %14525  ;;  %v9768_v60 = vmul.f32 %v18688_v57, %v9752_v53  ;;  %v9737_v16 = vmul.f32 %v18705_v43, %v9721_v42  ;;  %v9675_v58 = vmul.f32 %v18740_v56, %v9659_v40  ;;  %v9644_v14 = vmul.f32 1.0614054, %v18755_v45  ;;  %v14592_v57 = vld [vmem:[%s19094_s1 + $0x68] sm:$0xff] }
0x2e52   :  { %v14528_v2 = vpop.eup %14527  ;;  %v9706_v15 = vmul.f32 %v18727_v52, %v9690_v11  ;;  %v13886_v13 = vpack.i.bf16 %v14592_v57, %v14591_v6  ;;  %v9826_v40 = vmul.f32 1.442695, %v9805_v39  ;;  %v9599_v11 = vadd.f32 1.0, %v9583_v1 }
0x2e53   :  { %v9848_v31 = vmul.f32 %v14526_v34, %v9768_v60  ;;  %v9753_v4 = vadd.f32 0.2548296, %v9737_v16  ;;  %v9691_v50 = vadd.f32 1.4214138, %v9675_v58  ;;  %v9660_v53 = vadd.f32 -1.4531521, %v9644_v14 }
0x2e54   :  { %v9722_v42 = vadd.f32 -0.28449672, %v9706_v15  ;;  %13887 = vrot.lane.b32.xlu1 %v13886_v13, %s14609_s12  ;;  %v18777_v44 = vpop.eup %14529  ;;  %v18783_v34 = vmul.f32 0.5, %v18660_v33  ;;  %14539 = vrcp.f32 %v9599_v11 }
0x2e55   :  { %v9864_v23 = vsub.f32 1.0, %v9848_v31  ;;  %v9769_v49 = vmul.f32 %v18705_v43, %v9753_v4  ;;  %v9707_v6 = vmul.f32 %v18740_v56, %v9691_v50  ;;  %v9676_v60 = vmul.f32 %v18755_v45, %v9660_v53  ;;  %v14532_v57 = vpop.eup %14531 }
0x2e56   :  { %v9738_v16 = vmul.f32 %v18727_v52, %v9722_v42  ;;  %v9645_v39 = vmul.f32 1.0614054, %v18777_v44  ;;  %14541 = vpow2.f32 %v9826_v40  ;;  %v9806_v43 = vmul.f32 %v9790_v30, %v18725_v48 }
0x2e57   :  { %v9896_v58 = vsub.f32 0.0, %v9864_v23  ;;  %v9849_v14 = vmul.f32 %v14528_v2, %v9769_v49  ;;  %v9723_v15 = vadd.f32 -0.28449672, %v9707_v6  ;;  %v9692_v1 = vadd.f32 1.4214138, %v9676_v60 }
0x2e58   :  { %v9754_v13 = vadd.f32 0.2548296, %v9738_v16  ;;  %v9661_v31 = vadd.f32 -1.4531521, %v9645_v39  ;;  %v18788_v4 = vpop.eup %14533 }
0x2e59   :  { %v9912_v33 = vsel %vm9880_vm14, %v9864_v23, %v9896_v58  ;;  %v9865_v50 = vsub.f32 1.0, %v9849_v14  ;;  %v9739_v53 = vmul.f32 %v18740_v56, %v9723_v15  ;;  %v9708_v49 = vmul.f32 %v18755_v45, %v9692_v1  ;;  %v14536_v2 = vpop.eup %14535 }
0x2e5a   :  { %v9928_v42 = vadd.f32 1.0, %v9912_v33  ;;  %v9770_v11 = vmul.f32 %v18727_v52, %v9754_v13  ;;  %v9677_v40 = vmul.f32 %v18777_v44, %v9661_v31  ;;  %v9646_v48 = vmul.f32 1.0614054, %v18788_v4  ;;  %v14538_v20 = vpop.eup %14537 }
0x2e5b   :  { %v9897_v30 = vsub.f32 0.0, %v9865_v50  ;;  %v9755_v6 = vadd.f32 0.2548296, %v9739_v53  ;;  %v9724_v60 = vadd.f32 -0.28449672, %v9708_v49  ;;  %v9791_v23 = vsub.f32 0.0, %v18759_v8 }
0x2e5c   :  { %v9944_v16 = vmul.f32 %v9928_v42, %v18700_v5  ;;  %v9850_v39 = vmul.f32 %v14532_v57, %v9770_v11  ;;  %v9693_v58 = vadd.f32 1.4214138, %v9677_v40  ;;  %v9662_v14 = vadd.f32 -1.4531521, %v9646_v48 }
0x2e5d   :  { %v9913_v52 = vsel %vm9881_vm15, %v9865_v50, %v9897_v30  ;;  %v9771_v15 = vmul.f32 %v18740_v56, %v9755_v6  ;;  %v9740_v1 = vmul.f32 %v18755_v45, %v9724_v60  ;;  %v9828_v13 = vmul.f32 1.442695, %v9806_v43 }
0x2e5e   :  { %v9929_v31 = vadd.f32 1.0, %v9913_v52  ;;  %v9866_v33 = vsub.f32 1.0, %v9850_v39  ;;  %v9709_v53 = vmul.f32 %v18777_v44, %v9693_v58  ;;  %v9678_v49 = vmul.f32 %v18788_v4, %v9662_v14  ;;  %v18809_v40 = vpop.eup %14539 }
0x2e5f   :  { %v9851_v5 = vmul.f32 %v14536_v2, %v9771_v15  ;;  %v9756_v57 = vadd.f32 0.2548296, %v9740_v1  ;;  %v9807_v42 = vmul.f32 %v9791_v23, %v18759_v8  ;;  %v9960_v11 = vmul.f32 %v9944_v16, %v18698_v62 }
0x2e60   :  { %v9945_v61 = vmul.f32 %v9929_v31, %v18722_v46  ;;  %v9898_v56 = vsub.f32 0.0, %v9866_v33  ;;  %v9725_v50 = vadd.f32 -0.28449672, %v9709_v53  ;;  %v9694_v48 = vadd.f32 1.4214138, %v9678_v49  ;;  %v14542_v2 = vpop.eup %14541 }
0x2e61   :  { %v9867_v43 = vsub.f32 1.0, %v9851_v5  ;;  %v9772_v30 = vmul.f32 %v18755_v45, %v9756_v57  ;;  %14543 = vpow2.f32 %v9828_v13  ;;  %v9647_v6 = vmul.f32 1.0614054, %v18809_v40  ;;  %12726 = vmatprep.mubr.f32.mxu0 %v9960_v11 }
0x2e62   :  { %v9961_v60 = vmul.f32 %v9945_v61, %v18712_v28  ;;  %v9914_v62 = vsel %vm9882_vm2, %v9866_v33, %v9898_v56  ;;  %v9741_v8 = vmul.f32 %v18777_v44, %v9725_v50  ;;  %v9710_v46 = vmul.f32 %v18788_v4, %v9694_v48 }
0x2e63   :  { %v9930_v23 = vadd.f32 1.0, %v9914_v62  ;;  %v9899_v16 = vsub.f32 0.0, %v9867_v43  ;;  %v9852_v39 = vmul.f32 %v14538_v20, %v9772_v30  ;;  %v9663_v58 = vadd.f32 -1.4531521, %v9647_v6 }
0x2e64   :  { %v9452_v45 = vadd.f32 %v18662_v51, %v18684_v26  ;;  %v9757_v14 = vadd.f32 0.2548296, %v9741_v8  ;;  %v9726_v52 = vadd.f32 -0.28449672, %v9710_v46  ;;  %v9830_v15 = vmul.f32 1.442695, %v9807_v42  ;;  %12727 = vmatmul.mubr.f32.vlgmr.msra.gmra.mrb[172].mxu0 %v9961_v60 }
0x2e65   :  { %v9946_v28 = vmul.f32 %v9930_v23, %v18783_v34  ;;  %v9915_v12 = vsel %vm9883_vm3, %v9867_v43, %v9899_v16  ;;  %v9868_v1 = vsub.f32 1.0, %v9852_v39  ;;  %v9679_v13 = vmul.f32 %v18809_v40, %v9663_v58 }
0x2e66   :  { %v9531_v31 = vmul.f32 0.5, %v18668_v25  ;;  %v9931_v33 = vadd.f32 1.0, %v9915_v12  ;;  %v9773_v20 = vmul.f32 %v18777_v44, %v9757_v14  ;;  %v9742_v53 = vmul.f32 %v18788_v4, %v9726_v52 }
0x2e67   :  { %v9900_v51 = vsub.f32 0.0, %v9868_v1  ;;  %v9695_v49 = vadd.f32 1.4214138, %v9679_v13  ;;  %v9962_v5 = vmul.f32 %v9946_v28, %v18738_v17  ;;  %14545 = vpow2.f32 %v9830_v15 }
0x2e68   :  { %v9947_v34 = vmul.f32 %v9931_v33, %v9531_v31  ;;  %v9853_v57 = vmul.f32 %v14542_v2, %v9773_v20  ;;  %v9758_v24 = vadd.f32 0.2548296, %v9742_v53  ;;  %v9532_v42 = vmul.f32 0.5, %v18679_v54 }
0x2e69   :  { %v9916_v11 = vsel %vm9884_vm4, %v9868_v1, %v9900_v51  ;;  %v9711_v25 = vmul.f32 %v18809_v40, %v9695_v49  ;;  %12729 = vmatprep.mubr.f32.mxu0 %v9962_v5  ;;  %v9458_v17 = vadd.f32 %v18674_v21, %v18684_v26  ;;  %v9533_v8 = vmul.f32 0.5, %v18693_v41 }
0x2e6a   :  { %v9932_v61 = vadd.f32 1.0, %v9916_v11  ;;  %v9869_v44 = vsub.f32 1.0, %v9853_v57  ;;  %v9774_v56 = vmul.f32 %v18788_v4, %v9758_v24  ;;  %v9963_v50 = vmul.f32 %v9947_v34, %v9452_v45 }
0x2e6b   :  { %v14544_v9 = vpop.eup %14543  ;;  %v9727_v48 = vadd.f32 -0.28449672, %v9711_v25  ;;  %v9464_v21 = vadd.f32 %v18686_v55, %v18684_v26  ;;  %v9534_v45 = vmul.f32 0.5, %v18708_v35  ;;  %v9470_v41 = vadd.f32 %v18695_v63, %v18684_v26 }
0x2e6c   :  { %v9948_v43 = vmul.f32 %v9932_v61, %v9532_v42  ;;  %v9901_v30 = vsub.f32 0.0, %v9869_v44  ;;  %v9854_v6 = vmul.f32 %v14544_v9, %v9774_v56  ;;  %12730 = vmatmul.mubr.f32.gmra.mrb[174].mxu0 %v9963_v50  ;;  %v9476_v35 = vadd.f32 %v18719_v19, %v18684_v26 }
0x2e6d   :  { %v9743_v54 = vmul.f32 %v18809_v40, %v9727_v48 }
0x2e6e   :  { %v9917_v2 = vsel %vm9885_vm5, %v9869_v44, %v9901_v30  ;;  %v9870_v60 = vsub.f32 1.0, %v9854_v6  ;;  %v9964_v62 = vmul.f32 %v9948_v43, %v9458_v17 }
0x2e6f   :  { %v9933_v4 = vadd.f32 1.0, %v9917_v2  ;;  %v9759_v46 = vadd.f32 0.2548296, %v9743_v54 }
0x2e70   :  { %v9902_v23 = vsub.f32 0.0, %v9870_v60  ;;  %12732 = vmatprep.mubr.f32.mxu0 %v9964_v62 }
0x2e71   :  { %v9949_v16 = vmul.f32 %v9933_v4, %v9533_v8  ;;  %v9775_v39 = vmul.f32 %v18809_v40, %v9759_v46  ;;  %v14546_v32 = vpop.eup %14545  ;;  %v9535_v40 = vmul.f32 0.5, %v18732_v29 }
0x2e72   :  { %v9918_v58 = vsel %vm9886_vm6, %v9870_v60, %v9902_v23 }
0x2e73   :  { %v9934_v14 = vadd.f32 1.0, %v9918_v58  ;;  %v9855_v52 = vmul.f32 %v14546_v32, %v9775_v39  ;;  %v9965_v15 = vmul.f32 %v9949_v16, %v9464_v21 }
0x2e75   :  { %v9950_v28 = vmul.f32 %v9934_v14, %v9534_v45  ;;  %v9871_v12 = vsub.f32 1.0, %v9855_v52  ;;  %12733 = vmatmul.mubr.f32.gmra.mrb[176].mxu0 %v9965_v15 }
0x2e77   :  { %v9903_v1 = vsub.f32 0.0, %v9871_v12  ;;  %v9966_v55 = vmul.f32 %v9950_v28, %v9470_v41 }
0x2e79   :  { %v9919_v10 = vsel %vm9887_vm7, %v9871_v12, %v9903_v1  ;;  %12735 = vmatprep.mubr.f32.mxu0 %v9966_v55 }
0x2e7a   :  { %v9935_v13 = vadd.f32 1.0, %v9919_v10 }
0x2e7c   :  { %v9951_v31 = vmul.f32 %v9935_v13, %v9535_v40 }
0x2e7e   :  { %v9967_v33 = vmul.f32 %v9951_v31, %v9476_v35 }
0x2e80   :  { %12736 = vmatmul.mubr.f32.gmra.mrb[178].mxu0 %v9967_v33 }
0x2e88   :  { %v18849_v20 = vpop.f32.mrb[180].mxu1 }
0x2e89   :  { %v9483_v63 = vpop.f32.mrb[181].mxu1 }
0x2e8a   :  { %v18852_v53 = vadd.f32 %v9483_v63, %v18644_v27 }
0x2e8c   :  { %v18855_v51 = vmul.f32 0.70710677, %v18852_v53  ;;  %v18857_v3 = vpop.f32.mrb[182].mxu1 }
0x2e8d   :  { %v9489_v49 = vpop.f32.mrb[183].mxu1 }
0x2e8e   :  { %v9568_v29 = vand.u32 2147483647, %v18855_v51  ;;  %v18861_v5 = vadd.f32 %v9489_v49, %v18644_v27  ;;  %vm9888_vm8 = vcmp.ge.f32.partialorder %v18855_v51, 0.0  ;;  %v9536_v51 = vmul.f32 0.5, %v18852_v53 }
0x2e90   :  { %v9584_v19 = vmul.f32 0.3275911, %v9568_v29  ;;  %v18864_v34 = vmul.f32 0.70710677, %v18861_v5  ;;  %v18866_v57 = vpop.f32.mrb[184].mxu1  ;;  %v9792_v2 = vsub.f32 0.0, %v9568_v29 }
0x2e91   :  { %v9495_v11 = vpop.f32.mrb[185].mxu1 }
0x2e92   :  { %v9600_v24 = vadd.f32 1.0, %v9584_v19  ;;  %v9569_v42 = vand.u32 2147483647, %v18864_v34  ;;  %v18870_v25 = vadd.f32 %v9495_v11, %v18644_v27  ;;  %v9808_v16 = vmul.f32 %v9792_v2, %v9568_v29 }
0x2e93   :  { %vm9889_vm9 = vcmp.ge.f32.partialorder %v18864_v34, 0.0 }
0x2e94   :  { %14547 = vrcp.f32 %v9600_v24  ;;  %v9585_v61 = vmul.f32 0.3275911, %v9569_v42  ;;  %v18872_v44 = vpop.f32.mrb[186].mxu1  ;;  %v18875_v56 = vmul.f32 0.70710677, %v18870_v25  ;;  %v9793_v39 = vsub.f32 0.0, %v9569_v42 }
0x2e95   :  { %v9501_v50 = vpop.f32.mrb[187].mxu1  ;;  %v9832_v55 = vmul.f32 1.442695, %v9808_v16 }
0x2e96   :  { %v9601_v9 = vadd.f32 1.0, %v9585_v61  ;;  %v18878_v48 = vadd.f32 %v9501_v50, %v18644_v27  ;;  %v9570_v17 = vand.u32 2147483647, %v18875_v56  ;;  %v9809_v10 = vmul.f32 %v9793_v39, %v9569_v42 }
0x2e97   :  { %vm9890_vm10 = vcmp.ge.f32.partialorder %v18875_v56, 0.0 }
0x2e98   :  { %14549 = vrcp.f32 %v9601_v9  ;;  %v18882_v43 = vmul.f32 0.70710677, %v18878_v48  ;;  %v18884_v30 = vpop.f32.mrb[188].mxu1  ;;  %v9586_v6 = vmul.f32 0.3275911, %v9570_v17  ;;  %v9794_v28 = vsub.f32 0.0, %v9570_v17 }
0x2e99   :  { %v9507_v54 = vpop.f32.mrb[189].mxu1  ;;  %v9834_v19 = vmul.f32 1.442695, %v9809_v10 }
0x2e9a   :  { %v9571_v60 = vand.u32 2147483647, %v18882_v43  ;;  %v18888_v62 = vadd.f32 %v9507_v54, %v18644_v27  ;;  %v9602_v8 = vadd.f32 1.0, %v9586_v6  ;;  %v9810_v49 = vmul.f32 %v9794_v28, %v9570_v17 }
0x2e9b   :  { %vm9891_vm11 = vcmp.ge.f32.partialorder %v18882_v43, 0.0 }
0x2e9c   :  { %v9587_v4 = vmul.f32 0.3275911, %v9571_v60  ;;  %v18891_v46 = vmul.f32 0.70710677, %v18888_v62  ;;  %14551 = vrcp.f32 %v9602_v8  ;;  %v18893_v23 = vpop.f32.mrb[190].mxu1  ;;  %v9795_v24 = vsub.f32 0.0, %v9571_v60 }
0x2e9d   :  { %v9513_v45 = vpop.f32.mrb[191].mxu1  ;;  %v9836_v2 = vmul.f32 1.442695, %v9810_v49 }
0x2e9e   :  { %v14548_v21 = vpop.eup %14547  ;;  %v9603_v32 = vadd.f32 1.0, %v9587_v4  ;;  %v9572_v58 = vand.u32 2147483647, %v18891_v46  ;;  %v18897_v52 = vadd.f32 %v9513_v45, %v18644_v27  ;;  %v9811_v17 = vmul.f32 %v9795_v24, %v9571_v60 }
0x2e9f   :  { %v9648_v14 = vmul.f32 1.0614054, %v14548_v21  ;;  %vm9892_vm12 = vcmp.ge.f32.partialorder %v18891_v46, 0.0 }
0x2ea0   :  { %14553 = vrcp.f32 %v9603_v32  ;;  %v9588_v15 = vmul.f32 0.3275911, %v9572_v58  ;;  %v18900_v12 = vmul.f32 0.70710677, %v18897_v52  ;;  %v9796_v16 = vsub.f32 0.0, %v9572_v58 }
0x2ea1   :  { %v9664_v41 = vadd.f32 -1.4531521, %v9648_v14 }
0x2ea2   :  { %v14550_v1 = vpop.eup %14549  ;;  %v9604_v40 = vadd.f32 1.0, %v9588_v15  ;;  %v9573_v31 = vand.u32 2147483647, %v18900_v12  ;;  %vm9893_vm13 = vcmp.ge.f32.partialorder %v18900_v12, 0.0 }
0x2ea3   :  { %v9680_v13 = vmul.f32 %v14548_v21, %v9664_v41  ;;  %v9649_v35 = vmul.f32 1.0614054, %v14550_v1 }
0x2ea4   :  { %14555 = vrcp.f32 %v9604_v40  ;;  %v9589_v29 = vmul.f32 0.3275911, %v9573_v31  ;;  %v9838_v40 = vmul.f32 1.442695, %v9811_v17 }
0x2ea5   :  { %v9696_v33 = vadd.f32 1.4214138, %v9680_v13  ;;  %v9665_v63 = vadd.f32 -1.4531521, %v9649_v35  ;;  %14557 = vpow2.f32 %v9832_v55  ;;  %v9812_v13 = vmul.f32 %v9796_v16, %v9572_v58 }
0x2ea6   :  { %v18903_v11 = vpop.eup %14551  ;;  %v9605_v9 = vadd.f32 1.0, %v9589_v29  ;;  %v9797_v35 = vsub.f32 0.0, %v9573_v31 }
0x2ea7   :  { %v9712_v61 = vmul.f32 %v14548_v21, %v9696_v33  ;;  %v9681_v50 = vmul.f32 %v14550_v1, %v9665_v63  ;;  %v9650_v42 = vmul.f32 1.0614054, %v18903_v11 }
0x2ea8   :  { %14559 = vrcp.f32 %v9605_v9 }
0x2ea9   :  { %v9728_v6 = vadd.f32 -0.28449672, %v9712_v61  ;;  %v9697_v54 = vadd.f32 1.4214138, %v9681_v50  ;;  %14561 = vpow2.f32 %v9834_v19  ;;  %v9666_v4 = vadd.f32 -1.4531521, %v9650_v42 }
0x2eaa   :  { %v18906_v8 = vpop.eup %14553  ;;  %14563 = vpow2.f32 %v9836_v2 }
0x2eab   :  { %v9744_v39 = vmul.f32 %v14548_v21, %v9728_v6  ;;  %v9713_v32 = vmul.f32 %v14550_v1, %v9697_v54  ;;  %v9651_v45 = vmul.f32 1.0614054, %v18906_v8  ;;  %v9682_v14 = vmul.f32 %v18903_v11, %v9666_v4 }
0x2eac   :  { %14565 = vpow2.f32 %v9838_v40  ;;  %v9840_v6 = vmul.f32 1.442695, %v9812_v13  ;;  %v9813_v54 = vmul.f32 %v9797_v35, %v9573_v31 }
0x2ead   :  { %v9760_v15 = vadd.f32 0.2548296, %v9744_v39  ;;  %v9729_v41 = vadd.f32 -0.28449672, %v9713_v32  ;;  %v9667_v28 = vadd.f32 -1.4531521, %v9651_v45 }
0x2eae   :  { %v18910_v55 = vpop.eup %14555  ;;  %v9698_v10 = vadd.f32 1.4214138, %v9682_v14  ;;  %14567 = vpow2.f32 %v9840_v6 }
0x2eaf   :  { %v9776_v33 = vmul.f32 %v14548_v21, %v9760_v15  ;;  %v9745_v63 = vmul.f32 %v14550_v1, %v9729_v41  ;;  %v9683_v60 = vmul.f32 %v18906_v8, %v9667_v28  ;;  %v9652_v49 = vmul.f32 1.0614054, %v18910_v55  ;;  %v14558_v29 = vpop.eup %14557 }
0x2eb0   :  { %v9714_v19 = vmul.f32 %v18903_v11, %v9698_v10  ;;  %v9842_v10 = vmul.f32 1.442695, %v9813_v54 }
0x2eb1   :  { %v9856_v24 = vmul.f32 %v14558_v29, %v9776_v33  ;;  %v9761_v61 = vadd.f32 0.2548296, %v9745_v63  ;;  %v9699_v50 = vadd.f32 1.4214138, %v9683_v60  ;;  %v9668_v9 = vadd.f32 -1.4531521, %v9652_v49 }
0x2eb2   :  { %v9730_v42 = vadd.f32 -0.28449672, %v9714_v19  ;;  %v18915_v2 = vpop.eup %14559  ;;  %v9482_v29 = vadd.f32 %v18849_v20, %v18684_v26  ;;  %14569 = vpow2.f32 %v9842_v10 }
0x2eb3   :  { %v9872_v58 = vsub.f32 1.0, %v9856_v24  ;;  %v9777_v21 = vmul.f32 %v14550_v1, %v9761_v61  ;;  %v9715_v4 = vmul.f32 %v18906_v8, %v9699_v50  ;;  %v9684_v17 = vmul.f32 %v18910_v55, %v9668_v9  ;;  %v14562_v16 = vpop.eup %14561 }
0x2eb4   :  { %v9746_v39 = vmul.f32 %v18903_v11, %v9730_v42  ;;  %v9653_v32 = vmul.f32 1.0614054, %v18915_v2  ;;  %v14564_v1 = vpop.eup %14563 }
0x2eb5   :  { %v9904_v45 = vsub.f32 0.0, %v9872_v58  ;;  %v9857_v14 = vmul.f32 %v14562_v16, %v9777_v21  ;;  %v9731_v15 = vadd.f32 -0.28449672, %v9715_v4  ;;  %v9700_v41 = vadd.f32 1.4214138, %v9684_v17 }
0x2eb6   :  { %v9762_v31 = vadd.f32 0.2548296, %v9746_v39  ;;  %v9669_v28 = vadd.f32 -1.4531521, %v9653_v32  ;;  %v9537_v21 = vmul.f32 0.5, %v18861_v5 }
0x2eb7   :  { %v9920_v40 = vsel %vm9888_vm8, %v9872_v58, %v9904_v45  ;;  %v9873_v13 = vsub.f32 1.0, %v9857_v14  ;;  %v9747_v35 = vmul.f32 %v18906_v8, %v9731_v15  ;;  %v9716_v33 = vmul.f32 %v18910_v55, %v9700_v41  ;;  %v14566_v58 = vpop.eup %14565 }
0x2eb8   :  { %v9936_v63 = vadd.f32 1.0, %v9920_v40  ;;  %v9778_v60 = vmul.f32 %v18903_v11, %v9762_v31  ;;  %v9685_v49 = vmul.f32 %v18915_v2, %v9669_v28  ;;  %v9538_v40 = vmul.f32 0.5, %v18870_v25 }
0x2eb9   :  { %v9905_v19 = vsub.f32 0.0, %v9873_v13  ;;  %v9763_v24 = vadd.f32 0.2548296, %v9747_v35  ;;  %v9732_v61 = vadd.f32 -0.28449672, %v9716_v33 }
0x2eba   :  { %v9952_v50 = vmul.f32 %v9936_v63, %v9536_v51  ;;  %v9858_v9 = vmul.f32 %v14564_v1, %v9778_v60  ;;  %v9701_v42 = vadd.f32 1.4214138, %v9685_v49  ;;  %v14568_v1 = vpop.eup %14567 }
0x2ebb   :  { %v9921_v6 = vsel %vm9889_vm9, %v9873_v13, %v9905_v19  ;;  %v9779_v54 = vmul.f32 %v18906_v8, %v9763_v24  ;;  %v9748_v53 = vmul.f32 %v18910_v55, %v9732_v61  ;;  %v18932_v11 = vpop.f32.mrb[192].mxu1  ;;  %v9488_v8 = vadd.f32 %v18857_v3, %v18684_v26 }
0x2ebc   :  { %v9937_v20 = vadd.f32 1.0, %v9921_v6  ;;  %v9874_v4 = vsub.f32 1.0, %v9858_v9  ;;  %v9717_v17 = vmul.f32 %v18915_v2, %v9701_v42  ;;  %v9519_v16 = vpop.f32.mrb[193].mxu1  ;;  %v9968_v45 = vmul.f32 %v9952_v50, %v9482_v29 }
0x2ebd   :  { %v9859_v39 = vmul.f32 %v14566_v58, %v9779_v54  ;;  %v9764_v34 = vadd.f32 0.2548296, %v9748_v53  ;;  %v18937_v32 = vadd.f32 %v9519_v16, %v18644_v27  ;;  %v9539_v50 = vmul.f32 0.5, %v18878_v48  ;;  %v14570_v54 = vpop.eup %14569 }
0x2ebe   :  { %v9953_v14 = vmul.f32 %v9937_v20, %v9537_v21  ;;  %v9906_v15 = vsub.f32 0.0, %v9874_v4  ;;  %v9733_v41 = vadd.f32 -0.28449672, %v9717_v17  ;;  %12738 = vmatprep.mubr.f32.mxu0 %v9968_v45  ;;  %v9540_v16 = vmul.f32 0.5, %v18888_v62 }
0x2ebf   :  { %v9875_v5 = vsub.f32 1.0, %v9859_v39  ;;  %v9780_v31 = vmul.f32 %v18910_v55, %v9764_v34  ;;  %v18944_v28 = vmul.f32 0.70710677, %v18937_v32  ;;  %v18946_v10 = vpop.f32.mrb[194].mxu1  ;;  %v9494_v55 = vadd.f32 %v18866_v57, %v18684_v26 }
0x2ec0   :  { %v9922_v13 = vsel %vm9890_vm10, %v9874_v4, %v9906_v15  ;;  %v9749_v3 = vmul.f32 %v18915_v2, %v9733_v41  ;;  %v9525_v35 = vpop.f32.mrb[195].mxu1  ;;  %v9969_v33 = vmul.f32 %v9953_v14, %v9488_v8 }
0x2ec1   :  { %v9938_v51 = vadd.f32 1.0, %v9922_v13  ;;  %v9907_v63 = vsub.f32 0.0, %v9875_v5  ;;  %v9860_v56 = vmul.f32 %v14568_v1, %v9780_v31  ;;  %v9574_v60 = vand.u32 2147483647, %v18944_v28 }
0x2ec2   :  { %v9765_v49 = vadd.f32 0.2548296, %v9749_v3  ;;  %v18955_v29 = vadd.f32 %v9525_v35, %v18644_v27  ;;  %12739 = vmatmul.mubr.f32.gmra.mrb[180].mxu0 %v9969_v33  ;;  %v13883_v6 = vpop.permute.xlu0 %13882  ;;  %v9500_v27 = vadd.f32 %v18872_v44, %v18684_v26  ;;  %v9506_v44 = vadd.f32 %v18884_v30, %v18684_v26 }
0x2ec3   :  { %v9954_v25 = vmul.f32 %v9938_v51, %v9538_v40  ;;  %v9923_v19 = vsel %vm9891_vm11, %v9875_v5, %v9907_v63  ;;  %v9876_v24 = vsub.f32 1.0, %v9860_v56  ;;  %v9590_v61 = vmul.f32 0.3275911, %v9574_v60 }
0x2ec4   :  { %v9939_v9 = vadd.f32 1.0, %v9923_v19  ;;  %v9781_v42 = vmul.f32 %v18915_v2, %v9765_v49  ;;  %v18960_v43 = vmul.f32 0.70710677, %v18955_v29  ;;  %v13885_v17 = vunpack.i.h.bf16 %v13883_v6 }
0x2ec5   :  { %v9908_v53 = vsub.f32 0.0, %v9876_v24  ;;  %v9606_v57 = vadd.f32 1.0, %v9590_v61  ;;  %v9970_v58 = vmul.f32 %v9954_v25, %v9494_v55  ;;  %v13884_v14 = vunpack.i.l.bf16 %v13883_v6 }
0x2ec6   :  { %v9955_v21 = vmul.f32 %v9939_v9, %v9539_v50  ;;  %v9861_v20 = vmul.f32 %v14570_v54, %v9781_v42  ;;  %v13888_v4 = vpop.permute.xlu1 %13887  ;;  %v9575_v2 = vand.u32 2147483647, %v18960_v43  ;;  %v9541_v3 = vmul.f32 0.5, %v18897_v52 }
0x2ec7   :  { %v9924_v48 = vsel %vm9892_vm12, %v9876_v24, %v9908_v53  ;;  %14571 = vrcp.f32 %v9606_v57  ;;  %12741 = vmatprep.mubr.f32.mxu0 %v9970_v58  ;;  %v13890_v15 = vunpack.i.h.bf16 %v13888_v4  ;;  %v13889_v5 = vunpack.i.l.bf16 %v13888_v4 }
0x2ec8   :  { %v9940_v39 = vadd.f32 1.0, %v9924_v48  ;;  %v9877_v34 = vsub.f32 1.0, %v9861_v20  ;;  %v9971_v45 = vmul.f32 %v9955_v21, %v9500_v27  ;;  %v9591_v8 = vmul.f32 0.3275911, %v9575_v2 }
0x2ec9   :  { %v13502_v1 = vpack.c.bf16 %v13885_v17, %v13884_v14  ;;  %v13506_v62 = vpack.c.bf16 %v13890_v15, %v13889_v5  ;;  %v9798_v33 = vsub.f32 0.0, %v9574_v60  ;;  %v9512_v30 = vadd.f32 %v18893_v23, %v18684_v26 }
0x2eca   :  { %v9956_v46 = vmul.f32 %v9940_v39, %v9540_v16  ;;  %v9909_v41 = vsub.f32 0.0, %v9877_v34  ;;  %12742 = vmatmul.mubr.f32.gmra.mrb[182].mxu0 %v9971_v45  ;;  %v9607_v31 = vadd.f32 1.0, %v9591_v8  ;;  %v9799_v49 = vsub.f32 0.0, %v9575_v2 }
0x2ecb   :  { %13503 = vmatprep.subr.bf16.mxu0 %v13502_v1  ;;  %v9814_v12 = vmul.f32 %v9798_v33, %v9574_v60  ;;  %vm9894_vm14 = vcmp.ge.f32.partialorder %v18944_v28, 0.0  ;;  %v9542_v15 = vmul.f32 0.5, %v18937_v32  ;;  %vm9895_vm15 = vcmp.ge.f32.partialorder %v18960_v43, 0.0 }
0x2ecc   :  { %v9925_v40 = vsel %vm9893_vm13, %v9877_v34, %v9909_v41  ;;  %v9972_v13 = vmul.f32 %v9956_v46, %v9506_v44  ;;  %14573 = vrcp.f32 %v9607_v31  ;;  %13505 = vmatpush3.bf16.msra.mxu0 %v13502_v1  ;;  %v9815_v61 = vmul.f32 %v9799_v49, %v9575_v2 }
0x2ecd   :  { %v9941_v35 = vadd.f32 1.0, %v9925_v40  ;;  %13507 = vmatprep.subr.bf16.mxu0 %v13506_v62  ;;  %v9844_v52 = vmul.f32 1.442695, %v9814_v12  ;;  %v9518_v41 = vadd.f32 %v18932_v11, %v18684_v26  ;;  %v9524_v28 = vadd.f32 %v18946_v10, %v18684_v26  ;;  %v10153_v11 = vld [vmem:[%s19095_s2 + $0x16] ss:$0 sm:$0xff] }
0x2ece   :  { %12744 = vmatprep.mubr.f32.mxu0 %v9972_v13  ;;  %v9846_v23 = vmul.f32 1.442695, %v9815_v61  ;;  %v9543_v13 = vmul.f32 0.5, %v18955_v29 }
0x2ecf   :  { %v9957_v51 = vmul.f32 %v9941_v35, %v9541_v3  ;;  %14575 = vpow2.f32 %v9844_v52 }
0x2ed0   :  { %13509 = vmatpush3.bf16.msra.mxu0 %v13506_v62  ;;  %14577 = vpow2.f32 %v9846_v23 }
0x2ed1   :  { %v14572_v63 = vpop.eup %14571  ;;  %v9973_v56 = vmul.f32 %v9957_v51, %v9512_v30 }
0x2ed2   :  { %v9654_v55 = vmul.f32 1.0614054, %v14572_v63 }
0x2ed3   :  { %12745 = vmatmul.mubr.f32.gmra.mrb[184].mxu0 %v9973_v56 }
0x2ed4   :  { %v9670_v25 = vadd.f32 -1.4531521, %v9654_v55 }
0x2ed6   :  { %v9686_v19 = vmul.f32 %v14572_v63, %v9670_v25  ;;  %v14574_v24 = vpop.eup %14573 }
0x2ed7   :  { %v9655_v9 = vmul.f32 1.0614054, %v14574_v24 }
0x2ed8   :  { %v9702_v50 = vadd.f32 1.4214138, %v9686_v19 }
0x2ed9   :  { %v9671_v6 = vadd.f32 -1.4531521, %v9655_v9  ;;  %v14576_v4 = vpop.eup %14575 }
0x2eda   :  { %v9718_v42 = vmul.f32 %v14572_v63, %v9702_v50  ;;  %v14578_v45 = vpop.eup %14577 }
0x2edb   :  { %v9687_v53 = vmul.f32 %v14574_v24, %v9671_v6  ;;  %v19403_v6 = vld [vmem:[#allocation27_spill] sm:$0xff] }
0x2edc   :  { %v9734_v54 = vadd.f32 -0.28449672, %v9718_v42 }
0x2edd   :  { %v9703_v60 = vadd.f32 1.4214138, %v9687_v53 }
0x2ede   :  { %v9750_v57 = vmul.f32 %v14572_v63, %v9734_v54 }
0x2edf   :  { %v9719_v27 = vmul.f32 %v14574_v24, %v9703_v60 }
0x2ee0   :  { %v9766_v58 = vadd.f32 0.2548296, %v9750_v57 }
0x2ee1   :  { %v9735_v20 = vadd.f32 -0.28449672, %v9719_v27 }
0x2ee2   :  { %v9782_v21 = vmul.f32 %v14572_v63, %v9766_v58  ;;  %v19405_v58 = vld [vmem:[#allocation29_spill] sm:$0xff] }
0x2ee3   :  { %v9751_v17 = vmul.f32 %v14574_v24, %v9735_v20 }
0x2ee4   :  { %v9862_v48 = vmul.f32 %v14576_v4, %v9782_v21  ;;  %v19406_v4 = vld [vmem:[#allocation30_spill] sm:$0xff] }
0x2ee5   :  { %v9767_v2 = vadd.f32 0.2548296, %v9751_v17 }
0x2ee6   :  { %v9878_v16 = vsub.f32 1.0, %v9862_v48 }
0x2ee7   :  { %v9783_v34 = vmul.f32 %v14574_v24, %v9767_v2 }
0x2ee8   :  { %v9910_v39 = vsub.f32 0.0, %v9878_v16 }
0x2ee9   :  { %v9863_v14 = vmul.f32 %v14578_v45, %v9783_v34 }
0x2eea   :  { %v9926_v8 = vsel %vm9894_vm14, %v9878_v16, %v9910_v39  ;;  %v19407_v16 = vld [vmem:[#allocation45_spill] sm:$0xff] }
0x2eeb   :  { %v9942_v44 = vadd.f32 1.0, %v9926_v8  ;;  %v9879_v46 = vsub.f32 1.0, %v9863_v14  ;;  %v19408_v8 = vld [vmem:[#allocation46_spill] sm:$0xff] }
0x2eed   :  { %v9958_v5 = vmul.f32 %v9942_v44, %v9542_v15  ;;  %v9911_v31 = vsub.f32 0.0, %v9879_v46  ;;  %v19409_v44 = vld [vmem:[#allocation55_spill] sm:$0xff] }
0x2eef   :  { %v9974_v1 = vmul.f32 %v9958_v5, %v9518_v41  ;;  %v9927_v40 = vsel %vm9895_vm15, %v9879_v46, %v9911_v31  ;;  %v19019_v31 = vld [vmem:[%s19095_s2 + $0x17] ss:$0 sm:$0xff] }
0x2ef0   :  { %v9943_v62 = vadd.f32 1.0, %v9927_v40 }
0x2ef1   :  { %12747 = vmatprep.mubr.f32.mxu0 %v9974_v1 }
0x2ef2   :  { %v9959_v3 = vmul.f32 %v9943_v62, %v9543_v13 }
0x2ef4   :  { %v9975_v32 = vmul.f32 %v9959_v3, %v9524_v28 }
0x2ef6   :  { %12748 = vmatmul.mubr.f32.gmra.mrb[186].mxu0 %v9975_v32 }
0x2f37   :  { %v12728_v35 = vpop.f32.mrb[172].mxu0 }
0x2f38   :  { %v10138_v33 = vadd.f32 %v12728_v35, %v18254_v7  ;;  %v10058_v43 = vpop.f32.mrb[173].mxu0 }
0x2f39   :  { %v10137_v30 = vadd.f32 %v10058_v43, %v18250_v18 }
0x2f3a   :  { %v10155_v29 = vadd.f32 %v10153_v11, %v10138_v33 }
0x2f3b   :  { %v10154_v51 = vadd.f32 %v10153_v11, %v10137_v30 }
0x2f3d   :  { %12758 = vmatprep.mubr.msk.f32.mxu0 %vm270_vm1, %v10154_v51 }
0x2f3e   :  { %12759 = vmatmul.mubr.msk.f32.vlgmr.msra.gmra.mrb[188].mxu0 %vm270_vm1, %v10155_v29 }
0x2f3f   :  { %v12731_v26 = vpop.f32.mrb[174].mxu0 }
0x2f40   :  { %v10140_v10 = vadd.f32 %v12731_v26, %v18266_v36  ;;  %v10068_v63 = vpop.f32.mrb[175].mxu0 }
0x2f41   :  { %v10139_v12 = vadd.f32 %v10068_v63, %v18258_v37 }
0x2f42   :  { %v10157_v56 = vadd.f32 %v10153_v11, %v10140_v10 }
0x2f43   :  { %v10156_v7 = vadd.f32 %v10153_v11, %v10139_v12 }
0x2f45   :  { %12761 = vmatprep.mubr.msk.f32.mxu0 %vm270_vm1, %v10156_v7 }
0x2f46   :  { %12762 = vmatmul.mubr.msk.f32.gmra.mrb[190].mxu0 %vm270_vm1, %v10157_v56 }
0x2f48   :  { %v12734_v55 = vpop.f32.mrb[176].mxu0 }
0x2f49   :  { %v10142_v18 = vadd.f32 %v12734_v55, %v18269_v38  ;;  %v10078_v49 = vpop.f32.mrb[177].mxu0 }
0x2f4a   :  { %v10141_v25 = vadd.f32 %v10078_v49, %v18275_v47 }
0x2f4b   :  { %v10159_v19 = vadd.f32 %v10153_v11, %v10142_v18 }
0x2f4c   :  { %v10158_v52 = vadd.f32 %v10153_v11, %v10141_v25 }
0x2f4e   :  { %12764 = vmatprep.mubr.msk.f32.mxu0 %vm270_vm1, %v10158_v52 }
0x2f4f   :  { %12765 = vmatmul.mubr.msk.f32.gmra.mrb[192].mxu0 %vm270_vm1, %v10159_v19 }
0x2f53   :  { %v12737_v36 = vpop.f32.mrb[178].mxu0 }
0x2f54   :  { %v10144_v37 = vadd.f32 %v12737_v36, %v18286_v59  ;;  %v10088_v24 = vpop.f32.mrb[179].mxu0 }
0x2f55   :  { %v10143_v61 = vadd.f32 %v10088_v24, %v18289_v22  ;;  %v19404_v22 = vld [vmem:[#allocation28_spill] sm:$0xff] }
0x2f56   :  { %v10161_v9 = vadd.f32 %v10153_v11, %v10144_v37 }
0x2f57   :  { %v10160_v50 = vadd.f32 %v10153_v11, %v10143_v61  ;;  %v14593_v61 = vld [vmem:[%s19093_s0] sm:$0xff] }
0x2f59   :  { %12767 = vmatprep.mubr.msk.f32.mxu0 %vm270_vm1, %v10160_v50 }
0x2f5a   :  { %12768 = vmatmul.mubr.msk.f32.gmra.mrb[194].mxu0 %vm270_vm1, %v10161_v9 }
0x2f95   :  { %v12740_v38 = vpop.f32.mrb[180].mxu0 }
0x2f96   :  { %v10146_v47 = vadd.f32 %v12740_v38, %v18338_v0  ;;  %v10098_v42 = vpop.f32.mrb[181].mxu0  ;;  %v14594_v38 = vld [vmem:[%s19093_s0 + $0x8] sm:$0xff] }
0x2f97   :  { %v10145_v23 = vadd.f32 %v10098_v42, %v19403_v6  ;;  %v14595_v6 = vld [vmem:[%s19093_s0 + $0x10] sm:$0xff] }
0x2f98   :  { %v10163_v53 = vadd.f32 %v10153_v11, %v10146_v47 }
0x2f99   :  { %v10162_v54 = vadd.f32 %v10153_v11, %v10145_v23 }
0x2f9b   :  { %12770 = vmatprep.mubr.msk.f32.mxu0 %vm270_vm1, %v10162_v54 }
0x2f9c   :  { %12771 = vmatmul.mubr.msk.f32.gmra.mrb[196].mxu0 %vm270_vm1, %v10163_v53 }
0x2f9d   :  { %v12743_v59 = vpop.f32.mrb[182].mxu0 }
0x2f9e   :  { %v10148_v57 = vadd.f32 %v12743_v59, %v19404_v22  ;;  %v10108_v60 = vpop.f32.mrb[183].mxu0 }
0x2f9f   :  { %v10147_v27 = vadd.f32 %v10108_v60, %v19405_v58 }
0x2fa0   :  { %v10165_v20 = vadd.f32 %v10153_v11, %v10148_v57  ;;  %v14596_v57 = vld [vmem:[%s19093_s0 + $0x18] sm:$0xff] }
0x2fa1   :  { %v10164_v21 = vadd.f32 %v10153_v11, %v10147_v27 }
0x2fa3   :  { %12773 = vmatprep.mubr.msk.f32.mxu0 %vm270_vm1, %v10164_v21  ;;  %v14597_v21 = vld [vmem:[%s19093_s0 + $0x20] sm:$0xff] }
0x2fa4   :  { %12774 = vmatmul.mubr.msk.f32.gmra.mrb[198].mxu0 %vm270_vm1, %v10165_v20 }
0x2fa6   :  { %v12746_v0 = vpop.f32.mrb[184].mxu0 }
0x2fa7   :  { %v10150_v48 = vadd.f32 %v12746_v0, %v19406_v4  ;;  %v10118_v17 = vpop.f32.mrb[185].mxu0  ;;  %v14598_v4 = vld [vmem:[%s19093_s0 + $0x28] sm:$0xff] }
0x2fa8   :  { %v10149_v2 = vadd.f32 %v10118_v17, %v19407_v16  ;;  %v14599_v16 = vld [vmem:[%s19093_s0 + $0x30] sm:$0xff] }
0x2fa9   :  { %v10167_v34 = vadd.f32 %v10153_v11, %v10150_v48 }
0x2faa   :  { %v10166_v39 = vadd.f32 %v10153_v11, %v10149_v2 }
0x2fac   :  { %12776 = vmatprep.mubr.msk.f32.mxu0 %vm270_vm1, %v10166_v39 }
0x2fad   :  { %12777 = vmatmul.mubr.msk.f32.gmra.mrb[200].mxu0 %vm270_vm1, %v10167_v34  ;;  %v14600_v34 = vld [vmem:[%s19093_s0 + $0x38] sm:$0xff] }
0x2fc9   :  { %v12749_v45 = vpop.f32.mrb[186].mxu0 }
0x2fca   :  { %v10152_v14 = vadd.f32 %v12749_v45, %v19408_v8  ;;  %v10128_v15 = vpop.f32.mrb[187].mxu0 }
0x2fcb   :  { %v10151_v46 = vadd.f32 %v10128_v15, %v19409_v44 }
0x2fcc   :  { %v10169_v5 = vadd.f32 %v10153_v11, %v10152_v14 }
0x2fcd   :  { %v10168_v41 = vadd.f32 %v10153_v11, %v10151_v46 }
0x2fcf   :  { %12779 = vmatprep.mubr.msk.f32.mxu0 %vm270_vm1, %v10168_v41 }
0x2fd0   :  { %12780 = vmatmul.mubr.msk.f32.gmra.mrb[202].mxu0 %vm270_vm1, %v10169_v5 }
0x3011   :  { %v12760_v1 = vpop.f32.mrb[188].mxu0 }
0x3012   :  { %v10297_v40 = vpop.f32.mrb[189].mxu0  ;;  %v10303_v62 = vadd.f32 %v12760_v1, %v19019_v31 }
0x3013   :  { %v10298_v13 = vadd.f32 %v10297_v40, %v19019_v31 }
0x3015   :  { %10376 = vxpose.xlu1.b32.start [1/8] (short) (narrow) %v10298_v13, 32 }
0x3019   :  { %v12763_v28 = vpop.f32.mrb[190].mxu0  ;;  %10377 = vxpose.xlu1.b32.cont [2/8] (short) (narrow) %v10303_v62, 32 }
0x301a   :  { %v10307_v3 = vpop.f32.mrb[191].mxu0  ;;  %v10313_v35 = vadd.f32 %v12763_v28, %v19019_v31 }
0x301b   :  { %v10308_v32 = vadd.f32 %v10307_v3, %v19019_v31 }
0x301d   :  { %10378 = vxpose.xlu1.b32.cont [3/8] (short) (narrow) %v10308_v32, 32 }
0x3021   :  { %10379 = vxpose.xlu1.b32.cont [4/8] (short) (narrow) %v10313_v35, 32 }
0x3022   :  { %v12766_v33 = vpop.f32.mrb[192].mxu0 }
0x3023   :  { %v10317_v11 = vpop.f32.mrb[193].mxu0  ;;  %v10323_v30 = vadd.f32 %v12766_v33, %v19019_v31 }
0x3024   :  { %v10318_v43 = vadd.f32 %v10317_v11, %v19019_v31 }
0x3026   :  { %10380 = vxpose.xlu1.b32.cont [5/8] (short) (narrow) %v10318_v43, 32 }
0x302a   :  { %10381 = vxpose.xlu1.b32.cont [6/8] (short) (narrow) %v10323_v30, 32 }
0x302d   :  { %v12769_v51 = vpop.f32.mrb[194].mxu0 }
0x302e   :  { %v10327_v29 = vpop.f32.mrb[195].mxu0  ;;  %v10333_v10 = vadd.f32 %v12769_v51, %v19019_v31 }
0x302f   :  { %v10328_v26 = vadd.f32 %v10327_v29, %v19019_v31 }
0x3031   :  { %10382 = vxpose.xlu1.b32.cont [7/8] (short) (narrow) %v10328_v26, 32 }
0x3035   :  { %10383 = vxpose.xlu1.b32.end [8/8] (short) (narrow) %v10333_v10, 32 }
0x306f   :  { %v12772_v63 = vpop.f32.mrb[196].mxu0 }
0x3070   :  { %v10337_v12 = vpop.f32.mrb[197].mxu0  ;;  %v10343_v56 = vadd.f32 %v12772_v63, %v19019_v31 }
0x3071   :  { %v10338_v7 = vadd.f32 %v10337_v12, %v19019_v31 }
0x3073   :  { %10416 = vxpose.xlu0.b32.start [1/8] (short) (narrow) %v10338_v7, 32 }
0x3077   :  { %v12775_v55 = vpop.f32.mrb[198].mxu0  ;;  %10417 = vxpose.xlu0.b32.cont [2/8] (short) (narrow) %v10343_v56, 32 }
0x3078   :  { %v10347_v18 = vpop.f32.mrb[199].mxu0  ;;  %v10353_v25 = vadd.f32 %v12775_v55, %v19019_v31 }
0x3079   :  { %v10348_v49 = vadd.f32 %v10347_v18, %v19019_v31 }
0x307b   :  { %10418 = vxpose.xlu0.b32.cont [3/8] (short) (narrow) %v10348_v49, 32 }
0x307f   :  { %10419 = vxpose.xlu0.b32.cont [4/8] (short) (narrow) %v10353_v25, 32 }
0x3080   :  { %v12778_v52 = vpop.f32.mrb[200].mxu0 }
0x3081   :  { %v10357_v19 = vpop.f32.mrb[201].mxu0  ;;  %v10363_v37 = vadd.f32 %v12778_v52, %v19019_v31 }
0x3082   :  { %v10358_v36 = vadd.f32 %v10357_v19, %v19019_v31 }
0x3084   :  { %10420 = vxpose.xlu0.b32.cont [5/8] (short) (narrow) %v10358_v36, 32 }
0x3088   :  { %10421 = vxpose.xlu0.b32.cont [6/8] (short) (narrow) %v10363_v37, 32 }
0x3099   :  { %v10392_v24 = vpop.trf.xlu1 }
0x309a   :  { %v10408_v50 = vadd.f32 %v14593_v61, %v10392_v24 }
0x309c   :  { %10412 = vst.msk [vmem:[%s19097_s4] sm:$0xff] %vm56_vm0, %v10408_v50 }
0x309d   :  { %v10393_v9 = vpop.trf.xlu1 }
0x309e   :  { %v10409_v47 = vadd.f32 %v14594_v38, %v10393_v9 }
0x30a0   :  { %10413 = vst.msk [vmem:[%s19097_s4 + $0x8] sm:$0xff] %vm56_vm0, %v10409_v47 }
0x30a1   :  { %v10394_v42 = vpop.trf.xlu1 }
0x30a2   :  { %v10410_v23 = vadd.f32 %v14595_v6, %v10394_v42 }
0x30a3   :  { %v12781_v54 = vpop.f32.mrb[202].mxu0 }
0x30a4   :  { %10414 = vst.msk [vmem:[%s19097_s4 + $0x10] sm:$0xff] %vm56_vm0, %v10410_v23  ;;  %v10367_v53 = vpop.f32.mrb[203].mxu0  ;;  %v10373_v58 = vadd.f32 %v12781_v54, %v19019_v31 }
0x30a5   :  { %v10395_v59 = vpop.trf.xlu1  ;;  %v10368_v22 = vadd.f32 %v10367_v53, %v19019_v31 }
0x30a6   :  { %v10411_v60 = vadd.f32 %v14596_v57, %v10395_v59 }
0x30a7   :  { %10422 = vxpose.xlu0.b32.cont [7/8] (short) (narrow) %v10368_v22, 32 }
0x30a8   :  { %10415 = vst.msk [vmem:[%s19097_s4 + $0x18] sm:$0xff] %vm56_vm0, %v10411_v60 }
0x30ab   :  { %10423 = vxpose.xlu0.b32.end [8/8] (short) (narrow) %v10373_v58, 32 }
0x310f   :  { %v10432_v27 = vpop.trf.xlu0 }
0x3110   :  { %v10448_v20 = vadd.f32 %v14597_v21, %v10432_v27 }
0x3112   :  { %10970 = vst.msk [vmem:[%s19097_s4 + $0x20] sm:$0xff] %vm56_vm0, %v10448_v20 }
0x3113   :  { %v10433_v0 = vpop.trf.xlu0 }
0x3114   :  { %v10449_v48 = vadd.f32 %v14598_v4, %v10433_v0 }
0x3116   :  { %10971 = vst.msk [vmem:[%s19097_s4 + $0x28] sm:$0xff] %vm56_vm0, %v10449_v48 }
0x3117   :  { %v10434_v17 = vpop.trf.xlu0 }
0x3118   :  { %v10450_v2 = vadd.f32 %v14599_v16, %v10434_v17 }
0x311a   :  { %10972 = vst.msk [vmem:[%s19097_s4 + $0x30] sm:$0xff] %vm56_vm0, %v10450_v2 }
0x311b   :  { %v10435_v39 = vpop.trf.xlu0 }
0x311c   :  { %v10451_v45 = vadd.f32 %v14600_v34, %v10435_v39 }
0x311e   :  { %10973 = vst.msk [vmem:[%s19097_s4 + $0x38] sm:$0xff] %vm56_vm0, %v10451_v45 }

</bundles_post_ra>
